<compile_context>
chip_gen: v7x
topology: tpu7x:2x2x1
jax: 0.10.0
libtpu: 0.0.40
codegen_flags: <defaults>
</compile_context>

<pallas_src>
import math

import jax
import jax.numpy as jnp
from jax.experimental import pallas as pl
from jax.experimental.pallas import tpu as pltpu

_F32_MAX = float(jnp.finfo(jnp.float32).max)


def _make_mlm_kernel(bb):
    """Build the kernel for a static batch-block size `bb`."""

    def kernel(y_ref, wht_ref, off_ref, o_ref):
        # y_ref  : VMEM (bb, S, H)  bb batch elements, whole sequence resident
        # wht_ref: VMEM (3, H)      transposed stacked projection weights
        # off_ref: SMEM (B*3,)      per-(batch, head) performer-proj + bias offsets
        # o_ref  : VMEM (bb, 3, S)  head dim on sublanes, sequence on lanes
        g = pl.program_id(0)

        # Per-head clamp bounds + row selector, hoisted out of the batch loop.
        row = jax.lax.broadcasted_iota(jnp.int32, (3, 1), 0)
        is0 = row == 0
        is1 = row == 1
        lo = jnp.where(is1, -1000.0, 0.0)                              # vel/pos: 0, dur: -1000
        hi = jnp.where(is0, 66.0, jnp.where(is1, 1000.0, _F32_MAX))    # vel: 66, dur: 1000, pos: +max

        for j in range(bb):  # static unroll over batches in this block
            b = g * bb + j
            # (3, H) x (S, H) contracting H -> (3, S): lane-dense MXU output.
            acc = jax.lax.dot_general(
                wht_ref[...],
                y_ref[j],
                dimension_numbers=(((1,), (1,)), ((), ())),
                preferred_element_type=jnp.float32,
                precision=jax.lax.Precision.HIGHEST,
            )
            o0 = off_ref[b * 3 + 0]
            o1 = off_ref[b * 3 + 1]
            o2 = off_ref[b * 3 + 2]
            off = jnp.where(is0, o0, jnp.where(is1, o1, o2))           # (3, 1)
            # Single full-block store with per-row clamps.
            o_ref[j] = jnp.clip(acc + off, lo, hi)

    return kernel


def _default_batch_block(B):
    """v7x has 2 TensorCores/chip -> keep >=2 parallel grid steps; single-TC
    v5e/v6e -> merge all batches into one step to amortize per-step overhead."""
    try:
        kind = jax.devices()[0].device_kind.lower()
    except Exception:  # pragma: no cover - defensive
        kind = ""
    if "v7" in kind and B > 1:
        return 1
    return B


def mlm_forward(y_hidden, performer, params, *, batch_block=None, return_packed=False):
    """y_hidden: (B, S, H), performer: (B,) int32.  Returns [y0, y1, y2] each (B, S, 1)
    (or the packed (B, 3, S) array if return_packed=True)."""
    B, S, H = y_hidden.shape
    d_model = 128

    # --- glue (plain JAX): stack the 3 heads, hoist the batch-constant part ---
    # torch Linear weight is (out=1, in=H+128); stacked -> (3, H+128)
    W = jnp.stack([params["proj_w"][i][0] for i in range(3)], axis=0)        # (3, H+128)
    W_h_t = W[:, :H]                                                          # (3, H)
    W_p_t = W[:, H:]                                                          # (3, 128)
    bias = jnp.stack([params["proj_b"][i][0] for i in range(3)])              # (3,)

    # Performer table: (6, 3) = (emb @ W_p^T) * sqrt(128) + bias; gather -> (B*3,)
    table = (
        jnp.dot(params["emb"], W_p_t.T, precision=jax.lax.Precision.HIGHEST)
        * math.sqrt(d_model)
        + bias[None, :]
    )                                                                         # (6, 3)
    off = table[performer].reshape(-1).astype(jnp.float32)                    # (B*3,) -> SMEM

    if batch_block is None:
        batch_block = _default_batch_block(B)
    bb = int(batch_block)
    assert B % bb == 0, "batch_block must divide the batch size"
    grid = (B // bb,)

    flops = 2 * 3 * H * S * B
    bytes_accessed = 4 * (B * S * H + 3 * B * S + 3 * H + 3 * B)

    out = pl.pallas_call(
        _make_mlm_kernel(bb),
        out_shape=jax.ShapeDtypeStruct((B, 3, S), jnp.float32),
        grid_spec=pltpu.PrefetchScalarGridSpec(
            num_scalar_prefetch=0,
            grid=grid,
            in_specs=[
                # Whole-sequence block; see VMEM guard note in the header.
                pl.BlockSpec((bb, S, H), lambda g: (g, 0, 0)),
                pl.BlockSpec((3, H), lambda g: (0, 0)),
                # Tiny offset table lives in SMEM -> out of the VMEM pipeline.
                pl.BlockSpec(memory_space=pltpu.MemorySpace.SMEM),
            ],
            out_specs=pl.BlockSpec((bb, 3, S), lambda g: (g, 0, 0)),
        ),
        compiler_params=pltpu.CompilerParams(
            dimension_semantics=("parallel",),
        ),
        cost_estimate=pl.CostEstimate(
            flops=flops, transcendentals=0, bytes_accessed=bytes_accessed
        ),
    )(y_hidden, W_h_t, off)

    if return_packed:
        return out  # (B, 3, S): consumers can avoid the strided head slices below.
    # Slice along the head axis; reshape to PyTorch's (B, S, 1) per head.
    return [out[:, i, :, None] for i in range(3)]


def init_params(key, hidden_size):
    d_in = hidden_size + 128
    k_emb, k_w, k_b = jax.random.split(key, 3)
    bound = 1.0 / math.sqrt(d_in)
    params = {
        "emb": jax.random.normal(k_emb, (6, 128), jnp.float32),
        "proj_w": [
            jax.random.uniform(jax.random.fold_in(k_w, i), (1, d_in), jnp.float32,
                               minval=-bound, maxval=bound)
            for i in range(3)
        ],
        "proj_b": [
            jax.random.uniform(jax.random.fold_in(k_b, i), (1,), jnp.float32,
                               minval=-bound, maxval=bound)
            for i in range(3)
        ],
    }
    return params


if __name__ == "__main__":
    hidden_size = 32
    B, S = 2, 1000   # forward hardcodes repeat_interleave(..., 1000, dim=1) -> seq = 1000

    key = jax.random.PRNGKey(0)
    k_y, k_p, k_params = jax.random.split(key, 3)

    y_hidden = jax.random.normal(k_y, (B, S, hidden_size), jnp.float32)
    performer = jax.random.randint(k_p, (B,), 0, 6, jnp.int32)
    params = init_params(k_params, hidden_size)

    outs = jax.block_until_ready(mlm_forward(y_hidden, performer, params))

    # reference check in plain JAX
    y_p = params["emb"][performer] * math.sqrt(128.0)
    y_cat = jnp.concatenate(
        [y_hidden, jnp.broadcast_to(y_p[:, None, :], (B, S, 128))], axis=-1)
    refs = []
    for i in range(3):
        r = jnp.dot(y_cat, params["proj_w"][i][0],
                    precision=jax.lax.Precision.HIGHEST)[..., None]
        r = r + params["proj_b"][i][0]
        if i == 0:
            r = jnp.clip(r, 0.0, 66.0)
        elif i == 1:
            r = jnp.clip(r, -1000.0, 1000.0)
        else:
            r = jnp.maximum(r, 0.0)
        refs.append(r)

    for o, r in zip(outs, refs):
        assert o.shape == (B, S, 1)
        assert jnp.allclose(o, r, atol=1e-4, rtol=1e-4)

    print("KERNEL_OK")
</pallas_src>

<mosaic_0001>
module attributes {stable_mosaic.version = 11 : i64} {
  func.func @kernel(%arg0: i32, %arg1: memref<2x1000x32xf32, #tpu.memory_space<vmem>>, %arg2: memref<3x32xf32, #tpu.memory_space<vmem>>, %arg3: memref<6xf32, #tpu.memory_space<smem>>, %arg4: memref<2x3x1000xf32, #tpu.memory_space<vmem>>) attributes {dimension_semantics = [#tpu.dimension_semantics<parallel>], iteration_bounds = array<i64: 1>, scalar_prefetch = 0 : i64, scratch_operands = 0 : i64, tpu.core_type = #tpu.core_type<tc>, window_params = [{transform_indices = @transform_0, window_bounds = array<i64: 2, 1000, 32>}, {pipeline_mode = #tpu.pipeline_mode<synchronous>, transform_indices = @transform_1, window_bounds = array<i64: 3, 32>}, {transform_indices = @transform_2, window_bounds = array<i64: 6>}, {transform_indices = @transform_3, window_bounds = array<i64: 2, 3, 1000>}]} {
    %0 = tpu.iota {dimensions = array<i32: 0>} : vector<3x1xi32>
    %c0_i32 = arith.constant 0 : i32
    %1 = vector.broadcast %c0_i32 : i32 to vector<3x1xi32>
    %2 = arith.cmpi eq, %0, %1 : vector<3x1xi32>
    %c1_i32 = arith.constant 1 : i32
    %3 = vector.broadcast %c1_i32 : i32 to vector<3x1xi32>
    %4 = arith.cmpi eq, %0, %3 : vector<3x1xi32>
    %cst = arith.constant -1.000000e+03 : f32
    %cst_0 = arith.constant 0.000000e+00 : f32
    %5 = vector.broadcast %cst : f32 to vector<3x1xf32>
    %6 = vector.broadcast %cst_0 : f32 to vector<3x1xf32>
    %7 = arith.select %4, %5, %6 : vector<3x1xi1>, vector<3x1xf32>
    %cst_1 = arith.constant 1.000000e+03 : f32
    %cst_2 = arith.constant 3.40282347E+38 : f32
    %8 = vector.broadcast %cst_1 : f32 to vector<3x1xf32>
    %9 = vector.broadcast %cst_2 : f32 to vector<3x1xf32>
    %10 = arith.select %4, %8, %9 : vector<3x1xi1>, vector<3x1xf32>
    %cst_3 = arith.constant 6.600000e+01 : f32
    %11 = vector.broadcast %cst_3 : f32 to vector<3x1xf32>
    %12 = arith.select %2, %11, %10 : vector<3x1xi1>, vector<3x1xf32>
    %c2_i32 = arith.constant 2 : i32
    %13 = arith.muli %arg0, %c2_i32 : i32
    %c0_i32_4 = arith.constant 0 : i32
    %14 = arith.addi %13, %c0_i32_4 : i32
    %c0 = arith.constant 0 : index
    %c0_5 = arith.constant 0 : index
    %15 = vector.load %arg2[%c0, %c0_5] : memref<3x32xf32, #tpu.memory_space<vmem>>, vector<3x32xf32>
    %c0_6 = arith.constant 0 : index
    %c0_7 = arith.constant 0 : index
    %c0_8 = arith.constant 0 : index
    %16 = vector.load %arg1[%c0_6, %c0_7, %c0_8] : memref<2x1000x32xf32, #tpu.memory_space<vmem>>, vector<1x1000x32xf32>
    %17 = vector.shape_cast %16 : vector<1x1000x32xf32> to vector<1000x32xf32>
    %cst_9 = arith.constant dense<0.000000e+00> : vector<3x1000xf32>
    %18 = tpu.matmul %15, %17, %cst_9 {dimension_numbers = #tpu.dot_dimension_numbers<[1], [1], [0], [0], [0, 0, 1, 0], [], []>, precision = #tpu.contract_precision<fp32>} : vector<3x32xf32>, vector<1000x32xf32>, vector<3x1000xf32> -> vector<3x1000xf32>
    %c3_i32 = arith.constant 3 : i32
    %19 = arith.muli %14, %c3_i32 : i32
    %c0_i32_10 = arith.constant 0 : i32
    %20 = arith.addi %19, %c0_i32_10 : i32
    %21 = arith.index_cast %20 : i32 to index
    %22 = memref.load %arg3[%21] : memref<6xf32, #tpu.memory_space<smem>>
    %c3_i32_11 = arith.constant 3 : i32
    %23 = arith.muli %14, %c3_i32_11 : i32
    %c1_i32_12 = arith.constant 1 : i32
    %24 = arith.addi %23, %c1_i32_12 : i32
    %25 = arith.index_cast %24 : i32 to index
    %26 = memref.load %arg3[%25] : memref<6xf32, #tpu.memory_space<smem>>
    %c3_i32_13 = arith.constant 3 : i32
    %27 = arith.muli %14, %c3_i32_13 : i32
    %c2_i32_14 = arith.constant 2 : i32
    %28 = arith.addi %27, %c2_i32_14 : i32
    %29 = arith.index_cast %28 : i32 to index
    %30 = memref.load %arg3[%29] : memref<6xf32, #tpu.memory_space<smem>>
    %31 = vector.broadcast %26 : f32 to vector<3x1xf32>
    %32 = vector.broadcast %30 : f32 to vector<3x1xf32>
    %33 = arith.select %4, %31, %32 : vector<3x1xi1>, vector<3x1xf32>
    %34 = vector.broadcast %22 : f32 to vector<3x1xf32>
    %35 = arith.select %2, %34, %33 : vector<3x1xi1>, vector<3x1xf32>
    %36 = vector.broadcast %35 : vector<3x1xf32> to vector<3x1000xf32>
    %37 = arith.addf %18, %36 : vector<3x1000xf32>
    %38 = vector.broadcast %7 : vector<3x1xf32> to vector<3x1000xf32>
    %39 = arith.maximumf %38, %37 : vector<3x1000xf32>
    %40 = vector.broadcast %12 : vector<3x1xf32> to vector<3x1000xf32>
    %41 = arith.minimumf %40, %39 : vector<3x1000xf32>
    %c0_15 = arith.constant 0 : index
    %c0_16 = arith.constant 0 : index
    %c0_17 = arith.constant 0 : index
    %42 = vector.load %arg4[%c0_15, %c0_16, %c0_17] : memref<2x3x1000xf32, #tpu.memory_space<vmem>>, vector<1x3x1000xf32>
    %43 = vector.shape_cast %42 : vector<1x3x1000xf32> to vector<3x1000xf32>
    %44 = vector.shape_cast %41 : vector<3x1000xf32> to vector<1x3x1000xf32>
    tpu.vector_store %arg4[%c0_15, %c0_16, %c0_17], %44 {strides = array<i32>} : memref<2x3x1000xf32, #tpu.memory_space<vmem>>, vector<1x3x1000xf32>,
    %c2_i32_18 = arith.constant 2 : i32
    %45 = arith.muli %arg0, %c2_i32_18 : i32
    %c1_i32_19 = arith.constant 1 : i32
    %46 = arith.addi %45, %c1_i32_19 : i32
    %c0_20 = arith.constant 0 : index
    %c0_21 = arith.constant 0 : index
    %47 = vector.load %arg2[%c0_20, %c0_21] : memref<3x32xf32, #tpu.memory_space<vmem>>, vector<3x32xf32>
    %c1 = arith.constant 1 : index
    %c0_22 = arith.constant 0 : index
    %c0_23 = arith.constant 0 : index
    %48 = vector.load %arg1[%c1, %c0_22, %c0_23] : memref<2x1000x32xf32, #tpu.memory_space<vmem>>, vector<1x1000x32xf32>
    %49 = vector.shape_cast %48 : vector<1x1000x32xf32> to vector<1000x32xf32>
    %cst_24 = arith.constant dense<0.000000e+00> : vector<3x1000xf32>
    %50 = tpu.matmul %47, %49, %cst_24 {dimension_numbers = #tpu.dot_dimension_numbers<[1], [1], [0], [0], [0, 0, 1, 0], [], []>, precision = #tpu.contract_precision<fp32>} : vector<3x32xf32>, vector<1000x32xf32>, vector<3x1000xf32> -> vector<3x1000xf32>
    %c3_i32_25 = arith.constant 3 : i32
    %51 = arith.muli %46, %c3_i32_25 : i32
    %c0_i32_26 = arith.constant 0 : i32
    %52 = arith.addi %51, %c0_i32_26 : i32
    %53 = arith.index_cast %52 : i32 to index
    %54 = memref.load %arg3[%53] : memref<6xf32, #tpu.memory_space<smem>>
    %c3_i32_27 = arith.constant 3 : i32
    %55 = arith.muli %46, %c3_i32_27 : i32
    %c1_i32_28 = arith.constant 1 : i32
    %56 = arith.addi %55, %c1_i32_28 : i32
    %57 = arith.index_cast %56 : i32 to index
    %58 = memref.load %arg3[%57] : memref<6xf32, #tpu.memory_space<smem>>
    %c3_i32_29 = arith.constant 3 : i32
    %59 = arith.muli %46, %c3_i32_29 : i32
    %c2_i32_30 = arith.constant 2 : i32
    %60 = arith.addi %59, %c2_i32_30 : i32
    %61 = arith.index_cast %60 : i32 to index
    %62 = memref.load %arg3[%61] : memref<6xf32, #tpu.memory_space<smem>>
    %63 = vector.broadcast %58 : f32 to vector<3x1xf32>
    %64 = vector.broadcast %62 : f32 to vector<3x1xf32>
    %65 = arith.select %4, %63, %64 : vector<3x1xi1>, vector<3x1xf32>
    %66 = vector.broadcast %54 : f32 to vector<3x1xf32>
    %67 = arith.select %2, %66, %65 : vector<3x1xi1>, vector<3x1xf32>
    %68 = vector.broadcast %67 : vector<3x1xf32> to vector<3x1000xf32>
    %69 = arith.addf %50, %68 : vector<3x1000xf32>
    %70 = vector.broadcast %7 : vector<3x1xf32> to vector<3x1000xf32>
    %71 = arith.maximumf %70, %69 : vector<3x1000xf32>
    %72 = vector.broadcast %12 : vector<3x1xf32> to vector<3x1000xf32>
    %73 = arith.minimumf %72, %71 : vector<3x1000xf32>
    %c1_31 = arith.constant 1 : index
    %c0_32 = arith.constant 0 : index
    %c0_33 = arith.constant 0 : index
    %74 = vector.load %arg4[%c1_31, %c0_32, %c0_33] : memref<2x3x1000xf32, #tpu.memory_space<vmem>>, vector<1x3x1000xf32>
    %75 = vector.shape_cast %74 : vector<1x3x1000xf32> to vector<3x1000xf32>
    %76 = vector.shape_cast %73 : vector<3x1000xf32> to vector<1x3x1000xf32>
    tpu.vector_store %arg4[%c1_31, %c0_32, %c0_33], %76 {strides = array<i32>} : memref<2x3x1000xf32, #tpu.memory_space<vmem>>, vector<1x3x1000xf32>,
    return
  }
  func.func @transform_0(%arg0: i32) -> (i32, i32, i32) {
    %c0_i32 = arith.constant 0 : i32
    %c0_i32_0 = arith.constant 0 : i32
    %c0_i32_1 = arith.constant 0 : i32
    return %arg0, %c0_i32, %c0_i32_0 : i32, i32, i32
  }
  func.func @transform_1(%arg0: i32) -> (i32, i32) {
    %c0_i32 = arith.constant 0 : i32
    %c0_i32_0 = arith.constant 0 : i32
    %c0_i32_1 = arith.constant 0 : i32
    return %c0_i32, %c0_i32_0 : i32, i32
  }
  func.func @transform_2(%arg0: i32) -> i32 {
    %c0_i32 = arith.constant 0 : i32
    %c0_i32_0 = arith.constant 0 : i32
    return %c0_i32 : i32
  }
  func.func @transform_3(%arg0: i32) -> (i32, i32, i32) {
    %c0_i32 = arith.constant 0 : i32
    %c0_i32_0 = arith.constant 0 : i32
    %c0_i32_1 = arith.constant 0 : i32
    return %arg0, %c0_i32, %c0_i32_0 : i32, i32, i32
  }
}

</mosaic_0001>

<bundles_post_ra>
// kernel: tpu_custom_call.1
= control target key start
LH: loop header
LB: loop body
LE: loop exit
PB: predicated region body
PF: predicated region fallthrough
CT: control target
= control target key end

     0   :  { %8 = vsyncpa [#allocation3], 0  ;;  %s17173_s0 = inlined_call_operand.vmem [shape: f32[2,1000,32], index: 0, kind: input, shape index: {}]   ;;  %s17174_s1 = inlined_call_operand.vmem [shape: f32[3,32], index: 1, kind: input, shape index: {}]   ;;  %s17175_s2 = inlined_call_operand.vmem [shape: f32[6], index: 2, kind: input, shape index: {}]   ;;  %s17176_s3 = inlined_call_operand.vmem [shape: f32[2,3,1000], index: 3, kind: output, shape index: {}]  }
   0x1   :  { %s19_s14 = sshll.u32 %s17175_s2, 4  ;;  %s20_s14 = int_to_ptr.vmem [resolvable:$true] %s19_s14 }
   0x2   :  { %s11025_s15 = scalar_lea.vmem %s20_s14, 16  ;;  %p11030_p1 = scmp.lt.s32.totalorder %s20_s14, %s20_s14 }
   0x3   :  { %p11026_p0 = scmp.ne.s32.totalorder %s20_s14, %s11025_s15  ;;  %p11031_p2 = scmp.lt.s32.totalorder %s11025_s15, %s11025_s15 }
   0x5   :  { %p11032_p3 = por %p11031_p2, %p11030_p1 }
   0x7   :  { %p11033_p4 = pnand %p11032_p3, %p11026_p0 }
   0x9   :  { %11036 = shalt.err (!%p11033_p4)
}
   0xa   :  { %s11039_s16 = smov [#allocation2]  }
   0xb   :  { %22 = dma.vmem_to_smem %s20_s14, 16, %s11039_s16, [#allocation3]  }
   0xc   :  { %11037 = dma.done.wait [#allocation3], 16  }
   0xd   :  { %11038 = vsyncadd [#allocation3], 4294967280 }
   0xe   :  { %26 = sfence }
   0xf   :  { %v51_v0 = vld [vmem:[%s17173_s0 + $0x80] sm:$0xff]  ;;  %v52_v1 = vld [vmem:[%s17173_s0 + $0x88] sm:$0xff]  ;;  %vm171_vm0 = vcmask 261120   ;;  %v53_v7 = vld [vmem:[%s17173_s0 + $0x90] sm:$0xff]  ;;  %s7911_s17 = sld [smem:[#allocation2 + $0x1]]  ;;  %s7912_s18 = sld [smem:[#allocation2 + $0x2]] }
  0x10   :  { %v35_v2 = vld [vmem:[%s17173_s0] sm:$0xff]  ;;  %v224_v3 = vsel %vm171_vm0, %v51_v0, 0  ;;  %v227_v4 = vsel %vm171_vm0, %v52_v1, 0  ;;  %v36_v5 = vld [vmem:[%s17173_s0 + $0x8] sm:$0xff]  ;;  %v54_v8 = vld [vmem:[%s17173_s0 + $0x98] sm:$0xff]  ;;  %v230_v16 = vsel %vm171_vm0, %v53_v7, 0 }
  0x11   :  { %v176_v6 = vsel %vm171_vm0, %v35_v2, 0  ;;  %v599_v9 = vand.u32 4294901760, %v224_v3  ;;  %v602_v10 = vand.u32 4294901760, %v227_v4  ;;  %v179_v11 = vsel %vm171_vm0, %v36_v5, 0  ;;  %v83_v13 = vld [vmem:[%s17173_s0 + $0x180] sm:$0xff]  ;;  %v84_v14 = vld [vmem:[%s17173_s0 + $0x188] sm:$0xff] }
  0x12   :  { %v551_v12 = vand.u32 4294901760, %v176_v6  ;;  %v554_v15 = vand.u32 4294901760, %v179_v11  ;;  %v233_v17 = vsel %vm171_vm0, %v54_v8, 0  ;;  %v11097_v18 = vsel %vm171_vm0, %v83_v13, 0  ;;  %v37_v19 = vld [vmem:[%s17173_s0 + $0x10] sm:$0xff]  ;;  %v38_v20 = vld [vmem:[%s17173_s0 + $0x18] sm:$0xff] }
  0x13   :  { %18032 = vst [vmem:[#allocation5_spill] sm:$0xff] %v11097_v18  ;;  %v11105_v21 = vpack.c.bf16 %v602_v10, %v599_v9  ;;  %v11107_v22 = vsub.f32 %v224_v3, %v599_v9  ;;  %v11109_v23 = vsub.f32 %v227_v4, %v602_v10  ;;  %v605_v27 = vand.u32 4294901760, %v230_v16  ;;  %v67_v29 = vld [vmem:[%s17173_s0 + $0x100] sm:$0xff]  ;;  %v68_v34 = vld [vmem:[%s17173_s0 + $0x108] sm:$0xff]  ;;  %v85_v49 = vld [vmem:[%s17173_s0 + $0x190] sm:$0xff]  ;;  %s161_s19 = sld [smem:[#allocation2]] }
  0x14   :  { %v11111_v24 = vsub.f32 %v176_v6, %v551_v12  ;;  %v11113_v25 = vpack.c.bf16 %v554_v15, %v551_v12  ;;  %v11115_v26 = vsub.f32 %v179_v11, %v554_v15  ;;  %v608_v28 = vand.u32 4294901760, %v233_v17  ;;  %v55_v35 = vld [vmem:[%s17173_s0 + $0xa0] sm:$0xff]  ;;  %v56_v44 = vld [vmem:[%s17173_s0 + $0xa8] sm:$0xff]  ;;  %v86_v54 = vld [vmem:[%s17173_s0 + $0x198] sm:$0xff]  ;;  %s8039_s13 = sld [smem:[#allocation2 + $0x4]]  ;;  %s8040_s14 = sld [smem:[#allocation2 + $0x5]] }
  0x15   :  { %18033 = vst [vmem:[#allocation6_spill] sm:$0xff] %v11105_v21  ;;  %18034 = vst [vmem:[#allocation7_spill] sm:$0xff] %v11107_v22  ;;  %9270 = vmatprep.subr.bf16.mxu0 %v11105_v21  ;;  %v11122_v30 = vsel %vm171_vm0, %v84_v14, 0  ;;  %v17198_v31 = vand.u32 4294901760, %v11097_v18  ;;  %v182_v32 = vsel %vm171_vm0, %v37_v19, 0  ;;  %v185_v33 = vsel %vm171_vm0, %v38_v20, 0 }
  0x16   :  { %18035 = vst [vmem:[#allocation8_spill] sm:$0xff] %v11109_v23  ;;  %18036 = vst [vmem:[#allocation9_spill] sm:$0xff] %v11113_v25  ;;  %9272 = vmatpush3.bf16.xpose.msra.mxu0 %v11113_v25  ;;  %v11134_v36 = vpack.c.bf16 %v608_v28, %v605_v27  ;;  %v11136_v37 = vsub.f32 %v230_v16, %v605_v27  ;;  %v11138_v38 = vsub.f32 %v233_v17, %v608_v28  ;;  %v39_v3 = vld [vmem:[%s17173_s0 + $0x20] sm:$0xff]  ;;  %v40_v4 = vld [vmem:[%s17173_s0 + $0x28] sm:$0xff]  ;;  %vm3966_vm3 = vcmask 1042432   ;;  %s8038_s15 = sld [smem:[#allocation2 + $0x3]] }
  0x17   :  { %18037 = vst [vmem:[#allocation10_spill] sm:$0xff] %v11115_v26  ;;  %18038 = vst [vmem:[#allocation11_spill] sm:$0xff] %v11122_v30  ;;  %v17197_v39 = vand.u32 4294901760, %v11122_v30  ;;  %v11144_v40 = vsub.f32 %v11097_v18, %v17198_v31  ;;  %v557_v41 = vand.u32 4294901760, %v182_v32  ;;  %v560_v42 = vand.u32 4294901760, %v185_v33  ;;  %v69_v5 = vld [vmem:[%s17173_s0 + $0x110] sm:$0xff] }
  0x18   :  { %18039 = vst [vmem:[#allocation12_spill] sm:$0xff] %v11134_v36  ;;  %18040 = vst [vmem:[#allocation13_spill] sm:$0xff] %v11136_v37  ;;  %v11147_v43 = vsel %vm171_vm0, %v67_v29, 0  ;;  %9274 = vmatprep.subr.bf16.mxu0 %v11134_v36  ;;  %v11159_v46 = vsel %vm171_vm0, %v68_v34, 0  ;;  %v236_v48 = vsel %vm171_vm0, %v55_v35, 0  ;;  %v239_v58 = vsel %vm171_vm0, %v56_v44, 0 }
  0x19   :  { %18041 = vst [vmem:[#allocation14_spill] sm:$0xff] %v11138_v38  ;;  %18042 = vst [vmem:[#allocation15_spill] sm:$0xff] %v11144_v40  ;;  %v11156_v45 = vsub.f32 %v11122_v30, %v17197_v39  ;;  %v17193_v47 = vand.u32 4294901760, %v11147_v43  ;;  %v17184_v50 = vand.u32 4294901760, %v11144_v40  ;;  %v11167_v51 = vpack.c.bf16 %v560_v42, %v557_v41  ;;  %v70_v14 = vld [vmem:[%s17173_s0 + $0x118] sm:$0xff]  ;;  %v91_v21 = vld [vmem:[%s17173_s0 + $0x1c0] sm:$0xff] }
  0x1a   :  { %18043 = vst [vmem:[#allocation16_spill] sm:$0xff] %v11147_v43  ;;  %18045 = vst [vmem:[#allocation18_spill] sm:$0xff] %v11159_v46  ;;  %v11169_v52 = vsub.f32 %v182_v32, %v557_v41  ;;  %v11171_v53 = vsub.f32 %v185_v33, %v560_v42  ;;  %v17192_v56 = vand.u32 4294901760, %v11159_v46  ;;  %v611_v60 = vand.u32 4294901760, %v236_v48  ;;  %v57_v41 = vld [vmem:[%s17173_s0 + $0xb0] sm:$0xff]  ;;  %v74_v31 = vld [vmem:[%s17173_s0 + $0x138] sm:$0xff] }
  0x1b   :  { %18044 = vst [vmem:[#allocation17_spill] sm:$0xff] %v11156_v45  ;;  %18046 = vst [vmem:[#allocation19_spill] sm:$0xff] %v11167_v51  ;;  %v17183_v55 = vand.u32 4294901760, %v11156_v45  ;;  %v11181_v57 = vsub.f32 %v11147_v43, %v17193_v47  ;;  %v1629_v59 = vsub.f32 %v11144_v40, %v17184_v50  ;;  %v614_v61 = vand.u32 4294901760, %v239_v58 }
  0x1c   :  { %v11188_v62 = vsel %vm171_vm0, %v85_v49, 0  ;;  %v11197_v1 = vsub.f32 %v11159_v46, %v17192_v56  ;;  %v11200_v2 = vsel %vm171_vm0, %v86_v54, 0  ;;  %v11213_v8 = vsub.f32 %v236_v48, %v611_v60  ;;  %v58_v54 = vld [vmem:[%s17173_s0 + $0xb8] sm:$0xff] }
  0x1d   :  { %18047 = vst [vmem:[#allocation20_spill] sm:$0xff] %v11181_v57  ;;  %18048 = vst [vmem:[#allocation21_spill] sm:$0xff] %v11188_v62  ;;  %v1636_v63 = vsub.f32 %v11156_v45, %v17183_v55  ;;  %v17180_v0 = vand.u32 4294901760, %v11181_v57  ;;  %v1630_v6 = vand.u32 4294901760, %v1629_v59  ;;  %v11211_v7 = vpack.c.bf16 %v614_v61, %v611_v60 }
  0x1e   :  { %18049 = vst [vmem:[#allocation22_spill] sm:$0xff] %v11197_v1  ;;  %18050 = vst [vmem:[#allocation23_spill] sm:$0xff] %v11200_v2  ;;  %v11215_v9 = vsub.f32 %v239_v58, %v614_v61  ;;  %9276 = vmatpush3.bf16.xpose.msra.mxu0 %v11167_v51  ;;  %v17179_v12 = vand.u32 4294901760, %v11197_v1  ;;  %v17190_v13 = vand.u32 4294901760, %v11188_v62  ;;  %v17189_v15 = vand.u32 4294901760, %v11200_v2  ;;  %v87_v58 = vld [vmem:[%s17173_s0 + $0x1a0] sm:$0xff] }
  0x1f   :  { %18051 = vst [vmem:[#allocation24_spill] sm:$0xff] %v11211_v7  ;;  %v1637_v10 = vand.u32 4294901760, %v1636_v63  ;;  %v1517_v11 = vsub.f32 %v11181_v57, %v17180_v0  ;;  %9278 = vmatprep.subr.bf16.mxu0 %v11211_v7  ;;  %v188_v16 = vsel %vm171_vm0, %v39_v3, 0  ;;  %v191_v17 = vsel %vm171_vm0, %v40_v4, 0 }
  0x20   :  { %18052 = vst [vmem:[#allocation25_spill] sm:$0xff] %v11215_v9  ;;  %v11231_v19 = vsel %vm171_vm0, %v69_v5, 0  ;;  %v1524_v28 = vsub.f32 %v11197_v1, %v17179_v12  ;;  %v11239_v29 = vsub.f32 %v11188_v62, %v17190_v13  ;;  %v11244_v32 = vsub.f32 %v11200_v2, %v17189_v15 }
  0x21   :  { %18053 = vst [vmem:[#allocation26_spill] sm:$0xff] %v11231_v19  ;;  %v9493_v20 = vpack.c.bf16 %v1637_v10, %v1630_v6  ;;  %v1518_v27 = vand.u32 4294901760, %v1517_v11  ;;  %v563_v33 = vand.u32 4294901760, %v188_v16  ;;  %v566_v34 = vand.u32 4294901760, %v191_v17  ;;  %v88_v10 = vld [vmem:[%s17173_s0 + $0x1a8] sm:$0xff] }
  0x22   :  { %18054 = vst [vmem:[#allocation27_spill] sm:$0xff] %v11239_v29  ;;  %18055 = vst [vmem:[#allocation28_spill] sm:$0xff] %v11244_v32  ;;  %v11247_v35 = vsel %vm171_vm0, %v70_v14, 0  ;;  %v1525_v42 = vand.u32 4294901760, %v1524_v28  ;;  %v17178_v44 = vand.u32 4294901760, %v11239_v29  ;;  %v17188_v48 = vand.u32 4294901760, %v11231_v19 }
  0x23   :  { %18056 = vst [vmem:[#allocation29_spill] sm:$0xff] %v11247_v35  ;;  %9494 = vmatprep.subr.bf16.mxu1 %v9493_v20  ;;  %v17185_v49 = vand.u32 4294901760, %v11247_v35  ;;  %v17177_v59 = vand.u32 4294901760, %v11244_v32  ;;  %v11262_v60 = vpack.c.bf16 %v566_v34, %v563_v33  ;;  %v11264_v61 = vsub.f32 %v188_v16, %v563_v33 }
  0x24   :  { %v11266_v63 = vsub.f32 %v191_v17, %v566_v34  ;;  %v9495_v3 = vpack.c.bf16 %v1525_v42, %v1518_v27  ;;  %v1643_v4 = vsub.f32 %v11239_v29, %v17178_v44  ;;  %v11274_v5 = vsub.f32 %v11231_v19, %v17188_v48  ;;  %v71_v44 = vld [vmem:[%s17173_s0 + $0x120] sm:$0xff] }
  0x25   :  { %18057 = vst [vmem:[#allocation30_spill] sm:$0xff] %v11262_v60  ;;  %18058 = vst [vmem:[#allocation31_spill] sm:$0xff] %v11264_v61  ;;  %v11279_v6 = vsub.f32 %v11247_v35, %v17185_v49  ;;  %v1650_v11 = vsub.f32 %v11244_v32, %v17177_v59  ;;  %v242_v14 = vsel %vm171_vm0, %v57_v41, 0  ;;  %v245_v16 = vsel %vm171_vm0, %v58_v54, 0  ;;  %v41_v54 = vld [vmem:[%s17173_s0 + $0x30] sm:$0xff] }
  0x26   :  { %18059 = vst [vmem:[#allocation32_spill] sm:$0xff] %v11266_v63  ;;  %18060 = vst [vmem:[#allocation33_spill] sm:$0xff] %v11274_v5  ;;  %v11290_v17 = vsel %vm171_vm0, %v87_v58, 0  ;;  %9496 = vmatpush3.bf16.xpose.msra.mxu1 %v9495_v3  ;;  %v1644_v20 = vand.u32 4294901760, %v1643_v4  ;;  %9280 = vmatpush3.bf16.xpose.msra.mxu0 %v11262_v60  ;;  %v17181_v27 = vand.u32 4294901760, %v11274_v5  ;;  %v617_v33 = vand.u32 4294901760, %v242_v14 }
  0x27   :  { %18061 = vst [vmem:[#allocation34_spill] sm:$0xff] %v11279_v6  ;;  %18062 = vst [vmem:[#allocation35_spill] sm:$0xff] %v11290_v17  ;;  %v17182_v28 = vand.u32 4294901760, %v11279_v6  ;;  %v1651_v34 = vand.u32 4294901760, %v1650_v11  ;;  %v620_v42 = vand.u32 4294901760, %v245_v16  ;;  %v11296_v59 = vsel %vm171_vm0, %v88_v10, 0 }
  0x28   :  { %18063 = vst [vmem:[#allocation36_spill] sm:$0xff] %v11296_v59  ;;  %v17187_v41 = vand.u32 4294901760, %v11290_v17  ;;  %v1531_v58 = vsub.f32 %v11274_v5, %v17181_v27  ;;  %v11308_v4 = vsub.f32 %v242_v14, %v617_v33  ;;  %v17186_v11 = vand.u32 4294901760, %v11296_v59  ;;  %v42_v10 = vld [vmem:[%s17173_s0 + $0x38] sm:$0xff] }
  0x29   :  { %v1538_v3 = vsub.f32 %v11279_v6, %v17182_v28  ;;  %v9497_v12 = vpack.c.bf16 %v1651_v34, %v1644_v20  ;;  %v11317_v0 = vpack.c.bf16 %v620_v42, %v617_v33  ;;  %v11319_v27 = vsub.f32 %v245_v16, %v620_v42  ;;  %v72_v28 = vld [vmem:[%s17173_s0 + $0x128] sm:$0xff] }
  0x2a   :  { %18064 = vst [vmem:[#allocation37_spill] sm:$0xff] %v11308_v4  ;;  %v11324_v14 = vsub.f32 %v11290_v17, %v17187_v41  ;;  %v1532_v55 = vand.u32 4294901760, %v1531_v58  ;;  %v11332_v49 = vsub.f32 %v11296_v59, %v17186_v11  ;;  %v194_v20 = vsel %vm171_vm0, %v41_v54, 0  ;;  %v59_v58 = vld [vmem:[%s17173_s0 + $0xc0] sm:$0xff]  ;;  %v60_v54 = vld [vmem:[%s17173_s0 + $0xc8] sm:$0xff] }
  0x2b   :  { %18065 = vst [vmem:[#allocation38_spill] sm:$0xff] %v11317_v0  ;;  %18066 = vst [vmem:[#allocation39_spill] sm:$0xff] %v11319_v27  ;;  %v1539_v50 = vand.u32 4294901760, %v1538_v3  ;;  %9498 = vmatprep.subr.bf16.mxu1 %v9497_v12  ;;  %9282 = vmatprep.subr.bf16.mxu0 %v11317_v0  ;;  %v197_v33 = vsel %vm171_vm0, %v42_v10, 0  ;;  %v569_v34 = vand.u32 4294901760, %v194_v20  ;;  %v11339_v42 = vsel %vm171_vm0, %v71_v44, 0 }
  0x2c   :  { %18067 = vst [vmem:[#allocation40_spill] sm:$0xff] %v11332_v49  ;;  %v17191_v16 = vand.u32 4294901760, %v11324_v14  ;;  %18068 = vst [vmem:[#allocation41_spill] sm:$0xff] %v11339_v42  ;;  %v17194_v11 = vand.u32 4294901760, %v11332_v49  ;;  %v572_v41 = vand.u32 4294901760, %v197_v33  ;;  %v11346_v12 = vsel %vm171_vm0, %v72_v28, 0 }
  0x2d   :  { %v9499_v3 = vpack.c.bf16 %v1539_v50, %v1532_v55  ;;  %18069 = vst [vmem:[#allocation42_spill] sm:$0xff] %v11346_v12  ;;  %v11354_v10 = vsub.f32 %v194_v20, %v569_v34  ;;  %v17195_v48 = vand.u32 4294901760, %v11339_v42  ;;  %v17196_v50 = vand.u32 4294901760, %v11346_v12  ;;  %v89_v55 = vld [vmem:[%s17173_s0 + $0x1b0] sm:$0xff] }
  0x2e   :  { %v1657_v44 = vsub.f32 %v11324_v14, %v17191_v16  ;;  %v1664_v28 = vsub.f32 %v11332_v49, %v17194_v11  ;;  %v11364_v15 = vpack.c.bf16 %v572_v41, %v569_v34  ;;  %v11366_v13 = vsub.f32 %v197_v33, %v572_v41  ;;  %v90_v16 = vld [vmem:[%s17173_s0 + $0x1b8] sm:$0xff] }
  0x2f   :  { %18070 = vst [vmem:[#allocation43_spill] sm:$0xff] %v11354_v10  ;;  %9500 = vmatpush3.bf16.xpose.msra.mxu1 %v9499_v3  ;;  %v248_v20 = vsel %vm171_vm0, %v59_v58, 0  ;;  %v11375_v47 = vsub.f32 %v11339_v42, %v17195_v48  ;;  %v11380_v3 = vsub.f32 %v11346_v12, %v17196_v50  ;;  %v251_v41 = vsel %vm171_vm0, %v60_v54, 0  ;;  %v44_v48 = vld [vmem:[%s17173_s0 + $0x48] sm:$0xff] }
  0x30   :  { %18071 = vst [vmem:[#allocation44_spill] sm:$0xff] %v11364_v15  ;;  %18072 = vst [vmem:[#allocation45_spill] sm:$0xff] %v11366_v13  ;;  %v1658_v56 = vand.u32 4294901760, %v1657_v44  ;;  %v1665_v33 = vand.u32 4294901760, %v1664_v28  ;;  %9284 = vmatpush3.bf16.xpose.msra.mxu0 %v11364_v15  ;;  %v623_v34 = vand.u32 4294901760, %v248_v20  ;;  %v626_v58 = vand.u32 4294901760, %v251_v41 }
  0x31   :  { %v11385_v11 = vsel %vm171_vm0, %v89_v55, 0  ;;  %v43_v44 = vld [vmem:[%s17173_s0 + $0x40] sm:$0xff]  ;;  %v11396_v28 = vsel %vm171_vm0, %v90_v16, 0  ;;  %v73_v55 = vld [vmem:[%s17173_s0 + $0x130] sm:$0xff]  ;;  %v18078_v16 = vand.u32 4294901760, %v11375_v47  ;;  %v18079_v39 = vand.u32 4294901760, %v11380_v3 }
  0x32   :  { %18073 = vst [vmem:[#allocation46_spill] sm:$0xff] %v11385_v11  ;;  %18074 = vst [vmem:[#allocation47_spill] sm:$0xff] %v11396_v28  ;;  %v9501_v15 = vpack.c.bf16 %v1665_v33, %v1658_v56  ;;  %v11405_v0 = vpack.c.bf16 %v626_v58, %v623_v34  ;;  %v11407_v60 = vsub.f32 %v248_v20, %v623_v34  ;;  %v17215_v51 = vand.u32 4294901760, %v11396_v28 }
  0x33   :  { %v11409_v50 = vsub.f32 %v251_v41, %v626_v58  ;;  %v1545_v54 = vsub.f32 %v11375_v47, %v18078_v16  ;;  %v1552_v7 = vsub.f32 %v11380_v3, %v18079_v39  ;;  %v18080_v36 = vand.u32 4294901760, %v11385_v11  ;;  %v61_v39 = vld [vmem:[%s17173_s0 + $0xd0] sm:$0xff] }
  0x34   :  { %18075 = vst [vmem:[#allocation48_spill] sm:$0xff] %v11405_v0  ;;  %18076 = vst [vmem:[#allocation49_spill] sm:$0xff] %v11407_v60  ;;  %9502 = vmatprep.subr.bf16.mxu1 %v9501_v15  ;;  %9286 = vmatprep.subr.bf16.mxu0 %v11405_v0  ;;  %v200_v20 = vsel %vm171_vm0, %v43_v44, 0  ;;  %v203_v41 = vsel %vm171_vm0, %v44_v48, 0  ;;  %v11427_v33 = vsel %vm171_vm0, %v73_v55, 0  ;;  %v11430_v34 = vsel %vm171_vm0, %v74_v31, 0 }
  0x35   :  { %18077 = vst [vmem:[#allocation50_spill] sm:$0xff] %v11409_v50  ;;  %v11421_v56 = vsub.f32 %v11385_v11, %v18080_v36  ;;  %18081 = vst [vmem:[#allocation51_spill] sm:$0xff] %v11427_v33  ;;  %v1546_v58 = vand.u32 4294901760, %v1545_v54  ;;  %v1553_v36 = vand.u32 4294901760, %v1552_v7  ;;  %v11439_v44 = vsub.f32 %v11396_v28, %v17215_v51  ;;  %v62_v0 = vld [vmem:[%s17173_s0 + $0xd8] sm:$0xff] }
  0x36   :  { %18082 = vst [vmem:[#allocation52_spill] sm:$0xff] %v11430_v34  ;;  %v575_v48 = vand.u32 4294901760, %v200_v20  ;;  %v578_v16 = vand.u32 4294901760, %v203_v41  ;;  %v254_v51 = vsel %vm171_vm0, %v61_v39, 0  ;;  %vm3967_vm4 = vcmask 849924  }
  0x37   :  { %v17219_v15 = vand.u32 4294901760, %v11421_v56  ;;  %v9503_v25 = vpack.c.bf16 %v1553_v36, %v1546_v58  ;;  %v17222_v54 = vand.u32 4294901760, %v11439_v44  ;;  %v18086_v58 = vand.u32 4294901760, %v11427_v33  ;;  %vm15923_vm5 = vmor %vm3967_vm4, %vm3966_vm3 }
  0x38   :  { %v11454_v55 = vpack.c.bf16 %v578_v16, %v575_v48  ;;  %v11456_v31 = vsub.f32 %v200_v20, %v575_v48  ;;  %v11458_v28 = vsub.f32 %v203_v41, %v578_v16  ;;  %v18087_v20 = vand.u32 4294901760, %v11430_v34  ;;  %v46_v16 = vld [vmem:[%s17173_s0 + $0x58] sm:$0xff] }
  0x39   :  { %v1671_v7 = vsub.f32 %v11421_v56, %v17219_v15  ;;  %v11463_v36 = vsub.f32 %v11427_v33, %v18086_v58  ;;  %v92_v15 = vld [vmem:[%s17173_s0 + $0x1c8] sm:$0xff]  ;;  %9504 = vmatpush3.bf16.xpose.msra.mxu1 %v9503_v25  ;;  %v1678_v11 = vsub.f32 %v11439_v44, %v17222_v54  ;;  %v257_v48 = vsel %vm171_vm0, %v62_v0, 0 }
  0x3a   :  { %18083 = vst [vmem:[#allocation53_spill] sm:$0xff] %v11454_v55  ;;  %18084 = vst [vmem:[#allocation54_spill] sm:$0xff] %v11456_v31  ;;  %v11474_v41 = vsub.f32 %v11430_v34, %v18087_v20  ;;  %9288 = vmatpush3.bf16.xpose.msra.mxu0 %v11454_v55  ;;  %v629_v58 = vand.u32 4294901760, %v254_v51  ;;  %v632_v33 = vand.u32 4294901760, %v257_v48  ;;  %v11480_v25 = vsel %vm171_vm0, %v91_v21, 0  ;;  %v75_v21 = vld [vmem:[%s17173_s0 + $0x140] sm:$0xff] }
  0x3b   :  { %18085 = vst [vmem:[#allocation55_spill] sm:$0xff] %v11458_v28  ;;  %v1672_v39 = vand.u32 4294901760, %v1671_v7  ;;  %18088 = vst [vmem:[#allocation56_spill] sm:$0xff] %v11480_v25  ;;  %v45_v7 = vld [vmem:[%s17173_s0 + $0x50] sm:$0xff]  ;;  %v1679_v54 = vand.u32 4294901760, %v1678_v11  ;;  %v11487_v20 = vsel %vm171_vm0, %v92_v15, 0 }
  0x3c   :  { %18089 = vst [vmem:[#allocation57_spill] sm:$0xff] %v11487_v20  ;;  %v18090_v55 = vand.u32 4294901760, %v11463_v36  ;;  %v11499_v11 = vpack.c.bf16 %v632_v33, %v629_v58  ;;  %v11501_v12 = vsub.f32 %v254_v51, %v629_v58  ;;  %v11503_v15 = vsub.f32 %v257_v48, %v632_v33  ;;  %v63_v51 = vld [vmem:[%s17173_s0 + $0xe0] sm:$0xff] }
  0x3d   :  { %v9505_v42 = vpack.c.bf16 %v1679_v54, %v1672_v39  ;;  %v18094_v0 = vand.u32 4294901760, %v11474_v41  ;;  %v17235_v17 = vand.u32 4294901760, %v11487_v20  ;;  %v18095_v35 = vand.u32 4294901760, %v11480_v25 }
  0x3e   :  { %v1559_v34 = vsub.f32 %v11463_v36, %v18090_v55  ;;  %18091 = vst [vmem:[#allocation58_spill] sm:$0xff] %v11499_v11  ;;  %18092 = vst [vmem:[#allocation59_spill] sm:$0xff] %v11501_v12  ;;  %v76_v55 = vld [vmem:[%s17173_s0 + $0x148] sm:$0xff]  ;;  %9290 = vmatprep.subr.bf16.mxu0 %v11499_v11  ;;  %v206_v54 = vsel %vm171_vm0, %v45_v7, 0  ;;  %v209_v39 = vsel %vm171_vm0, %v46_v16, 0  ;;  %v11524_v48 = vsel %vm171_vm0, %v75_v21, 0 }
  0x3f   :  { %18093 = vst [vmem:[#allocation60_spill] sm:$0xff] %v11503_v15  ;;  %v1566_v59 = vsub.f32 %v11474_v41, %v18094_v0  ;;  %v11512_v19 = vsub.f32 %v11480_v25, %v18095_v35  ;;  %18097 = vst [vmem:[#allocation62_spill] sm:$0xff] %v11524_v48  ;;  %9506 = vmatprep.subr.bf16.mxu1 %v9505_v42  ;;  %v11530_v0 = vsub.f32 %v11487_v20, %v17235_v17  ;;  %v64_v16 = vld [vmem:[%s17173_s0 + $0xe8] sm:$0xff] }
  0x40   :  { %v1560_v33 = vand.u32 4294901760, %v1559_v34  ;;  %v581_v25 = vand.u32 4294901760, %v206_v54  ;;  %v584_v34 = vand.u32 4294901760, %v209_v39  ;;  %v11533_v11 = vsel %vm171_vm0, %v76_v55, 0  ;;  %v93_v55 = vld [vmem:[%s17173_s0 + $0x1d0] sm:$0xff] }
  0x41   :  { %18096 = vst [vmem:[#allocation61_spill] sm:$0xff] %v11512_v19  ;;  %v1567_v35 = vand.u32 4294901760, %v1566_v59  ;;  %v17238_v58 = vand.u32 4294901760, %v11512_v19  ;;  %18098 = vst [vmem:[#allocation63_spill] sm:$0xff] %v11530_v0  ;;  %v11540_v59 = vsel %vm171_vm0, %v63_v51, 0  ;;  %v17240_v17 = vand.u32 4294901760, %v11530_v0 }
  0x42   :  { %18099 = vst [vmem:[#allocation64_spill] sm:$0xff] %v11533_v11  ;;  %v11546_v20 = vsub.f32 %v206_v54, %v581_v25  ;;  %v11551_v7 = vpack.c.bf16 %v584_v34, %v581_v25  ;;  %v11553_v2 = vsub.f32 %v209_v39, %v584_v34  ;;  %v17242_v51 = vand.u32 4294901760, %v11533_v11  ;;  %v94_v54 = vld [vmem:[%s17173_s0 + $0x1d8] sm:$0xff] }
  0x43   :  { %v9507_v42 = vpack.c.bf16 %v1567_v35, %v1560_v33  ;;  %v1685_v21 = vsub.f32 %v11512_v19, %v17238_v58  ;;  %v18103_v33 = vand.u32 4294901760, %v11524_v48  ;;  %v1692_v25 = vsub.f32 %v11530_v0, %v17240_v17 }
  0x44   :  { %18100 = vst [vmem:[#allocation65_spill] sm:$0xff] %v11546_v20  ;;  %18101 = vst [vmem:[#allocation66_spill] sm:$0xff] %v11551_v7  ;;  %v11568_v39 = vsel %vm171_vm0, %v64_v16, 0  ;;  %v635_v34 = vand.u32 4294901760, %v11540_v59  ;;  %9292 = vmatpush3.bf16.xpose.msra.mxu0 %v11551_v7  ;;  %v47_v16 = vld [vmem:[%s17173_s0 + $0x60] sm:$0xff]  ;;  %v11586_v62 = vsel %vm171_vm0, %v94_v54, 0 }
  0x45   :  { %18102 = vst [vmem:[#allocation67_spill] sm:$0xff] %v11553_v2  ;;  %v11559_v35 = vsub.f32 %v11524_v48, %v18103_v33  ;;  %9508 = vmatpush3.bf16.xpose.msra.mxu1 %v9507_v42  ;;  %v1686_v58 = vand.u32 4294901760, %v1685_v21  ;;  %v11576_v48 = vsub.f32 %v11533_v11, %v17242_v51  ;;  %v638_v42 = vand.u32 4294901760, %v11568_v39  ;;  %18107 = vst [vmem:[#allocation71_spill] sm:$0xff] %v11586_v62  ;;  %v48_v51 = vld [vmem:[%s17173_s0 + $0x68] sm:$0xff] }
  0x46   :  { %v11580_v21 = vsel %vm171_vm0, %v93_v55, 0  ;;  %v1693_v17 = vand.u32 4294901760, %v1692_v25  ;;  %v77_v25 = vld [vmem:[%s17173_s0 + $0x150] sm:$0xff]  ;;  %v17259_v43 = vand.u32 4294901760, %v11586_v62  ;;  %v212_v18 = vsel %vm171_vm0, %v47_v16, 0 }
  0x47   :  { %18104 = vst [vmem:[#allocation68_spill] sm:$0xff] %v11559_v35  ;;  %18105 = vst [vmem:[#allocation69_spill] sm:$0xff] %v11576_v48  ;;  %v17253_v33 = vand.u32 4294901760, %v11580_v21  ;;  %v18108_v7 = vand.u32 4294901760, %v11559_v35  ;;  %v11596_v46 = vpack.c.bf16 %v638_v42, %v635_v34 }
  0x48   :  { %18106 = vst [vmem:[#allocation70_spill] sm:$0xff] %v11580_v21  ;;  %v9509_v54 = vpack.c.bf16 %v1693_v17, %v1686_v58  ;;  %v215_v17 = vsel %vm171_vm0, %v48_v51, 0  ;;  %v587_v58 = vand.u32 4294901760, %v212_v18  ;;  %v11620_v16 = vsub.f32 %v11586_v62, %v17259_v43  ;;  %v66_v43 = vld [vmem:[%s17173_s0 + $0xf8] sm:$0xff] }
  0x49   :  { %v1573_v11 = vsub.f32 %v11559_v35, %v18108_v7  ;;  %18109 = vst [vmem:[#allocation72_spill] sm:$0xff] %v11596_v46  ;;  %v11605_v30 = vsub.f32 %v11580_v21, %v17253_v33  ;;  %v78_v7 = vld [vmem:[%s17173_s0 + $0x158] sm:$0xff]  ;;  %v18111_v35 = vand.u32 4294901760, %v11576_v48  ;;  %9294 = vmatprep.subr.bf16.mxu0 %v11596_v46  ;;  %v590_v21 = vand.u32 4294901760, %v215_v17 }
  0x4a   :  { %9510 = vmatprep.subr.bf16.mxu1 %v9509_v54  ;;  %18112 = vst [vmem:[#allocation74_spill] sm:$0xff] %v11620_v16  ;;  %v11631_v51 = vsel %vm171_vm0, %v78_v7, 0  ;;  %v17267_v62 = vand.u32 4294901760, %v11620_v16 }
  0x4b   :  { %18110 = vst [vmem:[#allocation73_spill] sm:$0xff] %v11605_v30  ;;  %v1574_v55 = vand.u32 4294901760, %v1573_v11  ;;  %v1580_v2 = vsub.f32 %v11576_v48, %v18111_v35  ;;  %v17265_v33 = vand.u32 4294901760, %v11605_v30  ;;  %v11623_v11 = vsel %vm171_vm0, %v77_v25, 0  ;;  %v65_v35 = vld [vmem:[%s17173_s0 + $0xf0] sm:$0xff]  ;;  %18115 = vst [vmem:[#allocation77_spill] sm:$0xff] %v11631_v51 }
  0x4c   :  { %18113 = vst [vmem:[#allocation75_spill] sm:$0xff] %v11623_v11  ;;  %v11628_v48 = vsub.f32 %v212_v18, %v587_v58  ;;  %v11641_v20 = vpack.c.bf16 %v590_v21, %v587_v58  ;;  %v95_v18 = vld [vmem:[%s17173_s0 + $0x1e0] sm:$0xff]  ;;  %v17268_v54 = vand.u32 4294901760, %v11631_v51  ;;  %v1706_v58 = vsub.f32 %v11620_v16, %v17267_v62 }
  0x4d   :  { %v1581_v46 = vand.u32 4294901760, %v1580_v2  ;;  %v1699_v25 = vsub.f32 %v11605_v30, %v17265_v33  ;;  %v11643_v2 = vsub.f32 %v215_v17, %v590_v21  ;;  %v11655_v33 = vsel %vm171_vm0, %v65_v35, 0  ;;  %v96_v21 = vld [vmem:[%s17173_s0 + $0x1e8] sm:$0xff] }
  0x4e   :  { %18114 = vst [vmem:[#allocation76_spill] sm:$0xff] %v11628_v48  ;;  %18116 = vst [vmem:[#allocation78_spill] sm:$0xff] %v11641_v20  ;;  %v18118_v48 = vand.u32 4294901760, %v11623_v11  ;;  %9296 = vmatpush3.bf16.xpose.msra.mxu0 %v11641_v20  ;;  %v11672_v35 = vsub.f32 %v11631_v51, %v17268_v54  ;;  %v11682_v62 = vsub.f32 %v11540_v59, %v635_v34  ;;  %v50_v54 = vld [vmem:[%s17173_s0 + $0x78] sm:$0xff]  ;;  %v18128_v34 = vand.u32 4294901760, %v11655_v33  ;;  %v80_v59 = vld [vmem:[%s17173_s0 + $0x168] sm:$0xff] }
  0x4f   :  { %18117 = vst [vmem:[#allocation79_spill] sm:$0xff] %v11643_v2  ;;  %v9511_v7 = vpack.c.bf16 %v1581_v46, %v1574_v55  ;;  %18120 = vst [vmem:[#allocation81_spill] sm:$0xff] %v11655_v33  ;;  %v1700_v17 = vand.u32 4294901760, %v1699_v25  ;;  %v11665_v46 = vsel %vm171_vm0, %v66_v43, 0  ;;  %v49_v43 = vld [vmem:[%s17173_s0 + $0x70] sm:$0xff]  ;;  %v79_v55 = vld [vmem:[%s17173_s0 + $0x160] sm:$0xff] }
  0x50   :  { %v11652_v0 = vsub.f32 %v11623_v11, %v18118_v48  ;;  %18121 = vst [vmem:[#allocation82_spill] sm:$0xff] %v11665_v46  ;;  %18122 = vst [vmem:[#allocation83_spill] sm:$0xff] %v11672_v35  ;;  %v11676_v11 = vsel %vm171_vm0, %v95_v18, 0  ;;  %v11685_v48 = vsel %vm171_vm0, %v96_v21, 0  ;;  %v11692_v18 = vsub.f32 %v11568_v39, %v638_v42 }
  0x51   :  { %9512 = vmatpush3.bf16.xpose.msra.mxu1 %v9511_v7  ;;  %18123 = vst [vmem:[#allocation84_spill] sm:$0xff] %v11676_v11  ;;  %18124 = vst [vmem:[#allocation85_spill] sm:$0xff] %v11682_v62  ;;  %v1707_v7 = vand.u32 4294901760, %v1706_v58  ;;  %v18129_v21 = vand.u32 4294901760, %v11665_v46  ;;  %v17280_v39 = vand.u32 4294901760, %v11685_v48  ;;  %v18131_v42 = vand.u32 4294901760, %v11676_v11 }
  0x52   :  { %18119 = vst [vmem:[#allocation80_spill] sm:$0xff] %v11652_v0  ;;  %18125 = vst [vmem:[#allocation86_spill] sm:$0xff] %v11685_v48  ;;  %v18127_v25 = vand.u32 4294901760, %v11652_v0 }
  0x53   :  { %18126 = vst [vmem:[#allocation87_spill] sm:$0xff] %v11692_v18  ;;  %v11702_v58 = vpack.c.bf16 %v18129_v21, %v18128_v34  ;;  %v9513_v51 = vpack.c.bf16 %v1707_v7, %v1700_v17  ;;  %v11711_v2 = vsub.f32 %v11676_v11, %v18131_v42  ;;  %v18133_v21 = vand.u32 4294901760, %v11672_v35 }
  0x54   :  { %v1587_v20 = vsub.f32 %v11652_v0, %v18127_v25  ;;  %v218_v25 = vsel %vm171_vm0, %v49_v43, 0  ;;  %v221_v17 = vsel %vm171_vm0, %v50_v54, 0  ;;  %v11726_v43 = vsub.f32 %v11685_v48, %v17280_v39 }
  0x55   :  { %18130 = vst [vmem:[#allocation88_spill] sm:$0xff] %v11702_v58  ;;  %18132 = vst [vmem:[#allocation89_spill] sm:$0xff] %v11711_v2  ;;  %v1594_v46 = vsub.f32 %v11672_v35, %v18133_v21  ;;  %9298 = vmatprep.subr.bf16.mxu0 %v11702_v58  ;;  %v593_v7 = vand.u32 4294901760, %v218_v25  ;;  %9514 = vmatprep.subr.bf16.mxu1 %v9513_v51  ;;  %v17285_v42 = vand.u32 4294901760, %v11711_v2  ;;  %v596_v11 = vand.u32 4294901760, %v221_v17 }
  0x56   :  { %v1588_v34 = vand.u32 4294901760, %v1587_v20  ;;  %18134 = vst [vmem:[#allocation90_spill] sm:$0xff] %v11726_v43  ;;  %v11729_v20 = vsel %vm171_vm0, %v79_v55, 0  ;;  %v34_v21 = vld [vmem:[%s17174_s1] sm:$0x7]  ;;  %v11737_v51 = vsel %vm171_vm0, %v80_v59, 0 }
  0x57   :  { %18135 = vst [vmem:[#allocation91_spill] sm:$0xff] %v11729_v20  ;;  %v1595_v58 = vand.u32 4294901760, %v1594_v46  ;;  %v11734_v33 = vsub.f32 %v218_v25, %v593_v7  ;;  %18137 = vst [vmem:[#allocation93_spill] sm:$0xff] %v11737_v51  ;;  %v17286_v54 = vand.u32 4294901760, %v11729_v20  ;;  %v1713_v39 = vsub.f32 %v11711_v2, %v17285_v42  ;;  %v97_v46 = vld [vmem:[%s17173_s0 + $0x1f0] sm:$0xff] }
  0x58   :  { %v17288_v48 = vand.u32 4294901760, %v11726_v43  ;;  %v11744_v55 = vpack.c.bf16 %v596_v11, %v593_v7  ;;  %v11746_v35 = vsub.f32 %v221_v17, %v596_v11  ;;  %v17291_v59 = vand.u32 4294901760, %v11737_v51  ;;  %v98_v7 = vld [vmem:[%s17173_s0 + $0x1f8] sm:$0xff] }
  0x59   :  { %18136 = vst [vmem:[#allocation92_spill] sm:$0xff] %v11734_v33  ;;  %v9515_v25 = vpack.c.bf16 %v1595_v58, %v1588_v34  ;;  %v11755_v33 = vsub.f32 %v11729_v20, %v17286_v54  ;;  %v173_v42 = vsel %vm171_vm0, %v34_v21, 0  ;;  %v1714_v11 = vand.u32 4294901760, %v1713_v39 }
  0x5a   :  { %18138 = vst [vmem:[#allocation94_spill] sm:$0xff] %v11744_v55  ;;  %18139 = vst [vmem:[#allocation95_spill] sm:$0xff] %v11746_v35  ;;  %v1720_v17 = vsub.f32 %v11726_v43, %v17288_v48  ;;  %9300 = vmatpush3.bf16.xpose.msra.mxu0 %v11744_v55  ;;  %v11765_v58 = vand.u32 4294901760, %v173_v42  ;;  %v17294_v34 = vand.u32 4294901760, %v11107_v22  ;;  %v11772_v21 = vsub.f32 %v11737_v51, %v17291_v59  ;;  %v81_v43 = vld [vmem:[%s17173_s0 + $0x170] sm:$0xff] }
  0x5b   :  { %18140 = vst [vmem:[#allocation96_spill] sm:$0xff] %v11755_v33  ;;  %9516 = vmatpush3.bf16.xpose.msra.mxu1 %v9515_v25  ;;  %v11776_v20 = vsel %vm171_vm0, %v97_v46, 0  ;;  %v11785_v54 = vsel %vm171_vm0, %v98_v7, 0  ;;  %v18146_v59 = vand.u32 4294901760, %v11755_v33 }
  0x5c   :  { %18141 = vst [vmem:[#allocation97_spill] sm:$0xff] %v11765_v58  ;;  %18142 = vst [vmem:[#allocation98_spill] sm:$0xff] %v11772_v21  ;;  %v1721_v48 = vand.u32 4294901760, %v1720_v17  ;;  %v11779_v55 = vsub.f32 %v173_v42, %v11765_v58  ;;  %v774_v25 = vsub.f32 %v11107_v22, %v17294_v34  ;;  %8315 = vmatprep.mubr.f32.mxu1 %v11765_v58  ;;  %v17303_v46 = vand.u32 4294901760, %v11772_v21 }
  0x5d   :  { %18143 = vst [vmem:[#allocation99_spill] sm:$0xff] %v11776_v20  ;;  %18145 = vst [vmem:[#allocation101_spill] sm:$0xff] %v11785_v54  ;;  %v1601_v39 = vsub.f32 %v11755_v33, %v18146_v59  ;;  %v18147_v17 = vand.u32 4294901760, %v11109_v23  ;;  %v17304_v51 = vand.u32 4294901760, %v11776_v20  ;;  %v17308_v22 = vand.u32 4294901760, %v11785_v54 }
  0x5e   :  { %18144 = vst [vmem:[#allocation100_spill] sm:$0xff] %v11779_v55  ;;  %v9517_v35 = vpack.c.bf16 %v1721_v48, %v1714_v11  ;;  %v11797_v34 = vand.u32 4294901760, %v11779_v55  ;;  %v775_v7 = vand.u32 4294901760, %v774_v25  ;;  %v1608_v33 = vsub.f32 %v11772_v21, %v17303_v46 }
  0x5f   :  { %v781_v42 = vsub.f32 %v11109_v23, %v18147_v17  ;;  %v1602_v59 = vand.u32 4294901760, %v1601_v39  ;;  %v11809_v48 = vsub.f32 %v11776_v20, %v17304_v51  ;;  %v11816_v25 = vsub.f32 %v11785_v54, %v17308_v22 }
  0x60   :  { %18148 = vst [vmem:[#allocation102_spill] sm:$0xff] %v11797_v34  ;;  %9518 = vmatprep.subr.bf16.mxu1 %v9517_v35  ;;  %v650_v11 = vsub.f32 %v11779_v55, %v11797_v34  ;;  %v17314_v39 = vand.u32 4294901760, %v11111_v24  ;;  %v17316_v17 = vand.u32 4294901760, %v11115_v26  ;;  %v1609_v46 = vand.u32 4294901760, %v1608_v33 }
  0x61   :  { %v782_v2 = vand.u32 4294901760, %v781_v42  ;;  %18149 = vst [vmem:[#allocation103_spill] sm:$0xff] %v11809_v48  ;;  %18150 = vst [vmem:[#allocation104_spill] sm:$0xff] %v11816_v25  ;;  %v82_v42 = vld [vmem:[%s17173_s0 + $0x178] sm:$0xff]  ;;  %v17315_v35 = vand.u32 4294901760, %v11809_v48  ;;  %v11825_v20 = vsel %vm171_vm0, %v81_v43, 0 }
  0x62   :  { %v11827_v34 = vand.u32 4294901760, %v650_v11  ;;  %v17319_v22 = vand.u32 4294901760, %v11816_v25  ;;  %v662_v54 = vsub.f32 %v11111_v24, %v17314_v39  ;;  %v669_v23 = vsub.f32 %v11115_v26, %v17316_v17 }
  0x63   :  { %v9301_v51 = vpack.c.bf16 %v782_v2, %v775_v7  ;;  %v9519_v21 = vpack.c.bf16 %v1609_v46, %v1602_v59  ;;  %v1727_v33 = vsub.f32 %v11809_v48, %v17315_v35  ;;  %v11840_v2 = vsel %vm171_vm0, %v82_v42, 0  ;;  %v18170_v16 = vld [vmem:[#allocation98_spill] sm:$0xff] }
  0x64   :  { %18151 = vst [vmem:[#allocation105_spill] sm:$0xff] %v11827_v34  ;;  %18152 = vst [vmem:[#allocation106_spill] sm:$0xff] %v11840_v2  ;;  %v17321_v43 = vand.u32 4294901760, %v11825_v20  ;;  %8077 = vmatprep.mubr.f32.mxu0 %v11827_v34  ;;  %v1734_v7 = vsub.f32 %v11816_v25, %v17319_v22  ;;  %v663_v11 = vand.u32 4294901760, %v662_v54  ;;  %v670_v39 = vand.u32 4294901760, %v669_v23 }
  0x65   :  { %9302 = vmatprep.subr.bf16.mxu0 %v9301_v51  ;;  %v17320_v46 = vand.u32 4294901760, %v11840_v2  ;;  %9520 = vmatpush3.bf16.xpose.msra.mxu1 %v9519_v21  ;;  %v1728_v51 = vand.u32 4294901760, %v1727_v33  ;;  %v17324_v42 = vand.u32 4294901760, %v11136_v37  ;;  %v17326_v35 = vand.u32 4294901760, %v11138_v38 }
  0x66   :  { %8078 = vmatmul.mubr.f32.vlgmr.msra.gmra.mrb[0].mxu0 %v11827_v34  ;;  %v11852_v59 = vsub.f32 %v11825_v20, %v17321_v43  ;;  %v1735_v17 = vand.u32 4294901760, %v1734_v7  ;;  %v9303_v26 = vpack.c.bf16 %v670_v39, %v663_v11  ;;  %v9525_v54 = vpack.c.bf16 %v11156_v45, %v11144_v40 }
  0x67   :  { %v11859_v23 = vsub.f32 %v11840_v2, %v17320_v46  ;;  %8111 = vmatprep.mubr.f32.mxu0 %v11765_v58  ;;  %v788_v33 = vsub.f32 %v11136_v37, %v17324_v42  ;;  %v795_v39 = vsub.f32 %v11138_v38, %v17326_v35  ;;  %v17329_v7 = vand.u32 4294901760, %v11169_v52 }
  0x68   :  { %v17327_v21 = vand.u32 4294901760, %v11852_v59  ;;  %v9521_v11 = vpack.c.bf16 %v1735_v17, %v1728_v51  ;;  %9304 = vmatpush3.bf16.xpose.msra.mxu0 %v9303_v26  ;;  %v17331_v46 = vand.u32 4294901760, %v11171_v53  ;;  %v17334_v51 = vand.u32 4294901760, %v11213_v8 }
  0x69   :  { %v17330_v22 = vand.u32 4294901760, %v11859_v23  ;;  %v789_v42 = vand.u32 4294901760, %v788_v33  ;;  %v796_v45 = vand.u32 4294901760, %v795_v39  ;;  %v676_v35 = vsub.f32 %v11169_v52, %v17329_v7 }
  0x6a   :  { %v1615_v34 = vsub.f32 %v11852_v59, %v17327_v21  ;;  %9522 = vmatprep.subr.bf16.mxu1 %v9521_v11  ;;  %v683_v17 = vsub.f32 %v11171_v53, %v17331_v46  ;;  %v17335_v43 = vand.u32 4294901760, %v11215_v9  ;;  %v9529_v40 = vpack.c.bf16 %v11244_v32, %v11239_v29 }
  0x6b   :  { %v1622_v26 = vsub.f32 %v11859_v23, %v17330_v22  ;;  %v9305_v33 = vpack.c.bf16 %v796_v45, %v789_v42  ;;  %v677_v39 = vand.u32 4294901760, %v676_v35  ;;  %v802_v22 = vsub.f32 %v11213_v8, %v17334_v51 }
  0x6c   :  { %v1616_v21 = vand.u32 4294901760, %v1615_v34  ;;  %v684_v11 = vand.u32 4294901760, %v683_v17  ;;  %v809_v46 = vsub.f32 %v11215_v9, %v17335_v43  ;;  %v17341_v2 = vand.u32 4294901760, %v11264_v61 }
  0x6d   :  { %v1623_v7 = vand.u32 4294901760, %v1622_v26  ;;  %9306 = vmatprep.subr.bf16.mxu0 %v9305_v33  ;;  %v17336_v34 = vand.u32 4294901760, %v11266_v63  ;;  %v17337_v35 = vand.u32 4294901760, %v11308_v4  ;;  %v803_v17 = vand.u32 4294901760, %v802_v22  ;;  %v18156_v22 = vld [vmem:[#allocation67_spill] sm:$0xff] }
  0x6e   :  { %v9307_v26 = vpack.c.bf16 %v684_v11, %v677_v39  ;;  %v810_v32 = vand.u32 4294901760, %v809_v46  ;;  %v690_v51 = vsub.f32 %v11264_v61, %v17341_v2  ;;  %v17338_v45 = vand.u32 4294901760, %v11319_v27 }
  0x6f   :  { %v9523_v42 = vpack.c.bf16 %v1623_v7, %v1616_v21  ;;  %v697_v33 = vsub.f32 %v11266_v63, %v17336_v34  ;;  %v816_v43 = vsub.f32 %v11308_v4, %v17337_v35  ;;  %v17339_v46 = vand.u32 4294901760, %v11354_v10 }
  0x70   :  { %9308 = vmatpush3.bf16.xpose.msra.mxu0 %v9307_v26  ;;  %v9309_v21 = vpack.c.bf16 %v810_v32, %v803_v17  ;;  %v17340_v7 = vand.u32 4294901760, %v11366_v13  ;;  %v691_v39 = vand.u32 4294901760, %v690_v51  ;;  %v823_v35 = vsub.f32 %v11319_v27, %v17338_v45 }
  0x71   :  { %9524 = vmatpush3.bf16.xpose.msra.mxu1 %v9523_v42  ;;  %v698_v11 = vand.u32 4294901760, %v697_v33  ;;  %v817_v34 = vand.u32 4294901760, %v816_v43  ;;  %v704_v32 = vsub.f32 %v11354_v10, %v17339_v46  ;;  %v17342_v17 = vand.u32 4294901760, %v11409_v50 }
  0x72   :  { %9526 = vmatprep.subr.bf16.mxu1 %v9525_v54  ;;  %9310 = vmatprep.subr.bf16.mxu0 %v9309_v21  ;;  %v711_v42 = vsub.f32 %v11366_v13, %v17340_v7  ;;  %v17343_v54 = vand.u32 4294901760, %v11407_v60  ;;  %v824_v43 = vand.u32 4294901760, %v823_v35  ;;  %v17344_v7 = vand.u32 4294901760, %v11456_v31 }
  0x73   :  { %v9311_v51 = vpack.c.bf16 %v698_v11, %v691_v39  ;;  %v705_v21 = vand.u32 4294901760, %v704_v32  ;;  %v837_v26 = vsub.f32 %v11409_v50, %v17342_v17  ;;  %v17346_v35 = vand.u32 4294901760, %v11458_v28 }
  0x74   :  { %v712_v45 = vand.u32 4294901760, %v711_v42  ;;  %v830_v46 = vsub.f32 %v11407_v60, %v17343_v54  ;;  %v9313_v2 = vpack.c.bf16 %v824_v43, %v817_v34  ;;  %v718_v32 = vsub.f32 %v11456_v31, %v17344_v7  ;;  %v18153_v54 = vld [vmem:[#allocation63_spill] sm:$0xff] }
  0x75   :  { %v17350_v42 = vand.u32 4294901760, %v11501_v12  ;;  %v838_v34 = vand.u32 4294901760, %v837_v26  ;;  %v725_v43 = vsub.f32 %v11458_v28, %v17346_v35  ;;  %v18155_v26 = vld [vmem:[#allocation65_spill] sm:$0xff]  ;;  %v17353_v29 = vand.u32 4294901760, %v18156_v22 }
  0x76   :  { %v9315_v11 = vpack.c.bf16 %v712_v45, %v705_v21  ;;  %v831_v33 = vand.u32 4294901760, %v830_v46  ;;  %v18154_v45 = vpack.c.bf16 %v11197_v1, %v11181_v57  ;;  %v719_v46 = vand.u32 4294901760, %v718_v32 }
  0x77   :  { %v844_v21 = vsub.f32 %v11501_v12, %v17350_v42  ;;  %v17352_v7 = vand.u32 4294901760, %v18155_v26  ;;  %v726_v17 = vand.u32 4294901760, %v725_v43  ;;  %v18157_v39 = vand.u32 4294901760, %v11503_v15 }
  0x78   :  { %8316 = vmatmul.mubr.f32.vlgmr.msra.gmra.mrb[0].mxu1 %v11765_v58  ;;  %9312 = vmatpush3.bf16.xpose.msra.mxu0 %v9311_v51  ;;  %v9317_v35 = vpack.c.bf16 %v838_v34, %v831_v33  ;;  %v739_v57 = vsub.f32 %v18156_v22, %v17353_v29  ;;  %v18160_v51 = vld [vmem:[#allocation76_spill] sm:$0xff] }
  0x79   :  { %9528 = vmatpush3.bf16.xpose.msra.mxu1 %v18154_v45  ;;  %9314 = vmatprep.subr.bf16.mxu0 %v9313_v2  ;;  %v851_v58 = vsub.f32 %v11503_v15, %v18157_v39  ;;  %v845_v32 = vand.u32 4294901760, %v844_v21  ;;  %v732_v42 = vsub.f32 %v18155_v26, %v17352_v7  ;;  %v9319_v2 = vpack.c.bf16 %v726_v17, %v719_v46  ;;  %v18161_v17 = vld [vmem:[#allocation79_spill] sm:$0xff]  ;;  %v18169_v46 = vld [vmem:[#allocation96_spill] sm:$0xff] }
  0x7a   :  { %9530 = vmatprep.subr.bf16.mxu1 %v9529_v40  ;;  %v17358_v40 = vand.u32 4294901760, %v11682_v62  ;;  %8349 = vmatprep.mubr.f32.mxu1 %v11779_v55  ;;  %v17361_v39 = vand.u32 4294901760, %v11692_v18  ;;  %v740_v21 = vand.u32 4294901760, %v739_v57  ;;  %v17364_v1 = vand.u32 4294901760, %v18160_v51 }
  0x7b   :  { %v852_v33 = vand.u32 4294901760, %v851_v58  ;;  %v733_v43 = vand.u32 4294901760, %v732_v42  ;;  %v17365_v58 = vand.u32 4294901760, %v18161_v17 }
  0x7c   :  { %v858_v7 = vsub.f32 %v11682_v62, %v17358_v40  ;;  %v865_v55 = vsub.f32 %v11692_v18, %v17361_v39  ;;  %v746_v57 = vsub.f32 %v18160_v51, %v17364_v1  ;;  %v18164_v40 = vld [vmem:[#allocation90_spill] sm:$0xff]  ;;  %v18165_v39 = vpack.c.bf16 %v11279_v6, %v11274_v5 }
  0x7d   :  { %v9321_v29 = vpack.c.bf16 %v852_v33, %v845_v32  ;;  %v9323_v19 = vpack.c.bf16 %v740_v21, %v733_v43  ;;  %v753_v32 = vsub.f32 %v18161_v17, %v17365_v58  ;;  %v18163_v33 = vld [vmem:[#allocation89_spill] sm:$0xff]  ;;  %v18166_v43 = vld [vmem:[#allocation92_spill] sm:$0xff]  ;;  %v18167_v21 = vld [vmem:[#allocation95_spill] sm:$0xff] }
  0x7e   :  { %v859_v34 = vand.u32 4294901760, %v858_v7  ;;  %v866_v42 = vand.u32 4294901760, %v865_v55  ;;  %v9549_v30 = vpack.c.bf16 %v18164_v40, %v18163_v33  ;;  %v747_v45 = vand.u32 4294901760, %v746_v57  ;;  %v18171_v57 = vld [vmem:[#allocation7_spill] sm:$0xff]  ;;  %v18172_v33 = vld [vmem:[#allocation8_spill] sm:$0xff] }
  0x7f   :  { %v17370_v7 = vand.u32 4294901760, %v18166_v43  ;;  %v17371_v0 = vand.u32 4294901760, %v18167_v21  ;;  %v18168_v55 = vpack.c.bf16 %v11332_v49, %v11324_v14  ;;  %v754_v58 = vand.u32 4294901760, %v753_v32 }
  0x80   :  { %9316 = vmatpush3.bf16.xpose.msra.mxu0 %v9315_v11  ;;  %v9325_v1 = vpack.c.bf16 %v866_v42, %v859_v34  ;;  %v9551_v40 = vpack.c.bf16 %v18170_v16, %v18169_v46  ;;  %v9333_v6 = vpack.c.bf16 %v18172_v33, %v18171_v57  ;;  %v18173_v34 = vld [vmem:[#allocation10_spill] sm:$0xff]  ;;  %v9555_v16 = vpack.c.bf16 %v11859_v23, %v11852_v59  ;;  %v18174_v46 = vld [vmem:[#allocation81_spill] sm:$0xff] }
  0x81   :  { %9532 = vmatpush3.bf16.xpose.msra.mxu1 %v18165_v39  ;;  %9318 = vmatprep.subr.bf16.mxu0 %v9317_v35  ;;  %v760_v39 = vsub.f32 %v18166_v43, %v17370_v7  ;;  %v767_v11 = vsub.f32 %v18167_v21, %v17371_v0  ;;  %v9327_v5 = vpack.c.bf16 %v754_v58, %v747_v45  ;;  %v18175_v0 = vand.u32 4294901760, %v18174_v46  ;;  %v18176_v45 = vld [vmem:[#allocation82_spill] sm:$0xff] }
  0x82   :  { %9534 = vmatprep.subr.bf16.mxu1 %v18168_v55  ;;  %v9553_v35 = vpack.c.bf16 %v11816_v25, %v11809_v48  ;;  %v9335_v42 = vpack.c.bf16 %v18173_v34, %v11111_v24  ;;  %v9337_v7 = vpack.c.bf16 %v11138_v38, %v11136_v37  ;;  %v18177_v58 = vand.u32 4294901760, %v18176_v45 }
  0x83   :  { %v761_v32 = vand.u32 4294901760, %v760_v39  ;;  %v768_v55 = vand.u32 4294901760, %v767_v11  ;;  %v12024_v49 = vsub.f32 %v18174_v46, %v18175_v0  ;;  %v9339_v39 = vpack.c.bf16 %v11171_v53, %v11169_v52 }
  0x84   :  { %v12029_v25 = vsub.f32 %v18176_v45, %v18177_v58  ;;  %v9341_v48 = vpack.c.bf16 %v11215_v9, %v11213_v8  ;;  %v9343_v38 = vpack.c.bf16 %v11266_v63, %v11264_v61  ;;  %v9345_v37 = vpack.c.bf16 %v11319_v27, %v11308_v4  ;;  %v18182_v45 = vld [vmem:[#allocation77_spill] sm:$0xff]  ;;  %v18206_v61 = vld [vmem:[#allocation68_spill] sm:$0xff] }
  0x85   :  { %v9331_v11 = vpack.c.bf16 %v768_v55, %v761_v32  ;;  %v9347_v0 = vpack.c.bf16 %v11366_v13, %v11354_v10  ;;  %v18178_v46 = vpack.c.bf16 %v11380_v3, %v11375_v47  ;;  %v9349_v32 = vpack.c.bf16 %v11409_v50, %v11407_v60 }
  0x86   :  { %v18179_v55 = vpack.c.bf16 %v11439_v44, %v11421_v56  ;;  %v9351_v13 = vpack.c.bf16 %v11458_v28, %v11456_v31  ;;  %v9353_v10 = vpack.c.bf16 %v11503_v15, %v11501_v12  ;;  %v18183_v60 = vand.u32 4294901760, %v18182_v45  ;;  %v18184_v31 = vld [vmem:[#allocation84_spill] sm:$0xff]  ;;  %v18186_v12 = vld [vmem:[#allocation86_spill] sm:$0xff]  ;;  %v18194_v45 = vld [vmem:[#allocation101_spill] sm:$0xff] }
  0x87   :  { %v18185_v15 = vand.u32 4294901760, %v18184_v31  ;;  %v18187_v27 = vand.u32 4294901760, %v18186_v12  ;;  %v18195_v63 = vand.u32 4294901760, %v18194_v45  ;;  %v18197_v31 = vand.u32 4294901760, %v12024_v49 }
  0x88   :  { %9320 = vmatpush3.bf16.xpose.msra.mxu0 %v9319_v2  ;;  %v9355_v2 = vpack.c.bf16 %v18156_v22, %v18155_v26  ;;  %v18190_v26 = vld [vmem:[#allocation93_spill] sm:$0xff]  ;;  %v18198_v12 = vand.u32 4294901760, %v12029_v25 }
  0x89   :  { %9536 = vmatpush3.bf16.xpose.msra.mxu1 %v18178_v46  ;;  %9322 = vmatprep.subr.bf16.mxu0 %v9321_v29  ;;  %v9357_v46 = vpack.c.bf16 %v11692_v18, %v11682_v62  ;;  %v18180_v29 = vld [vmem:[#allocation75_spill] sm:$0xff]  ;;  %v12073_v22 = vpack.c.bf16 %v18187_v27, %v18185_v15  ;;  %v872_v27 = vsub.f32 %v12024_v49, %v18197_v31  ;;  %v18200_v18 = vld [vmem:[#allocation106_spill] sm:$0xff] }
  0x8a   :  { %9538 = vmatprep.subr.bf16.mxu1 %v18179_v55  ;;  %v18181_v50 = vand.u32 4294901760, %v18180_v29  ;;  %v18188_v62 = vld [vmem:[#allocation91_spill] sm:$0xff]  ;;  %v18191_v29 = vand.u32 4294901760, %v18190_v26  ;;  %v879_v15 = vsub.f32 %v12029_v25, %v18198_v12  ;;  %v18201_v26 = vand.u32 4294901760, %v18200_v18  ;;  %v18205_v12 = vld [vmem:[#allocation69_spill] sm:$0xff]  ;;  %v18208_v18 = vld [vmem:[#allocation74_spill] sm:$0xff] }
  0x8b   :  { %v18189_v55 = vand.u32 4294901760, %v18188_v62  ;;  %v18199_v62 = vand.u32 4294901760, %v11825_v20  ;;  %v18207_v20 = vpack.c.bf16 %v18205_v12, %v18206_v61 }
  0x8c   :  { %v12065_v58 = vpack.c.bf16 %v18183_v60, %v18181_v50  ;;  %v18192_v60 = vld [vmem:[#allocation99_spill] sm:$0xff]  ;;  %v880_v45 = vand.u32 4294901760, %v879_v15 }
  0x8d   :  { %v12081_v4 = vpack.c.bf16 %v18191_v29, %v18189_v55  ;;  %v18193_v50 = vand.u32 4294901760, %v18192_v60  ;;  %v12099_v55 = vpack.c.bf16 %v18201_v26, %v18199_v62  ;;  %v18202_v29 = vpack.c.bf16 %v11474_v41, %v11463_v36  ;;  %v18209_v62 = vld [vmem:[#allocation73_spill] sm:$0xff] }
  0x8e   :  { %v18210_v26 = vpack.c.bf16 %v18208_v18, %v18209_v62 }
  0x8f   :  { %v12087_v28 = vpack.c.bf16 %v18195_v63, %v18193_v50  ;;  %v18203_v63 = vld [vmem:[#allocation61_spill] sm:$0xff]  ;;  %v873_v50 = vand.u32 4294901760, %v872_v27  ;;  %v18216_v27 = vand.u32 4294901760, %v11859_v23 }
  0x90   :  { %9324 = vmatpush3.bf16.xpose.msra.mxu0 %v9323_v19  ;;  %v18204_v60 = vpack.c.bf16 %v18153_v54, %v18203_v63  ;;  %v18212_v19 = vld [vmem:[#allocation80_spill] sm:$0xff] }
  0x91   :  { %18196 = vst [vmem:[#allocation63_spill] sm:$0xff] %v12087_v28  ;;  %9540 = vmatpush3.bf16.xpose.msra.mxu1 %v18202_v29  ;;  %9326 = vmatprep.subr.bf16.mxu0 %v9325_v1  ;;  %v9329_v31 = vpack.c.bf16 %v880_v45, %v873_v50  ;;  %v18211_v29 = vld [vmem:[#allocation83_spill] sm:$0xff]  ;;  %v18214_v1 = vld [vmem:[#allocation97_spill] sm:$0xff] }
  0x92   :  { %9542 = vmatprep.subr.bf16.mxu1 %v18204_v60  ;;  %v18213_v9 = vpack.c.bf16 %v18211_v29, %v18212_v19  ;;  %v18217_v60 = vld [vmem:[#allocation100_spill] sm:$0xff]  ;;  %v18218_v50 = vld [vmem:[#allocation5_spill] sm:$0xff] }
  0x93   :  { %v18219_v45 = vand.u32 4294901760, %v18218_v50 }
  0x98   :  { %9328 = vmatpush3.bf16.xpose.msra.mxu0 %v9327_v5  ;;  %v18215_v5 = vand.u32 4294901760, %v11852_v59  ;;  %v18224_v59 = vld [vmem:[#allocation18_spill] sm:$0xff] }
  0x99   :  { %9544 = vmatpush3.bf16.xpose.msra.mxu1 %v18207_v20  ;;  %9330 = vmatprep.subr.bf16.mxu0 %v9329_v31  ;;  %v18228_v31 = vld [vmem:[#allocation23_spill] sm:$0xff] }
  0x9a   :  { %9546 = vmatprep.subr.bf16.mxu1 %v18210_v26  ;;  %v12121_v15 = vpack.c.bf16 %v18216_v27, %v18215_v5  ;;  %v18229_v20 = vand.u32 4294901760, %v18228_v31  ;;  %v18233_v5 = vld [vmem:[#allocation29_spill] sm:$0xff] }
  0x9b   :  { %v18234_v27 = vand.u32 4294901760, %v18233_v5  ;;  %v18249_v5 = vld [vmem:[#allocation52_spill] sm:$0xff] }
  0xa0   :  { %9332 = vmatpush3.bf16.xpose.msra.mxu0 %v9331_v11 }
  0xa1   :  { %9548 = vmatpush3.bf16.xpose.msra.mxu1 %v18213_v9  ;;  %9334 = vmatprep.subr.bf16.mxu0 %v9333_v6  ;;  %v18220_v9 = vld [vmem:[#allocation11_spill] sm:$0xff]  ;;  %v18222_v6 = vld [vmem:[#allocation16_spill] sm:$0xff] }
  0xa2   :  { %9550 = vmatprep.subr.bf16.mxu1 %v9549_v30  ;;  %v18221_v11 = vand.u32 4294901760, %v18220_v9 }
  0xa4   :  { %v12128_v30 = vpack.c.bf16 %v18221_v11, %v18219_v45  ;;  %v18235_v45 = vld [vmem:[#allocation35_spill] sm:$0xff]  ;;  %v18237_v11 = vld [vmem:[#allocation36_spill] sm:$0xff] }
  0xa5   :  { %v18236_v9 = vand.u32 4294901760, %v18235_v45 }
  0xa7   :  { %8112 = vmatmul.mubr.f32.vlgmr.msra.gmra.mrb[0].mxu0 %v18214_v1 }
  0xa8   :  { %9336 = vmatpush3.bf16.xpose.msra.mxu0 %v9335_v42  ;;  %8145 = vmatprep.mubr.f32.mxu0 %v18217_v60 }
  0xa9   :  { %9552 = vmatpush3.bf16.xpose.msra.mxu1 %v9551_v40  ;;  %9338 = vmatprep.subr.bf16.mxu0 %v9337_v7  ;;  %v18223_v40 = vand.u32 4294901760, %v18222_v6  ;;  %v18225_v7 = vand.u32 4294901760, %v18224_v59  ;;  %v18238_v6 = vand.u32 4294901760, %v18237_v11  ;;  %v18241_v59 = vld [vmem:[#allocation42_spill] sm:$0xff] }
  0xaa   :  { %9554 = vmatprep.subr.bf16.mxu1 %v9553_v35  ;;  %v18226_v35 = vld [vmem:[#allocation21_spill] sm:$0xff] }
  0xab   :  { %v12135_v23 = vpack.c.bf16 %v18225_v7, %v18223_v40  ;;  %v18227_v42 = vand.u32 4294901760, %v18226_v35  ;;  %v12157_v40 = vpack.c.bf16 %v18238_v6, %v18236_v9  ;;  %v18242_v7 = vand.u32 4294901760, %v18241_v59  ;;  %v18251_v9 = vld [vmem:[#allocation56_spill] sm:$0xff]  ;;  %v18253_v6 = vld [vmem:[#allocation57_spill] sm:$0xff] }
  0xac   :  { %v18252_v11 = vand.u32 4294901760, %v18251_v9  ;;  %v18257_v59 = vld [vmem:[#allocation64_spill] sm:$0xff]  ;;  %v18267_v9 = vld [vmem:[#allocation9_spill] sm:$0xff] }
  0xad   :  { %v12141_v26 = vpack.c.bf16 %v18229_v20, %v18227_v42  ;;  %v18243_v42 = vld [vmem:[#allocation46_spill] sm:$0xff]  ;;  %v18245_v20 = vld [vmem:[#allocation47_spill] sm:$0xff] }
  0xae   :  { %v18244_v31 = vand.u32 4294901760, %v18243_v42 }
  0xb0   :  { %9340 = vmatpush3.bf16.xpose.msra.mxu0 %v9339_v39 }
  0xb1   :  { %9556 = vmatpush3.bf16.xpose.msra.mxu1 %v9555_v16  ;;  %9342 = vmatprep.subr.bf16.mxu0 %v9341_v48  ;;  %v18230_v16 = vld [vmem:[#allocation102_spill] sm:$0xff] }
  0xb2   :  { %9558 = vmatprep.subr.bf16.mxu1 %v12128_v30  ;;  %v18231_v48 = vld [vmem:[#allocation26_spill] sm:$0xff] }
  0xb3   :  { %v18232_v39 = vand.u32 4294901760, %v18231_v48  ;;  %v18246_v48 = vand.u32 4294901760, %v18245_v20 }
  0xb5   :  { %v12151_v50 = vpack.c.bf16 %v18234_v27, %v18232_v39  ;;  %v12171_v39 = vpack.c.bf16 %v18246_v48, %v18244_v31  ;;  %v18250_v27 = vand.u32 4294901760, %v18249_v5  ;;  %v18259_v31 = vld [vmem:[#allocation70_spill] sm:$0xff]  ;;  %v18261_v48 = vld [vmem:[#allocation71_spill] sm:$0xff]  ;;  %v18265_v5 = vpack.c.bf16 %v18167_v21, %v18166_v43 }
  0xb6   :  { %v18260_v20 = vand.u32 4294901760, %v18259_v31  ;;  %v18274_v31 = vld [vmem:[#allocation24_spill] sm:$0xff] }
  0xb8   :  { %8350 = vmatmul.mubr.f32.vlgmr.msra.gmra.mrb[0].mxu1 %v18217_v60  ;;  %9344 = vmatpush3.bf16.xpose.msra.mxu0 %v9343_v38 }
  0xb9   :  { %9560 = vmatpush3.bf16.xpose.msra.mxu1 %v12135_v23  ;;  %9346 = vmatprep.subr.bf16.mxu0 %v9345_v37  ;;  %v18239_v37 = vld [vmem:[#allocation41_spill] sm:$0xff] }
  0xba   :  { %9562 = vmatprep.subr.bf16.mxu1 %v12141_v26  ;;  %8383 = vmatprep.mubr.f32.mxu1 %v18230_v16  ;;  %v18240_v38 = vand.u32 4294901760, %v18239_v37  ;;  %v18254_v37 = vand.u32 4294901760, %v18253_v6  ;;  %v18269_v6 = vld [vmem:[#allocation15_spill] sm:$0xff] }
  0xbc   :  { %v12165_v35 = vpack.c.bf16 %v18242_v7, %v18240_v38  ;;  %v12185_v38 = vpack.c.bf16 %v18254_v37, %v18252_v11  ;;  %v18258_v7 = vand.u32 4294901760, %v18257_v59  ;;  %v18268_v11 = vld [vmem:[#allocation12_spill] sm:$0xff]  ;;  %v18270_v37 = vand.u32 4294901760, %v18269_v6 }
  0xc0   :  { %9348 = vmatpush3.bf16.xpose.msra.mxu0 %v9347_v0  ;;  %v18247_v0 = vld [vmem:[#allocation51_spill] sm:$0xff] }
  0xc1   :  { %9564 = vmatpush3.bf16.xpose.msra.mxu1 %v12151_v50  ;;  %9350 = vmatprep.subr.bf16.mxu0 %v9349_v32  ;;  %v18248_v32 = vand.u32 4294901760, %v18247_v0  ;;  %v18262_v0 = vand.u32 4294901760, %v18261_v48 }
  0xc2   :  { %9566 = vmatprep.subr.bf16.mxu1 %v12157_v40 }
  0xc3   :  { %v12179_v45 = vpack.c.bf16 %v18250_v27, %v18248_v32  ;;  %v12199_v32 = vpack.c.bf16 %v18262_v0, %v18260_v20  ;;  %v18266_v27 = vld [vmem:[#allocation6_spill] sm:$0xff]  ;;  %v18275_v20 = vld [vmem:[#allocation20_spill] sm:$0xff] }
  0xc4   :  { %v18276_v48 = vand.u32 4294901760, %v18275_v20  ;;  %v18277_v0 = vld [vmem:[#allocation22_spill] sm:$0xff] }
  0xc5   :  { %v18287_v20 = vld [vmem:[#allocation34_spill] sm:$0xff] }
  0xc8   :  { %9352 = vmatpush3.bf16.xpose.msra.mxu0 %v9351_v13  ;;  %v18255_v13 = vld [vmem:[#allocation62_spill] sm:$0xff] }
  0xc9   :  { %9568 = vmatpush3.bf16.xpose.msra.mxu1 %v12165_v35  ;;  %9354 = vmatprep.subr.bf16.mxu0 %v9353_v10  ;;  %v18256_v10 = vand.u32 4294901760, %v18255_v13  ;;  %v18271_v13 = vld [vmem:[#allocation17_spill] sm:$0xff] }
  0xca   :  { %9570 = vmatprep.subr.bf16.mxu1 %v12171_v39 }
  0xcb   :  { %v12193_v42 = vpack.c.bf16 %v18258_v7, %v18256_v10  ;;  %v18272_v10 = vand.u32 4294901760, %v18271_v13  ;;  %v18273_v7 = vld [vmem:[#allocation19_spill] sm:$0xff]  ;;  %v18284_v13 = vld [vmem:[#allocation38_spill] sm:$0xff] }
  0xcd   :  { %v9589_v59 = vpack.c.bf16 %v18272_v10, %v18270_v37  ;;  %v18283_v37 = vld [vmem:[#allocation30_spill] sm:$0xff]  ;;  %v18285_v10 = vld [vmem:[#allocation33_spill] sm:$0xff] }
  0xd0   :  { %9356 = vmatpush3.bf16.xpose.msra.mxu0 %v9355_v2  ;;  %v18263_v2 = vpack.c.bf16 %v18161_v17, %v18160_v51 }
  0xd1   :  { %9572 = vmatpush3.bf16.xpose.msra.mxu1 %v12179_v45  ;;  %9358 = vmatprep.subr.bf16.mxu0 %v9357_v46  ;;  %v18264_v46 = vpack.c.bf16 %v12029_v25, %v12024_v49 }
  0xd2   :  { %9574 = vmatprep.subr.bf16.mxu1 %v12185_v38 }
  0xd8   :  { %9360 = vmatpush3.bf16.xpose.msra.mxu0 %v18263_v2  ;;  %v18278_v2 = vand.u32 4294901760, %v18277_v0  ;;  %v18288_v0 = vand.u32 4294901760, %v18287_v20 }
  0xd9   :  { %9576 = vmatpush3.bf16.xpose.msra.mxu1 %v12193_v42  ;;  %9362 = vmatprep.subr.bf16.mxu0 %v18264_v46 }
  0xda   :  { %9578 = vmatprep.subr.bf16.mxu1 %v12199_v32  ;;  %v9591_v46 = vpack.c.bf16 %v18278_v2, %v18276_v48  ;;  %v18289_v2 = vand.u32 4294901760, %v11324_v14  ;;  %v18298_v14 = vld [vmem:[#allocation53_spill] sm:$0xff] }
  0xe0   :  { %9364 = vmatpush3.bf16.xpose.msra.mxu0 %v18265_v5  ;;  %v18279_v5 = vld [vmem:[#allocation27_spill] sm:$0xff] }
  0xe1   :  { %9580 = vmatpush3.bf16.xpose.msra.mxu1 %v12065_v58  ;;  %9366 = vmatprep.subr.bf16.mxu0 %v18266_v27 }
  0xe2   :  { %9582 = vmatprep.subr.bf16.mxu1 %v12073_v22 }
  0xe7   :  { %8146 = vmatmul.mubr.f32.vlgmr.msra.gmra.mrb[0].mxu0 %v18217_v60  ;;  %v18280_v60 = vand.u32 4294901760, %v18279_v5  ;;  %v18290_v5 = vld [vmem:[#allocation40_spill] sm:$0xff] }
  0xe8   :  { %9368 = vmatpush3.bf16.xpose.msra.mxu0 %v18267_v9  ;;  %8179 = vmatprep.mubr.f32.mxu0 %v18230_v16 }
  0xe9   :  { %9584 = vmatpush3.bf16.xpose.msra.mxu1 %v12081_v4  ;;  %9370 = vmatprep.subr.bf16.mxu0 %v18268_v11  ;;  %v18281_v11 = vld [vmem:[#allocation28_spill] sm:$0xff] }
  0xea   :  { %9586 = vmatprep.subr.bf16.mxu1 %v12087_v28  ;;  %v18282_v28 = vand.u32 4294901760, %v18281_v11  ;;  %v18291_v11 = vand.u32 4294901760, %v18290_v5 }
  0xec   :  { %v9593_v6 = vpack.c.bf16 %v18282_v28, %v18280_v60  ;;  %v9597_v28 = vpack.c.bf16 %v18291_v11, %v18289_v2  ;;  %v18292_v60 = vld [vmem:[#allocation44_spill] sm:$0xff]  ;;  %v18301_v2 = vand.u32 4294901760, %v11474_v41  ;;  %v18307_v11 = vand.u32 4294901760, %v18205_v12  ;;  %v18316_v12 = vld [vmem:[#allocation90_spill] sm:$0xff] }
  0xed   :  { %v18309_v41 = vand.u32 4294901760, %v18208_v18  ;;  %v18319_v18 = vand.u32 4294901760, %v18172_v33 }
  0xf0   :  { %9372 = vmatpush3.bf16.xpose.msra.mxu0 %v18273_v7 }
  0xf1   :  { %9588 = vmatpush3.bf16.xpose.msra.mxu1 %v12099_v55  ;;  %9374 = vmatprep.subr.bf16.mxu0 %v18274_v31 }
  0xf2   :  { %9590 = vmatprep.subr.bf16.mxu1 %v9589_v59  ;;  %v18286_v59 = vand.u32 4294901760, %v18285_v10  ;;  %v18296_v10 = vand.u32 4294901760, %v11421_v56  ;;  %v18304_v56 = vld [vmem:[#allocation66_spill] sm:$0xff] }
  0xf4   :  { %v9595_v48 = vpack.c.bf16 %v18288_v0, %v18286_v59  ;;  %v18297_v59 = vand.u32 4294901760, %v11439_v44  ;;  %v18299_v0 = vld [vmem:[#allocation58_spill] sm:$0xff]  ;;  %v18305_v44 = vld [vmem:[#allocation72_spill] sm:$0xff] }
  0xf6   :  { %v9601_v20 = vpack.c.bf16 %v18297_v59, %v18296_v10  ;;  %v18312_v10 = vand.u32 4294901760, %v18212_v19  ;;  %v18313_v59 = vand.u32 4294901760, %v18211_v29 }
  0xf8   :  { %8384 = vmatmul.mubr.f32.vlgmr.msra.gmra.mrb[0].mxu1 %v18230_v16  ;;  %9376 = vmatpush3.bf16.xpose.msra.mxu0 %v18283_v37 }
  0xf9   :  { %9592 = vmatpush3.bf16.xpose.msra.mxu1 %v9591_v46  ;;  %9378 = vmatprep.subr.bf16.mxu0 %v18284_v13  ;;  %v18293_v46 = vld [vmem:[#allocation48_spill] sm:$0xff]  ;;  %v18295_v13 = vand.u32 4294901760, %v11380_v3  ;;  %v18303_v3 = vand.u32 4294901760, %v18153_v54 }
  0xfa   :  { %9594 = vmatprep.subr.bf16.mxu1 %v9593_v6  ;;  %8417 = vmatprep.mubr.f32.mxu1 %v18214_v1  ;;  %v18294_v6 = vand.u32 4294901760, %v11375_v47  ;;  %v18302_v47 = vand.u32 4294901760, %v18203_v63  ;;  %v18310_v63 = vld [vmem:[#allocation78_spill] sm:$0xff]  ;;  %v18311_v54 = vld [vmem:[#allocation88_spill] sm:$0xff] }
  0xfc   :  { %v9599_v37 = vpack.c.bf16 %v18295_v13, %v18294_v6  ;;  %v9605_v13 = vpack.c.bf16 %v18303_v3, %v18302_v47  ;;  %v18320_v3 = vld [vmem:[#allocation94_spill] sm:$0xff] }
 0x100   :  { %9380 = vmatpush3.bf16.xpose.msra.mxu0 %v18292_v60 }
 0x101   :  { %9596 = vmatpush3.bf16.xpose.msra.mxu1 %v9595_v48  ;;  %9382 = vmatprep.subr.bf16.mxu0 %v18293_v46  ;;  %v18300_v48 = vand.u32 4294901760, %v11463_v36  ;;  %v18308_v36 = vand.u32 4294901760, %v18209_v62  ;;  %v18318_v62 = vand.u32 4294901760, %v18171_v57 }
 0x102   :  { %9598 = vmatprep.subr.bf16.mxu1 %v9597_v28 }
 0x103   :  { %v9603_v5 = vpack.c.bf16 %v18301_v2, %v18300_v48  ;;  %v9609_v6 = vpack.c.bf16 %v18309_v41, %v18308_v36  ;;  %v18317_v2 = vand.u32 4294901760, %v18316_v12  ;;  %v9397_v47 = vpack.c.bf16 %v18319_v18, %v18318_v62  ;;  %v18338_v18 = vld [vmem:[#allocation25_spill] sm:$0xff] }
 0x104   :  { %v18326_v36 = vand.u32 4294901760, %v18173_v34  ;;  %v18336_v34 = vand.u32 4294901760, %v11171_v53  ;;  %v18337_v62 = vand.u32 4294901760, %v11213_v8  ;;  %v18346_v53 = vld [vmem:[#allocation39_spill] sm:$0xff] }
 0x105   :  { %v18348_v8 = vld [vmem:[#allocation43_spill] sm:$0xff] }
 0x108   :  { %9384 = vmatpush3.bf16.xpose.msra.mxu0 %v18298_v14 }
 0x109   :  { %9600 = vmatpush3.bf16.xpose.msra.mxu1 %v9599_v37  ;;  %9386 = vmatprep.subr.bf16.mxu0 %v18299_v0  ;;  %v18306_v37 = vand.u32 4294901760, %v18206_v61  ;;  %v18314_v61 = vld [vmem:[#allocation89_spill] sm:$0xff] }
 0x10a   :  { %9602 = vmatprep.subr.bf16.mxu1 %v9601_v20  ;;  %v9611_v20 = vpack.c.bf16 %v18313_v59, %v18312_v10  ;;  %v18315_v48 = vand.u32 4294901760, %v18314_v61  ;;  %v18329_v10 = vld [vmem:[#allocation104_spill] sm:$0xff] }
 0x10b   :  { %v9607_v28 = vpack.c.bf16 %v18307_v11, %v18306_v37  ;;  %v18323_v37 = vld [vmem:[#allocation98_spill] sm:$0xff]  ;;  %v18330_v33 = vand.u32 4294901760, %v18329_v10 }
 0x10c   :  { %v18324_v29 = vand.u32 4294901760, %v18323_v37 }
 0x110   :  { %9388 = vmatpush3.bf16.xpose.msra.mxu0 %v18304_v56 }
 0x111   :  { %9604 = vmatpush3.bf16.xpose.msra.mxu1 %v9603_v5  ;;  %9390 = vmatprep.subr.bf16.mxu0 %v18305_v44  ;;  %v9613_v5 = vpack.c.bf16 %v18317_v2, %v18315_v48  ;;  %v18333_v48 = vld [vmem:[#allocation14_spill] sm:$0xff] }
 0x112   :  { %9606 = vmatprep.subr.bf16.mxu1 %v9605_v13  ;;  %v18321_v13 = vld [vmem:[#allocation96_spill] sm:$0xff]  ;;  %v18334_v12 = vand.u32 4294901760, %v18333_v48 }
 0x113   :  { %v18322_v19 = vand.u32 4294901760, %v18321_v13 }
 0x115   :  { %v9615_v11 = vpack.c.bf16 %v18324_v29, %v18322_v19  ;;  %v18340_v19 = vld [vmem:[#allocation31_spill] sm:$0xff]  ;;  %v18342_v29 = vld [vmem:[#allocation32_spill] sm:$0xff] }
 0x116   :  { %v18341_v37 = vand.u32 4294901760, %v18340_v19 }
 0x118   :  { %9392 = vmatpush3.bf16.xpose.msra.mxu0 %v18310_v63 }
 0x119   :  { %9608 = vmatpush3.bf16.xpose.msra.mxu1 %v9607_v28  ;;  %9394 = vmatprep.subr.bf16.mxu0 %v18311_v54  ;;  %v18325_v28 = vand.u32 4294901760, %v11111_v24  ;;  %v18335_v24 = vand.u32 4294901760, %v11169_v52  ;;  %v18344_v52 = vld [vmem:[#allocation37_spill] sm:$0xff] }
 0x11a   :  { %9610 = vmatprep.subr.bf16.mxu1 %v9609_v6  ;;  %v18327_v6 = vld [vmem:[#allocation103_spill] sm:$0xff] }
 0x11b   :  { %v9399_v41 = vpack.c.bf16 %v18326_v36, %v18325_v28  ;;  %v18328_v57 = vand.u32 4294901760, %v18327_v6  ;;  %v18345_v36 = vand.u32 4294901760, %v18344_v52 }
 0x11d   :  { %v9617_v59 = vpack.c.bf16 %v18330_v33, %v18328_v57  ;;  %v18350_v57 = vld [vmem:[#allocation45_spill] sm:$0xff] }
 0x11e   :  { %v18351_v10 = vand.u32 4294901760, %v18350_v57  ;;  %v18372_v57 = vand.u32 4294901760, %v18160_v51  ;;  %v18378_v51 = vld [vmem:[#allocation63_spill] sm:$0xff] }
 0x120   :  { %9396 = vmatpush3.bf16.xpose.msra.mxu0 %v18320_v3 }
 0x121   :  { %9612 = vmatpush3.bf16.xpose.msra.mxu1 %v9611_v20  ;;  %9398 = vmatprep.subr.bf16.mxu0 %v9397_v47  ;;  %v18331_v20 = vld [vmem:[#allocation13_spill] sm:$0xff]  ;;  %v18339_v47 = vand.u32 4294901760, %v18338_v18  ;;  %v18360_v18 = vld [vmem:[#allocation59_spill] sm:$0xff] }
 0x122   :  { %9614 = vmatprep.subr.bf16.mxu1 %v9613_v5  ;;  %v18332_v61 = vand.u32 4294901760, %v18331_v20  ;;  %v9403_v5 = vpack.c.bf16 %v18336_v34, %v18335_v24  ;;  %v18358_v34 = vld [vmem:[#allocation55_spill] sm:$0xff] }
 0x123   :  { %v9405_v13 = vpack.c.bf16 %v18339_v47, %v18337_v62  ;;  %v18361_v47 = vand.u32 4294901760, %v18360_v18  ;;  %v17431_v18 = vmov 0.0|0.0  }
 0x124   :  { %v9401_v2 = vpack.c.bf16 %v18334_v12, %v18332_v61  ;;  %v18354_v61 = vld [vmem:[#allocation50_spill] sm:$0xff] }
 0x125   :  { %v18355_v48 = vand.u32 4294901760, %v18354_v61 }
 0x127   :  { %8180 = vmatmul.mubr.f32.vlgmr.msra.gmra.mrb[0].mxu0 %v18230_v16 }
 0x128   :  { %9400 = vmatpush3.bf16.xpose.msra.mxu0 %v9399_v41  ;;  %8213 = vmatprep.mubr.f32.mxu0 %v18214_v1  ;;  %v18347_v41 = vand.u32 4294901760, %v18346_v53  ;;  %v18368_v53 = vld [vmem:[#allocation85_spill] sm:$0xff] }
 0x129   :  { %9616 = vmatpush3.bf16.xpose.msra.mxu1 %v9615_v11  ;;  %9402 = vmatprep.subr.bf16.mxu0 %v9401_v2  ;;  %v18343_v11 = vand.u32 4294901760, %v18342_v29  ;;  %v18356_v2 = vld [vmem:[#allocation54_spill] sm:$0xff]  ;;  %v18364_v29 = vld [vmem:[#allocation65_spill] sm:$0xff] }
 0x12a   :  { %9618 = vmatprep.subr.bf16.mxu1 %v9617_v59  ;;  %v9409_v6 = vpack.c.bf16 %v18347_v41, %v18345_v36  ;;  %v18352_v59 = vld [vmem:[#allocation49_spill] sm:$0xff]  ;;  %v18357_v24 = vand.u32 4294901760, %v18356_v2  ;;  %v18369_v41 = vand.u32 4294901760, %v18368_v53 }
 0x12b   :  { %v9407_v28 = vpack.c.bf16 %v18343_v11, %v18341_v37  ;;  %v18353_v20 = vand.u32 4294901760, %v18352_v59  ;;  %v18365_v11 = vand.u32 4294901760, %v18364_v29  ;;  %v18374_v59 = vand.u32 4294901760, %v12024_v49  ;;  %v131_v49 = vld [vmem:[%s17173_s0 + $0x300] sm:$0xff] }
 0x12c   :  { %v135_v29 = vld [vmem:[%s17173_s0 + $0x320] sm:$0xff] }
 0x12d   :  { %v9413_v12 = vpack.c.bf16 %v18355_v48, %v18353_v20  ;;  %v18375_v20 = vand.u32 4294901760, %v12029_v25  ;;  %v18376_v48 = vand.u32 4294901760, %v18166_v43  ;;  %v132_v25 = vld [vmem:[%s17173_s0 + $0x308] sm:$0xff]  ;;  %v12392_v43 = vsel %vm171_vm0, %v131_v49, 0  ;;  %v139_v49 = vld [vmem:[%s17173_s0 + $0x340] sm:$0xff] }
 0x12e   :  { %v12451_v53 = vsel %vm171_vm0, %v135_v29, 0 }
 0x12f   :  { %v9425_v61 = vpack.c.bf16 %v18375_v20, %v18374_v59 }
 0x130   :  { %9404 = vmatpush3.bf16.xpose.msra.mxu0 %v9403_v5  ;;  %v18359_v5 = vand.u32 4294901760, %v18358_v34  ;;  %v134_v34 = vld [vmem:[%s17173_s0 + $0x318] sm:$0xff] }
 0x131   :  { %9620 = vmatpush3.bf16.xpose.msra.mxu1 %v12121_v15  ;;  %9406 = vmatprep.subr.bf16.mxu0 %v9405_v13  ;;  %v18349_v15 = vand.u32 4294901760, %v18348_v8  ;;  %v18362_v13 = vld [vmem:[#allocation60_spill] sm:$0xff] }
 0x132   :  { %9622 = vmatprep.subr.bf16.mxu1 %v12128_v30  ;;  %v9415_v62 = vpack.c.bf16 %v18359_v5, %v18357_v24  ;;  %v18363_v19 = vand.u32 4294901760, %v18362_v13 }
 0x133   :  { %v9411_v33 = vpack.c.bf16 %v18351_v10, %v18349_v15  ;;  %v18373_v10 = vand.u32 4294901760, %v18161_v17  ;;  %v18379_v17 = vld [vmem:[#allocation12_spill] sm:$0xff] }
 0x134   :  { %v9417_v37 = vpack.c.bf16 %v18363_v19, %v18361_v47 }
 0x138   :  { %8418 = vmatmul.mubr.f32.vlgmr.msra.gmra.mrb[0].mxu1 %v18214_v1  ;;  %9408 = vmatpush3.bf16.xpose.msra.mxu0 %v9407_v28  ;;  %v18366_v28 = vld [vmem:[#allocation67_spill] sm:$0xff] }
 0x139   :  { %9624 = vmatpush3.bf16.xpose.msra.mxu1 %v12135_v23  ;;  %9410 = vmatprep.subr.bf16.mxu0 %v9409_v6  ;;  %v18367_v52 = vand.u32 4294901760, %v18366_v28  ;;  %v18370_v6 = vld [vmem:[#allocation87_spill] sm:$0xff] }
 0x13a   :  { %9626 = vmatprep.subr.bf16.mxu1 %v12141_v26  ;;  %8451 = vmatprep.mubr.f32.mxu1 %v18214_v1  ;;  %v18371_v8 = vand.u32 4294901760, %v18370_v6  ;;  %v17418_v6 = vmov 0.0  }
 0x13b   :  { %v9419_v36 = vpack.c.bf16 %v18367_v52, %v18365_v11  ;;  %v18382_v11 = vld [vmem:[#allocation30_spill] sm:$0xff] }
 0x13c   :  { %v9421_v15 = vpack.c.bf16 %v18371_v8, %v18369_v41 }
 0x140   :  { %9412 = vmatpush3.bf16.xpose.msra.mxu0 %v9411_v33  ;;  %v9423_v33 = vpack.c.bf16 %v18373_v10, %v18372_v57  ;;  %v137_v10 = vld [vmem:[%s17173_s0 + $0x330] sm:$0xff] }
 0x141   :  { %9628 = vmatpush3.bf16.xpose.msra.mxu1 %v12151_v50  ;;  %9414 = vmatprep.subr.bf16.mxu0 %v9413_v12  ;;  %v18377_v12 = vand.u32 4294901760, %v18167_v21  ;;  %v12395_v21 = vsel %vm171_vm0, %v132_v25, 0 }
 0x142   :  { %9630 = vmatprep.subr.bf16.mxu1 %v12157_v40  ;;  %v17414_v24 = vand.u32 4294901760, %v12395_v21 }
 0x143   :  { %v9427_v2 = vpack.c.bf16 %v18377_v12, %v18376_v48 }
 0x148   :  { %9416 = vmatpush3.bf16.xpose.msra.mxu0 %v9415_v62  ;;  %v12416_v62 = vsub.f32 %v12395_v21, %v17414_v24 }
 0x149   :  { %9632 = vmatpush3.bf16.xpose.msra.mxu1 %v12165_v35  ;;  %9418 = vmatprep.subr.bf16.mxu0 %v9417_v37 }
 0x14a   :  { %9634 = vmatprep.subr.bf16.mxu1 %v12171_v39  ;;  %18381 = vst [vmem:[#allocation79_spill] sm:$0xff] %v12416_v62 }
 0x150   :  { %9420 = vmatpush3.bf16.xpose.msra.mxu0 %v9419_v36  ;;  %v18385_v36 = vld [vmem:[#allocation38_spill] sm:$0xff] }
 0x151   :  { %9636 = vmatpush3.bf16.xpose.msra.mxu1 %v12179_v45  ;;  %9422 = vmatprep.subr.bf16.mxu0 %v9421_v15  ;;  %v17408_v15 = vand.u32 4294901760, %v12451_v53 }
 0x152   :  { %9638 = vmatprep.subr.bf16.mxu1 %v12185_v38 }
 0x153   :  { %v12471_v59 = vsub.f32 %v12451_v53, %v17408_v15 }
 0x155   :  { %18386 = vst [vmem:[#allocation7_spill] sm:$0xff] %v12471_v59 }
 0x158   :  { %9424 = vmatpush3.bf16.xpose.msra.mxu0 %v9423_v33  ;;  %v138_v33 = vld [vmem:[%s17173_s0 + $0x338] sm:$0xff] }
 0x159   :  { %9640 = vmatpush3.bf16.xpose.msra.mxu1 %v12193_v42  ;;  %9426 = vmatprep.subr.bf16.mxu0 %v9425_v61  ;;  %v12481_v61 = vsel %vm171_vm0, %v137_v10, 0  ;;  %v12484_v48 = vsel %vm171_vm0, %v138_v33, 0 }
 0x15a   :  { %9642 = vmatprep.subr.bf16.mxu1 %v12199_v32  ;;  %v17405_v12 = vand.u32 4294901760, %v12481_v61 }
 0x15c   :  { %v12500_v25 = vsub.f32 %v12481_v61, %v17405_v12 }
 0x15e   :  { %18388 = vst [vmem:[#allocation10_spill] sm:$0xff] %v12500_v25 }
 0x160   :  { %9428 = vmatpush3.bf16.xpose.msra.mxu0 %v9427_v2  ;;  %v17403_v2 = vand.u32 4294901760, %v12484_v48 }
 0x161   :  { %9644 = vmatpush3.bf16.xpose.msra.mxu1 %v12065_v58  ;;  %9430 = vmatprep.subr.bf16.mxu0 %v18266_v27  ;;  %v17416_v27 = vand.u32 4294901760, %v12392_v43 }
 0x162   :  { %9646 = vmatprep.subr.bf16.mxu1 %v12073_v22 }
 0x163   :  { %v12411_v5 = vsub.f32 %v12392_v43, %v17416_v27 }
 0x165   :  { %18380 = vst [vmem:[#allocation76_spill] sm:$0xff] %v12411_v5  ;;  %v9930_v13 = vpack.c.bf16 %v12416_v62, %v12411_v5 }
 0x167   :  { %8214 = vmatmul.mubr.f32.vlgmr.msra.gmra.mrb[0].mxu0 %v18214_v1 }
 0x168   :  { %9432 = vmatpush3.bf16.xpose.msra.mxu0 %v18267_v9  ;;  %8247 = vmatprep.mubr.f32.mxu0 %v18214_v1  ;;  %v133_v9 = vld [vmem:[%s17173_s0 + $0x310] sm:$0xff] }
 0x169   :  { %9648 = vmatpush3.bf16.xpose.msra.mxu1 %v12081_v4  ;;  %9434 = vmatprep.subr.bf16.mxu0 %v18379_v17  ;;  %v12421_v47 = vsel %vm171_vm0, %v133_v9, 0  ;;  %v12505_v17 = vsub.f32 %v12484_v48, %v17403_v2  ;;  %v12510_v9 = vsel %vm171_vm0, %v139_v49, 0  ;;  %v143_v49 = vld [vmem:[%s17173_s0 + $0x360] sm:$0xff] }
 0x16a   :  { %9650 = vmatprep.subr.bf16.mxu1 %v18378_v51  ;;  %v17412_v19 = vand.u32 4294901760, %v12421_v47 }
 0x16b   :  { %18389 = vst [vmem:[#allocation81_spill] sm:$0xff] %v12505_v17 }
 0x16c   :  { %v12441_v28 = vsub.f32 %v12421_v47, %v17412_v19 }
 0x16e   :  { %18383 = vst [vmem:[#allocation92_spill] sm:$0xff] %v12441_v28 }
 0x170   :  { %9436 = vmatpush3.bf16.xpose.msra.mxu0 %v18273_v7  ;;  %v12424_v7 = vsel %vm171_vm0, %v134_v34, 0 }
 0x171   :  { %9652 = vmatpush3.bf16.xpose.msra.mxu1 %v12099_v55  ;;  %9438 = vmatprep.subr.bf16.mxu0 %v18274_v31  ;;  %v17410_v37 = vand.u32 4294901760, %v12424_v7  ;;  %v136_v31 = vld [vmem:[%s17173_s0 + $0x328] sm:$0xff] }
 0x172   :  { %9929 = vmatprep.subr.bf16.mxu1 %v17431_v18  ;;  %v12454_v41 = vsel %vm171_vm0, %v136_v31, 0  ;;  %v141_v31 = vld [vmem:[%s17173_s0 + $0x350] sm:$0xff] }
 0x173   :  { %v12446_v52 = vsub.f32 %v12424_v7, %v17410_v37  ;;  %v17407_v57 = vand.u32 4294901760, %v12454_v41 }
 0x175   :  { %18384 = vst [vmem:[#allocation95_spill] sm:$0xff] %v12446_v52  ;;  %v9933_v8 = vpack.c.bf16 %v12446_v52, %v12441_v28  ;;  %v12476_v20 = vsub.f32 %v12454_v41, %v17407_v57  ;;  %v149_v57 = vld [vmem:[%s17173_s0 + $0x390] sm:$0xff] }
 0x176   :  { %v12657_v15 = vsel %vm171_vm0, %v149_v57, 0 }
 0x177   :  { %18387 = vst [vmem:[#allocation8_spill] sm:$0xff] %v12476_v20 }
 0x178   :  { %8452 = vmatmul.mubr.f32.vlgmr.msra.gmra.mrb[0].mxu1 %v18214_v1  ;;  %9440 = vmatpush3.bf16.xpose.msra.mxu0 %v18382_v11 }
 0x179   :  { %9931 = vmatpush1.bf16.xpose.msra.mxu1 %v9930_v13  ;;  %9442 = vmatprep.subr.bf16.mxu0 %v18385_v36  ;;  %v17401_v13 = vand.u32 4294901760, %v12510_v9 }
 0x17a   :  { %9932 = vmatprep.subr.bf16.mxu1 %v17431_v18  ;;  %3559 = vmatprep.mubr.f32.mxu1 %v17418_v6 }
 0x17b   :  { %v12529_v11 = vsub.f32 %v12510_v9, %v17401_v13 }
 0x17d   :  { %18390 = vst [vmem:[#allocation82_spill] sm:$0xff] %v12529_v11 }
 0x180   :  { %9444 = vmatpush3.bf16.xpose.msra.mxu0 %v18292_v60  ;;  %v9936_v60 = vpack.c.bf16 %v12476_v20, %v12471_v59  ;;  %v18441_v59 = vand.u32 4294901760, %v12484_v48  ;;  %v127_v48 = vld [vmem:[%s17173_s0 + $0x2e0] sm:$0xff] }
 0x181   :  { %9934 = vmatpush1.bf16.xpose.msra.mxu1 %v9933_v8  ;;  %9446 = vmatprep.subr.bf16.mxu0 %v18293_v46  ;;  %v140_v46 = vld [vmem:[%s17173_s0 + $0x348] sm:$0xff]  ;;  %v12539_v8 = vsel %vm171_vm0, %v141_v31, 0  ;;  %v12568_v31 = vsel %vm171_vm0, %v143_v49, 0 }
 0x182   :  { %9935 = vmatprep.subr.bf16.mxu1 %v17431_v18  ;;  %v12513_v34 = vsel %vm171_vm0, %v140_v46, 0  ;;  %v17397_v33 = vand.u32 4294901760, %v12539_v8 }
 0x183   :  { %v17399_v29 = vand.u32 4294901760, %v12513_v34  ;;  %v18446_v28 = vand.u32 4294901760, %v12513_v34 }
 0x184   :  { %v12558_v46 = vsub.f32 %v12539_v8, %v17397_v33 }
 0x185   :  { %v12534_v36 = vsub.f32 %v12513_v34, %v17399_v29  ;;  %v129_v34 = vld [vmem:[%s17173_s0 + $0x2f0] sm:$0xff] }
 0x186   :  { %18392 = vst [vmem:[#allocation77_spill] sm:$0xff] %v12558_v46 }
 0x187   :  { %18391 = vst [vmem:[#allocation75_spill] sm:$0xff] %v12534_v36 }
 0x188   :  { %9448 = vmatpush3.bf16.xpose.msra.mxu0 %v18298_v14  ;;  %v9939_v14 = vpack.c.bf16 %v12505_v17, %v12500_v25  ;;  %v18431_v17 = vand.u32 4294901760, %v12424_v7  ;;  %v106_v7 = vld [vmem:[%s17173_s0 + $0x238] sm:$0xff] }
 0x189   :  { %9937 = vmatpush1.bf16.xpose.msra.mxu1 %v9936_v60  ;;  %9450 = vmatprep.subr.bf16.mxu0 %v18299_v0  ;;  %v142_v0 = vld [vmem:[%s17173_s0 + $0x358] sm:$0xff] }
 0x18a   :  { %9938 = vmatprep.subr.bf16.mxu1 %v17431_v18  ;;  %v12542_v10 = vsel %vm171_vm0, %v142_v0, 0 }
 0x18b   :  { %v17398_v60 = vand.u32 4294901760, %v12542_v10 }
 0x190   :  { %9452 = vmatpush3.bf16.xpose.msra.mxu0 %v18304_v56  ;;  %v9942_v56 = vpack.c.bf16 %v12534_v36, %v12529_v11 }
 0x191   :  { %9940 = vmatpush1.bf16.xpose.msra.mxu1 %v9939_v14  ;;  %9454 = vmatprep.subr.bf16.mxu0 %v18305_v44  ;;  %v144_v44 = vld [vmem:[%s17173_s0 + $0x368] sm:$0xff]  ;;  %v12563_v14 = vsub.f32 %v12542_v10, %v17398_v60  ;;  %v145_v60 = vld [vmem:[%s17173_s0 + $0x370] sm:$0xff] }
 0x192   :  { %9941 = vmatprep.subr.bf16.mxu1 %v17431_v18  ;;  %v12571_v0 = vsel %vm171_vm0, %v144_v44, 0  ;;  %v12597_v29 = vsel %vm171_vm0, %v145_v60, 0 }
 0x193   :  { %18393 = vst [vmem:[#allocation84_spill] sm:$0xff] %v12563_v14  ;;  %v17402_v33 = vand.u32 4294901760, %v12571_v0 }
 0x195   :  { %v12592_v44 = vsub.f32 %v12571_v0, %v17402_v33  ;;  %v147_v33 = vld [vmem:[%s17173_s0 + $0x380] sm:$0xff] }
 0x196   :  { %v12627_v2 = vsel %vm171_vm0, %v147_v33, 0 }
 0x197   :  { %18395 = vst [vmem:[#allocation91_spill] sm:$0xff] %v12592_v44  ;;  %v17409_v12 = vand.u32 4294901760, %v12627_v2 }
 0x198   :  { %9456 = vmatpush3.bf16.xpose.msra.mxu0 %v18310_v63  ;;  %v9945_v63 = vpack.c.bf16 %v12563_v14, %v12558_v46 }
 0x199   :  { %9943 = vmatpush1.bf16.xpose.msra.mxu1 %v9942_v56  ;;  %9458 = vmatprep.subr.bf16.mxu0 %v18311_v54  ;;  %v17400_v56 = vand.u32 4294901760, %v12568_v31  ;;  %v146_v54 = vld [vmem:[%s17173_s0 + $0x378] sm:$0xff]  ;;  %v12647_v33 = vsub.f32 %v12627_v2, %v17409_v12  ;;  %v17413_v12 = vand.u32 4294901760, %v12657_v15 }
 0x19a   :  { %9944 = vmatprep.subr.bf16.mxu1 %v17431_v18 }
 0x19b   :  { %v12587_v49 = vsub.f32 %v12568_v31, %v17400_v56  ;;  %v17404_v56 = vand.u32 4294901760, %v12597_v29  ;;  %18399 = vst [vmem:[#allocation101_spill] sm:$0xff] %v12647_v33  ;;  %v12676_v57 = vsub.f32 %v12657_v15, %v17413_v12 }
 0x19d   :  { %18394 = vst [vmem:[#allocation86_spill] sm:$0xff] %v12587_v49  ;;  %v12617_v60 = vsub.f32 %v12597_v29, %v17404_v56  ;;  %18401 = vst [vmem:[#allocation61_spill] sm:$0xff] %v12676_v57 }
 0x19f   :  { %18396 = vst [vmem:[#allocation93_spill] sm:$0xff] %v12617_v60 }
 0x1a0   :  { %9460 = vmatpush3.bf16.xpose.msra.mxu0 %v18320_v3  ;;  %v9948_v3 = vpack.c.bf16 %v12592_v44, %v12587_v49 }
 0x1a1   :  { %9946 = vmatpush1.bf16.xpose.msra.mxu1 %v9945_v63  ;;  %9462 = vmatprep.subr.bf16.mxu0 %v12128_v30  ;;  %v12600_v63 = vsel %vm171_vm0, %v146_v54, 0  ;;  %v148_v30 = vld [vmem:[%s17173_s0 + $0x388] sm:$0xff] }
 0x1a2   :  { %9947 = vmatprep.subr.bf16.mxu1 %v17431_v18  ;;  %v17406_v13 = vand.u32 4294901760, %v12600_v63 }
 0x1a4   :  { %v12622_v54 = vsub.f32 %v12600_v63, %v17406_v13 }
 0x1a6   :  { %18397 = vst [vmem:[#allocation99_spill] sm:$0xff] %v12622_v54  ;;  %v9951_v56 = vpack.c.bf16 %v12622_v54, %v12617_v60 }
 0x1a7   :  { %8248 = vmatmul.mubr.f32.vlgmr.msra.gmra.mrb[0].mxu0 %v18214_v1 }
 0x1a8   :  { %9464 = vmatpush3.bf16.xpose.msra.mxu0 %v12135_v23  ;;  %v18398_v23 = vld [vmem:[#allocation105_spill] sm:$0xff] }
 0x1a9   :  { %9949 = vmatpush1.bf16.xpose.msra.mxu1 %v9948_v3  ;;  %9466 = vmatprep.subr.bf16.mxu0 %v12141_v26  ;;  %v12630_v3 = vsel %vm171_vm0, %v148_v30, 0  ;;  %v150_v26 = vld [vmem:[%s17173_s0 + $0x398] sm:$0xff] }
 0x1aa   :  { %9950 = vmatprep.subr.bf16.mxu1 %v17431_v18  ;;  %8281 = vmatprep.mubr.f32.mxu0 %v18398_v23  ;;  %v17411_v13 = vand.u32 4294901760, %v12630_v3 }
 0x1ac   :  { %v12652_v30 = vsub.f32 %v12630_v3, %v17411_v13  ;;  %v151_v13 = vld [vmem:[%s17173_s0 + $0x3a0] sm:$0xff] }
 0x1ad   :  { %v12686_v19 = vsel %vm171_vm0, %v151_v13, 0 }
 0x1ae   :  { %18400 = vst [vmem:[#allocation106_spill] sm:$0xff] %v12652_v30  ;;  %v17417_v12 = vand.u32 4294901760, %v12686_v19 }
 0x1b0   :  { %9468 = vmatpush3.bf16.xpose.msra.mxu0 %v12151_v50  ;;  %v9954_v50 = vpack.c.bf16 %v12652_v30, %v12647_v33  ;;  %v12705_v13 = vsub.f32 %v12686_v19, %v17417_v12 }
 0x1b1   :  { %9952 = vmatpush1.bf16.xpose.msra.mxu1 %v9951_v56  ;;  %9470 = vmatprep.subr.bf16.mxu0 %v12157_v40  ;;  %v12660_v56 = vsel %vm171_vm0, %v150_v26, 0  ;;  %v152_v40 = vld [vmem:[%s17173_s0 + $0x3a8] sm:$0xff] }
 0x1b2   :  { %9953 = vmatprep.subr.bf16.mxu1 %v17431_v18  ;;  %v17415_v37 = vand.u32 4294901760, %v12660_v56  ;;  %18403 = vst [vmem:[#allocation68_spill] sm:$0xff] %v12705_v13 }
 0x1b4   :  { %v12681_v26 = vsub.f32 %v12660_v56, %v17415_v37  ;;  %v153_v37 = vld [vmem:[%s17173_s0 + $0x3b0] sm:$0xff] }
 0x1b5   :  { %v12715_v27 = vsel %vm171_vm0, %v153_v37, 0 }
 0x1b6   :  { %18402 = vst [vmem:[#allocation69_spill] sm:$0xff] %v12681_v26  ;;  %v17423_v12 = vand.u32 4294901760, %v12715_v27 }
 0x1b8   :  { %9472 = vmatpush3.bf16.xpose.msra.mxu0 %v12165_v35  ;;  %v9957_v35 = vpack.c.bf16 %v12681_v26, %v12676_v57  ;;  %v12734_v37 = vsub.f32 %v12715_v27, %v17423_v12 }
 0x1b9   :  { %9955 = vmatpush1.bf16.xpose.msra.mxu1 %v9954_v50  ;;  %9474 = vmatprep.subr.bf16.mxu0 %v12171_v39  ;;  %v12689_v50 = vsel %vm171_vm0, %v152_v40, 0  ;;  %v154_v39 = vld [vmem:[%s17173_s0 + $0x3b8] sm:$0xff] }
 0x1ba   :  { %9956 = vmatprep.subr.bf16.mxu1 %v17431_v18  ;;  %v17420_v24 = vand.u32 4294901760, %v12689_v50  ;;  %18405 = vst [vmem:[#allocation73_spill] sm:$0xff] %v12734_v37 }
 0x1bc   :  { %v12710_v40 = vsub.f32 %v12689_v50, %v17420_v24  ;;  %v155_v24 = vld [vmem:[%s17173_s0 + $0x3c0] sm:$0xff] }
 0x1be   :  { %18404 = vst [vmem:[#allocation74_spill] sm:$0xff] %v12710_v40 }
 0x1c0   :  { %9476 = vmatpush3.bf16.xpose.msra.mxu0 %v12179_v45  ;;  %v9960_v45 = vpack.c.bf16 %v12710_v40, %v12705_v13  ;;  %v12744_v40 = vsel %vm171_vm0, %v155_v24, 0 }
 0x1c1   :  { %9958 = vmatpush1.bf16.xpose.msra.mxu1 %v9957_v35  ;;  %9478 = vmatprep.subr.bf16.mxu0 %v12185_v38  ;;  %v12718_v35 = vsel %vm171_vm0, %v154_v39, 0  ;;  %v156_v38 = vld [vmem:[%s17173_s0 + $0x3c8] sm:$0xff]  ;;  %v17429_v12 = vand.u32 4294901760, %v12744_v40 }
 0x1c2   :  { %9959 = vmatprep.subr.bf16.mxu1 %v17431_v18  ;;  %v17426_v6 = vand.u32 4294901760, %v12718_v35 }
 0x1c3   :  { %v12763_v24 = vsub.f32 %v12744_v40, %v17429_v12  ;;  %v116_v12 = vld [vmem:[%s17173_s0 + $0x288] sm:$0xff] }
 0x1c4   :  { %v12739_v39 = vsub.f32 %v12718_v35, %v17426_v6  ;;  %v157_v6 = vld [vmem:[%s17173_s0 + $0x3d0] sm:$0xff] }
 0x1c5   :  { %18407 = vst [vmem:[#allocation80_spill] sm:$0xff] %v12763_v24 }
 0x1c6   :  { %18406 = vst [vmem:[#allocation83_spill] sm:$0xff] %v12739_v39 }
 0x1c8   :  { %9480 = vmatpush3.bf16.xpose.msra.mxu0 %v12193_v42  ;;  %v9963_v42 = vpack.c.bf16 %v12739_v39, %v12734_v37  ;;  %v12773_v39 = vsel %vm171_vm0, %v157_v6, 0 }
 0x1c9   :  { %9961 = vmatpush1.bf16.xpose.msra.mxu1 %v9960_v45  ;;  %9482 = vmatprep.subr.bf16.mxu0 %v12199_v32  ;;  %v12747_v45 = vsel %vm171_vm0, %v156_v38, 0  ;;  %v158_v32 = vld [vmem:[%s17173_s0 + $0x3d8] sm:$0xff] }
 0x1ca   :  { %9962 = vmatprep.subr.bf16.mxu1 %v17431_v18  ;;  %v17430_v13 = vand.u32 4294901760, %v12747_v45 }
 0x1cc   :  { %v12768_v38 = vsub.f32 %v12747_v45, %v17430_v13 }
 0x1ce   :  { %18408 = vst [vmem:[#allocation5_spill] sm:$0xff] %v12768_v38  ;;  %v9966_v13 = vpack.c.bf16 %v12768_v38, %v12763_v24  ;;  %v18411_v24 = vmov 0.0|0.0  }
 0x1d0   :  { %9484 = vmatpush3.bf16.xpose.msra.mxu0 %v12065_v58  ;;  %v115_v58 = vld [vmem:[%s17173_s0 + $0x280] sm:$0xff] }
 0x1d1   :  { %9964 = vmatpush1.bf16.xpose.msra.mxu1 %v9963_v42  ;;  %9486 = vmatprep.subr.bf16.mxu0 %v12073_v22  ;;  %v12776_v42 = vsel %vm171_vm0, %v158_v32, 0  ;;  %v12789_v6 = vsel %vm171_vm0, %v115_v58, 0  ;;  %v12792_v32 = vsel %vm171_vm0, %v116_v12, 0  ;;  %v99_v58 = vld [vmem:[%s17173_s0 + $0x200] sm:$0xff] }
 0x1d2   :  { %9965 = vmatprep.subr.bf16.mxu1 %v17431_v18  ;;  %v17440_v18 = vand.u32 4294901760, %v12773_v39  ;;  %v17439_v22 = vand.u32 4294901760, %v12776_v42  ;;  %v18412_v26 = vand.u32 4294901760, %v12789_v6  ;;  %v18413_v57 = vand.u32 4294901760, %v12792_v32 }
 0x1d3   :  { %v12834_v33 = vsel %vm171_vm0, %v99_v58, 0  ;;  %v18416_v58 = vmov 0.0  }
 0x1d4   :  { %v12798_v37 = vsub.f32 %v12773_v39, %v17440_v18  ;;  %v12803_v38 = vsub.f32 %v12776_v42, %v17439_v22  ;;  %v100_v22 = vld [vmem:[%s17173_s0 + $0x208] sm:$0xff]  ;;  %v118_v18 = vld [vmem:[%s17173_s0 + $0x298] sm:$0xff]  ;;  %v12831_v30 = vpack.c.bf16 %v18413_v57, %v18412_v26  ;;  %v17469_v57 = vand.u32 4294901760, %v12834_v33 }
 0x1d5   :  { %v12837_v54 = vsel %vm171_vm0, %v100_v22, 0  ;;  %v12843_v44 = vsel %vm171_vm0, %v118_v18, 0  ;;  %v101_v18 = vld [vmem:[%s17173_s0 + $0x210] sm:$0xff]  ;;  %v120_v26 = vld [vmem:[%s17173_s0 + $0x2a8] sm:$0xff] }
 0x1d6   :  { %18409 = vst [vmem:[#allocation11_spill] sm:$0xff] %v12798_v37  ;;  %18410 = vst [vmem:[#allocation16_spill] sm:$0xff] %v12803_v38  ;;  %v12882_v14 = vsel %vm171_vm0, %v101_v18, 0  ;;  %v12891_v36 = vsel %vm171_vm0, %v120_v26, 0 }
 0x1d7   :  { %18414 = vst [vmem:[#allocation18_spill] sm:$0xff] %v12831_v30  ;;  %v17481_v18 = vand.u32 4294901760, %v12882_v14 }
 0x1d8   :  { %9488 = vmatpush3.bf16.xpose.msra.mxu0 %v12081_v4  ;;  %v159_v4 = vld [vmem:[%s17173_s0 + $0x3e0] sm:$0xff] }
 0x1d9   :  { %9967 = vmatpush1.bf16.xpose.msra.mxu1 %v9966_v13  ;;  %9490 = vmatprep.subr.bf16.mxu0 %v18378_v51  ;;  %v117_v51 = vld [vmem:[%s17173_s0 + $0x290] sm:$0xff]  ;;  %v9969_v13 = vpack.c.bf16 %v12803_v38, %v12798_v37  ;;  %v548_v12 = vsel %vm171_vm0, %v159_v4, 0 }
 0x1da   :  { %9968 = vmatprep.subr.bf16.mxu1 %v18411_v24  ;;  %v12840_v60 = vsel %vm171_vm0, %v117_v51, 0  ;;  %v12846_v4 = vand.u32 4294901760, %v548_v12  ;;  %v18418_v51 = vand.u32 4294901760, %v12837_v54 }
 0x1db   :  { %v18420_v37 = vand.u32 4294901760, %v12840_v60 }
 0x1dc   :  { %18415 = vst [vmem:[#allocation21_spill] sm:$0xff] %v12846_v4  ;;  %v12867_v22 = vsub.f32 %v548_v12, %v12846_v4  ;;  %v12873_v38 = vpack.c.bf16 %v18418_v51, %v17469_v57  ;;  %v18423_v51 = vand.u32 4294901760, %v12392_v43  ;;  %v103_v43 = vld [vmem:[%s17173_s0 + $0x220] sm:$0xff]  ;;  %v122_v57 = vld [vmem:[%s17173_s0 + $0x2b8] sm:$0xff] }
 0x1de   :  { %18417 = vst [vmem:[#allocation23_spill] sm:$0xff] %v12867_v22  ;;  %18419 = vst [vmem:[#allocation26_spill] sm:$0xff] %v12873_v38 }
 0x1e0   :  { %9492 = vmatpush3.bf16.xpose.msra.mxu0 %v12099_v55  ;;  %v102_v55 = vld [vmem:[%s17173_s0 + $0x218] sm:$0xff] }
 0x1e1   :  { %9970 = vmatpush1.bf16.xpose.msra.mxu1 %v9969_v13  ;;  %9654 = vmatprep.subr.bf16.mxu0 %v12831_v30  ;;  %v119_v13 = vld [vmem:[%s17173_s0 + $0x2a0] sm:$0xff]  ;;  %v18421_v30 = vand.u32 4294901760, %v12843_v44  ;;  %v12885_v46 = vsel %vm171_vm0, %v102_v55, 0 }
 0x1e2   :  { %3549 = vmatprep.subr.mxu1 %v18416_v58  ;;  %v12888_v12 = vsel %vm171_vm0, %v119_v13, 0  ;;  %v17480_v55 = vand.u32 4294901760, %v12885_v46 }
 0x1e3   :  { %v12879_v49 = vpack.c.bf16 %v18421_v30, %v18420_v37  ;;  %v18424_v30 = vand.u32 4294901760, %v12395_v21  ;;  %v17486_v26 = vand.u32 4294901760, %v12888_v12  ;;  %v104_v21 = vld [vmem:[%s17173_s0 + $0x228] sm:$0xff] }
 0x1e4   :  { %v12927_v13 = vpack.c.bf16 %v17480_v55, %v17481_v18  ;;  %v12947_v55 = vsel %vm171_vm0, %v122_v57, 0  ;;  %v18430_v18 = vand.u32 4294901760, %v12421_v47  ;;  %v105_v47 = vld [vmem:[%s17173_s0 + $0x230] sm:$0xff]  ;;  %v124_v57 = vld [vmem:[%s17173_s0 + $0x2c8] sm:$0xff] }
 0x1e5   :  { %18422 = vst [vmem:[#allocation29_spill] sm:$0xff] %v12879_v49  ;;  %v12899_v37 = vpack.c.bf16 %v18424_v30, %v18423_v51  ;;  %v18426_v51 = vld [vmem:[#allocation100_spill] sm:$0xff]  ;;  %v121_v30 = vld [vmem:[%s17173_s0 + $0x2b0] sm:$0xff] }
 0x1e6   :  { %18427 = vst [vmem:[#allocation36_spill] sm:$0xff] %v12927_v13  ;;  %v12944_v11 = vsel %vm171_vm0, %v121_v30, 0  ;;  %v12953_v25 = vpack.c.bf16 %v18431_v17, %v18430_v18  ;;  %v17497_v30 = vand.u32 4294901760, %v12947_v55  ;;  %v123_v17 = vld [vmem:[%s17173_s0 + $0x2c0] sm:$0xff] }
 0x1e7   :  { %8282 = vmatmul.mubr.f32.vlgmr.msra.gmra.mrb[2].mxu0 %v18398_v23  ;;  %18425 = vst [vmem:[#allocation35_spill] sm:$0xff] %v12899_v37 }
 0x1e8   :  { %9656 = vmatpush3.bf16.xpose.msra.mxu0 %v12873_v38  ;;  %8485 = vmatprep.mubr.f32.mxu0 %v18398_v23  ;;  %v12938_v38 = vsel %vm171_vm0, %v103_v43, 0  ;;  %18432 = vst [vmem:[#allocation42_spill] sm:$0xff] %v12953_v25 }
 0x1e9   :  { %3552 = vmatpush1.xpose.msra.mxu1 %v12867_v22  ;;  %9658 = vmatprep.subr.bf16.mxu0 %v12879_v49  ;;  %v18428_v22 = vand.u32 4294901760, %v12891_v36 }
 0x1ea   :  { %9971 = vmatprep.subr.bf16.mxu1 %v18411_v24 }
 0x1eb   :  { %v12935_v49 = vpack.c.bf16 %v18428_v22, %v17486_v26  ;;  %v17494_v22 = vand.u32 4294901760, %v12938_v38 }
 0x1ec   :  { %3562 = vmatmul.mubr.f32.vlgmr.msra.gmra.mrb[2].mxu1 %v18426_v51  ;;  %v18436_v51 = vand.u32 4294901760, %v12454_v41  ;;  %v108_v41 = vld [vmem:[%s17173_s0 + $0x248] sm:$0xff] }
 0x1ed   :  { %9973 = vmatpush1.bf16.xpose.msra.mxu1 %v12899_v37  ;;  %3661 = vmatprep.mubr.f32.mxu1 %v18416_v58  ;;  %18429 = vst [vmem:[#allocation41_spill] sm:$0xff] %v12935_v49  ;;  %v12941_v37 = vsel %vm171_vm0, %v104_v21, 0  ;;  %v17498_v21 = vand.u32 4294901760, %v12944_v11 }
 0x1ee   :  { %9974 = vmatprep.subr.bf16.mxu1 %v18411_v24  ;;  %v17493_v43 = vand.u32 4294901760, %v12941_v37 }
 0x1ef   :  { %v12985_v26 = vpack.c.bf16 %v17497_v30, %v17498_v21 }
 0x1f0   :  { %9660 = vmatpush3.bf16.xpose.msra.mxu0 %v12927_v13  ;;  %v12978_v18 = vpack.c.bf16 %v17493_v43, %v17494_v22  ;;  %v12991_v13 = vsel %vm171_vm0, %v106_v7, 0  ;;  %v12997_v43 = vsel %vm171_vm0, %v124_v57, 0  ;;  %v18435_v22 = vand.u32 4294901760, %v12451_v53  ;;  %v107_v53 = vld [vmem:[%s17173_s0 + $0x240] sm:$0xff] }
 0x1f1   :  { %9662 = vmatprep.subr.bf16.mxu0 %v12935_v49  ;;  %18434 = vst [vmem:[#allocation47_spill] sm:$0xff] %v12985_v26  ;;  %v12988_v49 = vsel %vm171_vm0, %v105_v47, 0  ;;  %v17505_v30 = vand.u32 4294901760, %v12991_v13 }
 0x1f2   :  { %18433 = vst [vmem:[#allocation46_spill] sm:$0xff] %v12978_v18  ;;  %v13003_v20 = vpack.c.bf16 %v18436_v51, %v18435_v22  ;;  %v17506_v47 = vand.u32 4294901760, %v12988_v49  ;;  %v125_v51 = vld [vmem:[%s17173_s0 + $0x2d0] sm:$0xff]  ;;  %v126_v22 = vld [vmem:[%s17173_s0 + $0x2d8] sm:$0xff] }
 0x1f4   :  { %18437 = vst [vmem:[#allocation51_spill] sm:$0xff] %v13003_v20  ;;  %v13028_v57 = vpack.c.bf16 %v17505_v30, %v17506_v47  ;;  %v13047_v30 = vsel %vm171_vm0, %v126_v22, 0  ;;  %v18440_v47 = vand.u32 4294901760, %v12481_v61  ;;  %v109_v61 = vld [vmem:[%s17173_s0 + $0x250] sm:$0xff] }
 0x1f5   :  { %9976 = vmatpush1.bf16.xpose.msra.mxu1 %v12953_v25  ;;  %v12994_v25 = vsel %vm171_vm0, %v123_v17, 0  ;;  %v17511_v17 = vand.u32 4294901760, %v12997_v43 }
 0x1f6   :  { %9977 = vmatprep.subr.bf16.mxu1 %v18411_v24  ;;  %v17512_v7 = vand.u32 4294901760, %v12994_v25  ;;  %18438 = vst [vmem:[#allocation52_spill] sm:$0xff] %v13028_v57  ;;  %v13053_v52 = vpack.c.bf16 %v18441_v59, %v18440_v47  ;;  %v110_v59 = vld [vmem:[%s17173_s0 + $0x258] sm:$0xff]  ;;  %v128_v47 = vld [vmem:[%s17173_s0 + $0x2e8] sm:$0xff] }
 0x1f8   :  { %9664 = vmatpush3.bf16.xpose.msra.mxu0 %v12978_v18  ;;  %v13035_v21 = vpack.c.bf16 %v17511_v17, %v17512_v7  ;;  %v13041_v18 = vsel %vm171_vm0, %v108_v41, 0  ;;  %18442 = vst [vmem:[#allocation57_spill] sm:$0xff] %v13053_v52 }
 0x1f9   :  { %9666 = vmatprep.subr.bf16.mxu0 %v12985_v26  ;;  %v13038_v26 = vsel %vm171_vm0, %v107_v53, 0  ;;  %v17519_v17 = vand.u32 4294901760, %v13041_v18 }
 0x1fa   :  { %18439 = vst [vmem:[#allocation56_spill] sm:$0xff] %v13035_v21  ;;  %v17520_v53 = vand.u32 4294901760, %v13038_v26 }
 0x1fc   :  { %v13078_v22 = vpack.c.bf16 %v17519_v17, %v17520_v53  ;;  %v13097_v17 = vsel %vm171_vm0, %v128_v47, 0  ;;  %v18445_v53 = vand.u32 4294901760, %v12510_v9  ;;  %v111_v9 = vld [vmem:[%s17173_s0 + $0x260] sm:$0xff]  ;;  %v18448_v47 = vand.u32 4294901760, %v12789_v6 }
 0x1fd   :  { %9979 = vmatpush1.bf16.xpose.msra.mxu1 %v13003_v20  ;;  %v13044_v20 = vsel %vm171_vm0, %v125_v51, 0  ;;  %v17524_v51 = vand.u32 4294901760, %v13047_v30 }
 0x1fe   :  { %9980 = vmatprep.subr.bf16.mxu1 %v18411_v24  ;;  %v17525_v41 = vand.u32 4294901760, %v13044_v20  ;;  %18443 = vst [vmem:[#allocation62_spill] sm:$0xff] %v13078_v22  ;;  %v13103_v16 = vpack.c.bf16 %v18446_v28, %v18445_v53  ;;  %v112_v28 = vld [vmem:[%s17173_s0 + $0x268] sm:$0xff]  ;;  %v130_v53 = vld [vmem:[%s17173_s0 + $0x2f8] sm:$0xff] }
 0x1ff   :  { %v13151_v4 = vsel %vm171_vm0, %v112_v28, 0  ;;  %v18459_v28 = vand.u32 4294901760, %v12837_v54 }
 0x200   :  { %9668 = vmatpush3.bf16.xpose.msra.mxu0 %v13028_v57  ;;  %v13085_v7 = vpack.c.bf16 %v17524_v51, %v17525_v41  ;;  %v13091_v57 = vsel %vm171_vm0, %v110_v59, 0  ;;  %18447 = vst [vmem:[#allocation70_spill] sm:$0xff] %v13103_v16  ;;  %v13126_v41 = vsub.f32 %v12789_v6, %v18448_v47  ;;  %v18451_v59 = vand.u32 4294901760, %v12792_v32 }
 0x201   :  { %9670 = vmatprep.subr.bf16.mxu0 %v13035_v21  ;;  %v13088_v21 = vsel %vm171_vm0, %v109_v61, 0  ;;  %v17534_v51 = vand.u32 4294901760, %v13091_v57  ;;  %v18453_v6 = vand.u32 4294901760, %v13097_v17 }
 0x202   :  { %18444 = vst [vmem:[#allocation64_spill] sm:$0xff] %v13085_v7  ;;  %v17535_v61 = vand.u32 4294901760, %v13088_v21  ;;  %18449 = vst [vmem:[#allocation71_spill] sm:$0xff] %v13126_v41 }
 0x205   :  { %9982 = vmatpush1.bf16.xpose.msra.mxu1 %v13053_v52  ;;  %v13094_v52 = vsel %vm171_vm0, %v127_v48, 0  ;;  %v13133_v48 = vpack.c.bf16 %v17534_v51, %v17535_v61  ;;  %v13154_v51 = vsel %vm171_vm0, %v129_v34, 0  ;;  %v18456_v61 = vand.u32 4294901760, %v12542_v10 }
 0x206   :  { %9983 = vmatprep.subr.bf16.mxu1 %v18411_v24  ;;  %v13187_v34 = vsub.f32 %v12837_v54, %v18459_v28 }
 0x207   :  { %18450 = vst [vmem:[#allocation6_spill] sm:$0xff] %v13133_v48 }
 0x208   :  { %9672 = vmatpush3.bf16.xpose.msra.mxu0 %v13078_v22  ;;  %v18452_v22 = vand.u32 4294901760, %v13094_v52  ;;  %18460 = vst [vmem:[#allocation17_spill] sm:$0xff] %v13187_v34 }
 0x209   :  { %9674 = vmatprep.subr.bf16.mxu0 %v13085_v7  ;;  %v13138_v7 = vsub.f32 %v12792_v32, %v18451_v59  ;;  %v13157_v32 = vsel %vm171_vm0, %v130_v53, 0  ;;  %v18455_v59 = vand.u32 4294901760, %v12539_v8  ;;  %v113_v8 = vld [vmem:[%s17173_s0 + $0x270] sm:$0xff]  ;;  %v114_v53 = vld [vmem:[%s17173_s0 + $0x278] sm:$0xff] }
 0x20a   :  { %v13145_v47 = vpack.c.bf16 %v18453_v6, %v18452_v22  ;;  %v18458_v6 = vand.u32 4294901760, %v12834_v33  ;;  %v13207_v54 = vsel %vm171_vm0, %v113_v8, 0 }
 0x20b   :  { %v13163_v62 = vpack.c.bf16 %v18456_v61, %v18455_v59  ;;  %v18463_v61 = vand.u32 4294901760, %v12843_v44 }
 0x20c   :  { %18454 = vst [vmem:[#allocation9_spill] sm:$0xff] %v13145_v47  ;;  %v13182_v59 = vsub.f32 %v12834_v33, %v18458_v6  ;;  %v18465_v6 = vand.u32 4294901760, %v13151_v4 }
 0x20d   :  { %9985 = vmatpush1.bf16.xpose.msra.mxu1 %v13103_v16  ;;  %v13148_v16 = vsel %vm171_vm0, %v111_v9, 0  ;;  %18457 = vst [vmem:[#allocation15_spill] sm:$0xff] %v13163_v62  ;;  %v18461_v9 = vand.u32 4294901760, %v12840_v60  ;;  %v13197_v22 = vsub.f32 %v12843_v44, %v18463_v61  ;;  %v13217_v44 = vsel %vm171_vm0, %v114_v53, 0 }
 0x20e   :  { %9986 = vmatprep.subr.bf16.mxu1 %v18411_v24  ;;  %v18464_v33 = vand.u32 4294901760, %v13148_v16  ;;  %v18470_v61 = vand.u32 4294901760, %v13126_v41 }
 0x20f   :  { %v13192_v10 = vsub.f32 %v12840_v60, %v18461_v9  ;;  %v18467_v60 = vand.u32 4294901760, %v13154_v51  ;;  %v18468_v9 = vand.u32 4294901760, %v13157_v32 }
 0x210   :  { %9676 = vmatpush3.bf16.xpose.msra.mxu0 %v13133_v48  ;;  %v18473_v48 = vand.u32 4294901760, %v12571_v0 }
 0x211   :  { %9678 = vmatprep.subr.bf16.mxu0 %v13145_v47  ;;  %18462 = vst [vmem:[#allocation19_spill] sm:$0xff] %v13192_v10  ;;  %v13204_v47 = vpack.c.bf16 %v18465_v6, %v18464_v33  ;;  %v13214_v28 = vpack.c.bf16 %v18468_v9, %v18467_v60  ;;  %v18471_v33 = vand.u32 4294901760, %v13138_v7  ;;  %v18472_v6 = vand.u32 4294901760, %v12568_v31 }
 0x212   :  { %v18476_v60 = vand.u32 4294901760, %v12885_v46  ;;  %v18482_v31 = vand.u32 4294901760, %v12891_v36 }
 0x213   :  { %18466 = vst [vmem:[#allocation24_spill] sm:$0xff] %v13204_v47  ;;  %18469 = vst [vmem:[#allocation20_spill] sm:$0xff] %v13214_v28  ;;  %v2491_v8 = vsub.f32 %v13138_v7, %v18471_v33  ;;  %v13229_v5 = vpack.c.bf16 %v18473_v48, %v18472_v6  ;;  %v18475_v48 = vand.u32 4294901760, %v12882_v14 }
 0x214   :  { %v13247_v53 = vsub.f32 %v12885_v46, %v18476_v60  ;;  %v18481_v46 = vand.u32 4294901760, %v13187_v34 }
 0x215   :  { %9988 = vmatpush1.bf16.xpose.msra.mxu1 %v13163_v62  ;;  %v2484_v62 = vsub.f32 %v13126_v41, %v18470_v61  ;;  %18474 = vst [vmem:[#allocation22_spill] sm:$0xff] %v13229_v5  ;;  %v2492_v33 = vand.u32 4294901760, %v2491_v8  ;;  %v13242_v6 = vsub.f32 %v12882_v14, %v18475_v48  ;;  %v18477_v61 = vand.u32 4294901760, %v12888_v12 }
 0x216   :  { %9989 = vmatprep.subr.bf16.mxu1 %v18411_v24  ;;  %v18479_v8 = vand.u32 4294901760, %v13217_v44  ;;  %v18480_v14 = vand.u32 4294901760, %v13182_v59  ;;  %v2379_v60 = vsub.f32 %v13187_v34, %v18481_v46  ;;  %v18486_v46 = vand.u32 4294901760, %v12600_v63 }
 0x217   :  { %v2485_v41 = vand.u32 4294901760, %v2484_v62  ;;  %v13252_v9 = vsub.f32 %v12888_v12, %v18477_v61  ;;  %v18478_v62 = vand.u32 4294901760, %v13207_v54  ;;  %v13270_v12 = vsub.f32 %v12891_v36, %v18482_v31 }
 0x218   :  { %9680 = vmatpush3.bf16.xpose.msra.mxu0 %v13204_v47  ;;  %v2372_v48 = vsub.f32 %v13182_v59, %v18480_v14  ;;  %v2380_v31 = vand.u32 4294901760, %v2379_v60  ;;  %v18489_v60 = vand.u32 4294901760, %v12944_v11 }
 0x219   :  { %9682 = vmatprep.subr.bf16.mxu0 %v13214_v28  ;;  %v13259_v0 = vpack.c.bf16 %v18479_v8, %v18478_v62  ;;  %v9685_v61 = vpack.c.bf16 %v2492_v33, %v2485_v41  ;;  %v18484_v8 = vand.u32 4294901760, %v13197_v22  ;;  %v18485_v28 = vand.u32 4294901760, %v12597_v29 }
 0x21a   :  { %v2373_v36 = vand.u32 4294901760, %v2372_v48  ;;  %v17587_v41 = vand.u32 4294901760, %v13242_v6  ;;  %v17563_v33 = vand.u32 4294901760, %v13247_v53  ;;  %v17558_v34 = vand.u32 4294901760, %v13252_v9 }
 0x21b   :  { %v2505_v14 = vsub.f32 %v13197_v22, %v18484_v8  ;;  %v13283_v47 = vpack.c.bf16 %v18486_v46, %v18485_v28  ;;  %v17559_v8 = vand.u32 4294901760, %v13270_v12  ;;  %v18487_v29 = vand.u32 4294901760, %v12938_v38 }
 0x21c   :  { %v18488_v28 = vand.u32 4294901760, %v12941_v37  ;;  %v18490_v46 = vand.u32 4294901760, %v12947_v55 }
 0x21d   :  { %9991 = vmatpush1.bf16.xpose.msra.mxu1 %v13229_v5  ;;  %v18483_v5 = vand.u32 4294901760, %v13192_v10  ;;  %v13293_v63 = vsub.f32 %v12938_v38, %v18487_v29  ;;  %v2393_v38 = vsub.f32 %v13247_v53, %v17563_v33  ;;  %v18491_v29 = vand.u32 4294901760, %v12627_v2 }
 0x21e   :  { %9992 = vmatprep.subr.bf16.mxu1 %v18411_v24  ;;  %v13298_v48 = vsub.f32 %v12941_v37, %v18488_v28  ;;  %v13315_v37 = vsub.f32 %v12947_v55, %v18490_v46  ;;  %v18492_v28 = vand.u32 4294901760, %v12630_v3 }
 0x21f   :  { %v2498_v62 = vsub.f32 %v13192_v10, %v18483_v5  ;;  %v2506_v10 = vand.u32 4294901760, %v2505_v14  ;;  %v2386_v14 = vsub.f32 %v13242_v6, %v17587_v41  ;;  %v2394_v46 = vand.u32 4294901760, %v2393_v38 }
 0x220   :  { %9684 = vmatpush3.bf16.xpose.msra.mxu0 %v13259_v0  ;;  %v17564_v3 = vand.u32 4294901760, %v13315_v37  ;;  %v18495_v38 = vand.u32 4294901760, %v12994_v25 }
 0x221   :  { %9686 = vmatprep.subr.bf16.mxu0 %v9685_v61  ;;  %v2499_v5 = vand.u32 4294901760, %v2498_v62  ;;  %v13303_v61 = vsub.f32 %v12944_v11, %v18489_v60  ;;  %v9687_v62 = vpack.c.bf16 %v2380_v31, %v2373_v36  ;;  %v2512_v36 = vsub.f32 %v13252_v9, %v17558_v34 }
 0x222   :  { %v2519_v31 = vsub.f32 %v13270_v12, %v17559_v8  ;;  %v13328_v60 = vpack.c.bf16 %v18492_v28, %v18491_v29  ;;  %v2387_v55 = vand.u32 4294901760, %v2386_v14  ;;  %v18493_v29 = vand.u32 4294901760, %v12988_v49 }
 0x223   :  { %v9689_v11 = vpack.c.bf16 %v2506_v10, %v2499_v5  ;;  %v17561_v10 = vand.u32 4294901760, %v13293_v63  ;;  %v17560_v5 = vand.u32 4294901760, %v13298_v48  ;;  %v2513_v34 = vand.u32 4294901760, %v2512_v36 }
 0x224   :  { %v2520_v8 = vand.u32 4294901760, %v2519_v31  ;;  %v17562_v2 = vand.u32 4294901760, %v13303_v61  ;;  %v13339_v28 = vsub.f32 %v12988_v49, %v18493_v29  ;;  %v9691_v36 = vpack.c.bf16 %v2394_v46, %v2387_v55 }
 0x225   :  { %9994 = vmatpush1.bf16.xpose.msra.mxu1 %v13283_v47  ;;  %v2400_v31 = vsub.f32 %v13293_v63, %v17561_v10  ;;  %v2407_v49 = vsub.f32 %v13298_v48, %v17560_v5  ;;  %v18496_v29 = vand.u32 4294901760, %v12997_v43  ;;  %v2533_v46 = vsub.f32 %v13315_v37, %v17564_v3 }
 0x226   :  { %9995 = vmatprep.subr.bf16.mxu1 %v18411_v24  ;;  %v2526_v55 = vsub.f32 %v13303_v61, %v17562_v2  ;;  %v17586_v10 = vand.u32 4294901760, %v13339_v28 }
 0x227   :  { %8486 = vmatmul.mubr.f32.vlgmr.msra.gmra.mrb[4].mxu0 %v18398_v23  ;;  %v2534_v2 = vand.u32 4294901760, %v2533_v46  ;;  %v18538_v23 = vld [vmem:[#allocation81_spill] sm:$0xff] }
 0x228   :  { %9688 = vmatpush3.bf16.xpose.msra.mxu0 %v9687_v62  ;;  %8519 = vmatprep.mubr.f32.mxu0 %v18214_v1  ;;  %v18494_v62 = vand.u32 4294901760, %v12991_v13  ;;  %v2414_v46 = vsub.f32 %v13339_v28, %v17586_v10 }
 0x229   :  { %9690 = vmatprep.subr.bf16.mxu0 %v9689_v11  ;;  %v13349_v11 = vsub.f32 %v12994_v25, %v18495_v38  ;;  %v9693_v25 = vpack.c.bf16 %v2520_v8, %v2513_v34  ;;  %v18498_v38 = vand.u32 4294901760, %v12660_v56  ;;  %v2527_v8 = vand.u32 4294901760, %v2526_v55 }
 0x22a   :  { %v13344_v14 = vsub.f32 %v12991_v13, %v18494_v62  ;;  %v13361_v13 = vsub.f32 %v12997_v43, %v18496_v29  ;;  %v18497_v62 = vand.u32 4294901760, %v12657_v15  ;;  %v2401_v43 = vand.u32 4294901760, %v2400_v31 }
 0x22b   :  { %v2408_v29 = vand.u32 4294901760, %v2407_v49  ;;  %v17565_v33 = vand.u32 4294901760, %v13349_v11  ;;  %v18499_v15 = vand.u32 4294901760, %v13038_v26  ;;  %v18501_v49 = vand.u32 4294901760, %v13044_v20 }
 0x22c   :  { %v13374_v5 = vpack.c.bf16 %v18498_v38, %v18497_v62  ;;  %v17566_v34 = vand.u32 4294901760, %v13344_v14  ;;  %v17567_v3 = vand.u32 4294901760, %v13361_v13  ;;  %v18502_v62 = vand.u32 4294901760, %v13047_v30 }
 0x22d   :  { %9997 = vmatpush1.bf16.xpose.msra.mxu1 %v13328_v60  ;;  %v13383_v56 = vsub.f32 %v13038_v26, %v18499_v15  ;;  %v9695_v55 = vpack.c.bf16 %v2408_v29, %v2401_v43  ;;  %v2540_v38 = vsub.f32 %v13349_v11, %v17565_v33  ;;  %v18503_v29 = vand.u32 4294901760, %v12686_v19 }
 0x22e   :  { %9998 = vmatprep.subr.bf16.mxu1 %v18411_v24  ;;  %v2421_v26 = vsub.f32 %v13344_v14, %v17566_v34  ;;  %v2547_v43 = vsub.f32 %v13361_v13, %v17567_v3  ;;  %v18504_v15 = vand.u32 4294901760, %v12689_v50  ;;  %v18505_v19 = vand.u32 4294901760, %v13088_v21 }
 0x230   :  { %9692 = vmatpush3.bf16.xpose.msra.mxu0 %v9691_v36  ;;  %v18500_v36 = vand.u32 4294901760, %v13041_v18  ;;  %v2548_v33 = vand.u32 4294901760, %v2547_v43  ;;  %v13427_v50 = vsub.f32 %v13088_v21, %v18505_v19  ;;  %v18510_v19 = vand.u32 4294901760, %v12718_v35 }
 0x231   :  { %9694 = vmatprep.subr.bf16.mxu0 %v9693_v25  ;;  %v13393_v25 = vsub.f32 %v13044_v20, %v18501_v49  ;;  %v9697_v20 = vpack.c.bf16 %v2534_v2, %v2527_v8  ;;  %v2422_v49 = vand.u32 4294901760, %v2421_v26  ;;  %v2541_v8 = vand.u32 4294901760, %v2540_v38 }
 0x232   :  { %v13388_v31 = vsub.f32 %v13041_v18, %v18500_v36  ;;  %v13405_v18 = vsub.f32 %v13047_v30, %v18502_v62  ;;  %v13418_v36 = vpack.c.bf16 %v18504_v15, %v18503_v29  ;;  %v2415_v30 = vand.u32 4294901760, %v2414_v46 }
 0x233   :  { %v17583_v62 = vand.u32 4294901760, %v13383_v56  ;;  %v17568_v34 = vand.u32 4294901760, %v13393_v25  ;;  %v18507_v26 = vand.u32 4294901760, %v13094_v52  ;;  %v18508_v29 = vand.u32 4294901760, %v13097_v17 }
 0x234   :  { %v17569_v2 = vand.u32 4294901760, %v13388_v31  ;;  %v17570_v3 = vand.u32 4294901760, %v13405_v18  ;;  %v9699_v38 = vpack.c.bf16 %v2422_v49, %v2415_v30  ;;  %v18509_v49 = vand.u32 4294901760, %v12715_v27 }
 0x235   :  { %10000 = vmatpush1.bf16.xpose.msra.mxu1 %v13374_v5  ;;  %v2428_v43 = vsub.f32 %v13383_v56, %v17583_v62  ;;  %v2554_v15 = vsub.f32 %v13393_v25, %v17568_v34  ;;  %v18512_v27 = vand.u32 4294901760, %v13148_v16  ;;  %v27_v62 = vlaneseq }
 0x236   :  { %10001 = vmatprep.subr.bf16.mxu1 %v18411_v24  ;;  %v2435_v21 = vsub.f32 %v13388_v31, %v17569_v2  ;;  %v2561_v30 = vsub.f32 %v13405_v18, %v17570_v3 }
 0x237   :  { %v13471_v35 = vsub.f32 %v13148_v16, %v18512_v27  ;;  %v18517_v27 = vand.u32 4294901760, %v12747_v45  ;;  %v13592_v10 = vshrl.u32 %v27_v62, 7  ;;  %v9727_v62 = vpack.c.bf16 %v13298_v48, %v13293_v63 }
 0x238   :  { %9696 = vmatpush3.bf16.xpose.msra.mxu0 %v9695_v55  ;;  %v18506_v55 = vand.u32 4294901760, %v13091_v57  ;;  %v2562_v34 = vand.u32 4294901760, %v2561_v30 }
 0x239   :  { %9698 = vmatprep.subr.bf16.mxu0 %v9697_v20  ;;  %v13437_v20 = vsub.f32 %v13094_v52, %v18507_v26  ;;  %v9701_v52 = vpack.c.bf16 %v2548_v33, %v2541_v8  ;;  %v2436_v26 = vand.u32 4294901760, %v2435_v21  ;;  %v2555_v8 = vand.u32 4294901760, %v2554_v15  ;;  %18536 = vst [vmem:[#allocation34_spill] sm:$0xff] %v13592_v10 }
 0x23a   :  { %v13432_v46 = vsub.f32 %v13091_v57, %v18506_v55  ;;  %v13449_v57 = vsub.f32 %v13097_v17, %v18508_v29  ;;  %v13462_v55 = vpack.c.bf16 %v18510_v19, %v18509_v49  ;;  %v2429_v17 = vand.u32 4294901760, %v2428_v43 }
 0x23b   :  { %v17574_v29 = vand.u32 4294901760, %v13427_v50  ;;  %v17571_v2 = vand.u32 4294901760, %v13437_v20  ;;  %v18514_v21 = vand.u32 4294901760, %v13154_v51  ;;  %v18515_v49 = vand.u32 4294901760, %v13157_v32 }
 0x23c   :  { %18511 = vst [vmem:[#allocation27_spill] sm:$0xff] %v13462_v55  ;;  %v17572_v33 = vand.u32 4294901760, %v13432_v46  ;;  %v17573_v3 = vand.u32 4294901760, %v13449_v57  ;;  %v9703_v15 = vpack.c.bf16 %v2436_v26, %v2429_v17  ;;  %v18516_v26 = vand.u32 4294901760, %v12744_v40 }
 0x23d   :  { %10003 = vmatpush1.bf16.xpose.msra.mxu1 %v13418_v36  ;;  %v2442_v30 = vsub.f32 %v13427_v50, %v17574_v29  ;;  %v2568_v19 = vsub.f32 %v13437_v20, %v17571_v2  ;;  %v18519_v40 = vand.u32 4294901760, %v13207_v54  ;;  %vm30_vm1 = vcmp.eq.s32.totalorder %v13592_v10, 1 }
 0x23e   :  { %10004 = vmatprep.subr.bf16.mxu1 %v18411_v24  ;;  %v2449_v16 = vsub.f32 %v13432_v46, %v17572_v33  ;;  %v2575_v17 = vsub.f32 %v13449_v57, %v17573_v3  ;;  %vm29_vm2 = vcmp.eq.s32.totalorder %v13592_v10, 0  ;;  %v18546_v10 = vld [vmem:[#allocation84_spill] sm:$0xff] }
 0x23f   :  { %v13517_v45 = vsub.f32 %v13207_v54, %v18519_v40 }
 0x240   :  { %9700 = vmatpush3.bf16.xpose.msra.mxu0 %v9699_v38  ;;  %v18513_v38 = vand.u32 4294901760, %v13151_v4  ;;  %v2576_v2 = vand.u32 4294901760, %v2575_v17 }
 0x241   :  { %9702 = vmatprep.subr.bf16.mxu0 %v9701_v52  ;;  %v13481_v52 = vsub.f32 %v13154_v51, %v18514_v21  ;;  %v9705_v51 = vpack.c.bf16 %v2562_v34, %v2555_v8  ;;  %v2450_v21 = vand.u32 4294901760, %v2449_v16  ;;  %v2569_v8 = vand.u32 4294901760, %v2568_v19 }
 0x242   :  { %v13476_v43 = vsub.f32 %v13151_v4, %v18513_v38  ;;  %v13493_v4 = vsub.f32 %v13157_v32, %v18515_v49  ;;  %v13506_v38 = vpack.c.bf16 %v18517_v27, %v18516_v26  ;;  %v2443_v32 = vand.u32 4294901760, %v2442_v30 }
 0x243   :  { %v17577_v49 = vand.u32 4294901760, %v13471_v35  ;;  %v17576_v33 = vand.u32 4294901760, %v13481_v52  ;;  %v18520_v30 = vand.u32 4294901760, %v13217_v44  ;;  %v9709_v54 = vpack.c.bf16 %v2576_v2, %v2569_v8 }
 0x244   :  { %18518 = vst [vmem:[#allocation28_spill] sm:$0xff] %v13506_v38  ;;  %v17575_v34 = vand.u32 4294901760, %v13476_v43  ;;  %v17582_v3 = vand.u32 4294901760, %v13493_v4  ;;  %v18521_v27 = vand.u32 4294901760, %v12773_v39 }
 0x245   :  { %10006 = vmatpush1.bf16.xpose.msra.mxu1 %v13462_v55  ;;  %v13524_v16 = vsub.f32 %v13217_v44, %v18520_v30  ;;  %v2456_v19 = vsub.f32 %v13471_v35, %v17577_v49  ;;  %v2582_v26 = vsub.f32 %v13481_v52, %v17576_v33 }
 0x246   :  { %10007 = vmatprep.subr.bf16.mxu1 %v18411_v24  ;;  %v2463_v17 = vsub.f32 %v13476_v43, %v17575_v34  ;;  %v2589_v44 = vsub.f32 %v13493_v4, %v17582_v3  ;;  %v17581_v34 = vand.u32 4294901760, %v13517_v45 }
 0x247   :  { %v2457_v40 = vand.u32 4294901760, %v2456_v19  ;;  %v17578_v2 = vand.u32 4294901760, %v13524_v16  ;;  %v2583_v8 = vand.u32 4294901760, %v2582_v26  ;;  %v18524_v19 = vld [vmem:[#allocation76_spill] sm:$0xff] }
 0x248   :  { %9704 = vmatpush3.bf16.xpose.msra.mxu0 %v9703_v15  ;;  %v2464_v30 = vand.u32 4294901760, %v2463_v17  ;;  %v2590_v33 = vand.u32 4294901760, %v2589_v44  ;;  %v2470_v39 = vsub.f32 %v13517_v45, %v17581_v34  ;;  %v17580_v17 = vand.u32 4294901760, %v18524_v19 }
 0x249   :  { %9706 = vmatprep.subr.bf16.mxu0 %v9705_v51  ;;  %v9707_v51 = vpack.c.bf16 %v2450_v21, %v2443_v32  ;;  %v18522_v32 = vand.u32 4294901760, %v12776_v42  ;;  %v2477_v42 = vsub.f32 %v13524_v16, %v17578_v2  ;;  %v18527_v2 = vld [vmem:[#allocation71_spill] sm:$0xff] }
 0x24a   :  { %v9711_v49 = vpack.c.bf16 %v2464_v30, %v2457_v40  ;;  %v2471_v44 = vand.u32 4294901760, %v2470_v39 }
 0x24b   :  { %v13512_v29 = vpop.f32.mrb[0].mxu1  ;;  %v13544_v21 = vpack.c.bf16 %v18522_v32, %v18521_v27  ;;  %v2478_v27 = vand.u32 4294901760, %v2477_v42  ;;  %v18526_v32 = vld [vmem:[#allocation21_spill] sm:$0xff]  ;;  %v18530_v42 = vld [vmem:[#allocation95_spill] sm:$0xff] }
 0x24c   :  { %v13519_v15 = vpop.f32.mrb[1].mxu1 }
 0x24d   :  { %10009 = vmatpush1.bf16.xpose.msra.mxu1 %v13506_v38  ;;  %18523 = vst [vmem:[#allocation33_spill] sm:$0xff] %v13544_v21  ;;  %v9715_v30 = vpack.c.bf16 %v2478_v27, %v2471_v44  ;;  %v18531_v27 = vld [vmem:[#allocation17_spill] sm:$0xff] }
 0x24e   :  { %10010 = vmatprep.subr.bf16.mxu1 %v18411_v24 }
 0x250   :  { %9708 = vmatpush3.bf16.xpose.msra.mxu0 %v9707_v51  ;;  %v9713_v51 = vpack.c.bf16 %v2590_v33, %v2583_v8  ;;  %v9717_v33 = vpack.c.bf16 %v13138_v7, %v18527_v2  ;;  %v18529_v8 = vld [vmem:[#allocation92_spill] sm:$0xff] }
 0x251   :  { %9710 = vmatprep.subr.bf16.mxu0 %v9709_v54  ;;  %v18525_v54 = vld [vmem:[#allocation79_spill] sm:$0xff]  ;;  %v17585_v39 = vand.u32 4294901760, %v18529_v8 }
 0x252   :  { %v17579_v26 = vand.u32 4294901760, %v18525_v54 }
 0x254   :  { %v10014_v40 = vpack.c.bf16 %v17579_v26, %v17580_v17  ;;  %v9719_v26 = vpack.c.bf16 %v18531_v27, %v13182_v59  ;;  %v18532_v17 = vld [vmem:[#allocation19_spill] sm:$0xff] }
 0x255   :  { %10012 = vmatpush1.bf16.xpose.msra.mxu1 %v13544_v21  ;;  %v18567_v21 = vld [vmem:[#allocation47_spill] sm:$0xff] }
 0x256   :  { %3652 = vmatprep.subr.mxu1 %v18416_v58 }
 0x258   :  { %9712 = vmatpush3.bf16.xpose.msra.mxu0 %v9711_v49  ;;  %v18528_v49 = vld [vmem:[#allocation102_spill] sm:$0xff] }
 0x259   :  { %9714 = vmatprep.subr.bf16.mxu0 %v9713_v51  ;;  %v17584_v51 = vand.u32 4294901760, %v18530_v42  ;;  %v17597_v42 = vand.u32 4294901760, %v18538_v23 }
 0x25b   :  { %v10017_v44 = vpack.c.bf16 %v17584_v51, %v17585_v39  ;;  %v18535_v51 = vld [vmem:[#allocation100_spill] sm:$0xff] }
 0x25d   :  { %3654 = vmatpush1.xpose.msra.mxu1 %v18526_v32 }
 0x25e   :  { %10013 = vmatprep.subr.bf16.mxu1 %v18411_v24 }
 0x260   :  { %3665 = vmatmul.mubr.f32.vlgmr.msra.gmra.mrb[2].mxu1 %v18528_v49  ;;  %9716 = vmatpush3.bf16.xpose.msra.mxu0 %v9715_v30  ;;  %v18533_v30 = vld [vmem:[#allocation7_spill] sm:$0xff] }
 0x261   :  { %10015 = vmatpush1.bf16.xpose.msra.mxu1 %v10014_v40  ;;  %9718 = vmatprep.subr.bf16.mxu0 %v9717_v33  ;;  %v9721_v40 = vpack.c.bf16 %v13197_v22, %v18532_v17  ;;  %v17591_v34 = vand.u32 4294901760, %v18533_v30  ;;  %v18534_v33 = vld [vmem:[#allocation8_spill] sm:$0xff]  ;;  %v18539_v30 = vld [vmem:[#allocation82_spill] sm:$0xff] }
 0x262   :  { %10016 = vmatprep.subr.bf16.mxu1 %v18411_v24  ;;  %3822 = vmatprep.mubr.f32.mxu1 %v18416_v58  ;;  %v17590_v3 = vand.u32 4294901760, %v18534_v33  ;;  %v17602_v8 = vand.u32 4294901760, %v18539_v30 }
 0x264   :  { %v10020_v39 = vpack.c.bf16 %v17590_v3, %v17591_v34  ;;  %v166_v3 = vstv %s7911_s17  ;;  %v167_v34 = vstv %s7912_s18 }
 0x267   :  { %8520 = vmatmul.mubr.f32.vlgmr.msra.gmra.mrb[4].mxu0 %v18214_v1 }
 0x268   :  { %9720 = vmatpush3.bf16.xpose.msra.mxu0 %v9719_v26  ;;  %8553 = vmatprep.mubr.f32.mxu0 %v18535_v51  ;;  %v9723_v26 = vpack.c.bf16 %v13247_v53, %v13242_v6 }
 0x269   :  { %10018 = vmatpush1.bf16.xpose.msra.mxu1 %v10017_v44  ;;  %9722 = vmatprep.subr.bf16.mxu0 %v9721_v40  ;;  %v9725_v44 = vpack.c.bf16 %v13270_v12, %v13252_v9  ;;  %v18537_v40 = vld [vmem:[#allocation10_spill] sm:$0xff] }
 0x26a   :  { %10019 = vmatprep.subr.bf16.mxu1 %v18411_v24  ;;  %v17598_v41 = vand.u32 4294901760, %v18537_v40  ;;  %v18540_v40 = vld [vmem:[#allocation75_spill] sm:$0xff] }
 0x26c   :  { %v10023_v33 = vpack.c.bf16 %v17597_v42, %v17598_v41  ;;  %v11042_v41 = vmov 3.4028235e+38  }
 0x270   :  { %9724 = vmatpush3.bf16.xpose.msra.mxu0 %v9723_v26  ;;  %v169_v26 = vstv %s161_s19 }
 0x271   :  { %10021 = vmatpush1.bf16.xpose.msra.mxu1 %v10020_v39  ;;  %9726 = vmatprep.subr.bf16.mxu0 %v9725_v44  ;;  %v168_v39 = vsel %vm30_vm1, %v166_v3, %v167_v34  ;;  %v9729_v44 = vpack.c.bf16 %v13315_v37, %v13303_v61  ;;  %v32_v3 = vsel %vm30_vm1, 1000.0, %v11042_v41  ;;  %v13621_v34 = vsel %vm30_vm1, -1000.0, %v18416_v58 }
 0x272   :  { %10022 = vmatprep.subr.bf16.mxu1 %v18411_v24  ;;  %v13613_v42 = vsel %vm29_vm2, %v169_v26, %v168_v39  ;;  %18542 = vst [vmem:[#allocation44_spill] sm:$0xff] %v13621_v34  ;;  %v18543_v39 = vand.u32 4294901760, %v18540_v40  ;;  %v13630_v23 = vsel %vm29_vm2, 66.0, %v32_v3  ;;  %v18545_v3 = vld [vmem:[#allocation77_spill] sm:$0xff] }
 0x273   :  { %18541 = vst [vmem:[#allocation40_spill] sm:$0xff] %v13613_v42  ;;  %18544 = vst [vmem:[#allocation48_spill] sm:$0xff] %v13630_v23 }
 0x274   :  { %v10026_v26 = vpack.c.bf16 %v18543_v39, %v17602_v8  ;;  %v17607_v8 = vand.u32 4294901760, %v18545_v3 }
 0x278   :  { %9728 = vmatpush3.bf16.xpose.msra.mxu0 %v9727_v62 }
 0x279   :  { %10024 = vmatpush1.bf16.xpose.msra.mxu1 %v10023_v33  ;;  %9730 = vmatprep.subr.bf16.mxu0 %v9729_v44  ;;  %v9731_v44 = vpack.c.bf16 %v13344_v14, %v13339_v28 }
 0x27a   :  { %10025 = vmatprep.subr.bf16.mxu1 %v18411_v24  ;;  %v1400_v33 = vpop.f32.mrb[0].mxu0 }
 0x27b   :  { %v10925_v62 = vadd.f32 %v1400_v33, %v13613_v42  ;;  %v1402_v54 = vpop.f32.mrb[1].mxu0  ;;  %v9733_v33 = vpack.c.bf16 %v13361_v13, %v13349_v11 }
 0x27c   :  { %v10926_v41 = vadd.f32 %v1402_v54, %v13613_v42  ;;  %v17606_v54 = vand.u32 4294901760, %v18546_v10  ;;  %v18563_v10 = vld [vmem:[#allocation41_spill] sm:$0xff] }
 0x27d   :  { %v3931_v19 = vmax.f32 %v13621_v34, %v10925_v62  ;;  %v9737_v62 = vpack.c.bf16 %v13405_v18, %v13393_v25 }
 0x27e   :  { %v3932_v32 = vmax.f32 %v13621_v34, %v10926_v41 }
 0x27f   :  { %v3939_v30 = vmin.f32 %v13630_v23, %v3931_v19  ;;  %v10029_v19 = vpack.c.bf16 %v17606_v54, %v17607_v8  ;;  %v18550_v54 = vld [vmem:[#allocation99_spill] sm:$0xff] }
 0x280   :  { %v3940_v39 = vmin.f32 %v13630_v23, %v3932_v32  ;;  %9732 = vmatpush3.bf16.xpose.msra.mxu0 %v9731_v44  ;;  %v9735_v32 = vpack.c.bf16 %v13388_v31, %v13383_v56  ;;  %v17612_v8 = vand.u32 4294901760, %v18550_v54 }
 0x281   :  { %10027 = vmatpush1.bf16.xpose.msra.mxu1 %v10026_v26  ;;  %9734 = vmatprep.subr.bf16.mxu0 %v9733_v33  ;;  %v18547_v26 = vld [vmem:[#allocation86_spill] sm:$0xff]  ;;  %v9739_v33 = vpack.c.bf16 %v13432_v46, %v13427_v50 }
 0x282   :  { %10028 = vmatprep.subr.bf16.mxu1 %v18411_v24  ;;  %v3955_v40 = vcombine.low %v3939_v30, %v3940_v39  ;;  %v17609_v41 = vand.u32 4294901760, %v18547_v26  ;;  %v18548_v30 = vld [vmem:[#allocation91_spill] sm:$0xff]  ;;  %v9741_v39 = vpack.c.bf16 %v13449_v57, %v13437_v20 }
 0x283   :  { %v17608_v44 = vand.u32 4294901760, %v18548_v30  ;;  %v18552_v30 = vld [vmem:[#allocation106_spill] sm:$0xff] }
 0x284   :  { %3963 = vst [vmem:[%s17176_s3] sm:$0x77] %v3955_v40  ;;  %v17616_v26 = vand.u32 4294901760, %v18552_v30 }
 0x285   :  { %v10032_v40 = vpack.c.bf16 %v17608_v44, %v17609_v41  ;;  %v9743_v44 = vpack.c.bf16 %v13476_v43, %v13471_v35  ;;  %v9745_v41 = vpack.c.bf16 %v13493_v4, %v13481_v52 }
 0x288   :  { %9736 = vmatpush3.bf16.xpose.msra.mxu0 %v9735_v32 }
 0x289   :  { %10030 = vmatpush1.bf16.xpose.msra.mxu1 %v10029_v19  ;;  %9738 = vmatprep.subr.bf16.mxu0 %v9737_v62  ;;  %v18549_v19 = vld [vmem:[#allocation93_spill] sm:$0xff] }
 0x28a   :  { %10031 = vmatprep.subr.bf16.mxu1 %v18411_v24  ;;  %v17613_v32 = vand.u32 4294901760, %v18549_v19  ;;  %v18555_v19 = vld [vmem:[#allocation18_spill] sm:$0xff] }
 0x28c   :  { %v10035_v62 = vpack.c.bf16 %v17612_v8, %v17613_v32  ;;  %v9747_v8 = vpack.c.bf16 %v13524_v16, %v13517_v45  ;;  %v18553_v32 = vld [vmem:[#allocation61_spill] sm:$0xff] }
 0x290   :  { %9740 = vmatpush3.bf16.xpose.msra.mxu0 %v9739_v33 }
 0x291   :  { %10033 = vmatpush1.bf16.xpose.msra.mxu1 %v10032_v40  ;;  %9742 = vmatprep.subr.bf16.mxu0 %v9741_v39  ;;  %v18551_v40 = vld [vmem:[#allocation101_spill] sm:$0xff] }
 0x292   :  { %10034 = vmatprep.subr.bf16.mxu1 %v18411_v24  ;;  %v17617_v33 = vand.u32 4294901760, %v18551_v40  ;;  %v18559_v40 = vld [vmem:[#allocation29_spill] sm:$0xff] }
 0x294   :  { %v10038_v39 = vpack.c.bf16 %v17616_v26, %v17617_v33  ;;  %v18556_v26 = vld [vmem:[#allocation26_spill] sm:$0xff] }
 0x295   :  { %v18558_v33 = vld [vmem:[#allocation74_spill] sm:$0xff] }
 0x296   :  { %v17627_v30 = vand.u32 4294901760, %v18558_v33 }
 0x298   :  { %9744 = vmatpush3.bf16.xpose.msra.mxu0 %v9743_v44  ;;  %v18554_v44 = vld [vmem:[#allocation69_spill] sm:$0xff] }
 0x299   :  { %10036 = vmatpush1.bf16.xpose.msra.mxu1 %v10035_v62  ;;  %9746 = vmatprep.subr.bf16.mxu0 %v9745_v41  ;;  %v17621_v62 = vand.u32 4294901760, %v18553_v32  ;;  %v17620_v54 = vand.u32 4294901760, %v18554_v44  ;;  %v18562_v44 = vld [vmem:[#allocation83_spill] sm:$0xff] }
 0x29a   :  { %10037 = vmatprep.subr.bf16.mxu1 %v18411_v24  ;;  %v17634_v32 = vand.u32 4294901760, %v18562_v44 }
 0x29b   :  { %v10041_v41 = vpack.c.bf16 %v17620_v54, %v17621_v62 }
 0x2a0   :  { %9748 = vmatpush3.bf16.xpose.msra.mxu0 %v9747_v8 }
 0x2a1   :  { %10039 = vmatpush1.bf16.xpose.msra.mxu1 %v10038_v39  ;;  %9750 = vmatprep.subr.bf16.mxu0 %v18555_v19  ;;  %v18557_v39 = vld [vmem:[#allocation68_spill] sm:$0xff] }
 0x2a2   :  { %10040 = vmatprep.subr.bf16.mxu1 %v18411_v24  ;;  %v17628_v8 = vand.u32 4294901760, %v18557_v39  ;;  %v18564_v39 = vld [vmem:[#allocation46_spill] sm:$0xff] }
 0x2a4   :  { %v10044_v54 = vpack.c.bf16 %v17627_v30, %v17628_v8  ;;  %v18565_v30 = vld [vmem:[#allocation80_spill] sm:$0xff]  ;;  %v18566_v8 = vld [vmem:[#allocation5_spill] sm:$0xff] }
 0x2a5   :  { %v17645_v33 = vand.u32 4294901760, %v18566_v8 }
 0x2a7   :  { %8554 = vmatmul.mubr.f32.vlgmr.msra.gmra.mrb[4].mxu0 %v18535_v51  ;;  %v18560_v51 = vld [vmem:[#allocation36_spill] sm:$0xff] }
 0x2a8   :  { %9752 = vmatpush3.bf16.xpose.msra.mxu0 %v18556_v26  ;;  %8587 = vmatprep.mubr.f32.mxu0 %v18528_v49 }
 0x2a9   :  { %10042 = vmatpush1.bf16.xpose.msra.mxu1 %v10041_v41  ;;  %9754 = vmatprep.subr.bf16.mxu0 %v18559_v40  ;;  %v18561_v41 = vld [vmem:[#allocation73_spill] sm:$0xff]  ;;  %v18570_v40 = vld [vmem:[#allocation16_spill] sm:$0xff] }
 0x2aa   :  { %10043 = vmatprep.subr.bf16.mxu1 %v18411_v24  ;;  %v17635_v62 = vand.u32 4294901760, %v18561_v41 }
 0x2ac   :  { %v10047_v3 = vpack.c.bf16 %v17634_v32, %v17635_v62 }
 0x2b0   :  { %9756 = vmatpush3.bf16.xpose.msra.mxu0 %v18560_v51 }
 0x2b1   :  { %10045 = vmatpush1.bf16.xpose.msra.mxu1 %v10044_v54  ;;  %9758 = vmatprep.subr.bf16.mxu0 %v18563_v10  ;;  %v17646_v54 = vand.u32 4294901760, %v18565_v30  ;;  %v17643_v30 = vand.u32 4294901760, %v18570_v40 }
 0x2b2   :  { %10046 = vmatprep.subr.bf16.mxu1 %v18411_v24 }
 0x2b3   :  { %v10050_v32 = vpack.c.bf16 %v17645_v33, %v17646_v54  ;;  %v18583_v33 = vld [vmem:[#allocation51_spill] sm:$0xff]  ;;  %v18584_v54 = vand.u32 4294901760, %v13182_v59  ;;  %v18589_v59 = vand.u32 4294901760, %v13242_v6  ;;  %v18597_v6 = vand.u32 4294901760, %v13315_v37 }
 0x2b4   :  { %v18604_v37 = vand.u32 4294901760, %v13383_v56  ;;  %v18610_v56 = vand.u32 4294901760, %v13437_v20  ;;  %v18616_v20 = vand.u32 4294901760, %v13517_v45  ;;  %v18621_v45 = vld [vmem:[#allocation41_spill] sm:$0xff] }
 0x2b8   :  { %9760 = vmatpush3.bf16.xpose.msra.mxu0 %v18564_v39  ;;  %v18568_v39 = vld [vmem:[#allocation52_spill] sm:$0xff] }
 0x2b9   :  { %10048 = vmatpush1.bf16.xpose.msra.mxu1 %v10047_v3  ;;  %9762 = vmatprep.subr.bf16.mxu0 %v18567_v21 }
 0x2ba   :  { %10049 = vmatprep.subr.bf16.mxu1 %v18411_v24  ;;  %v1508_v38 = vpop.f32.mrb[2].mxu0 }
 0x2bb   :  { %v1509_v51 = vadd.f32 %v1508_v38, %v13613_v42  ;;  %v1510_v10 = vpop.f32.mrb[3].mxu0  ;;  %v18569_v38 = vld [vmem:[#allocation11_spill] sm:$0xff] }
 0x2bc   :  { %v1511_v3 = vadd.f32 %v1510_v10, %v13613_v42  ;;  %v17644_v55 = vand.u32 4294901760, %v18569_v38  ;;  %v18571_v10 = vld [vmem:[#allocation56_spill] sm:$0xff]  ;;  %v18587_v42 = vand.u32 4294901760, %v13197_v22  ;;  %v18592_v22 = vand.u32 4294901760, %v13270_v12 }
 0x2bd   :  { %v10928_v62 = vadd.f32 %v13512_v29, %v1509_v51  ;;  %v18574_v51 = vld [vmem:[#allocation23_spill] sm:$0xff]  ;;  %v18599_v12 = vand.u32 4294901760, %v13339_v28  ;;  %v18606_v28 = vand.u32 4294901760, %v13393_v25  ;;  %v18612_v25 = vand.u32 4294901760, %v13471_v35  ;;  %v18618_v35 = vld [vmem:[#allocation29_spill] sm:$0xff] }
 0x2be   :  { %v10930_v44 = vadd.f32 %v13519_v15, %v1511_v3  ;;  %v18577_v3 = vld [vmem:[#allocation35_spill] sm:$0xff] }
 0x2bf   :  { %v3933_v41 = vmax.f32 %v13621_v34, %v10928_v62  ;;  %v18572_v62 = vld [vmem:[#allocation62_spill] sm:$0xff] }
 0x2c0   :  { %v3934_v21 = vmax.f32 %v13621_v34, %v10930_v44  ;;  %9764 = vmatpush3.bf16.xpose.msra.mxu0 %v18568_v39  ;;  %v18573_v44 = vld [vmem:[#allocation64_spill] sm:$0xff]  ;;  %v18586_v34 = vand.u32 4294901760, %v18532_v17  ;;  %v18591_v17 = vand.u32 4294901760, %v13252_v9  ;;  %v18598_v9 = vld [vmem:[#allocation15_spill] sm:$0xff] }
 0x2c1   :  { %10051 = vmatpush1.bf16.xpose.msra.mxu1 %v10050_v32  ;;  %v3941_v8 = vmin.f32 %v13630_v23, %v3933_v41  ;;  %9766 = vmatprep.subr.bf16.mxu0 %v18571_v10  ;;  %v10053_v32 = vpack.c.bf16 %v17643_v30, %v17644_v55  ;;  %v17642_v41 = vand.u32 4294901760, %v18574_v51  ;;  %v18582_v30 = vand.u32 4294901760, %v13138_v7  ;;  %v18588_v7 = vld [vmem:[#allocation57_spill] sm:$0xff] }
 0x2c2   :  { %10052 = vmatprep.subr.bf16.mxu1 %v18411_v24  ;;  %v3942_v29 = vmin.f32 %v13630_v23, %v3934_v21  ;;  %v18575_v21 = vld [vmem:[#allocation6_spill] sm:$0xff]  ;;  %v18585_v51 = vand.u32 4294901760, %v18531_v27 }
 0x2c4   :  { %v3956_v15 = vcombine.low %v3941_v8, %v3942_v29  ;;  %v18576_v8 = vld [vmem:[#allocation9_spill] sm:$0xff]  ;;  %v18578_v29 = vld [vmem:[#allocation24_spill] sm:$0xff]  ;;  %v9783_v23 = vpack.c.bf16 %v18585_v51, %v18584_v54  ;;  %v18600_v51 = vand.u32 4294901760, %v13344_v14  ;;  %v18607_v14 = vand.u32 4294901760, %v13405_v18 }
 0x2c5   :  { %v18613_v18 = vand.u32 4294901760, %v13476_v43  ;;  %v18619_v43 = vld [vmem:[#allocation27_spill] sm:$0xff] }
 0x2c6   :  { %3964 = vst [vmem:[%s17176_s3 + $0x8] sm:$0x77] %v3956_v15  ;;  %v18579_v15 = vld [vmem:[#allocation20_spill] sm:$0xff] }
 0x2c8   :  { %9768 = vmatpush3.bf16.xpose.msra.mxu0 %v18572_v62 }
 0x2c9   :  { %10054 = vmatpush1.bf16.xpose.msra.mxu1 %v10053_v32  ;;  %9770 = vmatprep.subr.bf16.mxu0 %v18573_v44  ;;  %v18580_v32 = vld [vmem:[#allocation42_spill] sm:$0xff] }
 0x2ca   :  { %3811 = vmatprep.subr.mxu1 %v18416_v58 }
 0x2d0   :  { %9772 = vmatpush3.bf16.xpose.msra.mxu0 %v18575_v21 }
 0x2d1   :  { %3815 = vmatpush1.xpose.msra.mxu1 %v17642_v41  ;;  %9774 = vmatprep.subr.bf16.mxu0 %v18576_v8  ;;  %v18581_v41 = vand.u32 4294901760, %v18527_v2  ;;  %v9785_v2 = vpack.c.bf16 %v18587_v42, %v18586_v34  ;;  %v9789_v42 = vpack.c.bf16 %v18592_v22, %v18591_v17  ;;  %v18595_v34 = vand.u32 4294901760, %v13298_v48 }
 0x2d2   :  { %10055 = vmatprep.subr.bf16.mxu1 %v18411_v24  ;;  %v18602_v48 = vand.u32 4294901760, %v13361_v13  ;;  %v18609_v13 = vand.u32 4294901760, %v13432_v46  ;;  %v18615_v46 = vand.u32 4294901760, %v13493_v4  ;;  %v3972_v4 = vld [vmem:[%s17174_s1] sm:$0x7] }
 0x2d3   :  { %v9781_v55 = vpack.c.bf16 %v18582_v30, %v18581_v41  ;;  %v9795_v41 = vpack.c.bf16 %v18600_v51, %v18599_v12 }
 0x2d4   :  { %3824 = vmatmul.mubr.f32.vlgmr.msra.gmra.mrb[2].mxu1 %v18214_v1 }
 0x2d5   :  { %10057 = vmatpush1.bf16.xpose.msra.mxu1 %v18577_v3  ;;  %3923 = vmatprep.mubr.f32.mxu1 %v18416_v58 }
 0x2d6   :  { %10058 = vmatprep.subr.bf16.mxu1 %v18411_v24 }
 0x2d8   :  { %9776 = vmatpush3.bf16.xpose.msra.mxu0 %v18578_v29 }
 0x2d9   :  { %9778 = vmatprep.subr.bf16.mxu0 %v18579_v15 }
 0x2dd   :  { %10060 = vmatpush1.bf16.xpose.msra.mxu1 %v18580_v32 }
 0x2de   :  { %10061 = vmatprep.subr.bf16.mxu1 %v18411_v24 }
 0x2e0   :  { %9780 = vmatpush3.bf16.xpose.msra.mxu0 %v13259_v0 }
 0x2e1   :  { %9782 = vmatprep.subr.bf16.mxu0 %v9781_v55  ;;  %v18590_v55 = vand.u32 4294901760, %v13247_v53  ;;  %v18596_v53 = vand.u32 4294901760, %v13303_v61  ;;  %v18603_v61 = vld [vmem:[#allocation22_spill] sm:$0xff] }
 0x2e3   :  { %v9787_v27 = vpack.c.bf16 %v18590_v55, %v18589_v59  ;;  %v9793_v54 = vpack.c.bf16 %v18597_v6, %v18596_v53  ;;  %v18605_v59 = vand.u32 4294901760, %v13388_v31  ;;  %v18611_v31 = vand.u32 4294901760, %v13449_v57  ;;  %v7962_v53 = vld [vmem:[%s17173_s0 + $0x570] sm:$0xff]  ;;  %v18623_v6 = vld [vmem:[#allocation46_spill] sm:$0xff] }
 0x2e4   :  { %v18617_v57 = vand.u32 4294901760, %v13524_v16  ;;  %v4111_v16 = vsel %vm171_vm0, %v3972_v4, 0  ;;  %v13874_v51 = vsel %vm171_vm0, %v7962_v53, 0 }
 0x2e5   :  { %10063 = vmatpush1.bf16.xpose.msra.mxu1 %v18583_v33  ;;  %v9799_v55 = vpack.c.bf16 %v18605_v59, %v18604_v37  ;;  %v9805_v22 = vpack.c.bf16 %v18611_v31, %v18610_v56  ;;  %v7964_v37 = vld [vmem:[%s17173_s0 + $0x580] sm:$0xff] }
 0x2e6   :  { %10064 = vmatprep.subr.bf16.mxu1 %v18411_v24  ;;  %v18626_v59 = vld [vmem:[#allocation33_spill] sm:$0xff] }
 0x2e7   :  { %8588 = vmatmul.mubr.f32.vlgmr.msra.gmra.mrb[4].mxu0 %v18528_v49  ;;  %v18594_v49 = vand.u32 4294901760, %v13293_v63  ;;  %v18601_v63 = vand.u32 4294901760, %v13349_v11  ;;  %v18608_v11 = vand.u32 4294901760, %v13427_v50  ;;  %v18614_v50 = vand.u32 4294901760, %v13481_v52  ;;  %v18620_v52 = vld [vmem:[#allocation36_spill] sm:$0xff] }
 0x2e8   :  { %9784 = vmatpush3.bf16.xpose.msra.mxu0 %v9783_v23  ;;  %8621 = vmatprep.mubr.f32.mxu0 %v18214_v1  ;;  %v18593_v23 = vld [vmem:[#allocation70_spill] sm:$0xff] }
 0x2e9   :  { %9786 = vmatprep.subr.bf16.mxu0 %v9785_v2  ;;  %v9791_v30 = vpack.c.bf16 %v18595_v34, %v18594_v49  ;;  %v9797_v2 = vpack.c.bf16 %v18602_v48, %v18601_v63  ;;  %v9803_v17 = vpack.c.bf16 %v18609_v13, %v18608_v11  ;;  %v9809_v49 = vpack.c.bf16 %v18615_v46, %v18614_v50  ;;  %v7946_v63 = vld [vmem:[%s17173_s0 + $0x4f0] sm:$0xff]  ;;  %v7965_v46 = vld [vmem:[%s17173_s0 + $0x588] sm:$0xff] }
 0x2ea   :  { %v9811_v34 = vpack.c.bf16 %v18617_v57, %v18616_v20  ;;  %v13905_v13 = vsel %vm171_vm0, %v7964_v37, 0 }
 0x2ed   :  { %10066 = vmatpush1.bf16.xpose.msra.mxu1 %v18588_v7 }
 0x2ee   :  { %10067 = vmatprep.subr.bf16.mxu1 %v18411_v24 }
 0x2f0   :  { %9788 = vmatpush3.bf16.xpose.msra.mxu0 %v9787_v27  ;;  %v9801_v27 = vpack.c.bf16 %v18607_v14, %v18606_v28  ;;  %v17666_v28 = vand.u32 4294901760, %v13874_v51 }
 0x2f1   :  { %9790 = vmatprep.subr.bf16.mxu0 %v9789_v42  ;;  %v9807_v42 = vpack.c.bf16 %v18613_v18, %v18612_v25  ;;  %v17658_v18 = vand.u32 4294901760, %v13905_v13 }
 0x2f5   :  { %10069 = vmatpush1.bf16.xpose.msra.mxu1 %v18593_v23 }
 0x2f6   :  { %10070 = vmatprep.subr.bf16.mxu1 %v18411_v24 }
 0x2f8   :  { %9792 = vmatpush3.bf16.xpose.msra.mxu0 %v9791_v30  ;;  %v7961_v30 = vld [vmem:[%s17173_s0 + $0x568] sm:$0xff] }
 0x2f9   :  { %9794 = vmatprep.subr.bf16.mxu0 %v9793_v54  ;;  %v18624_v54 = vld [vmem:[#allocation47_spill] sm:$0xff]  ;;  %v13871_v12 = vsel %vm171_vm0, %v7961_v30, 0 }
 0x2fd   :  { %10072 = vmatpush1.bf16.xpose.msra.mxu1 %v18598_v9 }
 0x2fe   :  { %10073 = vmatprep.subr.bf16.mxu1 %v18411_v24 }
 0x300   :  { %9796 = vmatpush3.bf16.xpose.msra.mxu0 %v9795_v41  ;;  %v7945_v41 = vld [vmem:[%s17173_s0 + $0x4e8] sm:$0xff] }
 0x301   :  { %9798 = vmatprep.subr.bf16.mxu0 %v9797_v2  ;;  %v7963_v2 = vld [vmem:[%s17173_s0 + $0x578] sm:$0xff]  ;;  %v13896_v14 = vsel %vm171_vm0, %v7945_v41, 0 }
 0x302   :  { %v13902_v11 = vsel %vm171_vm0, %v7963_v2, 0  ;;  %v17665_v56 = vand.u32 4294901760, %v13896_v14  ;;  %v7967_v41 = vld [vmem:[%s17173_s0 + $0x598] sm:$0xff] }
 0x303   :  { %v17659_v25 = vand.u32 4294901760, %v13902_v11 }
 0x305   :  { %10075 = vmatpush1.bf16.xpose.msra.mxu1 %v18603_v61  ;;  %v13948_v57 = vpack.c.bf16 %v17658_v18, %v17659_v25 }
 0x306   :  { %10076 = vmatprep.subr.bf16.mxu1 %v18411_v24 }
 0x307   :  { %18631 = vst [vmem:[#allocation78_spill] sm:$0xff] %v13948_v57 }
 0x308   :  { %9800 = vmatpush3.bf16.xpose.msra.mxu0 %v9799_v55  ;;  %v17667_v55 = vand.u32 4294901760, %v13871_v12 }
 0x309   :  { %9802 = vmatprep.subr.bf16.mxu0 %v9801_v27  ;;  %v13899_v27 = vsel %vm171_vm0, %v7946_v63, 0 }
 0x30a   :  { %v17664_v31 = vand.u32 4294901760, %v13899_v27 }
 0x30c   :  { %v13941_v20 = vpack.c.bf16 %v17664_v31, %v17665_v56 }
 0x30d   :  { %10078 = vmatpush1.bf16.xpose.msra.mxu1 %v13283_v47 }
 0x30e   :  { %10079 = vmatprep.subr.bf16.mxu1 %v18411_v24  ;;  %18630 = vst [vmem:[#allocation72_spill] sm:$0xff] %v13941_v20 }
 0x310   :  { %9804 = vmatpush3.bf16.xpose.msra.mxu0 %v9803_v17 }
 0x311   :  { %9806 = vmatprep.subr.bf16.mxu0 %v9805_v22  ;;  %v13917_v22 = vpack.c.bf16 %v17666_v28, %v17667_v55 }
 0x313   :  { %18628 = vst [vmem:[#allocation66_spill] sm:$0xff] %v13917_v22 }
 0x315   :  { %10081 = vmatpush1.bf16.xpose.msra.mxu1 %v13328_v60 }
 0x316   :  { %10082 = vmatprep.subr.bf16.mxu1 %v18411_v24 }
 0x318   :  { %9808 = vmatpush3.bf16.xpose.msra.mxu0 %v9807_v42  ;;  %v7948_v42 = vld [vmem:[%s17173_s0 + $0x500] sm:$0xff] }
 0x319   :  { %9810 = vmatprep.subr.bf16.mxu0 %v9809_v49  ;;  %v18629_v49 = vld [vmem:[#allocation21_spill] sm:$0xff] }
 0x31d   :  { %10084 = vmatpush1.bf16.xpose.msra.mxu1 %v13374_v5 }
 0x31e   :  { %10085 = vmatprep.subr.bf16.mxu1 %v18411_v24 }
 0x320   :  { %9812 = vmatpush3.bf16.xpose.msra.mxu0 %v9811_v34 }
 0x321   :  { %9814 = vmatprep.subr.bf16.mxu0 %v18555_v19  ;;  %v18622_v19 = vld [vmem:[#allocation28_spill] sm:$0xff] }
 0x325   :  { %10087 = vmatpush1.bf16.xpose.msra.mxu1 %v13418_v36 }
 0x326   :  { %10088 = vmatprep.subr.bf16.mxu1 %v18411_v24 }
 0x327   :  { %8622 = vmatmul.mubr.f32.vlgmr.msra.gmra.mrb[4].mxu0 %v18214_v1 }
 0x328   :  { %9816 = vmatpush3.bf16.xpose.msra.mxu0 %v18556_v26  ;;  %8655 = vmatprep.mubr.f32.mxu0 %v18214_v1  ;;  %v13860_v26 = vand.u32 4294901760, %v4111_v16 }
 0x329   :  { %9818 = vmatprep.subr.bf16.mxu0 %v18618_v35  ;;  %v13954_v35 = vsel %vm171_vm0, %v7948_v42, 0  ;;  %v14005_v42 = vsel %vm171_vm0, %v7967_v41, 0  ;;  %v7951_v41 = vld [vmem:[%s17173_s0 + $0x518] sm:$0xff] }
 0x32a   :  { %v13883_v48 = vsub.f32 %v4111_v16, %v13860_v26  ;;  %v17656_v30 = vand.u32 4294901760, %v13954_v35 }
 0x32c   :  { %18625 = vst [vmem:[#allocation53_spill] sm:$0xff] %v13883_v48  ;;  %v13908_v17 = vand.u32 4294901760, %v13883_v48 }
 0x32d   :  { %10090 = vmatpush1.bf16.xpose.msra.mxu1 %v18619_v43 }
 0x32e   :  { %10091 = vmatprep.subr.bf16.mxu1 %v18411_v24  ;;  %18627 = vst [vmem:[#allocation58_spill] sm:$0xff] %v13908_v17  ;;  %v4588_v50 = vsub.f32 %v13883_v48, %v13908_v17 }
 0x330   :  { %9820 = vmatpush3.bf16.xpose.msra.mxu0 %v18620_v52  ;;  %v13957_v52 = vsel %vm171_vm0, %v7965_v46, 0 }
 0x331   :  { %9822 = vmatprep.subr.bf16.mxu0 %v18621_v45  ;;  %v13962_v45 = vand.u32 4294901760, %v4588_v50  ;;  %v17655_v53 = vand.u32 4294901760, %v13957_v52 }
 0x333   :  { %18632 = vst [vmem:[#allocation88_spill] sm:$0xff] %v13962_v45 }
 0x335   :  { %10093 = vmatpush1.bf16.xpose.msra.mxu1 %v18622_v19 }
 0x336   :  { %10094 = vmatprep.subr.bf16.mxu1 %v18411_v24 }
 0x338   :  { %9824 = vmatpush3.bf16.xpose.msra.mxu0 %v18623_v6 }
 0x339   :  { %9826 = vmatprep.subr.bf16.mxu0 %v18624_v54  ;;  %v7949_v54 = vld [vmem:[%s17173_s0 + $0x508] sm:$0xff] }
 0x33a   :  { %v13999_v37 = vsel %vm171_vm0, %v7949_v54, 0  ;;  %v17662_v54 = vand.u32 4294901760, %v14005_v42 }
 0x33b   :  { %v17663_v46 = vand.u32 4294901760, %v13999_v37 }
 0x33d   :  { %10096 = vmatpush1.bf16.xpose.msra.mxu1 %v18626_v59 }
 0x33e   :  { %3914 = vmatprep.subr.mxu1 %v18416_v58 }
 0x340   :  { %9828 = vmatpush3.bf16.xpose.msra.mxu0 %v18568_v39  ;;  %v7947_v39 = vld [vmem:[%s17173_s0 + $0x4f8] sm:$0xff] }
 0x341   :  { %9830 = vmatprep.subr.bf16.mxu0 %v18571_v10  ;;  %v7966_v10 = vld [vmem:[%s17173_s0 + $0x590] sm:$0xff]  ;;  %v13951_v34 = vsel %vm171_vm0, %v7947_v39, 0 }
 0x342   :  { %v13960_v4 = vsel %vm171_vm0, %v7966_v10, 0  ;;  %v17657_v16 = vand.u32 4294901760, %v13951_v34 }
 0x343   :  { %v17654_v6 = vand.u32 4294901760, %v13960_v4 }
 0x344   :  { %v13990_v63 = vpack.c.bf16 %v17656_v30, %v17657_v16  ;;  %v14043_v30 = vsel %vm171_vm0, %v7951_v41, 0 }
 0x345   :  { %3916 = vmatpush1.xpose.msra.mxu1 %v18629_v49  ;;  %v13996_v2 = vpack.c.bf16 %v17654_v6, %v17655_v53 }
 0x346   :  { %10290 = vmatprep.subr.bf16.mxu1 %v13917_v22  ;;  %18633 = vst [vmem:[#allocation89_spill] sm:$0xff] %v13990_v63 }
 0x347   :  { %18634 = vst [vmem:[#allocation90_spill] sm:$0xff] %v13996_v2 }
 0x348   :  { %3925 = vmatmul.mubr.f32.vlgmr.msra.gmra.mrb[2].mxu1 %v18214_v1  ;;  %9832 = vmatpush3.bf16.xpose.msra.mxu0 %v18572_v62  ;;  %v7950_v62 = vld [vmem:[%s17173_s0 + $0x510] sm:$0xff] }
 0x349   :  { %10292 = vmatpush3.bf16.xpose.msra.mxu1 %v13941_v20  ;;  %9834 = vmatprep.subr.bf16.mxu0 %v18573_v44  ;;  %v7968_v44 = vld [vmem:[%s17173_s0 + $0x5a0] sm:$0xff]  ;;  %v14002_v39 = vsel %vm171_vm0, %v7950_v62, 0 }
 0x34a   :  { %10294 = vmatprep.subr.bf16.mxu1 %v13948_v57  ;;  %8893 = vmatprep.mubr.f32.mxu1 %v13962_v45  ;;  %v14008_v50 = vsel %vm171_vm0, %v7968_v44, 0  ;;  %v17660_v10 = vand.u32 4294901760, %v14002_v39  ;;  %v7969_v44 = vld [vmem:[%s17173_s0 + $0x5a8] sm:$0xff] }
 0x34b   :  { %v17661_v62 = vand.u32 4294901760, %v14008_v50  ;;  %v14049_v18 = vsel %vm171_vm0, %v7969_v44, 0  ;;  %v7953_v44 = vld [vmem:[%s17173_s0 + $0x528] sm:$0xff] }
 0x34c   :  { %v14034_v6 = vpack.c.bf16 %v17660_v10, %v17663_v46  ;;  %v17671_v10 = vand.u32 4294901760, %v14043_v30  ;;  %v17670_v41 = vand.u32 4294901760, %v14049_v18  ;;  %v14087_v31 = vsel %vm171_vm0, %v7953_v44, 0 }
 0x34d   :  { %v14040_v53 = vpack.c.bf16 %v17661_v62, %v17662_v54 }
 0x34e   :  { %18635 = vst [vmem:[#allocation94_spill] sm:$0xff] %v14034_v6 }
 0x34f   :  { %18636 = vst [vmem:[#allocation96_spill] sm:$0xff] %v14040_v53 }
 0x350   :  { %9836 = vmatpush3.bf16.xpose.msra.mxu0 %v18575_v21  ;;  %v7952_v21 = vld [vmem:[%s17173_s0 + $0x520] sm:$0xff] }
 0x351   :  { %10296 = vmatpush3.bf16.xpose.msra.mxu1 %v13990_v63  ;;  %9838 = vmatprep.subr.bf16.mxu0 %v18576_v8  ;;  %v7970_v8 = vld [vmem:[%s17173_s0 + $0x5b0] sm:$0xff]  ;;  %v14046_v16 = vsel %vm171_vm0, %v7952_v21, 0 }
 0x352   :  { %10298 = vmatprep.subr.bf16.mxu1 %v13996_v2  ;;  %v14052_v25 = vsel %vm171_vm0, %v7970_v8, 0  ;;  %v17668_v62 = vand.u32 4294901760, %v14046_v16  ;;  %v7971_v8 = vld [vmem:[%s17173_s0 + $0x5b8] sm:$0xff] }
 0x353   :  { %v17669_v21 = vand.u32 4294901760, %v14052_v25  ;;  %v14093_v28 = vsel %vm171_vm0, %v7971_v8, 0  ;;  %v7955_v8 = vld [vmem:[%s17173_s0 + $0x538] sm:$0xff] }
 0x354   :  { %v14078_v54 = vpack.c.bf16 %v17668_v62, %v17671_v10  ;;  %v17683_v62 = vand.u32 4294901760, %v14087_v31  ;;  %v17681_v44 = vand.u32 4294901760, %v14093_v28  ;;  %v14131_v38 = vsel %vm171_vm0, %v7955_v8, 0 }
 0x355   :  { %v14084_v46 = vpack.c.bf16 %v17669_v21, %v17670_v41  ;;  %v7974_v41 = vld [vmem:[%s17173_s0 + $0x5d0] sm:$0xff] }
 0x356   :  { %18637 = vst [vmem:[#allocation98_spill] sm:$0xff] %v14078_v54 }
 0x357   :  { %18638 = vst [vmem:[#allocation103_spill] sm:$0xff] %v14084_v46 }
 0x358   :  { %9840 = vmatpush3.bf16.xpose.msra.mxu0 %v18578_v29  ;;  %v7954_v29 = vld [vmem:[%s17173_s0 + $0x530] sm:$0xff] }
 0x359   :  { %10300 = vmatpush3.bf16.xpose.msra.mxu1 %v14034_v6  ;;  %9842 = vmatprep.subr.bf16.mxu0 %v18579_v15  ;;  %v7972_v15 = vld [vmem:[%s17173_s0 + $0x5c0] sm:$0xff]  ;;  %v14090_v56 = vsel %vm171_vm0, %v7954_v29, 0 }
 0x35a   :  { %10302 = vmatprep.subr.bf16.mxu1 %v14040_v53  ;;  %v14096_v55 = vsel %vm171_vm0, %v7972_v15, 0  ;;  %v17682_v21 = vand.u32 4294901760, %v14090_v56  ;;  %v7973_v15 = vld [vmem:[%s17173_s0 + $0x5c8] sm:$0xff]  ;;  %v14140_v53 = vsel %vm171_vm0, %v7974_v41, 0 }
 0x35b   :  { %v17680_v29 = vand.u32 4294901760, %v14096_v55  ;;  %v7957_v41 = vld [vmem:[%s17173_s0 + $0x548] sm:$0xff]  ;;  %v18645_v6 = vand.u32 4294901760, %v14140_v53 }
 0x35c   :  { %v14122_v10 = vpack.c.bf16 %v17682_v21, %v17683_v62  ;;  %v7976_v21 = vld [vmem:[%s17173_s0 + $0x5e0] sm:$0xff]  ;;  %v18641_v62 = vand.u32 4294901760, %v13871_v12 }
 0x35d   :  { %v14128_v40 = vpack.c.bf16 %v17680_v29, %v17681_v44  ;;  %v17694_v29 = vand.u32 4294901760, %v14131_v38  ;;  %v7975_v44 = vld [vmem:[%s17173_s0 + $0x5d8] sm:$0xff] }
 0x35e   :  { %18639 = vst [vmem:[#allocation104_spill] sm:$0xff] %v14122_v10 }
 0x35f   :  { %18640 = vst [vmem:[#allocation13_spill] sm:$0xff] %v14128_v40 }
 0x360   :  { %9844 = vmatpush3.bf16.xpose.msra.mxu0 %v13259_v0  ;;  %v7956_v0 = vld [vmem:[%s17173_s0 + $0x540] sm:$0xff] }
 0x361   :  { %10304 = vmatpush3.bf16.xpose.msra.mxu1 %v14078_v54  ;;  %9845 = vmatprep.subr.bf16.mxu0 %v18411_v24  ;;  %v14137_v54 = vsel %vm171_vm0, %v7973_v15, 0  ;;  %v14167_v15 = vsub.f32 %v13871_v12, %v18641_v62  ;;  %v14187_v12 = vsel %vm171_vm0, %v7957_v41, 0  ;;  %v7960_v41 = vld [vmem:[%s17173_s0 + $0x560] sm:$0xff] }
 0x362   :  { %10306 = vmatprep.subr.bf16.mxu1 %v14084_v46  ;;  %v14134_v46 = vsel %vm171_vm0, %v7956_v0, 0 }
 0x363   :  { %v17693_v8 = vand.u32 4294901760, %v14134_v46 }
 0x365   :  { %v14173_v0 = vpack.c.bf16 %v17693_v8, %v17694_v29  ;;  %v14193_v8 = vsel %vm171_vm0, %v7975_v44, 0  ;;  %v14196_v29 = vsel %vm171_vm0, %v7976_v21, 0  ;;  %v7959_v21 = vld [vmem:[%s17173_s0 + $0x558] sm:$0xff] }
 0x366   :  { %v14241_v63 = vsel %vm171_vm0, %v7959_v21, 0 }
 0x367   :  { %8656 = vmatmul.mubr.f32.vlgmr.msra.gmra.mrb[4].mxu0 %v18214_v1  ;;  %18642 = vst [vmem:[#allocation14_spill] sm:$0xff] %v14173_v0  ;;  %v18643_v1 = vand.u32 4294901760, %v13874_v51 }
 0x368   :  { %9847 = vmatpush1.bf16.xpose.msra.mxu0 %v18577_v3  ;;  %v7958_v3 = vld [vmem:[%s17173_s0 + $0x550] sm:$0xff]  ;;  %3208 = vmatprep.mubr.f32.mxu0 %v18416_v58 }
 0x369   :  { %10308 = vmatpush3.bf16.xpose.msra.mxu1 %v14122_v10  ;;  %9848 = vmatprep.subr.bf16.mxu0 %v18411_v24  ;;  %v18644_v10 = vand.u32 4294901760, %v14137_v54  ;;  %v14190_v62 = vsel %vm171_vm0, %v7958_v3, 0  ;;  %v18647_v3 = vand.u32 4294901760, %v13896_v14 }
 0x36a   :  { %10310 = vmatprep.subr.bf16.mxu1 %v14128_v40  ;;  %v14178_v40 = vsub.f32 %v13874_v51, %v18643_v1  ;;  %v18649_v1 = vand.u32 4294901760, %v13902_v11 }
 0x36b   :  { %v14184_v2 = vpack.c.bf16 %v18645_v6, %v18644_v10  ;;  %v14217_v51 = vsub.f32 %v13896_v14, %v18647_v3  ;;  %v18648_v6 = vand.u32 4294901760, %v13899_v27  ;;  %v18652_v14 = vand.u32 4294901760, %v14190_v62 }
 0x36c   :  { %v14227_v44 = vsub.f32 %v13902_v11, %v18649_v1  ;;  %v14250_v1 = vsel %vm171_vm0, %v7960_v41, 0  ;;  %v18658_v57 = vand.u32 4294901760, %v14178_v40  ;;  %v18661_v41 = vand.u32 4294901760, %v13957_v52 }
 0x36d   :  { %18646 = vst [vmem:[#allocation25_spill] sm:$0xff] %v14184_v2  ;;  %v14222_v10 = vsub.f32 %v13899_v27, %v18648_v6  ;;  %v18654_v27 = vand.u32 4294901760, %v14193_v8  ;;  %v18655_v6 = vand.u32 4294901760, %v14196_v29 }
 0x36f   :  { %v14247_v11 = vpack.c.bf16 %v18655_v6, %v18654_v27 }
 0x370   :  { %9850 = vmatpush1.bf16.xpose.msra.mxu0 %v18580_v32  ;;  %v18650_v32 = vand.u32 4294901760, %v13905_v13 }
 0x371   :  { %10312 = vmatpush3.bf16.xpose.msra.mxu1 %v14173_v0  ;;  %9851 = vmatprep.subr.bf16.mxu0 %v18411_v24  ;;  %v18651_v0 = vand.u32 4294901760, %v14187_v12  ;;  %18656 = vst [vmem:[#allocation32_spill] sm:$0xff] %v14247_v11 }
 0x372   :  { %10314 = vmatprep.subr.bf16.mxu1 %v14184_v2  ;;  %v14232_v2 = vsub.f32 %v13905_v13, %v18650_v32  ;;  %v18657_v13 = vand.u32 4294901760, %v14167_v15 }
 0x373   :  { %v14238_v3 = vpack.c.bf16 %v18652_v14, %v18651_v0  ;;  %v5574_v0 = vsub.f32 %v14178_v40, %v18658_v57  ;;  %v18660_v14 = vand.u32 4294901760, %v13954_v35  ;;  %v18665_v57 = vand.u32 4294901760, %v14217_v51 }
 0x374   :  { %v5567_v32 = vsub.f32 %v14167_v15, %v18657_v13 }
 0x375   :  { %18653 = vst [vmem:[#allocation31_spill] sm:$0xff] %v14238_v3  ;;  %v5575_v13 = vand.u32 4294901760, %v5574_v0  ;;  %v14276_v27 = vsub.f32 %v13954_v35, %v18660_v14  ;;  %v18663_v0 = vand.u32 4294901760, %v14250_v1  ;;  %v18667_v14 = vand.u32 4294901760, %v13960_v4 }
 0x376   :  { %v5568_v6 = vand.u32 4294901760, %v5567_v32  ;;  %v18662_v32 = vand.u32 4294901760, %v14241_v63 }
 0x377   :  { %v14298_v17 = vsub.f32 %v13960_v4, %v18667_v14  ;;  %v17715_v4 = vand.u32 4294901760, %v14276_v27 }
 0x378   :  { %9853 = vmatpush1.bf16.xpose.msra.mxu0 %v18583_v33  ;;  %v18659_v33 = vand.u32 4294901760, %v13951_v34 }
 0x379   :  { %10316 = vmatpush3.bf16.xpose.msra.mxu1 %v14238_v3  ;;  %9854 = vmatprep.subr.bf16.mxu0 %v18411_v24  ;;  %v14287_v3 = vpack.c.bf16 %v18663_v0, %v18662_v32  ;;  %v18669_v32 = vand.u32 4294901760, %v14232_v2 }
 0x37a   :  { %10318 = vmatprep.subr.bf16.mxu1 %v14247_v11  ;;  %v14271_v21 = vsub.f32 %v13951_v34, %v18659_v33  ;;  %v14281_v11 = vsub.f32 %v13957_v52, %v18661_v41  ;;  %v5455_v34 = vsub.f32 %v14217_v51, %v18665_v57  ;;  %v18666_v33 = vand.u32 4294901760, %v14222_v10 }
 0x37b   :  { %18664 = vst [vmem:[#allocation37_spill] sm:$0xff] %v14287_v3  ;;  %v10321_v52 = vpack.c.bf16 %v5575_v13, %v5568_v6  ;;  %v18668_v41 = vand.u32 4294901760, %v14227_v44  ;;  %v5588_v0 = vsub.f32 %v14232_v2, %v18669_v32  ;;  %v18670_v32 = vand.u32 4294901760, %v13999_v37 }
 0x37c   :  { %v5462_v35 = vsub.f32 %v14222_v10, %v18666_v33  ;;  %v5456_v57 = vand.u32 4294901760, %v5455_v34  ;;  %v17717_v22 = vand.u32 4294901760, %v14271_v21  ;;  %v17716_v14 = vand.u32 4294901760, %v14281_v11 }
 0x37d   :  { %v5581_v20 = vsub.f32 %v14227_v44, %v18668_v41  ;;  %v5589_v13 = vand.u32 4294901760, %v5588_v0 }
 0x37e   :  { %v5463_v33 = vand.u32 4294901760, %v5462_v35  ;;  %v18672_v35 = vand.u32 4294901760, %v14005_v42  ;;  %v5469_v0 = vsub.f32 %v14271_v21, %v17717_v22 }
 0x37f   :  { %v5582_v6 = vand.u32 4294901760, %v5581_v20 }
 0x380   :  { %9856 = vmatpush1.bf16.xpose.msra.mxu0 %v18588_v7  ;;  %v18671_v7 = vand.u32 4294901760, %v14002_v39  ;;  %v10323_v20 = vpack.c.bf16 %v5463_v33, %v5456_v57  ;;  %v18674_v57 = vand.u32 4294901760, %v14298_v17 }
 0x381   :  { %10320 = vmatpush3.bf16.xpose.msra.mxu1 %v14287_v3  ;;  %9857 = vmatprep.subr.bf16.mxu0 %v18411_v24  ;;  %v14316_v3 = vsub.f32 %v13999_v37, %v18670_v32  ;;  %v5476_v37 = vsub.f32 %v14276_v27, %v17715_v4  ;;  %v18673_v32 = vand.u32 4294901760, %v14008_v50 }
 0x382   :  { %10322 = vmatprep.subr.bf16.mxu1 %v10321_v52  ;;  %v14321_v34 = vsub.f32 %v14002_v39, %v18671_v7  ;;  %v14326_v52 = vsub.f32 %v14005_v42, %v18672_v35  ;;  %v10325_v39 = vpack.c.bf16 %v5589_v13, %v5582_v6  ;;  %v5595_v42 = vsub.f32 %v14281_v11, %v17716_v14 }
 0x383   :  { %v14337_v41 = vsub.f32 %v14008_v50, %v18673_v32  ;;  %v5602_v33 = vsub.f32 %v14298_v17, %v18674_v57  ;;  %v5470_v7 = vand.u32 4294901760, %v5469_v0  ;;  %v5477_v35 = vand.u32 4294901760, %v5476_v37 }
 0x384   :  { %v17739_v4 = vand.u32 4294901760, %v14316_v3  ;;  %v17718_v50 = vand.u32 4294901760, %v14321_v34  ;;  %v5596_v6 = vand.u32 4294901760, %v5595_v42  ;;  %v17720_v32 = vand.u32 4294901760, %v14326_v52 }
 0x385   :  { %v5603_v13 = vand.u32 4294901760, %v5602_v33  ;;  %v17719_v57 = vand.u32 4294901760, %v14337_v41  ;;  %v18676_v0 = vand.u32 4294901760, %v14046_v16  ;;  %v10327_v33 = vpack.c.bf16 %v5477_v35, %v5470_v7 }
 0x386   :  { %v5483_v14 = vsub.f32 %v14316_v3, %v17739_v4  ;;  %v18753_v4 = vld [vmem:[#allocation83_spill] sm:$0xff] }
 0x387   :  { %v14361_v37 = vsub.f32 %v14046_v16, %v18676_v0  ;;  %v10329_v16 = vpack.c.bf16 %v5603_v13, %v5596_v6  ;;  %v5616_v7 = vsub.f32 %v14337_v41, %v17719_v57  ;;  %v18679_v57 = vand.u32 4294901760, %v14087_v31 }
 0x388   :  { %8894 = vmatmul.mubr.f32.vlgmr.msra.gmra.mrb[4].mxu1 %v13962_v45  ;;  %9859 = vmatpush1.bf16.xpose.msra.mxu0 %v18593_v23  ;;  %v5484_v35 = vand.u32 4294901760, %v5483_v14 }
 0x389   :  { %10324 = vmatpush3.bf16.xpose.msra.mxu1 %v10323_v20  ;;  %9860 = vmatprep.subr.bf16.mxu0 %v18411_v24  ;;  %v18675_v20 = vand.u32 4294901760, %v14043_v30  ;;  %v5617_v6 = vand.u32 4294901760, %v5616_v7 }
 0x38a   :  { %10326 = vmatprep.subr.bf16.mxu1 %v10325_v39  ;;  %8927 = vmatprep.mubr.f32.mxu1 %v13860_v26  ;;  %v18677_v39 = vand.u32 4294901760, %v14049_v18 }
 0x38b   :  { %v14356_v23 = vsub.f32 %v14043_v30, %v18675_v20  ;;  %v5490_v30 = vsub.f32 %v14321_v34, %v17718_v50  ;;  %v18678_v20 = vand.u32 4294901760, %v14052_v25  ;;  %v17721_v50 = vand.u32 4294901760, %v14361_v37 }
 0x38c   :  { %v14366_v42 = vsub.f32 %v14049_v18, %v18677_v39  ;;  %v5609_v18 = vsub.f32 %v14326_v52, %v17720_v32 }
 0x38d   :  { %v14377_v22 = vsub.f32 %v14052_v25, %v18678_v20  ;;  %v5491_v0 = vand.u32 4294901760, %v5490_v30  ;;  %v17738_v39 = vand.u32 4294901760, %v14356_v23  ;;  %v18681_v30 = vand.u32 4294901760, %v14093_v28 }
 0x38e   :  { %v5610_v25 = vand.u32 4294901760, %v5609_v18  ;;  %v17723_v13 = vand.u32 4294901760, %v14366_v42 }
 0x38f   :  { %v17722_v20 = vand.u32 4294901760, %v14377_v22  ;;  %v10331_v18 = vpack.c.bf16 %v5491_v0, %v5484_v35  ;;  %v5497_v7 = vsub.f32 %v14356_v23, %v17738_v39  ;;  %v18751_v39 = vld [vmem:[#allocation73_spill] sm:$0xff] }
 0x390   :  { %9862 = vmatpush1.bf16.xpose.msra.mxu0 %v18598_v9  ;;  %v18680_v9 = vand.u32 4294901760, %v14090_v56 }
 0x391   :  { %10328 = vmatpush3.bf16.xpose.msra.mxu1 %v10327_v33  ;;  %9863 = vmatprep.subr.bf16.mxu0 %v18411_v24  ;;  %v14394_v33 = vsub.f32 %v14087_v31, %v18679_v57  ;;  %v5504_v31 = vsub.f32 %v14361_v37, %v17721_v50  ;;  %v18682_v57 = vand.u32 4294901760, %v14096_v55  ;;  %v5630_v35 = vsub.f32 %v14377_v22, %v17722_v20 }
 0x392   :  { %10330 = vmatprep.subr.bf16.mxu1 %v10329_v16  ;;  %v14399_v14 = vsub.f32 %v14090_v56, %v18680_v9  ;;  %v14404_v16 = vsub.f32 %v14093_v28, %v18681_v30  ;;  %v10333_v56 = vpack.c.bf16 %v5617_v6, %v5610_v25  ;;  %v5623_v28 = vsub.f32 %v14366_v42, %v17723_v13 }
 0x393   :  { %v14415_v32 = vsub.f32 %v14096_v55, %v18682_v57  ;;  %v5498_v0 = vand.u32 4294901760, %v5497_v7  ;;  %v5505_v9 = vand.u32 4294901760, %v5504_v31  ;;  %v17737_v30 = vand.u32 4294901760, %v14394_v33 }
 0x394   :  { %v17724_v50 = vand.u32 4294901760, %v14399_v14  ;;  %v5624_v55 = vand.u32 4294901760, %v5623_v28  ;;  %v5631_v25 = vand.u32 4294901760, %v5630_v35  ;;  %v17726_v6 = vand.u32 4294901760, %v14404_v16 }
 0x395   :  { %v17725_v57 = vand.u32 4294901760, %v14415_v32  ;;  %v18683_v20 = vand.u32 4294901760, %v14131_v38  ;;  %v18685_v31 = vand.u32 4294901760, %v14137_v54  ;;  %v10335_v28 = vpack.c.bf16 %v5505_v9, %v5498_v0 }
 0x396   :  { %v5511_v35 = vsub.f32 %v14394_v33, %v17737_v30 }
 0x397   :  { %v5644_v0 = vsub.f32 %v14415_v32, %v17725_v57  ;;  %v18687_v57 = vand.u32 4294901760, %v14187_v12 }
 0x398   :  { %9865 = vmatpush1.bf16.xpose.msra.mxu0 %v18603_v61  ;;  %v18684_v61 = vand.u32 4294901760, %v14134_v46  ;;  %v5512_v9 = vand.u32 4294901760, %v5511_v35 }
 0x399   :  { %10332 = vmatpush3.bf16.xpose.msra.mxu1 %v10331_v18  ;;  %9866 = vmatprep.subr.bf16.mxu0 %v18411_v24  ;;  %v14432_v18 = vsub.f32 %v14131_v38, %v18683_v20  ;;  %v5518_v38 = vsub.f32 %v14399_v14, %v17724_v50  ;;  %v18686_v20 = vand.u32 4294901760, %v14140_v53 }
 0x39a   :  { %10334 = vmatprep.subr.bf16.mxu1 %v10333_v56  ;;  %v14437_v7 = vsub.f32 %v14134_v46, %v18684_v61  ;;  %v14442_v56 = vsub.f32 %v14137_v54, %v18685_v31  ;;  %v10337_v46 = vpack.c.bf16 %v5631_v25, %v5624_v55  ;;  %v5637_v54 = vsub.f32 %v14404_v16, %v17726_v6 }
 0x39b   :  { %v14453_v13 = vsub.f32 %v14140_v53, %v18686_v20  ;;  %v5519_v61 = vand.u32 4294901760, %v5518_v38  ;;  %v17736_v31 = vand.u32 4294901760, %v14432_v18  ;;  %v5645_v55 = vand.u32 4294901760, %v5644_v0 }
 0x39c   :  { %v17727_v50 = vand.u32 4294901760, %v14437_v7  ;;  %v5638_v53 = vand.u32 4294901760, %v5637_v54  ;;  %v17735_v25 = vand.u32 4294901760, %v14442_v56  ;;  %v18689_v38 = vand.u32 4294901760, %v14193_v8 }
 0x39d   :  { %v17728_v20 = vand.u32 4294901760, %v14453_v13  ;;  %v10339_v54 = vpack.c.bf16 %v5519_v61, %v5512_v9  ;;  %v5525_v0 = vsub.f32 %v14432_v18, %v17736_v31  ;;  %v18749_v31 = vld [vmem:[#allocation103_spill] sm:$0xff] }
 0x39f   :  { %v5658_v9 = vsub.f32 %v14453_v13, %v17728_v20  ;;  %v5526_v61 = vand.u32 4294901760, %v5525_v0  ;;  %v18691_v20 = vand.u32 4294901760, %v14241_v63 }
 0x3a0   :  { %9868 = vmatpush1.bf16.xpose.msra.mxu0 %v13283_v47  ;;  %v18688_v47 = vand.u32 4294901760, %v14190_v62 }
 0x3a1   :  { %10336 = vmatpush3.bf16.xpose.msra.mxu1 %v10335_v28  ;;  %9869 = vmatprep.subr.bf16.mxu0 %v18411_v24  ;;  %v14470_v28 = vsub.f32 %v14187_v12, %v18687_v57  ;;  %v5532_v12 = vsub.f32 %v14437_v7, %v17727_v50  ;;  %v18690_v57 = vand.u32 4294901760, %v14196_v29 }
 0x3a2   :  { %10338 = vmatprep.subr.bf16.mxu1 %v10337_v46  ;;  %v14475_v35 = vsub.f32 %v14190_v62, %v18688_v47  ;;  %v14480_v46 = vsub.f32 %v14193_v8, %v18689_v38  ;;  %v10341_v62 = vpack.c.bf16 %v5645_v55, %v5638_v53  ;;  %v5651_v8 = vsub.f32 %v14442_v56, %v17735_v25  ;;  %v18747_v25 = vld [vmem:[#allocation74_spill] sm:$0xff] }
 0x3a3   :  { %v14491_v6 = vsub.f32 %v14196_v29, %v18690_v57  ;;  %v5533_v47 = vand.u32 4294901760, %v5532_v12  ;;  %v17734_v38 = vand.u32 4294901760, %v14470_v28  ;;  %v5659_v53 = vand.u32 4294901760, %v5658_v9 }
 0x3a4   :  { %v17729_v50 = vand.u32 4294901760, %v14475_v35  ;;  %v5652_v29 = vand.u32 4294901760, %v5651_v8  ;;  %v17730_v55 = vand.u32 4294901760, %v14480_v46 }
 0x3a5   :  { %v17733_v57 = vand.u32 4294901760, %v14491_v6  ;;  %v10343_v12 = vpack.c.bf16 %v5533_v47, %v5526_v61 }
 0x3a6   :  { %v5546_v8 = vsub.f32 %v14475_v35, %v17729_v50  ;;  %v10345_v9 = vpack.c.bf16 %v5659_v53, %v5652_v29 }
 0x3a8   :  { %9871 = vmatpush1.bf16.xpose.msra.mxu0 %v13328_v60  ;;  %v18692_v60 = vand.u32 4294901760, %v14250_v1  ;;  %v5547_v61 = vand.u32 4294901760, %v5546_v8 }
 0x3a9   :  { %10340 = vmatpush3.bf16.xpose.msra.mxu1 %v10339_v54  ;;  %9872 = vmatprep.subr.bf16.mxu0 %v18411_v24  ;;  %v14508_v54 = vsub.f32 %v14241_v63, %v18691_v20  ;;  %v5665_v63 = vsub.f32 %v14480_v46, %v17730_v55  ;;  %v5672_v20 = vsub.f32 %v14491_v6, %v17733_v57  ;;  %v18739_v57 = vld [vmem:[#allocation69_spill] sm:$0xff] }
 0x3aa   :  { %10342 = vmatprep.subr.bf16.mxu1 %v10341_v62  ;;  %v14513_v0 = vsub.f32 %v14250_v1, %v18692_v60  ;;  %v5539_v62 = vsub.f32 %v14470_v28, %v17734_v38  ;;  %v18741_v38 = vld [vmem:[#allocation96_spill] sm:$0xff] }
 0x3ab   :  { %v17732_v47 = vand.u32 4294901760, %v14508_v54  ;;  %v5666_v29 = vand.u32 4294901760, %v5665_v63  ;;  %v5673_v53 = vand.u32 4294901760, %v5672_v20  ;;  %v10353_v63 = vpack.c.bf16 %v14178_v40, %v14167_v15  ;;  %v18693_v20 = vld [vmem:[#allocation76_spill] sm:$0xff] }
 0x3ac   :  { %v5540_v1 = vand.u32 4294901760, %v5539_v62  ;;  %v17731_v60 = vand.u32 4294901760, %v14513_v0 }
 0x3ad   :  { %v5553_v55 = vsub.f32 %v14508_v54, %v17732_v47  ;;  %v18737_v47 = vld [vmem:[#allocation61_spill] sm:$0xff] }
 0x3ae   :  { %v10347_v50 = vpack.c.bf16 %v5547_v61, %v5540_v1  ;;  %v18694_v1 = vand.u32 4294901760, %v18693_v20 }
 0x3af   :  { %v5554_v62 = vand.u32 4294901760, %v5553_v55  ;;  %v10361_v55 = vpack.c.bf16 %v14298_v17, %v14281_v11 }
 0x3b0   :  { %9874 = vmatpush1.bf16.xpose.msra.mxu0 %v13374_v5  ;;  %v5560_v5 = vsub.f32 %v14513_v0, %v17731_v60  ;;  %v3224_v61 = vsub.f32 %v18693_v20, %v18694_v1  ;;  %v18701_v20 = vld [vmem:[#allocation105_spill] sm:$0xff]  ;;  %v10367_v1 = vpack.c.bf16 %v14361_v37, %v14356_v23 }
 0x3b1   :  { %10344 = vmatpush3.bf16.xpose.msra.mxu1 %v10343_v12  ;;  %9875 = vmatprep.subr.bf16.mxu0 %v18411_v24  ;;  %v10349_v12 = vpack.c.bf16 %v5673_v53, %v5666_v29  ;;  %v18695_v29 = vld [vmem:[#allocation79_spill] sm:$0xff] }
 0x3b2   :  { %10346 = vmatprep.subr.bf16.mxu1 %v10345_v9  ;;  %v5561_v8 = vand.u32 4294901760, %v5560_v5  ;;  %v10363_v5 = vpack.c.bf16 %v14321_v34, %v14316_v3 }
 0x3b4   :  { %v10351_v9 = vpack.c.bf16 %v5561_v8, %v5554_v62  ;;  %v10365_v8 = vpack.c.bf16 %v14337_v41, %v14326_v52 }
 0x3b8   :  { %9877 = vmatpush1.bf16.xpose.msra.mxu0 %v13418_v36  ;;  %v10357_v36 = vpack.c.bf16 %v14232_v2, %v14227_v44 }
 0x3b9   :  { %10348 = vmatpush3.bf16.xpose.msra.mxu1 %v10347_v50  ;;  %9878 = vmatprep.subr.bf16.mxu0 %v18411_v24  ;;  %v10355_v50 = vpack.c.bf16 %v14222_v10, %v14217_v51 }
 0x3ba   :  { %10350 = vmatprep.subr.bf16.mxu1 %v10349_v12  ;;  %v3225_v12 = vand.u32 4294901760, %v3224_v61 }
 0x3c0   :  { %9880 = vmatpush1.bf16.xpose.msra.mxu0 %v18619_v43  ;;  %v10359_v43 = vpack.c.bf16 %v14276_v27, %v14271_v21 }
 0x3c1   :  { %10352 = vmatpush3.bf16.xpose.msra.mxu1 %v10351_v9  ;;  %9881 = vmatprep.subr.bf16.mxu0 %v18411_v24  ;;  %v18697_v9 = vld [vmem:[#allocation92_spill] sm:$0xff] }
 0x3c2   :  { %10354 = vmatprep.subr.bf16.mxu1 %v10353_v63  ;;  %v18698_v63 = vand.u32 4294901760, %v18697_v9 }
 0x3c8   :  { %8928 = vmatmul.mubr.f32.vlgmr.msra.gmra.mrb[4].mxu1 %v13860_v26  ;;  %9883 = vmatpush1.bf16.xpose.msra.mxu0 %v18622_v19  ;;  %v18696_v19 = vand.u32 4294901760, %v18695_v29 }
 0x3c9   :  { %10356 = vmatpush3.bf16.xpose.msra.mxu1 %v10355_v50  ;;  %9884 = vmatprep.subr.bf16.mxu0 %v18411_v24  ;;  %v3238_v50 = vsub.f32 %v18697_v9, %v18698_v63 }
 0x3ca   :  { %10358 = vmatprep.subr.bf16.mxu1 %v10357_v36  ;;  %8961 = vmatprep.mubr.f32.mxu1 %v13883_v48  ;;  %v3231_v53 = vsub.f32 %v18695_v29, %v18696_v19  ;;  %v18699_v36 = vld [vmem:[#allocation95_spill] sm:$0xff]  ;;  %v10369_v29 = vpack.c.bf16 %v14377_v22, %v14366_v42 }
 0x3cb   :  { %v3239_v61 = vand.u32 4294901760, %v3238_v50 }
 0x3cc   :  { %v3232_v62 = vand.u32 4294901760, %v3231_v53  ;;  %v18702_v53 = vld [vmem:[#allocation7_spill] sm:$0xff] }
 0x3d0   :  { %9886 = vmatpush1.bf16.xpose.msra.mxu0 %v18626_v59  ;;  %v9888_v59 = vpack.c.bf16 %v3232_v62, %v3225_v12  ;;  %v18704_v62 = vld [vmem:[#allocation8_spill] sm:$0xff] }
 0x3d1   :  { %10360 = vmatpush3.bf16.xpose.msra.mxu1 %v10359_v43  ;;  %3199 = vmatprep.subr.mxu0 %v18416_v58  ;;  %v18700_v43 = vand.u32 4294901760, %v18699_v36 }
 0x3d2   :  { %10362 = vmatprep.subr.bf16.mxu1 %v10361_v55 }
 0x3d3   :  { %v3245_v55 = vsub.f32 %v18699_v36, %v18700_v43  ;;  %v10373_v36 = vpack.c.bf16 %v14415_v32, %v14404_v16 }
 0x3d8   :  { %3201 = vmatpush1.xpose.msra.mxu0 %v18629_v49  ;;  %v3246_v49 = vand.u32 4294901760, %v3245_v55  ;;  %v18706_v55 = vld [vmem:[#allocation10_spill] sm:$0xff] }
 0x3d9   :  { %10364 = vmatpush3.bf16.xpose.msra.mxu1 %v10363_v5  ;;  %9887 = vmatprep.subr.bf16.mxu0 %v18411_v24  ;;  %v18703_v5 = vand.u32 4294901760, %v18702_v53 }
 0x3da   :  { %10366 = vmatprep.subr.bf16.mxu1 %v10365_v8  ;;  %v9891_v19 = vpack.c.bf16 %v3246_v49, %v3239_v61  ;;  %v18705_v8 = vand.u32 4294901760, %v18704_v62  ;;  %v18708_v61 = vld [vmem:[#allocation81_spill] sm:$0xff] }
 0x3db   :  { %3214 = vmatmul.mubr.f32.vlgmr.msra.gmra.mrb[6].mxu0 %v18701_v20  ;;  %v3252_v12 = vsub.f32 %v18702_v53, %v18703_v5  ;;  %v18707_v20 = vand.u32 4294901760, %v18706_v55  ;;  %v18709_v49 = vand.u32 4294901760, %v18708_v61 }
 0x3dc   :  { %9889 = vmatpush1.bf16.xpose.msra.mxu0 %v9888_v59  ;;  %3429 = vmatprep.mubr.f32.mxu0 %v18416_v58  ;;  %v3259_v9 = vsub.f32 %v18704_v62, %v18705_v8  ;;  %v10371_v59 = vpack.c.bf16 %v14399_v14, %v14394_v33  ;;  %v18710_v8 = vld [vmem:[#allocation82_spill] sm:$0xff] }
 0x3dd   :  { %9890 = vmatprep.subr.bf16.mxu0 %v18411_v24  ;;  %v3253_v63 = vand.u32 4294901760, %v3252_v12  ;;  %v10377_v12 = vpack.c.bf16 %v14453_v13, %v14442_v56 }
 0x3de   :  { %v3260_v50 = vand.u32 4294901760, %v3259_v9  ;;  %v18711_v9 = vand.u32 4294901760, %v18710_v8 }
 0x3e0   :  { %v9894_v43 = vpack.c.bf16 %v3260_v50, %v3253_v63  ;;  %v18712_v63 = vld [vmem:[#allocation75_spill] sm:$0xff] }
 0x3e1   :  { %10368 = vmatpush3.bf16.xpose.msra.mxu1 %v10367_v1  ;;  %v3266_v1 = vsub.f32 %v18706_v55, %v18707_v20  ;;  %v18713_v50 = vand.u32 4294901760, %v18712_v63 }
 0x3e2   :  { %10370 = vmatprep.subr.bf16.mxu1 %v10369_v29  ;;  %v3273_v29 = vsub.f32 %v18708_v61, %v18709_v49  ;;  %v18714_v49 = vld [vmem:[#allocation77_spill] sm:$0xff] }
 0x3e3   :  { %v3267_v53 = vand.u32 4294901760, %v3266_v1  ;;  %v10381_v1 = vpack.c.bf16 %v14491_v6, %v14480_v46 }
 0x3e4   :  { %9892 = vmatpush1.bf16.xpose.msra.mxu0 %v9891_v19  ;;  %v10375_v19 = vpack.c.bf16 %v14437_v7, %v14432_v18  ;;  %v3274_v5 = vand.u32 4294901760, %v3273_v29  ;;  %v18715_v29 = vand.u32 4294901760, %v18714_v49 }
 0x3e5   :  { %9893 = vmatprep.subr.bf16.mxu0 %v18411_v24 }
 0x3e6   :  { %v9897_v62 = vpack.c.bf16 %v3274_v5, %v3267_v53  ;;  %v18716_v53 = vld [vmem:[#allocation84_spill] sm:$0xff] }
 0x3e7   :  { %v18717_v5 = vand.u32 4294901760, %v18716_v53 }
 0x3e9   :  { %10372 = vmatpush3.bf16.xpose.msra.mxu1 %v10371_v59  ;;  %v3280_v59 = vsub.f32 %v18710_v8, %v18711_v9 }
 0x3ea   :  { %10374 = vmatprep.subr.bf16.mxu1 %v10373_v36  ;;  %v3287_v36 = vsub.f32 %v18712_v63, %v18713_v50  ;;  %v18718_v63 = vld [vmem:[#allocation86_spill] sm:$0xff] }
 0x3eb   :  { %v3281_v55 = vand.u32 4294901760, %v3280_v59  ;;  %v18719_v50 = vand.u32 4294901760, %v18718_v63 }
 0x3ec   :  { %9895 = vmatpush1.bf16.xpose.msra.mxu0 %v9894_v43  ;;  %v10379_v43 = vpack.c.bf16 %v14475_v35, %v14470_v28  ;;  %v3288_v20 = vand.u32 4294901760, %v3287_v36 }
 0x3ed   :  { %9896 = vmatprep.subr.bf16.mxu0 %v18411_v24  ;;  %v3308_v36 = vsub.f32 %v18718_v63, %v18719_v50  ;;  %v18728_v63 = vld [vmem:[#allocation58_spill] sm:$0xff] }
 0x3ee   :  { %v9900_v61 = vpack.c.bf16 %v3288_v20, %v3281_v55 }
 0x3f1   :  { %10376 = vmatpush3.bf16.xpose.msra.mxu1 %v10375_v19  ;;  %v3294_v19 = vsub.f32 %v18714_v49, %v18715_v29  ;;  %v18722_v49 = vld [vmem:[#allocation66_spill] sm:$0xff] }
 0x3f2   :  { %10378 = vmatprep.subr.bf16.mxu1 %v10377_v12  ;;  %v3301_v12 = vsub.f32 %v18716_v53, %v18717_v5  ;;  %v18724_v53 = vld [vmem:[#allocation93_spill] sm:$0xff] }
 0x3f3   :  { %v3295_v8 = vand.u32 4294901760, %v3294_v19  ;;  %v18725_v5 = vand.u32 4294901760, %v18724_v53 }
 0x3f4   :  { %9898 = vmatpush1.bf16.xpose.msra.mxu0 %v9897_v62  ;;  %v10383_v62 = vpack.c.bf16 %v14513_v0, %v14508_v54  ;;  %v3302_v9 = vand.u32 4294901760, %v3301_v12 }
 0x3f5   :  { %9899 = vmatprep.subr.bf16.mxu0 %v18411_v24  ;;  %v3322_v12 = vsub.f32 %v18724_v53, %v18725_v5  ;;  %v18733_v53 = vld [vmem:[#allocation106_spill] sm:$0xff] }
 0x3f6   :  { %v9903_v59 = vpack.c.bf16 %v3302_v9, %v3295_v8  ;;  %v18734_v5 = vand.u32 4294901760, %v18733_v53 }
 0x3f7   :  { %v3323_v50 = vand.u32 4294901760, %v3322_v12  ;;  %v18736_v12 = vld [vmem:[#allocation94_spill] sm:$0xff] }
 0x3f9   :  { %10380 = vmatpush3.bf16.xpose.msra.mxu1 %v10379_v43  ;;  %v18720_v43 = vld [vmem:[#allocation91_spill] sm:$0xff] }
 0x3fa   :  { %10382 = vmatprep.subr.bf16.mxu1 %v10381_v1  ;;  %v18721_v55 = vand.u32 4294901760, %v18720_v43  ;;  %v3309_v1 = vand.u32 4294901760, %v3308_v36 }
 0x3fc   :  { %9901 = vmatpush1.bf16.xpose.msra.mxu0 %v9900_v61  ;;  %v3315_v20 = vsub.f32 %v18720_v43, %v18721_v55  ;;  %v18723_v61 = vld [vmem:[#allocation72_spill] sm:$0xff]  ;;  %v18730_v43 = vld [vmem:[#allocation89_spill] sm:$0xff] }
 0x3fd   :  { %9902 = vmatprep.subr.bf16.mxu0 %v18411_v24 }
 0x3fe   :  { %v3316_v29 = vand.u32 4294901760, %v3315_v20  ;;  %v18731_v20 = vld [vmem:[#allocation101_spill] sm:$0xff] }
 0x400   :  { %v9906_v19 = vpack.c.bf16 %v3316_v29, %v3309_v1  ;;  %v18732_v1 = vand.u32 4294901760, %v18731_v20 }
 0x401   :  { %10384 = vmatpush3.bf16.xpose.msra.mxu1 %v10383_v62  ;;  %v18726_v62 = vld [vmem:[#allocation99_spill] sm:$0xff] }
 0x402   :  { %10386 = vmatprep.subr.bf16.mxu1 %v18722_v49  ;;  %v18727_v8 = vand.u32 4294901760, %v18726_v62  ;;  %v3336_v29 = vsub.f32 %v18731_v20, %v18732_v1  ;;  %v18740_v20 = vand.u32 4294901760, %v18739_v57 }
 0x404   :  { %9904 = vmatpush1.bf16.xpose.msra.mxu0 %v9903_v59  ;;  %v3329_v9 = vsub.f32 %v18726_v62, %v18727_v8  ;;  %v18729_v59 = vld [vmem:[#allocation78_spill] sm:$0xff]  ;;  %v3343_v62 = vsub.f32 %v18733_v53, %v18734_v5  ;;  %v3337_v60 = vand.u32 4294901760, %v3336_v29  ;;  %v3357_v1 = vsub.f32 %v18739_v57, %v18740_v20 }
 0x405   :  { %9905 = vmatprep.subr.bf16.mxu0 %v18411_v24  ;;  %v18735_v8 = vld [vmem:[#allocation90_spill] sm:$0xff]  ;;  %v18748_v57 = vand.u32 4294901760, %v18747_v25 }
 0x406   :  { %v3330_v36 = vand.u32 4294901760, %v3329_v9  ;;  %v3358_v5 = vand.u32 4294901760, %v3357_v1 }
 0x407   :  { %v3371_v20 = vsub.f32 %v18747_v25, %v18748_v57 }
 0x408   :  { %8962 = vmatmul.mubr.f32.vlgmr.msra.gmra.mrb[4].mxu1 %v13883_v48  ;;  %v9909_v55 = vpack.c.bf16 %v3330_v36, %v3323_v50  ;;  %v18738_v50 = vand.u32 4294901760, %v18737_v47  ;;  %v18761_v48 = vld [vmem:[#allocation25_spill] sm:$0xff] }
 0x409   :  { %10388 = vmatpush3.bf16.xpose.msra.mxu1 %v18723_v61  ;;  %8995 = vmatprep.mubr.f32.mxu1 %v18728_v63 }
 0x40a   :  { %10390 = vmatprep.subr.bf16.mxu1 %v18729_v59  ;;  %v3350_v36 = vsub.f32 %v18737_v47, %v18738_v50 }
 0x40c   :  { %9907 = vmatpush1.bf16.xpose.msra.mxu0 %v9906_v19  ;;  %v3344_v19 = vand.u32 4294901760, %v3343_v62  ;;  %v3351_v29 = vand.u32 4294901760, %v3350_v36  ;;  %v18750_v36 = vld [vmem:[#allocation104_spill] sm:$0xff] }
 0x40d   :  { %9908 = vmatprep.subr.bf16.mxu0 %v18411_v24 }
 0x40e   :  { %v9912_v9 = vpack.c.bf16 %v3344_v19, %v3337_v60  ;;  %v18744_v60 = vld [vmem:[#allocation98_spill] sm:$0xff]  ;;  %v9915_v62 = vpack.c.bf16 %v3358_v5, %v3351_v29  ;;  %v18745_v19 = vld [vmem:[#allocation68_spill] sm:$0xff]  ;;  %v18752_v29 = vand.u32 4294901760, %v18751_v39 }
 0x40f   :  { %v18746_v47 = vand.u32 4294901760, %v18745_v19 }
 0x410   :  { %v3378_v5 = vsub.f32 %v18751_v39, %v18752_v29 }
 0x411   :  { %10392 = vmatpush3.bf16.xpose.msra.mxu1 %v18730_v43  ;;  %v3364_v50 = vsub.f32 %v18745_v19, %v18746_v47  ;;  %v18754_v19 = vand.u32 4294901760, %v18753_v4 }
 0x412   :  { %10394 = vmatprep.subr.bf16.mxu1 %v18735_v8  ;;  %v3379_v25 = vand.u32 4294901760, %v3378_v5  ;;  %v18762_v5 = vld [vmem:[#allocation31_spill] sm:$0xff] }
 0x413   :  { %v3365_v30 = vand.u32 4294901760, %v3364_v50  ;;  %v3385_v47 = vsub.f32 %v18753_v4, %v18754_v19  ;;  %v18756_v50 = vld [vmem:[#allocation14_spill] sm:$0xff] }
 0x414   :  { %9910 = vmatpush1.bf16.xpose.msra.mxu0 %v9909_v55 }
 0x415   :  { %9911 = vmatprep.subr.bf16.mxu0 %v18411_v24 }
 0x419   :  { %10396 = vmatpush3.bf16.xpose.msra.mxu1 %v18736_v12 }
 0x41a   :  { %10398 = vmatprep.subr.bf16.mxu1 %v18741_v38 }
 0x41b   :  { %v14660_v53 = vpop.f32.mrb[2].mxu1 }
 0x41c   :  { %18742 = vst [vmem:[#allocation39_spill] sm:$0xff] %v14660_v53  ;;  %v14662_v55 = vpop.f32.mrb[3].mxu1  ;;  %9913 = vmatpush1.bf16.xpose.msra.mxu0 %v9912_v9  ;;  %v3372_v9 = vand.u32 4294901760, %v3371_v20  ;;  %v18757_v20 = vld [vmem:[#allocation80_spill] sm:$0xff]  ;;  %v18759_v53 = vld [vmem:[#allocation5_spill] sm:$0xff] }
 0x41d   :  { %18743 = vst [vmem:[#allocation43_spill] sm:$0xff] %v14662_v55  ;;  %9914 = vmatprep.subr.bf16.mxu0 %v18411_v24  ;;  %v18755_v55 = vld [vmem:[#allocation13_spill] sm:$0xff]  ;;  %v18760_v39 = vand.u32 4294901760, %v18759_v53 }
 0x41e   :  { %v9918_v1 = vpack.c.bf16 %v3372_v9, %v3365_v30  ;;  %v18758_v30 = vand.u32 4294901760, %v18757_v20 }
 0x41f   :  { %v3399_v29 = vsub.f32 %v18759_v53, %v18760_v39  ;;  %v18768_v39 = vld [vmem:[#allocation40_spill] sm:$0xff] }
 0x420   :  { %v3392_v9 = vsub.f32 %v18757_v20, %v18758_v30 }
 0x421   :  { %10400 = vmatpush3.bf16.xpose.msra.mxu1 %v18744_v60 }
 0x422   :  { %10402 = vmatprep.subr.bf16.mxu1 %v18749_v31  ;;  %v3393_v4 = vand.u32 4294901760, %v3392_v9 }
 0x424   :  { %9916 = vmatpush1.bf16.xpose.msra.mxu0 %v9915_v62  ;;  %v3386_v62 = vand.u32 4294901760, %v3385_v47  ;;  %v18763_v47 = vld [vmem:[#allocation11_spill] sm:$0xff] }
 0x425   :  { %9917 = vmatprep.subr.bf16.mxu0 %v18411_v24 }
 0x426   :  { %v9921_v57 = vpack.c.bf16 %v3386_v62, %v3379_v25  ;;  %v18764_v25 = vand.u32 4294901760, %v18763_v47 }
 0x428   :  { %v3406_v62 = vsub.f32 %v18763_v47, %v18764_v25  ;;  %v18771_v47 = vand.u32 4294901760, %v14178_v40 }
 0x429   :  { %10404 = vmatpush3.bf16.xpose.msra.mxu1 %v18750_v36  ;;  %v18770_v36 = vand.u32 4294901760, %v14167_v15 }
 0x42a   :  { %10406 = vmatprep.subr.bf16.mxu1 %v18755_v55  ;;  %v18767_v55 = vld [vmem:[#allocation32_spill] sm:$0xff] }
 0x42b   :  { %v10417_v25 = vpack.c.bf16 %v18771_v47, %v18770_v36  ;;  %v7913_v36 = vld [vmem:[%s17173_s0 + $0x3e8] sm:$0xff] }
 0x42c   :  { %9919 = vmatpush1.bf16.xpose.msra.mxu0 %v9918_v1  ;;  %v3400_v1 = vand.u32 4294901760, %v3399_v29 }
 0x42d   :  { %9920 = vmatprep.subr.bf16.mxu0 %v18411_v24 }
 0x42e   :  { %v9924_v19 = vpack.c.bf16 %v3400_v1, %v3393_v4  ;;  %v18769_v4 = vld [vmem:[#allocation44_spill] sm:$0xff] }
 0x431   :  { %10408 = vmatpush3.bf16.xpose.msra.mxu1 %v18756_v50  ;;  %v18765_v50 = vld [vmem:[#allocation16_spill] sm:$0xff] }
 0x432   :  { %10410 = vmatprep.subr.bf16.mxu1 %v18761_v48  ;;  %v18766_v20 = vand.u32 4294901760, %v18765_v50  ;;  %v3407_v48 = vand.u32 4294901760, %v3406_v62  ;;  %v18773_v62 = vld [vmem:[#allocation37_spill] sm:$0xff] }
 0x434   :  { %9922 = vmatpush1.bf16.xpose.msra.mxu0 %v9921_v57  ;;  %v3413_v30 = vsub.f32 %v18765_v50, %v18766_v20  ;;  %v18772_v20 = vld [vmem:[#allocation48_spill] sm:$0xff] }
 0x435   :  { %9923 = vmatprep.subr.bf16.mxu0 %v18411_v24 }
 0x439   :  { %10412 = vmatpush3.bf16.xpose.msra.mxu1 %v18762_v5  ;;  %v3414_v5 = vand.u32 4294901760, %v3413_v30 }
 0x43a   :  { %10414 = vmatprep.subr.bf16.mxu1 %v18767_v55  ;;  %v3110_v53 = vpop.f32.mrb[4].mxu0 }
 0x43b   :  { %v10931_v57 = vadd.f32 %v3110_v53, %v18768_v39  ;;  %v3112_v9 = vpop.f32.mrb[5].mxu0  ;;  %v7929_v53 = vld [vmem:[%s17173_s0 + $0x468] sm:$0xff]  ;;  %v9927_v40 = vpack.c.bf16 %v3414_v5, %v3407_v48  ;;  %v8010_v5 = vld [vmem:[%s17173_s0 + $0x6f0] sm:$0xff] }
 0x43c   :  { %v10932_v29 = vadd.f32 %v3112_v9, %v18768_v39  ;;  %9925 = vmatpush1.bf16.xpose.msra.mxu0 %v9924_v19  ;;  %v7930_v19 = vld [vmem:[%s17173_s0 + $0x470] sm:$0xff]  ;;  %v8009_v48 = vld [vmem:[%s17173_s0 + $0x6e8] sm:$0xff] }
 0x43d   :  { %v3935_v1 = vmax.f32 %v18769_v4, %v10931_v57  ;;  %9926 = vmatprep.subr.bf16.mxu0 %v18411_v24  ;;  %v14722_v57 = vsel %vm171_vm0, %v7929_v53, 0  ;;  %v14725_v9 = vsel %vm171_vm0, %v7930_v19, 0  ;;  %v14746_v53 = vsel %vm171_vm0, %v8009_v48, 0 }
 0x43e   :  { %v3936_v50 = vmax.f32 %v18769_v4, %v10932_v29  ;;  %v7914_v29 = vld [vmem:[%s17173_s0 + $0x3f0] sm:$0xff]  ;;  %v14749_v19 = vsel %vm171_vm0, %v8010_v5, 0  ;;  %v18779_v4 = vand.u32 4294901760, %v14232_v2  ;;  %v17749_v48 = vand.u32 4294901760, %v14722_v57 }
 0x43f   :  { %v3943_v55 = vmin.f32 %v18772_v20, %v3935_v1  ;;  %v18774_v1 = vld [vmem:[#allocation23_spill] sm:$0xff]  ;;  %v17748_v5 = vand.u32 4294901760, %v14725_v9  ;;  %v14766_v24 = vsel %vm171_vm0, %v7913_v36, 0  ;;  %v17747_v2 = vand.u32 4294901760, %v14746_v53 }
 0x440   :  { %v3944_v15 = vmin.f32 %v18772_v20, %v3936_v50  ;;  %v7932_v50 = vld [vmem:[%s17173_s0 + $0x480] sm:$0xff]  ;;  %v18778_v20 = vand.u32 4294901760, %v14227_v44 }
 0x441   :  { %10416 = vmatpush3.bf16.xpose.msra.mxu1 %v18773_v62  ;;  %v14775_v44 = vsel %vm171_vm0, %v7932_v50, 0  ;;  %v18785_v50 = vand.u32 4294901760, %v14271_v21 }
 0x442   :  { %10418 = vmatprep.subr.bf16.mxu1 %v10417_v25  ;;  %v3957_v30 = vcombine.low %v3943_v55, %v3944_v15  ;;  %v18775_v55 = vand.u32 4294901760, %v18774_v1  ;;  %v7931_v25 = vld [vmem:[%s17173_s0 + $0x478] sm:$0xff]  ;;  %v18776_v15 = vand.u32 4294901760, %v14217_v51  ;;  %v10421_v39 = vpack.c.bf16 %v18779_v4, %v18778_v20 }
 0x443   :  { %v14769_v51 = vsel %vm171_vm0, %v7914_v29, 0  ;;  %v17746_v4 = vand.u32 4294901760, %v14749_v19  ;;  %v18792_v21 = vand.u32 4294901760, %v14775_v44 }
 0x444   :  { %v3420_v47 = vsub.f32 %v18774_v1, %v18775_v55  ;;  %3965 = vst [vmem:[%s17176_s3 + $0x10] sm:$0x77] %v3957_v30  ;;  %v18777_v1 = vand.u32 4294901760, %v14222_v10  ;;  %9928 = vmatpush1.bf16.xpose.msra.mxu0 %v9927_v40  ;;  %v14772_v10 = vsel %vm171_vm0, %v7931_v25, 0  ;;  %v17756_v40 = vand.u32 4294901760, %v14766_v24 }
 0x445   :  { %3416 = vmatprep.subr.mxu0 %v18416_v58  ;;  %v14786_v30 = vsub.f32 %v14746_v53, %v17747_v2  ;;  %v14791_v29 = vsub.f32 %v14749_v19, %v17746_v4  ;;  %v7933_v4 = vld [vmem:[%s17173_s0 + $0x488] sm:$0xff]  ;;  %v7934_v2 = vld [vmem:[%s17173_s0 + $0x490] sm:$0xff]  ;;  %v18786_v25 = vand.u32 4294901760, %v14276_v27  ;;  %v18791_v58 = vand.u32 4294901760, %v14772_v10 }
 0x446   :  { %v10419_v55 = vpack.c.bf16 %v18777_v1, %v18776_v15  ;;  %v3421_v20 = vand.u32 4294901760, %v3420_v47  ;;  %v14797_v47 = vpack.c.bf16 %v17748_v5, %v17749_v48  ;;  %v8011_v15 = vld [vmem:[%s17173_s0 + $0x6f8] sm:$0xff]  ;;  %v8012_v1 = vld [vmem:[%s17173_s0 + $0x700] sm:$0xff] }
 0x447   :  { %18780 = vst [vmem:[#allocation45_spill] sm:$0xff] %v14786_v30  ;;  %18781 = vst [vmem:[#allocation49_spill] sm:$0xff] %v14791_v29  ;;  %v14820_v5 = vsel %vm171_vm0, %v8011_v15, 0  ;;  %v14823_v48 = vsel %vm171_vm0, %v8012_v1, 0  ;;  %v10423_v36 = vpack.c.bf16 %v18786_v25, %v18785_v50  ;;  %v18787_v29 = vand.u32 4294901760, %v14769_v51  ;;  %v18794_v50 = vld [vmem:[#allocation97_spill] sm:$0xff] }
 0x448   :  { %8996 = vmatmul.mubr.f32.vlgmr.msra.gmra.mrb[4].mxu1 %v18728_v63  ;;  %18782 = vst [vmem:[#allocation50_spill] sm:$0xff] %v14797_v47  ;;  %18783 = vst [vmem:[#allocation54_spill] sm:$0xff] %v14820_v5  ;;  %v18789_v15 = vand.u32 4294901760, %v14281_v11  ;;  %v18790_v63 = vand.u32 4294901760, %v14298_v17  ;;  %v14844_v27 = vpack.c.bf16 %v18792_v21, %v18791_v58  ;;  %v14856_v11 = vsel %vm171_vm0, %v7934_v2, 0  ;;  %v8014_v21 = vld [vmem:[%s17173_s0 + $0x710] sm:$0xff] }
 0x449   :  { %10420 = vmatpush3.bf16.xpose.msra.mxu1 %v10419_v55  ;;  %9029 = vmatprep.mubr.f32.mxu1 %v13860_v26  ;;  %v7916_v55 = vld [vmem:[%s17173_s0 + $0x400] sm:$0xff]  ;;  %18784 = vst [vmem:[#allocation55_spill] sm:$0xff] %v14823_v48  ;;  %v14833_v30 = vpack.c.bf16 %v18787_v29, %v17756_v40  ;;  %v14853_v29 = vsel %vm171_vm0, %v7933_v4, 0  ;;  %v17755_v17 = vand.u32 4294901760, %v14820_v5 }
 0x44a   :  { %10422 = vmatprep.subr.bf16.mxu1 %v10421_v39  ;;  %v7915_v39 = vld [vmem:[%s17173_s0 + $0x3f8] sm:$0xff]  ;;  %v10425_v1 = vpack.c.bf16 %v18790_v63, %v18789_v15  ;;  %18793 = vst [vmem:[#allocation60_spill] sm:$0xff] %v14844_v27  ;;  %v14850_v25 = vsel %vm171_vm0, %v7916_v55, 0  ;;  %v17754_v63 = vand.u32 4294901760, %v14823_v48  ;;  %v8013_v15 = vld [vmem:[%s17173_s0 + $0x708] sm:$0xff]  ;;  %v14900_v55 = vsel %vm171_vm0, %v8014_v21, 0 }
 0x44b   :  { %18788 = vst [vmem:[#allocation59_spill] sm:$0xff] %v14833_v30  ;;  %v14867_v4 = vsub.f32 %v14820_v5, %v17755_v17  ;;  %v7936_v17 = vld [vmem:[%s17173_s0 + $0x4a0] sm:$0xff]  ;;  %v14897_v40 = vsel %vm171_vm0, %v8013_v15, 0  ;;  %18798 = vst [vmem:[#allocation87_spill] sm:$0xff] %v14900_v55  ;;  %v18807_v21 = vand.u32 4294901760, %v14856_v11 }
 0x44c   :  { %3422 = vmatpush1.xpose.msra.mxu0 %v3421_v20  ;;  %v14847_v20 = vsel %vm171_vm0, %v7915_v39, 0  ;;  %v14872_v2 = vsub.f32 %v14823_v48, %v17754_v63  ;;  %v7935_v63 = vld [vmem:[%s17173_s0 + $0x498] sm:$0xff]  ;;  %18797 = vst [vmem:[#allocation85_spill] sm:$0xff] %v14897_v40  ;;  %v18800_v39 = vand.u32 4294901760, %v14321_v34  ;;  %v18806_v48 = vand.u32 4294901760, %v14853_v29 }
 0x44d   :  { %10098 = vmatprep.subr.bf16.mxu0 %v14797_v47  ;;  %18795 = vst [vmem:[#allocation65_spill] sm:$0xff] %v14867_v4  ;;  %v18802_v4 = vand.u32 4294901760, %v14850_v25  ;;  %v18805_v47 = vand.u32 4294901760, %v14337_v41  ;;  %v17768_v41 = vand.u32 4294901760, %v14897_v40 }
 0x44e   :  { %18796 = vst [vmem:[#allocation67_spill] sm:$0xff] %v14872_v2  ;;  %v18801_v2 = vand.u32 4294901760, %v14847_v20  ;;  %v14920_v5 = vpack.c.bf16 %v18807_v21, %v18806_v48  ;;  %v7938_v21 = vld [vmem:[%s17173_s0 + $0x4b0] sm:$0xff] }
 0x44f   :  { %3431 = vmatmul.mubr.f32.vlgmr.msra.gmra.mrb[6].mxu0 %v18794_v50  ;;  %v7917_v50 = vld [vmem:[%s17173_s0 + $0x408] sm:$0xff] }
 0x450   :  { %10100 = vmatpush3.bf16.xpose.msra.mxu0 %v14833_v30  ;;  %8689 = vmatprep.mubr.f32.mxu0 %v13962_v45  ;;  %v18804_v30 = vand.u32 4294901760, %v14326_v52  ;;  %18808 = vst [vmem:[#allocation12_spill] sm:$0xff] %v14920_v5  ;;  %v14932_v52 = vsel %vm171_vm0, %v7936_v17, 0 }
 0x451   :  { %10424 = vmatpush3.bf16.xpose.msra.mxu1 %v10423_v36  ;;  %10102 = vmatprep.subr.bf16.mxu0 %v14844_v27  ;;  %v18799_v36 = vand.u32 4294901760, %v14316_v3  ;;  %v14910_v27 = vpack.c.bf16 %v18802_v4, %v18801_v2  ;;  %v14923_v3 = vsel %vm171_vm0, %v7917_v50, 0  ;;  %v14942_v4 = vsub.f32 %v14897_v40, %v17768_v41  ;;  %v8015_v2 = vld [vmem:[%s17173_s0 + $0x718] sm:$0xff] }
 0x452   :  { %10426 = vmatprep.subr.bf16.mxu1 %v10425_v1  ;;  %v7918_v1 = vld [vmem:[%s17173_s0 + $0x410] sm:$0xff]  ;;  %v10429_v15 = vpack.c.bf16 %v18805_v47, %v18804_v30  ;;  %v17767_v30 = vand.u32 4294901760, %v14900_v55  ;;  %v17779_v48 = vand.u32 4294901760, %v14923_v3  ;;  %v7919_v50 = vld [vmem:[%s17173_s0 + $0x418] sm:$0xff] }
 0x453   :  { %v10427_v58 = vpack.c.bf16 %v18800_v39, %v18799_v36  ;;  %18803 = vst [vmem:[#allocation63_spill] sm:$0xff] %v14910_v27  ;;  %v14926_v34 = vsel %vm171_vm0, %v7918_v1, 0  ;;  %v14929_v39 = vsel %vm171_vm0, %v7935_v63, 0  ;;  %18809 = vst [vmem:[#allocation30_spill] sm:$0xff] %v14942_v4  ;;  %v8016_v36 = vld [vmem:[%s17173_s0 + $0x720] sm:$0xff]  ;;  %v18814_v63 = vand.u32 4294901760, %v14361_v37 }
 0x454   :  { %v14947_v17 = vsub.f32 %v14900_v55, %v17767_v30  ;;  %v7920_v1 = vld [vmem:[%s17173_s0 + $0x420] sm:$0xff]  ;;  %v14971_v30 = vsel %vm171_vm0, %v8015_v2, 0  ;;  %v14974_v41 = vsel %vm171_vm0, %v8016_v36, 0  ;;  %v18819_v55 = vand.u32 4294901760, %v14929_v39 }
 0x455   :  { %18811 = vst [vmem:[#allocation71_spill] sm:$0xff] %v14971_v30  ;;  %18812 = vst [vmem:[#allocation102_spill] sm:$0xff] %v14974_v41  ;;  %v18820_v36 = vand.u32 4294901760, %v14932_v52  ;;  %v15000_v37 = vsel %vm171_vm0, %v7920_v1, 0  ;;  %v8017_v1 = vld [vmem:[%s17173_s0 + $0x728] sm:$0xff] }
 0x456   :  { %18810 = vst [vmem:[#allocation38_spill] sm:$0xff] %v14947_v17  ;;  %v18815_v17 = vand.u32 4294901760, %v14926_v34 }
 0x457   :  { %v14994_v40 = vpack.c.bf16 %v18820_v36, %v18819_v55  ;;  %v7939_v36 = vld [vmem:[%s17173_s0 + $0x4b8] sm:$0xff] }
 0x458   :  { %10104 = vmatpush3.bf16.xpose.msra.mxu0 %v14910_v27  ;;  %v14984_v4 = vpack.c.bf16 %v18815_v17, %v17779_v48  ;;  %v18818_v27 = vand.u32 4294901760, %v14377_v22  ;;  %v17778_v22 = vand.u32 4294901760, %v14971_v30 }
 0x459   :  { %10428 = vmatpush3.bf16.xpose.msra.mxu1 %v10427_v58  ;;  %10106 = vmatprep.subr.bf16.mxu0 %v14920_v5  ;;  %v18813_v58 = vand.u32 4294901760, %v14356_v23  ;;  %v18817_v5 = vand.u32 4294901760, %v14366_v42  ;;  %18821 = vst [vmem:[#allocation19_spill] sm:$0xff] %v14994_v40  ;;  %v14997_v23 = vsel %vm171_vm0, %v7919_v50, 0  ;;  %v15006_v42 = vsel %vm171_vm0, %v7938_v21, 0  ;;  %v7921_v21 = vld [vmem:[%s17173_s0 + $0x428] sm:$0xff] }
 0x45a   :  { %10430 = vmatprep.subr.bf16.mxu1 %v10429_v15  ;;  %v7937_v15 = vld [vmem:[%s17173_s0 + $0x4a8] sm:$0xff]  ;;  %18816 = vst [vmem:[#allocation17_spill] sm:$0xff] %v14984_v4  ;;  %v18826_v50 = vand.u32 4294901760, %v14394_v33  ;;  %v15071_v33 = vsel %vm171_vm0, %v7921_v21, 0  ;;  %v8019_v21 = vld [vmem:[%s17173_s0 + $0x738] sm:$0xff] }
 0x45b   :  { %v10431_v47 = vpack.c.bf16 %v18814_v63, %v18813_v58  ;;  %v10433_v2 = vpack.c.bf16 %v18818_v27, %v18817_v5  ;;  %v15003_v17 = vsel %vm171_vm0, %v7937_v15, 0  ;;  %v17777_v5 = vand.u32 4294901760, %v14974_v41  ;;  %v8018_v15 = vld [vmem:[%s17173_s0 + $0x730] sm:$0xff] }
 0x45c   :  { %v17790_v27 = vand.u32 4294901760, %v14997_v23  ;;  %v15016_v63 = vsub.f32 %v14971_v30, %v17778_v22  ;;  %v15045_v22 = vsel %vm171_vm0, %v8017_v1, 0  ;;  %v15048_v48 = vsel %vm171_vm0, %v8018_v15, 0 }
 0x45d   :  { %v15021_v58 = vsub.f32 %v14974_v41, %v17777_v5  ;;  %v7940_v5 = vld [vmem:[%s17173_s0 + $0x4c0] sm:$0xff]  ;;  %18824 = vst [vmem:[#allocation26_spill] sm:$0xff] %v15045_v22  ;;  %18825 = vst [vmem:[#allocation52_spill] sm:$0xff] %v15048_v48  ;;  %v18832_v41 = vand.u32 4294901760, %v15003_v17  ;;  %v18833_v15 = vand.u32 4294901760, %v15006_v42 }
 0x45e   :  { %18822 = vst [vmem:[#allocation100_spill] sm:$0xff] %v15016_v63 }
 0x45f   :  { %18823 = vst [vmem:[#allocation18_spill] sm:$0xff] %v15021_v58  ;;  %v18828_v58 = vand.u32 4294901760, %v15000_v37  ;;  %v15068_v30 = vpack.c.bf16 %v18833_v15, %v18832_v41  ;;  %v17801_v41 = vand.u32 4294901760, %v15071_v33  ;;  %v7941_v15 = vld [vmem:[%s17173_s0 + $0x4c8] sm:$0xff] }
 0x460   :  { %10108 = vmatpush3.bf16.xpose.msra.mxu0 %v14984_v4  ;;  %v18831_v4 = vand.u32 4294901760, %v14415_v32  ;;  %v17789_v32 = vand.u32 4294901760, %v15045_v22 }
 0x461   :  { %10432 = vmatpush3.bf16.xpose.msra.mxu1 %v10431_v47  ;;  %10110 = vmatprep.subr.bf16.mxu0 %v14994_v40  ;;  %v18827_v47 = vand.u32 4294901760, %v14399_v14  ;;  %v15058_v63 = vpack.c.bf16 %v18828_v58, %v17790_v27  ;;  %v18830_v40 = vand.u32 4294901760, %v14404_v16  ;;  %18834 = vst [vmem:[#allocation62_spill] sm:$0xff] %v15068_v30  ;;  %v15077_v58 = vsel %vm171_vm0, %v7939_v36, 0  ;;  %v7923_v36 = vld [vmem:[%s17173_s0 + $0x438] sm:$0xff] }
 0x462   :  { %10434 = vmatprep.subr.bf16.mxu1 %v10433_v2  ;;  %v7922_v2 = vld [vmem:[%s17173_s0 + $0x430] sm:$0xff]  ;;  %v15080_v16 = vsel %vm171_vm0, %v7940_v5, 0 }
 0x463   :  { %v10435_v55 = vpack.c.bf16 %v18827_v47, %v18826_v50  ;;  %18829 = vst [vmem:[#allocation56_spill] sm:$0xff] %v15058_v63  ;;  %v10437_v1 = vpack.c.bf16 %v18831_v4, %v18830_v40  ;;  %v15074_v14 = vsel %vm171_vm0, %v7922_v2, 0  ;;  %v17788_v40 = vand.u32 4294901760, %v15048_v48  ;;  %v8020_v2 = vld [vmem:[%s17173_s0 + $0x740] sm:$0xff] }
 0x464   :  { %v15090_v47 = vsub.f32 %v15045_v22, %v17789_v32  ;;  %v15119_v32 = vsel %vm171_vm0, %v8019_v21, 0  ;;  %v15122_v27 = vsel %vm171_vm0, %v8020_v2, 0  ;;  %v18839_v50 = vand.u32 4294901760, %v14432_v18 }
 0x465   :  { %v15095_v5 = vsub.f32 %v15048_v48, %v17788_v40  ;;  %v7942_v40 = vld [vmem:[%s17173_s0 + $0x4d0] sm:$0xff]  ;;  %18837 = vst [vmem:[#allocation9_spill] sm:$0xff] %v15119_v32  ;;  %18838 = vst [vmem:[#allocation35_spill] sm:$0xff] %v15122_v27  ;;  %v18845_v48 = vand.u32 4294901760, %v15077_v58  ;;  %v18846_v2 = vand.u32 4294901760, %v15080_v16  ;;  %v15145_v18 = vsel %vm171_vm0, %v7923_v36, 0 }
 0x466   :  { %18835 = vst [vmem:[#allocation64_spill] sm:$0xff] %v15090_v47  ;;  %v8021_v36 = vld [vmem:[%s17173_s0 + $0x748] sm:$0xff] }
 0x467   :  { %18836 = vst [vmem:[#allocation6_spill] sm:$0xff] %v15095_v5  ;;  %v18841_v5 = vand.u32 4294901760, %v15074_v14  ;;  %v15142_v22 = vpack.c.bf16 %v18846_v2, %v18845_v48  ;;  %v7943_v2 = vld [vmem:[%s17173_s0 + $0x4d8] sm:$0xff] }
 0x468   :  { %10112 = vmatpush3.bf16.xpose.msra.mxu0 %v15058_v63  ;;  %v18844_v63 = vand.u32 4294901760, %v14453_v13  ;;  %v17800_v13 = vand.u32 4294901760, %v15119_v32 }
 0x469   :  { %10436 = vmatpush3.bf16.xpose.msra.mxu1 %v10435_v55  ;;  %10114 = vmatprep.subr.bf16.mxu0 %v15068_v30  ;;  %v18840_v55 = vand.u32 4294901760, %v14437_v7  ;;  %v15132_v47 = vpack.c.bf16 %v18841_v5, %v17801_v41  ;;  %v18843_v30 = vand.u32 4294901760, %v14442_v56  ;;  %18847 = vst [vmem:[#allocation20_spill] sm:$0xff] %v15142_v22  ;;  %v15151_v5 = vsel %vm171_vm0, %v7941_v15, 0  ;;  %v7925_v15 = vld [vmem:[%s17173_s0 + $0x448] sm:$0xff] }
 0x46a   :  { %10438 = vmatprep.subr.bf16.mxu1 %v10437_v1  ;;  %v7924_v1 = vld [vmem:[%s17173_s0 + $0x440] sm:$0xff]  ;;  %v15154_v56 = vsel %vm171_vm0, %v7942_v40, 0 }
 0x46b   :  { %v10439_v4 = vpack.c.bf16 %v18840_v55, %v18839_v50  ;;  %18842 = vst [vmem:[#allocation24_spill] sm:$0xff] %v15132_v47  ;;  %v10441_v21 = vpack.c.bf16 %v18844_v63, %v18843_v30  ;;  %v15148_v7 = vsel %vm171_vm0, %v7924_v1, 0  ;;  %v17799_v30 = vand.u32 4294901760, %v15122_v27  ;;  %v8022_v1 = vld [vmem:[%s17173_s0 + $0x750] sm:$0xff] }
 0x46c   :  { %v15164_v55 = vsub.f32 %v15119_v32, %v17800_v13  ;;  %v15193_v13 = vsel %vm171_vm0, %v8021_v36, 0  ;;  %v15196_v41 = vsel %vm171_vm0, %v8022_v1, 0  ;;  %v18850_v50 = vand.u32 4294901760, %v14722_v57 }
 0x46d   :  { %v15169_v40 = vsub.f32 %v15122_v27, %v17799_v30  ;;  %v7944_v30 = vld [vmem:[%s17173_s0 + $0x4e0] sm:$0xff]  ;;  %v18851_v63 = vand.u32 4294901760, %v14725_v9  ;;  %v18854_v36 = vand.u32 4294901760, %v15145_v18  ;;  %v18855_v1 = vand.u32 4294901760, %v15148_v7 }
 0x46e   :  { %18848 = vst [vmem:[#allocation42_spill] sm:$0xff] %v15164_v55  ;;  %v18853_v55 = vand.u32 4294901760, %v14475_v35  ;;  %v18857_v27 = vand.u32 4294901760, %v14480_v46  ;;  %v18859_v32 = vand.u32 4294901760, %v15151_v5  ;;  %v15238_v46 = vsel %vm171_vm0, %v7944_v30, 0  ;;  %v7928_v30 = vld [vmem:[%s17173_s0 + $0x460] sm:$0xff] }
 0x46f   :  { %18849 = vst [vmem:[#allocation51_spill] sm:$0xff] %v15169_v40  ;;  %v15206_v48 = vsub.f32 %v14725_v9, %v18851_v63  ;;  %v18852_v40 = vand.u32 4294901760, %v14470_v28  ;;  %v18860_v9 = vand.u32 4294901760, %v15154_v56  ;;  %v15229_v28 = vsel %vm171_vm0, %v7925_v15, 0  ;;  %v7927_v15 = vld [vmem:[%s17173_s0 + $0x458] sm:$0xff] }
 0x470   :  { %10116 = vmatpush3.bf16.xpose.msra.mxu0 %v15132_v47  ;;  %v15216_v47 = vpack.c.bf16 %v18855_v1, %v18854_v36 }
 0x471   :  { %10440 = vmatpush3.bf16.xpose.msra.mxu1 %v10439_v4  ;;  %10118 = vmatprep.subr.bf16.mxu0 %v15142_v22  ;;  %v15201_v4 = vsub.f32 %v14722_v57, %v18850_v50  ;;  %v10443_v22 = vpack.c.bf16 %v18853_v55, %v18852_v40  ;;  %v18858_v57 = vand.u32 4294901760, %v14491_v6  ;;  %v15226_v63 = vpack.c.bf16 %v18860_v9, %v18859_v32  ;;  %v8023_v9 = vld [vmem:[%s17173_s0 + $0x758] sm:$0xff] }
 0x472   :  { %10442 = vmatprep.subr.bf16.mxu1 %v10441_v21  ;;  %v7926_v21 = vld [vmem:[%s17173_s0 + $0x450] sm:$0xff]  ;;  %18856 = vst [vmem:[#allocation57_spill] sm:$0xff] %v15216_v47  ;;  %v15235_v55 = vsel %vm171_vm0, %v7943_v2, 0  ;;  %v17811_v6 = vand.u32 4294901760, %v15193_v13  ;;  %v18865_v2 = vand.u32 4294901760, %v14769_v51  ;;  %v15288_v40 = vsel %vm171_vm0, %v8023_v9, 0 }
 0x473   :  { %v10445_v50 = vpack.c.bf16 %v18858_v57, %v18857_v27  ;;  %18861 = vst [vmem:[#allocation70_spill] sm:$0xff] %v15226_v63  ;;  %v15232_v35 = vsel %vm171_vm0, %v7926_v21, 0  ;;  %v17810_v27 = vand.u32 4294901760, %v15196_v41  ;;  %v18866_v57 = vand.u32 4294901760, %v14772_v10  ;;  %18867 = vst [vmem:[#allocation29_spill] sm:$0xff] %v15288_v40 }
 0x474   :  { %v15254_v21 = vsub.f32 %v15193_v13, %v17811_v6  ;;  %v15280_v36 = vsub.f32 %v14769_v51, %v18865_v2  ;;  %v18872_v51 = vand.u32 4294901760, %v15232_v35 }
 0x475   :  { %v15285_v1 = vsub.f32 %v14772_v10, %v18866_v57  ;;  %v15304_v10 = vsel %vm171_vm0, %v7927_v15, 0  ;;  %v15307_v57 = vsel %vm171_vm0, %v7928_v30, 0  ;;  %v18879_v15 = vand.u32 4294901760, %v15206_v48 }
 0x476   :  { %18862 = vst [vmem:[#allocation15_spill] sm:$0xff] %v15254_v21  ;;  %v18871_v21 = vand.u32 4294901760, %v15229_v28 }
 0x477   :  { %v4719_v30 = vsub.f32 %v15206_v48, %v18879_v15 }
 0x478   :  { %10120 = vmatpush3.bf16.xpose.msra.mxu0 %v15216_v47  ;;  %v15301_v2 = vpack.c.bf16 %v18872_v51, %v18871_v21  ;;  %v18878_v21 = vand.u32 4294901760, %v15201_v4  ;;  %v17816_v51 = vand.u32 4294901760, %v15288_v40 }
 0x479   :  { %10444 = vmatpush3.bf16.xpose.msra.mxu1 %v10443_v22  ;;  %v15259_v22 = vsub.f32 %v15196_v41, %v17810_v27  ;;  %10122 = vmatprep.subr.bf16.mxu0 %v15226_v63  ;;  %v8024_v27 = vld [vmem:[%s17173_s0 + $0x760] sm:$0xff] }
 0x47a   :  { %10446 = vmatprep.subr.bf16.mxu1 %v10445_v50  ;;  %v18864_v50 = vand.u32 4294901760, %v14766_v24  ;;  %v15291_v32 = vsel %vm171_vm0, %v8024_v27, 0  ;;  %18873 = vst [vmem:[#allocation36_spill] sm:$0xff] %v15301_v2  ;;  %v18874_v27 = vand.u32 4294901760, %v14775_v44 }
 0x47b   :  { %18863 = vst [vmem:[#allocation22_spill] sm:$0xff] %v15259_v22  ;;  %18868 = vst [vmem:[#allocation27_spill] sm:$0xff] %v15291_v32  ;;  %v18869_v22 = vand.u32 4294901760, %v14508_v54  ;;  %v18875_v54 = vand.u32 4294901760, %v15235_v55  ;;  %v17817_v63 = vand.u32 4294901760, %v15291_v32 }
 0x47c   :  { %v15275_v6 = vsub.f32 %v14766_v24, %v18864_v50  ;;  %v18870_v24 = vand.u32 4294901760, %v14513_v0  ;;  %v15312_v9 = vsub.f32 %v14775_v44, %v18874_v27  ;;  %v18876_v0 = vand.u32 4294901760, %v15238_v46  ;;  %v8026_v44 = vld [vmem:[%s17173_s0 + $0x770] sm:$0xff] }
 0x47d   :  { %v15341_v15 = vsub.f32 %v15291_v32, %v17817_v63  ;;  %v4720_v27 = vand.u32 4294901760, %v4719_v30  ;;  %v18882_v63 = vand.u32 4294901760, %v14847_v20 }
 0x47e   :  { %v10447_v50 = vpack.c.bf16 %v18870_v24, %v18869_v22  ;;  %v15318_v22 = vpack.c.bf16 %v18876_v0, %v18875_v54  ;;  %v4712_v24 = vsub.f32 %v15201_v4, %v18878_v21  ;;  %v15336_v21 = vsub.f32 %v15288_v40, %v17816_v51  ;;  %v8025_v51 = vld [vmem:[%s17173_s0 + $0x768] sm:$0xff] }
 0x47f   :  { %18881 = vst [vmem:[#allocation46_spill] sm:$0xff] %v15341_v15  ;;  %v15364_v0 = vsel %vm171_vm0, %v8025_v51, 0  ;;  %v15367_v54 = vsel %vm171_vm0, %v8026_v44, 0  ;;  %v18886_v15 = vand.u32 4294901760, %v14853_v29  ;;  %v18891_v51 = vand.u32 4294901760, %v15280_v36 }
 0x480   :  { %18877 = vst [vmem:[#allocation41_spill] sm:$0xff] %v15318_v22  ;;  %10124 = vmatpush3.bf16.xpose.msra.mxu0 %v15301_v2  ;;  %18880 = vst [vmem:[#allocation28_spill] sm:$0xff] %v15336_v21  ;;  %v18892_v2 = vand.u32 4294901760, %v14856_v11  ;;  %v17829_v40 = vand.u32 4294901760, %v15367_v54 }
 0x481   :  { %10448 = vmatpush3.bf16.xpose.msra.mxu1 %v10447_v50  ;;  %10126 = vmatprep.subr.bf16.mxu0 %v15318_v22  ;;  %v4713_v50 = vand.u32 4294901760, %v4712_v24  ;;  %v18883_v24 = vand.u32 4294901760, %v14850_v25  ;;  %18884 = vst [vmem:[#allocation47_spill] sm:$0xff] %v15364_v0  ;;  %18885 = vst [vmem:[#allocation33_spill] sm:$0xff] %v15367_v54  ;;  %v15372_v21 = vsub.f32 %v14853_v29, %v18886_v15  ;;  %v18887_v22 = vand.u32 4294901760, %v15304_v10 }
 0x482   :  { %10450 = vmatprep.subr.bf16.mxu1 %v18722_v49  ;;  %v15356_v49 = vsub.f32 %v14847_v20, %v18882_v63  ;;  %v18888_v20 = vand.u32 4294901760, %v15307_v57  ;;  %v4607_v44 = vsub.f32 %v15280_v36, %v18891_v51  ;;  %v15389_v47 = vsub.f32 %v14856_v11, %v18892_v2 }
 0x483   :  { %v15361_v30 = vsub.f32 %v14850_v25, %v18883_v24  ;;  %v18890_v25 = vand.u32 4294901760, %v15275_v6  ;;  %v10129_v29 = vpack.c.bf16 %v4720_v27, %v4713_v50  ;;  %v18893_v15 = vand.u32 4294901760, %v15285_v1 }
 0x484   :  { %v15378_v63 = vpack.c.bf16 %v18888_v20, %v18887_v22  ;;  %v18894_v22 = vand.u32 4294901760, %v15312_v9  ;;  %v17832_v51 = vand.u32 4294901760, %v15356_v49  ;;  %v4608_v27 = vand.u32 4294901760, %v4607_v44  ;;  %v8027_v44 = vld [vmem:[%s17173_s0 + $0x778] sm:$0xff] }
 0x485   :  { %v4600_v24 = vsub.f32 %v15275_v6, %v18890_v25  ;;  %v4726_v32 = vsub.f32 %v15285_v1, %v18893_v15  ;;  %v17828_v25 = vand.u32 4294901760, %v15364_v0  ;;  %v15412_v15 = vsub.f32 %v15367_v54, %v17829_v40 }
 0x486   :  { %18889 = vst [vmem:[#allocation21_spill] sm:$0xff] %v15378_v63  ;;  %v4733_v20 = vsub.f32 %v15312_v9, %v18894_v22 }
 0x487   :  { %v4601_v2 = vand.u32 4294901760, %v4600_v24  ;;  %v15407_v50 = vsub.f32 %v15364_v0, %v17828_v25  ;;  %18896 = vst [vmem:[#allocation79_spill] sm:$0xff] %v15412_v15  ;;  %v4727_v22 = vand.u32 4294901760, %v4726_v32  ;;  %v8028_v25 = vld [vmem:[%s17173_s0 + $0x780] sm:$0xff]  ;;  %v18897_v32 = vand.u32 4294901760, %v15361_v30 }
 0x488   :  { %9030 = vmatmul.mubr.f32.vlgmr.msra.gmra.mrb[4].mxu1 %v13860_v26  ;;  %10128 = vmatpush3.bf16.xpose.msra.mxu0 %v15378_v63  ;;  %v4734_v11 = vand.u32 4294901760, %v4733_v20  ;;  %v15431_v20 = vsel %vm171_vm0, %v8027_v44, 0  ;;  %v15434_v40 = vsel %vm171_vm0, %v8028_v25, 0  ;;  %v18898_v24 = vand.u32 4294901760, %v14923_v3 }
 0x489   :  { %10452 = vmatpush3.bf16.xpose.msra.mxu1 %v18723_v61  ;;  %18895 = vst [vmem:[#allocation76_spill] sm:$0xff] %v15407_v50  ;;  %10130 = vmatprep.subr.bf16.mxu0 %v10129_v29  ;;  %v4621_v29 = vsub.f32 %v15361_v30, %v18897_v32  ;;  %v18899_v15 = vand.u32 4294901760, %v14926_v34  ;;  %v10131_v44 = vpack.c.bf16 %v4608_v27, %v4601_v2  ;;  %v18901_v63 = vand.u32 4294901760, %v14932_v52 }
 0x48a   :  { %10454 = vmatprep.subr.bf16.mxu1 %v18729_v59  ;;  %9063 = vmatprep.mubr.f32.mxu1 %v13860_v26  ;;  %v4614_v59 = vsub.f32 %v15356_v49, %v17832_v51  ;;  %v15439_v61 = vsub.f32 %v14923_v3, %v18898_v24  ;;  %v18900_v51 = vand.u32 4294901760, %v14929_v39  ;;  %v10133_v54 = vpack.c.bf16 %v4734_v11, %v4727_v22 }
 0x48b   :  { %v15444_v50 = vsub.f32 %v14926_v34, %v18899_v15  ;;  %v15454_v25 = vsub.f32 %v14932_v52, %v18901_v63  ;;  %v18902_v3 = vand.u32 4294901760, %v15372_v21  ;;  %v18903_v0 = vand.u32 4294901760, %v15389_v47 }
 0x48c   :  { %v15449_v32 = vsub.f32 %v14929_v39, %v18900_v51  ;;  %v17838_v15 = vand.u32 4294901760, %v15431_v20  ;;  %v17837_v39 = vand.u32 4294901760, %v15434_v40  ;;  %v4615_v51 = vand.u32 4294901760, %v4614_v59 }
 0x48d   :  { %v4740_v24 = vsub.f32 %v15372_v21, %v18902_v3  ;;  %v4747_v34 = vsub.f32 %v15389_v47, %v18903_v0  ;;  %v4622_v2 = vand.u32 4294901760, %v4621_v29  ;;  %v17839_v52 = vand.u32 4294901760, %v15439_v61  ;;  %v8029_v29 = vld [vmem:[%s17173_s0 + $0x788] sm:$0xff] }
 0x48e   :  { %v17840_v63 = vand.u32 4294901760, %v15444_v50  ;;  %v15471_v11 = vsub.f32 %v15431_v20, %v17838_v15  ;;  %v15476_v0 = vsub.f32 %v15434_v40, %v17837_v39  ;;  %v18906_v3 = vand.u32 4294901760, %v14997_v23 }
 0x48f   :  { %8690 = vmatmul.mubr.f32.vlgmr.msra.gmra.mrb[8].mxu0 %v13962_v45  ;;  %v4741_v27 = vand.u32 4294901760, %v4740_v24  ;;  %v18908_v15 = vand.u32 4294901760, %v15003_v17  ;;  %v10135_v22 = vpack.c.bf16 %v4622_v2, %v4615_v51 }
 0x490   :  { %10132 = vmatpush3.bf16.xpose.msra.mxu0 %v10131_v44  ;;  %18904 = vst [vmem:[#allocation92_spill] sm:$0xff] %v15471_v11  ;;  %18905 = vst [vmem:[#allocation95_spill] sm:$0xff] %v15476_v0  ;;  %v8030_v44 = vld [vmem:[%s17173_s0 + $0x790] sm:$0xff]  ;;  %8723 = vmatprep.mubr.f32.mxu0 %v13860_v26 }
 0x491   :  { %10456 = vmatpush3.bf16.xpose.msra.mxu1 %v18730_v43  ;;  %10134 = vmatprep.subr.bf16.mxu0 %v10133_v54  ;;  %v4748_v43 = vand.u32 4294901760, %v4747_v34  ;;  %v18907_v54 = vand.u32 4294901760, %v15000_v37  ;;  %v15499_v34 = vsel %vm171_vm0, %v8029_v29, 0  ;;  %v15502_v39 = vsel %vm171_vm0, %v8030_v44, 0 }
 0x492   :  { %10458 = vmatprep.subr.bf16.mxu1 %v18735_v8  ;;  %v15491_v8 = vsub.f32 %v14997_v23, %v18906_v3  ;;  %v15507_v59 = vsub.f32 %v15003_v17, %v18908_v15  ;;  %v4628_v23 = vsub.f32 %v15439_v61, %v17839_v52  ;;  %v18909_v29 = vand.u32 4294901760, %v15006_v42 }
 0x493   :  { %v15496_v24 = vsub.f32 %v15000_v37, %v18907_v54  ;;  %v4635_v37 = vsub.f32 %v15444_v50, %v17840_v63  ;;  %v10137_v44 = vpack.c.bf16 %v4748_v43, %v4741_v27  ;;  %v18910_v54 = vand.u32 4294901760, %v15449_v32 }
 0x494   :  { %v15518_v3 = vsub.f32 %v15006_v42, %v18909_v29  ;;  %v18911_v15 = vand.u32 4294901760, %v15454_v25  ;;  %v17843_v2 = vand.u32 4294901760, %v15499_v34  ;;  %v17842_v52 = vand.u32 4294901760, %v15502_v39 }
 0x495   :  { %v4754_v17 = vsub.f32 %v15449_v32, %v18910_v54  ;;  %v17844_v63 = vand.u32 4294901760, %v15491_v8  ;;  %v17845_v0 = vand.u32 4294901760, %v15496_v24  ;;  %v4629_v42 = vand.u32 4294901760, %v4628_v23  ;;  %v8031_v23 = vld [vmem:[%s17173_s0 + $0x798] sm:$0xff] }
 0x496   :  { %v4761_v51 = vsub.f32 %v15454_v25, %v18911_v15  ;;  %v4636_v27 = vand.u32 4294901760, %v4635_v37  ;;  %v15534_v43 = vsub.f32 %v15499_v34, %v17843_v2  ;;  %v15539_v29 = vsub.f32 %v15502_v39, %v17842_v52  ;;  %v8032_v37 = vld [vmem:[%s17173_s0 + $0x7a0] sm:$0xff] }
 0x497   :  { %v4755_v54 = vand.u32 4294901760, %v4754_v17  ;;  %v4642_v52 = vsub.f32 %v15491_v8, %v17844_v63  ;;  %v15560_v17 = vsel %vm171_vm0, %v8032_v37, 0  ;;  %v18916_v63 = vand.u32 4294901760, %v15077_v58 }
 0x498   :  { %10136 = vmatpush3.bf16.xpose.msra.mxu0 %v10135_v22  ;;  %18912 = vst [vmem:[#allocation105_spill] sm:$0xff] %v15534_v43  ;;  %18913 = vst [vmem:[#allocation7_spill] sm:$0xff] %v15539_v29  ;;  %v4762_v15 = vand.u32 4294901760, %v4761_v51  ;;  %v18914_v51 = vand.u32 4294901760, %v15071_v33  ;;  %v18915_v22 = vand.u32 4294901760, %v15074_v14  ;;  %v18917_v29 = vand.u32 4294901760, %v15080_v16 }
 0x499   :  { %10460 = vmatpush3.bf16.xpose.msra.mxu1 %v18736_v12  ;;  %10138 = vmatprep.subr.bf16.mxu0 %v10137_v44  ;;  %v15557_v44 = vsel %vm171_vm0, %v8031_v23, 0  ;;  %v10139_v23 = vpack.c.bf16 %v4636_v27, %v4629_v42  ;;  %v18919_v11 = vand.u32 4294901760, %v15518_v3 }
 0x49a   :  { %10462 = vmatprep.subr.bf16.mxu1 %v18741_v38  ;;  %v4649_v38 = vsub.f32 %v15496_v24, %v17845_v0  ;;  %v15565_v2 = vsub.f32 %v15071_v33, %v18914_v51  ;;  %v15570_v12 = vsub.f32 %v15074_v14, %v18915_v22  ;;  %v15575_v0 = vsub.f32 %v15077_v58, %v18916_v63 }
 0x49b   :  { %v15580_v37 = vsub.f32 %v15080_v16, %v18917_v29  ;;  %v10141_v43 = vpack.c.bf16 %v4762_v15, %v4755_v54  ;;  %v18918_v33 = vand.u32 4294901760, %v15507_v59  ;;  %v4775_v14 = vsub.f32 %v15518_v3, %v18919_v11 }
 0x49c   :  { %v17850_v22 = vand.u32 4294901760, %v15557_v44  ;;  %v17849_v58 = vand.u32 4294901760, %v15560_v17  ;;  %v4643_v63 = vand.u32 4294901760, %v4642_v52  ;;  %v4650_v42 = vand.u32 4294901760, %v4649_v38  ;;  %v8033_v38 = vld [vmem:[%s17173_s0 + $0x7a8] sm:$0xff] }
 0x49d   :  { %v4768_v51 = vsub.f32 %v15507_v59, %v18918_v33  ;;  %v17851_v16 = vand.u32 4294901760, %v15565_v2  ;;  %v17852_v27 = vand.u32 4294901760, %v15570_v12  ;;  %v18922_v33 = vand.u32 4294901760, %v15145_v18 }
 0x49e   :  { %v15596_v29 = vsub.f32 %v15557_v44, %v17850_v22  ;;  %v15601_v11 = vsub.f32 %v15560_v17, %v17849_v58  ;;  %v18925_v22 = vand.u32 4294901760, %v15151_v5  ;;  %v10143_v54 = vpack.c.bf16 %v4650_v42, %v4643_v63 }
 0x49f   :  { %v4769_v52 = vand.u32 4294901760, %v4768_v51  ;;  %v15615_v58 = vsub.f32 %v15145_v18, %v18922_v33  ;;  %v15623_v51 = vsel %vm171_vm0, %v8033_v38, 0  ;;  %v4656_v18 = vsub.f32 %v15565_v2, %v17851_v16 }
 0x4a0   :  { %10140 = vmatpush3.bf16.xpose.msra.mxu0 %v10139_v23  ;;  %18920 = vst [vmem:[#allocation8_spill] sm:$0xff] %v15596_v29  ;;  %18921 = vst [vmem:[#allocation10_spill] sm:$0xff] %v15601_v11  ;;  %v8034_v23 = vld [vmem:[%s17173_s0 + $0x7b0] sm:$0xff]  ;;  %v15631_v15 = vsub.f32 %v15151_v5, %v18925_v22  ;;  %v18926_v38 = vand.u32 4294901760, %v15154_v56  ;;  %v18928_v22 = vand.u32 4294901760, %v15580_v37  ;;  %v17856_v42 = vand.u32 4294901760, %v15623_v51 }
 0x4a1   :  { %10464 = vmatpush3.bf16.xpose.msra.mxu1 %v18744_v60  ;;  %10142 = vmatprep.subr.bf16.mxu0 %v10141_v43  ;;  %v4776_v60 = vand.u32 4294901760, %v4775_v14  ;;  %v15626_v14 = vsel %vm171_vm0, %v8034_v23, 0  ;;  %v18929_v29 = vld [vmem:[#allocation104_spill] sm:$0xff] }
 0x4a2   :  { %10466 = vmatprep.subr.bf16.mxu1 %v18749_v31  ;;  %v18923_v31 = vand.u32 4294901760, %v15148_v7  ;;  %18924 = vst [vmem:[#allocation81_spill] sm:$0xff] %v15626_v14  ;;  %v15642_v33 = vsub.f32 %v15154_v56, %v18926_v38  ;;  %v4789_v63 = vsub.f32 %v15580_v37, %v18928_v22  ;;  %v17855_v16 = vand.u32 4294901760, %v15626_v14 }
 0x4a3   :  { %v10145_v23 = vpack.c.bf16 %v4776_v60, %v4769_v52  ;;  %v4657_v56 = vand.u32 4294901760, %v4656_v18  ;;  %v15658_v60 = vsub.f32 %v15623_v51, %v17856_v42  ;;  %v8035_v18 = vld [vmem:[%s17173_s0 + $0x7b8] sm:$0xff]  ;;  %v18934_v42 = vand.u32 4294901760, %v15229_v28 }
 0x4a4   :  { %v15620_v43 = vsub.f32 %v15148_v7, %v18923_v31  ;;  %v4663_v7 = vsub.f32 %v15570_v12, %v17852_v27  ;;  %v18927_v31 = vand.u32 4294901760, %v15575_v0  ;;  %v17858_v27 = vand.u32 4294901760, %v15615_v58 }
 0x4a5   :  { %18930 = vst [vmem:[#allocation82_spill] sm:$0xff] %v15658_v60  ;;  %v15663_v38 = vsub.f32 %v15626_v14, %v17855_v16  ;;  %v4790_v11 = vand.u32 4294901760, %v4789_v63  ;;  %v15681_v63 = vsel %vm171_vm0, %v8035_v18, 0  ;;  %v18937_v60 = vand.u32 4294901760, %v15238_v46 }
 0x4a6   :  { %v4782_v5 = vsub.f32 %v15575_v0, %v18927_v31  ;;  %v4664_v52 = vand.u32 4294901760, %v4663_v7  ;;  %v18932_v31 = vld [vmem:[#allocation13_spill] sm:$0xff]  ;;  %v4670_v16 = vsub.f32 %v15615_v58, %v17858_v27  ;;  %v18936_v27 = vand.u32 4294901760, %v15235_v55 }
 0x4a7   :  { %18931 = vst [vmem:[#allocation75_spill] sm:$0xff] %v15663_v38  ;;  %v8036_v7 = vld [vmem:[%s17173_s0 + $0x7c0] sm:$0xff]  ;;  %v18939_v14 = vand.u32 4294901760, %v15642_v33 }
 0x4a8   :  { %10144 = vmatpush3.bf16.xpose.msra.mxu0 %v10143_v54  ;;  %v4783_v22 = vand.u32 4294901760, %v4782_v5  ;;  %v15689_v54 = vsub.f32 %v15229_v28, %v18934_v42  ;;  %v10147_v18 = vpack.c.bf16 %v4664_v52, %v4657_v56  ;;  %v18938_v28 = vand.u32 4294901760, %v15631_v15  ;;  %v18940_v52 = vld [vmem:[#allocation14_spill] sm:$0xff] }
 0x4a9   :  { %10468 = vmatpush3.bf16.xpose.msra.mxu1 %v18929_v29  ;;  %10146 = vmatprep.subr.bf16.mxu0 %v10145_v23  ;;  %v18933_v23 = vand.u32 4294901760, %v15620_v43  ;;  %v18935_v29 = vand.u32 4294901760, %v15232_v35 }
 0x4aa   :  { %10470 = vmatprep.subr.bf16.mxu1 %v18932_v31  ;;  %v15684_v31 = vsel %vm171_vm0, %v8036_v7, 0  ;;  %v15704_v7 = vsub.f32 %v15238_v46, %v18937_v60  ;;  %v10149_v45 = vpack.c.bf16 %v4790_v11, %v4783_v22  ;;  %v4796_v42 = vsub.f32 %v15631_v15, %v18938_v28  ;;  %v18943_v22 = vld [vmem:[#allocation25_spill] sm:$0xff] }
 0x4ab   :  { %v4677_v5 = vsub.f32 %v15620_v43, %v18933_v23  ;;  %v15694_v38 = vsub.f32 %v15232_v35, %v18935_v29  ;;  %v15699_v23 = vsub.f32 %v15235_v55, %v18936_v27  ;;  %v4803_v35 = vsub.f32 %v15642_v33, %v18939_v14 }
 0x4ac   :  { %v17863_v29 = vand.u32 4294901760, %v15681_v63  ;;  %v17864_v55 = vand.u32 4294901760, %v15684_v31  ;;  %v4671_v27 = vand.u32 4294901760, %v4670_v16  ;;  %v4797_v16 = vand.u32 4294901760, %v4796_v42 }
 0x4ad   :  { %v4678_v56 = vand.u32 4294901760, %v4677_v5  ;;  %v4804_v5 = vand.u32 4294901760, %v4803_v35  ;;  %v18947_v42 = vand.u32 4294901760, %v15694_v38 }
 0x4ae   :  { %v15720_v60 = vsub.f32 %v15681_v63, %v17863_v29  ;;  %v15725_v14 = vsub.f32 %v15684_v31, %v17864_v55  ;;  %v18945_v29 = vand.u32 4294901760, %v15307_v57 }
 0x4af   :  { %v10151_v55 = vpack.c.bf16 %v4678_v56, %v4671_v27  ;;  %v4691_v35 = vsub.f32 %v15694_v38, %v18947_v42  ;;  %v10153_v28 = vpack.c.bf16 %v4804_v5, %v4797_v16 }
 0x4b0   :  { %10148 = vmatpush3.bf16.xpose.msra.mxu0 %v10147_v18  ;;  %18941 = vst [vmem:[#allocation77_spill] sm:$0xff] %v15720_v60  ;;  %18942 = vst [vmem:[#allocation84_spill] sm:$0xff] %v15725_v14  ;;  %v17867_v18 = vand.u32 4294901760, %v15699_v23  ;;  %v15738_v46 = vsub.f32 %v15307_v57, %v18945_v29  ;;  %v18949_v57 = vld [vmem:[#allocation31_spill] sm:$0xff]  ;;  %v18950_v60 = vld [vmem:[#allocation32_spill] sm:$0xff] }
 0x4b1   :  { %10472 = vmatpush3.bf16.xpose.msra.mxu1 %v18940_v52  ;;  %10150 = vmatprep.subr.bf16.mxu0 %v10149_v45  ;;  %v18944_v52 = vand.u32 4294901760, %v15304_v10  ;;  %v4692_v27 = vand.u32 4294901760, %v4691_v35 }
 0x4b2   :  { %10474 = vmatprep.subr.bf16.mxu1 %v18943_v22  ;;  %v18946_v22 = vand.u32 4294901760, %v15689_v54 }
 0x4b3   :  { %v15733_v11 = vsub.f32 %v15304_v10, %v18944_v52  ;;  %v4810_v10 = vsub.f32 %v15699_v23, %v17867_v18  ;;  %v18948_v52 = vand.u32 4294901760, %v15704_v7 }
 0x4b4   :  { %v4684_v45 = vsub.f32 %v15689_v54, %v18946_v22  ;;  %v17868_v22 = vand.u32 4294901760, %v15738_v46 }
 0x4b5   :  { %v4817_v14 = vsub.f32 %v15704_v7, %v18948_v52  ;;  %v17869_v56 = vand.u32 4294901760, %v15733_v11  ;;  %v4811_v16 = vand.u32 4294901760, %v4810_v10 }
 0x4b6   :  { %v4685_v29 = vand.u32 4294901760, %v4684_v45 }
 0x4b7   :  { %v4818_v5 = vand.u32 4294901760, %v4817_v14  ;;  %v4698_v18 = vsub.f32 %v15733_v11, %v17869_v56  ;;  %v18953_v14 = vand.u32 4294901760, %v14749_v19  ;;  %v19008_v56 = vand.u32 4294901760, %v15560_v17 }
 0x4b8   :  { %10152 = vmatpush3.bf16.xpose.msra.mxu0 %v10151_v55  ;;  %v10155_v42 = vpack.c.bf16 %v4692_v27, %v4685_v29  ;;  %v4705_v55 = vsub.f32 %v15738_v46, %v17868_v22  ;;  %v10161_v29 = vpack.c.bf16 %v15206_v48, %v15201_v4  ;;  %v18958_v27 = vld [vmem:[#allocation55_spill] sm:$0xff] }
 0x4b9   :  { %10476 = vmatpush3.bf16.xpose.msra.mxu1 %v18949_v57  ;;  %10154 = vmatprep.subr.bf16.mxu0 %v10153_v28  ;;  %v10157_v45 = vpack.c.bf16 %v4818_v5, %v4811_v16  ;;  %v4699_v35 = vand.u32 4294901760, %v4698_v18  ;;  %v18951_v57 = vmov 0.0|0.0   ;;  %v18956_v18 = vld [vmem:[#allocation54_spill] sm:$0xff]  ;;  %v18959_v19 = vand.u32 4294901760, %v18958_v27 }
 0x4ba   :  { %10478 = vmatprep.subr.bf16.mxu1 %v18950_v60  ;;  %v4706_v52 = vand.u32 4294901760, %v4705_v55  ;;  %v18952_v60 = vand.u32 4294901760, %v14746_v53  ;;  %v18957_v53 = vand.u32 4294901760, %v18956_v18  ;;  %v10163_v5 = vpack.c.bf16 %v15280_v36, %v15275_v6  ;;  %v18961_v55 = vld [vmem:[#allocation53_spill] sm:$0xff]  ;;  %v18967_v18 = vld [vmem:[#allocation71_spill] sm:$0xff]  ;;  %v18969_v27 = vld [vmem:[#allocation102_spill] sm:$0xff] }
 0x4bc   :  { %v15768_v28 = vpack.c.bf16 %v18953_v14, %v18952_v60  ;;  %v10159_v10 = vpack.c.bf16 %v4706_v52, %v4699_v35  ;;  %v15780_v16 = vpack.c.bf16 %v18959_v19, %v18957_v53  ;;  %v18964_v52 = vld [vmem:[#allocation87_spill] sm:$0xff]  ;;  %v18968_v53 = vand.u32 4294901760, %v18967_v18 }
 0x4bd   :  { %v18965_v60 = vand.u32 4294901760, %v18964_v52  ;;  %v18970_v19 = vand.u32 4294901760, %v18969_v27  ;;  %v10175_v18 = vpack.c.bf16 %v15496_v24, %v15491_v8  ;;  %v18977_v27 = vld [vmem:[#allocation9_spill] sm:$0xff] }
 0x4be   :  { %18954 = vst [vmem:[#allocation86_spill] sm:$0xff] %v15768_v28  ;;  %18960 = vst [vmem:[#allocation91_spill] sm:$0xff] %v15780_v16 }
 0x4c0   :  { %10156 = vmatpush3.bf16.xpose.msra.mxu0 %v10155_v42  ;;  %v10165_v42 = vpack.c.bf16 %v15312_v9, %v15285_v1 }
 0x4c1   :  { %10480 = vmatpush3.bf16.xpose.msra.mxu1 %v18773_v62  ;;  %10158 = vmatprep.subr.bf16.mxu0 %v10157_v45  ;;  %v18955_v62 = vmov 0.0   ;;  %v18962_v45 = vld [vmem:[#allocation85_spill] sm:$0xff] }
 0x4c2   :  { %10673 = vmatprep.subr.bf16.mxu1 %v18951_v57  ;;  %v18963_v35 = vand.u32 4294901760, %v18962_v45  ;;  %v10173_v45 = vpack.c.bf16 %v15454_v25, %v15449_v32 }
 0x4c4   :  { %v15794_v14 = vpack.c.bf16 %v18965_v60, %v18963_v35  ;;  %v18972_v35 = vld [vmem:[#allocation26_spill] sm:$0xff]  ;;  %v18974_v60 = vld [vmem:[#allocation52_spill] sm:$0xff] }
 0x4c5   :  { %v18973_v52 = vand.u32 4294901760, %v18972_v35 }
 0x4c6   :  { %18966 = vst [vmem:[#allocation66_spill] sm:$0xff] %v15794_v14 }
 0x4c8   :  { %9064 = vmatmul.mubr.f32.vlgmr.msra.gmra.mrb[4].mxu1 %v13860_v26  ;;  %10160 = vmatpush3.bf16.xpose.msra.mxu0 %v10159_v10  ;;  %v10167_v10 = vpack.c.bf16 %v15361_v30, %v15356_v49 }
 0x4c9   :  { %10675 = vmatpush1.bf16.xpose.msra.mxu1 %v15768_v28  ;;  %10162 = vmatprep.subr.bf16.mxu0 %v10161_v29  ;;  %v10169_v29 = vpack.c.bf16 %v15389_v47, %v15372_v21 }
 0x4ca   :  { %10676 = vmatprep.subr.bf16.mxu1 %v18951_v57  ;;  %7146 = vmatprep.mubr.f32.mxu1 %v18955_v62 }
 0x4cf   :  { %8724 = vmatmul.mubr.f32.vlgmr.msra.gmra.mrb[8].mxu0 %v13860_v26 }
 0x4d0   :  { %10164 = vmatpush3.bf16.xpose.msra.mxu0 %v10163_v5  ;;  %8757 = vmatprep.mubr.f32.mxu0 %v18961_v55  ;;  %v15806_v5 = vpack.c.bf16 %v18970_v19, %v18968_v53  ;;  %v10177_v53 = vpack.c.bf16 %v15518_v3, %v15507_v59  ;;  %v18978_v19 = vand.u32 4294901760, %v18977_v27  ;;  %v10183_v27 = vpack.c.bf16 %v15620_v43, %v15615_v58 }
 0x4d1   :  { %10678 = vmatpush1.bf16.xpose.msra.mxu1 %v15780_v16  ;;  %10166 = vmatprep.subr.bf16.mxu0 %v10165_v42  ;;  %v10171_v42 = vpack.c.bf16 %v15444_v50, %v15439_v61 }
 0x4d2   :  { %10679 = vmatprep.subr.bf16.mxu1 %v18951_v57  ;;  %18971 = vst [vmem:[#allocation72_spill] sm:$0xff] %v15806_v5 }
 0x4d8   :  { %10168 = vmatpush3.bf16.xpose.msra.mxu0 %v10167_v10  ;;  %v18975_v10 = vand.u32 4294901760, %v18974_v60  ;;  %v10181_v60 = vpack.c.bf16 %v15580_v37, %v15575_v0 }
 0x4d9   :  { %10681 = vmatpush1.bf16.xpose.msra.mxu1 %v15794_v14  ;;  %10170 = vmatprep.subr.bf16.mxu0 %v10169_v29 }
 0x4da   :  { %10682 = vmatprep.subr.bf16.mxu1 %v18951_v57  ;;  %v15818_v29 = vpack.c.bf16 %v18975_v10, %v18973_v52  ;;  %v10179_v52 = vpack.c.bf16 %v15570_v12, %v15565_v2  ;;  %v18982_v10 = vand.u32 4294901760, %v15193_v13 }
 0x4dc   :  { %18976 = vst [vmem:[#allocation93_spill] sm:$0xff] %v15818_v29 }
 0x4e0   :  { %10172 = vmatpush3.bf16.xpose.msra.mxu0 %v10171_v42  ;;  %v18979_v42 = vld [vmem:[#allocation35_spill] sm:$0xff] }
 0x4e1   :  { %10684 = vmatpush1.bf16.xpose.msra.mxu1 %v15806_v5  ;;  %10174 = vmatprep.subr.bf16.mxu0 %v10173_v45  ;;  %v18980_v45 = vand.u32 4294901760, %v18979_v42  ;;  %v18985_v42 = vld [vmem:[#allocation29_spill] sm:$0xff]  ;;  %v19019_v5 = vld [vmem:[#allocation44_spill] sm:$0xff] }
 0x4e2   :  { %10685 = vmatprep.subr.bf16.mxu1 %v18951_v57 }
 0x4e3   :  { %v15830_v35 = vpack.c.bf16 %v18980_v45, %v18978_v19  ;;  %v10185_v19 = vpack.c.bf16 %v15642_v33, %v15631_v15  ;;  %v18986_v45 = vand.u32 4294901760, %v18985_v42 }
 0x4e5   :  { %18981 = vst [vmem:[#allocation99_spill] sm:$0xff] %v15830_v35 }
 0x4e8   :  { %10176 = vmatpush3.bf16.xpose.msra.mxu0 %v10175_v18  ;;  %v18983_v18 = vand.u32 4294901760, %v15196_v41  ;;  %v10187_v41 = vpack.c.bf16 %v15694_v38, %v15689_v54 }
 0x4e9   :  { %10687 = vmatpush1.bf16.xpose.msra.mxu1 %v15818_v29  ;;  %10178 = vmatprep.subr.bf16.mxu0 %v10177_v53 }
 0x4ea   :  { %10688 = vmatprep.subr.bf16.mxu1 %v18951_v57  ;;  %v15842_v53 = vpack.c.bf16 %v18983_v18, %v18982_v10  ;;  %v10189_v10 = vpack.c.bf16 %v15704_v7, %v15699_v23  ;;  %v18990_v18 = vld [vmem:[#allocation47_spill] sm:$0xff] }
 0x4ec   :  { %18984 = vst [vmem:[#allocation78_spill] sm:$0xff] %v15842_v53 }
 0x4f0   :  { %10180 = vmatpush3.bf16.xpose.msra.mxu0 %v10179_v52  ;;  %v18987_v52 = vld [vmem:[#allocation27_spill] sm:$0xff] }
 0x4f1   :  { %10690 = vmatpush1.bf16.xpose.msra.mxu1 %v15830_v35  ;;  %10182 = vmatprep.subr.bf16.mxu0 %v10181_v60  ;;  %v18988_v13 = vand.u32 4294901760, %v18987_v52  ;;  %v18995_v52 = vld [vmem:[#allocation50_spill] sm:$0xff] }
 0x4f2   :  { %10691 = vmatprep.subr.bf16.mxu1 %v18951_v57 }
 0x4f3   :  { %v15854_v60 = vpack.c.bf16 %v18988_v13, %v18986_v45  ;;  %v10191_v45 = vpack.c.bf16 %v15738_v46, %v15733_v11  ;;  %v18996_v13 = vand.u32 4294901760, %v15431_v20  ;;  %v19003_v20 = vand.u32 4294901760, %v15502_v39  ;;  %v19011_v39 = vld [vmem:[#allocation19_spill] sm:$0xff] }
 0x4f5   :  { %18989 = vst [vmem:[#allocation89_spill] sm:$0xff] %v15854_v60 }
 0x4f8   :  { %10184 = vmatpush3.bf16.xpose.msra.mxu0 %v10183_v27  ;;  %v18991_v27 = vand.u32 4294901760, %v18990_v18  ;;  %v18999_v18 = vld [vmem:[#allocation59_spill] sm:$0xff] }
 0x4f9   :  { %10693 = vmatpush1.bf16.xpose.msra.mxu1 %v15842_v53  ;;  %10186 = vmatprep.subr.bf16.mxu0 %v10185_v19  ;;  %v18992_v19 = vld [vmem:[#allocation33_spill] sm:$0xff] }
 0x4fa   :  { %10694 = vmatprep.subr.bf16.mxu1 %v18951_v57  ;;  %v18993_v42 = vand.u32 4294901760, %v18992_v19  ;;  %v19001_v19 = vld [vmem:[#allocation58_spill] sm:$0xff]  ;;  %v19014_v53 = vld [vmem:[#allocation81_spill] sm:$0xff] }
 0x4fc   :  { %v15866_v22 = vpack.c.bf16 %v18993_v42, %v18991_v27  ;;  %v19000_v27 = vld [vmem:[#allocation60_spill] sm:$0xff]  ;;  %v19002_v42 = vand.u32 4294901760, %v15499_v34  ;;  %v19010_v34 = vld [vmem:[#allocation17_spill] sm:$0xff] }
 0x4fe   :  { %18994 = vst [vmem:[#allocation101_spill] sm:$0xff] %v15866_v22 }
 0x500   :  { %10188 = vmatpush3.bf16.xpose.msra.mxu0 %v10187_v41  ;;  %v18997_v41 = vand.u32 4294901760, %v15434_v40  ;;  %v19005_v40 = vld [vmem:[#allocation63_spill] sm:$0xff] }
 0x501   :  { %10696 = vmatpush1.bf16.xpose.msra.mxu1 %v15854_v60  ;;  %10190 = vmatprep.subr.bf16.mxu0 %v10189_v10  ;;  %v19013_v60 = vand.u32 4294901760, %v15623_v51  ;;  %v19021_v51 = vld [vmem:[#allocation48_spill] sm:$0xff] }
 0x502   :  { %10697 = vmatprep.subr.bf16.mxu1 %v18951_v57  ;;  %v15877_v10 = vpack.c.bf16 %v18997_v41, %v18996_v13  ;;  %v19006_v13 = vld [vmem:[#allocation12_spill] sm:$0xff]  ;;  %v19007_v41 = vand.u32 4294901760, %v15557_v44  ;;  %v19015_v44 = vand.u32 4294901760, %v19014_v53 }
 0x504   :  { %18998 = vst [vmem:[#allocation106_spill] sm:$0xff] %v15877_v10  ;;  %v15910_v35 = vpack.c.bf16 %v19015_v44, %v19013_v60  ;;  %v19022_v60 = vld [vmem:[#allocation62_spill] sm:$0xff] }
 0x506   :  { %19016 = vst [vmem:[#allocation61_spill] sm:$0xff] %v15910_v35 }
 0x508   :  { %10192 = vmatpush3.bf16.xpose.msra.mxu0 %v10191_v45  ;;  %v15889_v45 = vpack.c.bf16 %v19003_v20, %v19002_v42  ;;  %v19012_v20 = vld [vmem:[#allocation40_spill] sm:$0xff] }
 0x509   :  { %10699 = vmatpush1.bf16.xpose.msra.mxu1 %v15866_v22  ;;  %10194 = vmatprep.subr.bf16.mxu0 %v18995_v52 }
 0x50a   :  { %10700 = vmatprep.subr.bf16.mxu1 %v18951_v57  ;;  %19004 = vst [vmem:[#allocation90_spill] sm:$0xff] %v15889_v45 }
 0x50f   :  { %8758 = vmatmul.mubr.f32.vlgmr.msra.gmra.mrb[8].mxu0 %v18961_v55  ;;  %v19036_v55 = vld [vmem:[#allocation57_spill] sm:$0xff] }
 0x510   :  { %10196 = vmatpush3.bf16.xpose.msra.mxu0 %v18999_v18  ;;  %8791 = vmatprep.mubr.f32.mxu0 %v19001_v19 }
 0x511   :  { %10702 = vmatpush1.bf16.xpose.msra.mxu1 %v15877_v10  ;;  %10198 = vmatprep.subr.bf16.mxu0 %v19000_v27  ;;  %v15899_v10 = vpack.c.bf16 %v19008_v56, %v19007_v41  ;;  %v19017_v56 = vld [vmem:[#allocation39_spill] sm:$0xff] }
 0x512   :  { %10703 = vmatprep.subr.bf16.mxu1 %v18951_v57 }
 0x513   :  { %19009 = vst [vmem:[#allocation94_spill] sm:$0xff] %v15899_v10 }
 0x518   :  { %10200 = vmatpush3.bf16.xpose.msra.mxu0 %v19005_v40 }
 0x519   :  { %10705 = vmatpush1.bf16.xpose.msra.mxu1 %v15889_v45  ;;  %10202 = vmatprep.subr.bf16.mxu0 %v19006_v13 }
 0x51a   :  { %10706 = vmatprep.subr.bf16.mxu1 %v18951_v57 }
 0x520   :  { %10204 = vmatpush3.bf16.xpose.msra.mxu0 %v19010_v34 }
 0x521   :  { %10708 = vmatpush1.bf16.xpose.msra.mxu1 %v15899_v10  ;;  %10206 = vmatprep.subr.bf16.mxu0 %v19011_v39  ;;  %v19018_v10 = vld [vmem:[#allocation43_spill] sm:$0xff] }
 0x522   :  { %10709 = vmatprep.subr.bf16.mxu1 %v18951_v57  ;;  %v3432_v42 = vpop.f32.mrb[6].mxu0 }
 0x523   :  { %v10933_v45 = vadd.f32 %v3432_v42, %v19012_v20  ;;  %v3434_v22 = vpop.f32.mrb[7].mxu0  ;;  %v19020_v42 = vld [vmem:[#allocation56_spill] sm:$0xff] }
 0x524   :  { %v10935_v17 = vadd.f32 %v3434_v22, %v19012_v20  ;;  %v19026_v20 = vand.u32 4294901760, %v15681_v63  ;;  %v19031_v63 = vld [vmem:[#allocation24_spill] sm:$0xff] }
 0x525   :  { %v10934_v41 = vadd.f32 %v10933_v45, %v19017_v56 }
 0x526   :  { %v10936_v29 = vadd.f32 %v10935_v17, %v19018_v10  ;;  %v19023_v10 = vmov 0  ;;  %v19029_v17 = vld [vmem:[#allocation45_spill] sm:$0xff] }
 0x527   :  { %v3937_v14 = vmax.f32 %v19019_v5, %v10934_v41  ;;  %v19024_v10 = vsel %vm15923_vm5, 4294967295, %v19023_v10  ;;  %v17899_v56 = vand.u32 4294901760, %v19029_v17 }
 0x528   :  { %v3938_v16 = vmax.f32 %v19019_v5, %v10936_v29  ;;  %10208 = vmatpush3.bf16.xpose.msra.mxu0 %v19020_v42  ;;  %19025 = vst [vmem:[#allocation69_spill] sm:$0xff] %v19024_v10  ;;  %v19027_v29 = vand.u32 4294901760, %v15684_v31  ;;  %v19034_v10 = vld [vmem:[#allocation65_spill] sm:$0xff] }
 0x529   :  { %10711 = vmatpush1.bf16.xpose.msra.mxu1 %v15910_v35  ;;  %v3945_v53 = vmin.f32 %v19021_v51, %v3937_v14  ;;  %10210 = vmatprep.subr.bf16.mxu0 %v19022_v60  ;;  %v19030_v14 = vld [vmem:[#allocation49_spill] sm:$0xff]  ;;  %v8037_v35 = vld [vmem:[%s17173_s0 + $0x7c8] sm:$0xff] }
 0x52a   :  { %10712 = vmatprep.subr.bf16.mxu1 %v18951_v57  ;;  %v3946_v22 = vmin.f32 %v19021_v51, %v3938_v16  ;;  %v15931_v44 = vpack.c.bf16 %v19027_v29, %v19026_v20  ;;  %v17901_v41 = vand.u32 4294901760, %v19030_v14  ;;  %v15946_v31 = vsel %vm171_vm0, %v8037_v35, 0  ;;  %v19044_v60 = vld [vmem:[#allocation18_spill] sm:$0xff] }
 0x52b   :  { %v7162_v16 = vsub.f32 %v19029_v17, %v17899_v56  ;;  %v17904_v35 = vand.u32 4294901760, %v19034_v10  ;;  %v17912_v42 = vand.u32 4294901760, %v19044_v60 }
 0x52c   :  { %v3958_v45 = vcombine.low %v3945_v53, %v3946_v22  ;;  %19028 = vst [vmem:[#allocation96_spill] sm:$0xff] %v15931_v44  ;;  %v7169_v53 = vsub.f32 %v19030_v14, %v17901_v41  ;;  %v19032_v22 = vld [vmem:[#allocation20_spill] sm:$0xff] }
 0x52d   :  { %v7163_v20 = vand.u32 4294901760, %v7162_v16  ;;  %v7176_v41 = vsub.f32 %v19034_v10, %v17904_v35  ;;  %v19037_v16 = vld [vmem:[#allocation70_spill] sm:$0xff]  ;;  %v19041_v10 = vld [vmem:[#allocation36_spill] sm:$0xff] }
 0x52e   :  { %3969 = vst.msk [vmem:[%s17176_s3 + $0x18] sm:$0x77] %vm15923_vm5, %v3958_v45  ;;  %v15957_v45 = vand.u32 4294901760, %v15946_v31  ;;  %v7170_v29 = vand.u32 4294901760, %v7169_v53  ;;  %v19038_v53 = vld [vmem:[#allocation88_spill] sm:$0xff] }
 0x530   :  { %10212 = vmatpush3.bf16.xpose.msra.mxu0 %v19031_v63  ;;  %19033 = vst [vmem:[#allocation98_spill] sm:$0xff] %v15957_v45  ;;  %v10716_v56 = vpack.c.bf16 %v7170_v29, %v7163_v20  ;;  %v7177_v63 = vand.u32 4294901760, %v7176_v41  ;;  %v19039_v20 = vld [vmem:[#allocation30_spill] sm:$0xff]  ;;  %v19042_v41 = vld [vmem:[#allocation41_spill] sm:$0xff] }
 0x531   :  { %10714 = vmatpush1.bf16.xpose.msra.mxu1 %v15931_v44  ;;  %10214 = vmatprep.subr.bf16.mxu0 %v19032_v22  ;;  %v19035_v44 = vld [vmem:[#allocation67_spill] sm:$0xff]  ;;  %v17908_v29 = vand.u32 4294901760, %v19039_v20 }
 0x532   :  { %7137 = vmatprep.subr.mxu1 %v18955_v62  ;;  %v17906_v28 = vand.u32 4294901760, %v19035_v44 }
 0x534   :  { %v7183_v22 = vsub.f32 %v19035_v44, %v17906_v28  ;;  %v7190_v28 = vsub.f32 %v19039_v20, %v17908_v29  ;;  %v19047_v20 = vld [vmem:[#allocation21_spill] sm:$0xff] }
 0x536   :  { %v7184_v14 = vand.u32 4294901760, %v7183_v22  ;;  %v7191_v22 = vand.u32 4294901760, %v7190_v28  ;;  %v7211_v28 = vsub.f32 %v19044_v60, %v17912_v42 }
 0x538   :  { %10216 = vmatpush3.bf16.xpose.msra.mxu0 %v19036_v55  ;;  %v19040_v55 = vld [vmem:[#allocation38_spill] sm:$0xff]  ;;  %v10719_v35 = vpack.c.bf16 %v7184_v14, %v7177_v63  ;;  %v19045_v14 = vand.u32 4294901760, %v15201_v4  ;;  %v19046_v63 = vand.u32 4294901760, %v15206_v48  ;;  %v7212_v4 = vand.u32 4294901760, %v7211_v28 }
 0x539   :  { %7139 = vmatpush1.xpose.msra.mxu1 %v15957_v45  ;;  %10218 = vmatprep.subr.bf16.mxu0 %v19037_v16  ;;  %v17910_v17 = vand.u32 4294901760, %v19040_v55  ;;  %v19043_v16 = vld [vmem:[#allocation100_spill] sm:$0xff]  ;;  %v19049_v48 = vand.u32 4294901760, %v15275_v6 }
 0x53a   :  { %10715 = vmatprep.subr.bf16.mxu1 %v18951_v57  ;;  %v17911_v44 = vand.u32 4294901760, %v19043_v16  ;;  %v10225_v29 = vpack.c.bf16 %v19046_v63, %v19045_v14  ;;  %v19051_v14 = vld [vmem:[#allocation6_spill] sm:$0xff] }
 0x53b   :  { %v17932_v63 = vand.u32 4294901760, %v19051_v14 }
 0x53c   :  { %7152 = vmatmul.mubr.f32.vlgmr.msra.gmra.mrb[6].mxu1 %v19038_v53 }
 0x53d   :  { %10717 = vmatpush1.bf16.xpose.msra.mxu1 %v10716_v56  ;;  %7367 = vmatprep.mubr.f32.mxu1 %v18955_v62  ;;  %v7197_v56 = vsub.f32 %v19040_v55, %v17910_v17  ;;  %v7225_v6 = vsub.f32 %v19051_v14, %v17932_v63 }
 0x53e   :  { %10718 = vmatprep.subr.bf16.mxu1 %v18951_v57 }
 0x53f   :  { %v7198_v53 = vand.u32 4294901760, %v7197_v56  ;;  %v19048_v56 = vld [vmem:[#allocation64_spill] sm:$0xff] }
 0x540   :  { %10220 = vmatpush3.bf16.xpose.msra.mxu0 %v19041_v10  ;;  %v17933_v17 = vand.u32 4294901760, %v19048_v56 }
 0x541   :  { %10222 = vmatprep.subr.bf16.mxu0 %v19042_v41  ;;  %v10722_v10 = vpack.c.bf16 %v7198_v53, %v7191_v22  ;;  %v19050_v53 = vand.u32 4294901760, %v15280_v36 }
 0x543   :  { %v10227_v22 = vpack.c.bf16 %v19050_v53, %v19049_v48  ;;  %v19057_v48 = vld [vmem:[#allocation51_spill] sm:$0xff]  ;;  %v19059_v53 = vand.u32 4294901760, %v15389_v47  ;;  %v19062_v47 = vand.u32 4294901760, %v15444_v50 }
 0x545   :  { %10720 = vmatpush1.bf16.xpose.msra.mxu1 %v10719_v35  ;;  %v7204_v35 = vsub.f32 %v19043_v16, %v17911_v44  ;;  %v19052_v44 = vand.u32 4294901760, %v15285_v1  ;;  %v7226_v1 = vand.u32 4294901760, %v7225_v6 }
 0x546   :  { %10721 = vmatprep.subr.bf16.mxu1 %v18951_v57 }
 0x547   :  { %v7205_v41 = vand.u32 4294901760, %v7204_v35  ;;  %v19056_v35 = vld [vmem:[#allocation42_spill] sm:$0xff] }
 0x548   :  { %10224 = vmatpush3.bf16.xpose.msra.mxu0 %v19047_v20  ;;  %v19053_v20 = vand.u32 4294901760, %v15312_v9  ;;  %v19054_v9 = vand.u32 4294901760, %v15356_v49  ;;  %v17931_v28 = vand.u32 4294901760, %v19056_v35 }
 0x549   :  { %10226 = vmatprep.subr.bf16.mxu0 %v10225_v29  ;;  %v10725_v29 = vpack.c.bf16 %v7212_v4, %v7205_v41  ;;  %v17930_v41 = vand.u32 4294901760, %v19057_v48  ;;  %v19058_v4 = vand.u32 4294901760, %v15372_v21  ;;  %v19061_v21 = vand.u32 4294901760, %v15439_v61 }
 0x54a   :  { %v10229_v42 = vpack.c.bf16 %v19053_v20, %v19052_v44  ;;  %v19055_v44 = vand.u32 4294901760, %v15361_v30  ;;  %v7232_v49 = vsub.f32 %v19056_v35, %v17931_v28 }
 0x54b   :  { %v7239_v30 = vsub.f32 %v19057_v48, %v17930_v41 }
 0x54c   :  { %v10231_v20 = vpack.c.bf16 %v19055_v44, %v19054_v9  ;;  %v7233_v6 = vand.u32 4294901760, %v7232_v49 }
 0x54d   :  { %10723 = vmatpush1.bf16.xpose.msra.mxu1 %v10722_v10  ;;  %v7218_v10 = vsub.f32 %v19048_v56, %v17933_v17  ;;  %v7240_v9 = vand.u32 4294901760, %v7239_v30  ;;  %v19066_v30 = vand.u32 4294901760, %v15491_v8  ;;  %v7999_v17 = vld [vmem:[%s17173_s0 + $0x698] sm:$0xff] }
 0x54e   :  { %10724 = vmatprep.subr.bf16.mxu1 %v18951_v57 }
 0x54f   :  { %8792 = vmatmul.mubr.f32.vlgmr.msra.gmra.mrb[8].mxu0 %v19001_v19  ;;  %v7219_v36 = vand.u32 4294901760, %v7218_v10  ;;  %v19060_v10 = vld [vmem:[#allocation15_spill] sm:$0xff] }
 0x550   :  { %10228 = vmatpush3.bf16.xpose.msra.mxu0 %v10227_v22  ;;  %8825 = vmatprep.mubr.f32.mxu0 %v13860_v26  ;;  %v10233_v22 = vpack.c.bf16 %v19059_v53, %v19058_v4  ;;  %v19065_v4 = vand.u32 4294901760, %v15454_v25 }
 0x551   :  { %10230 = vmatprep.subr.bf16.mxu0 %v10229_v42  ;;  %v10728_v42 = vpack.c.bf16 %v7226_v1, %v7219_v36  ;;  %v10235_v36 = vpack.c.bf16 %v19062_v47, %v19061_v21  ;;  %v19063_v1 = vld [vmem:[#allocation22_spill] sm:$0xff]  ;;  %v19068_v21 = vld [vmem:[#allocation28_spill] sm:$0xff] }
 0x552   :  { %v17928_v44 = vand.u32 4294901760, %v19063_v1  ;;  %v17927_v47 = vand.u32 4294901760, %v19068_v21 }
 0x554   :  { %v7253_v50 = vsub.f32 %v19063_v1, %v17928_v44  ;;  %v7260_v8 = vsub.f32 %v19068_v21, %v17927_v47 }
 0x555   :  { %10726 = vmatpush1.bf16.xpose.msra.mxu1 %v10725_v29  ;;  %v17929_v29 = vand.u32 4294901760, %v19060_v10 }
 0x556   :  { %10727 = vmatprep.subr.bf16.mxu1 %v18951_v57  ;;  %v7254_v49 = vand.u32 4294901760, %v7253_v50  ;;  %v7261_v50 = vand.u32 4294901760, %v7260_v8 }
 0x558   :  { %10232 = vmatpush3.bf16.xpose.msra.mxu0 %v10231_v20  ;;  %v19064_v20 = vand.u32 4294901760, %v15449_v32  ;;  %v19067_v32 = vand.u32 4294901760, %v15496_v24 }
 0x559   :  { %10234 = vmatprep.subr.bf16.mxu0 %v10233_v22  ;;  %v7246_v22 = vsub.f32 %v19060_v10, %v17929_v29 }
 0x55a   :  { %v10237_v53 = vpack.c.bf16 %v19065_v4, %v19064_v20  ;;  %v10239_v25 = vpack.c.bf16 %v19067_v32, %v19066_v30  ;;  %v19069_v20 = vld [vmem:[#allocation46_spill] sm:$0xff] }
 0x55b   :  { %v7247_v61 = vand.u32 4294901760, %v7246_v22  ;;  %v17926_v4 = vand.u32 4294901760, %v19069_v20  ;;  %v19072_v22 = vld [vmem:[#allocation76_spill] sm:$0xff] }
 0x55d   :  { %10729 = vmatpush1.bf16.xpose.msra.mxu1 %v10728_v42  ;;  %v10731_v42 = vpack.c.bf16 %v7240_v9, %v7233_v6  ;;  %v19070_v6 = vand.u32 4294901760, %v15507_v59  ;;  %v19071_v9 = vand.u32 4294901760, %v15518_v3  ;;  %v7267_v24 = vsub.f32 %v19069_v20, %v17926_v4 }
 0x55e   :  { %10730 = vmatprep.subr.bf16.mxu1 %v18951_v57  ;;  %v19073_v59 = vand.u32 4294901760, %v15565_v2  ;;  %v19074_v3 = vand.u32 4294901760, %v15570_v12 }
 0x55f   :  { %v7268_v30 = vand.u32 4294901760, %v7267_v24  ;;  %v19078_v24 = vand.u32 4294901760, %v15615_v58 }
 0x560   :  { %10236 = vmatpush3.bf16.xpose.msra.mxu0 %v10235_v36  ;;  %v10241_v36 = vpack.c.bf16 %v19071_v9, %v19070_v6  ;;  %v19077_v6 = vand.u32 4294901760, %v15580_v37 }
 0x561   :  { %10238 = vmatprep.subr.bf16.mxu0 %v10237_v53  ;;  %v10734_v53 = vpack.c.bf16 %v7254_v49, %v7247_v61  ;;  %v10243_v61 = vpack.c.bf16 %v19074_v3, %v19073_v59  ;;  %v19075_v49 = vld [vmem:[#allocation79_spill] sm:$0xff]  ;;  %v19080_v59 = vld [vmem:[#allocation92_spill] sm:$0xff] }
 0x562   :  { %v17924_v32 = vand.u32 4294901760, %v19075_v49  ;;  %v17923_v3 = vand.u32 4294901760, %v19080_v59 }
 0x564   :  { %v7281_v2 = vsub.f32 %v19075_v49, %v17924_v32  ;;  %v7288_v58 = vsub.f32 %v19080_v59, %v17923_v3  ;;  %v10770_v32 = vpack.c.bf16 %v19051_v14, %v19048_v56 }
 0x565   :  { %10732 = vmatpush1.bf16.xpose.msra.mxu1 %v10731_v42  ;;  %v17925_v42 = vand.u32 4294901760, %v19072_v22 }
 0x566   :  { %10733 = vmatprep.subr.bf16.mxu1 %v18951_v57  ;;  %v7282_v8 = vand.u32 4294901760, %v7281_v2  ;;  %v7289_v2 = vand.u32 4294901760, %v7288_v58 }
 0x568   :  { %10240 = vmatpush3.bf16.xpose.msra.mxu0 %v10239_v25  ;;  %v19076_v25 = vand.u32 4294901760, %v15575_v0  ;;  %v19079_v0 = vand.u32 4294901760, %v15620_v43 }
 0x569   :  { %10242 = vmatprep.subr.bf16.mxu0 %v10241_v36  ;;  %v7274_v36 = vsub.f32 %v19072_v22, %v17925_v42 }
 0x56a   :  { %v10245_v9 = vpack.c.bf16 %v19077_v6, %v19076_v25  ;;  %v10247_v37 = vpack.c.bf16 %v19079_v0, %v19078_v24  ;;  %v19081_v25 = vld [vmem:[#allocation95_spill] sm:$0xff] }
 0x56b   :  { %v7275_v12 = vand.u32 4294901760, %v7274_v36  ;;  %v17922_v6 = vand.u32 4294901760, %v19081_v25  ;;  %v19084_v36 = vld [vmem:[#allocation105_spill] sm:$0xff] }
 0x56d   :  { %10735 = vmatpush1.bf16.xpose.msra.mxu1 %v10734_v53  ;;  %v10737_v53 = vpack.c.bf16 %v7268_v30, %v7261_v50  ;;  %v19082_v50 = vand.u32 4294901760, %v15631_v15  ;;  %v19083_v30 = vand.u32 4294901760, %v15642_v33  ;;  %v7295_v43 = vsub.f32 %v19081_v25, %v17922_v6 }
 0x56e   :  { %10736 = vmatprep.subr.bf16.mxu1 %v18951_v57  ;;  %v19085_v15 = vand.u32 4294901760, %v15689_v54  ;;  %v19086_v33 = vand.u32 4294901760, %v15694_v38 }
 0x56f   :  { %v7296_v24 = vand.u32 4294901760, %v7295_v43  ;;  %v19090_v43 = vand.u32 4294901760, %v15733_v11 }
 0x570   :  { %10244 = vmatpush3.bf16.xpose.msra.mxu0 %v10243_v61  ;;  %v10249_v61 = vpack.c.bf16 %v19083_v30, %v19082_v50  ;;  %v19089_v50 = vand.u32 4294901760, %v15704_v7 }
 0x571   :  { %10246 = vmatprep.subr.bf16.mxu0 %v10245_v9  ;;  %v10740_v9 = vpack.c.bf16 %v7282_v8, %v7275_v12  ;;  %v10251_v12 = vpack.c.bf16 %v19086_v33, %v19085_v15  ;;  %v19087_v8 = vld [vmem:[#allocation7_spill] sm:$0xff]  ;;  %v19092_v15 = vld [vmem:[#allocation8_spill] sm:$0xff] }
 0x572   :  { %v17920_v0 = vand.u32 4294901760, %v19087_v8  ;;  %v17919_v33 = vand.u32 4294901760, %v19092_v15 }
 0x574   :  { %v7309_v38 = vsub.f32 %v19087_v8, %v17920_v0 }
 0x575   :  { %10738 = vmatpush1.bf16.xpose.msra.mxu1 %v10737_v53  ;;  %v17921_v53 = vand.u32 4294901760, %v19084_v36 }
 0x576   :  { %10739 = vmatprep.subr.bf16.mxu1 %v18951_v57  ;;  %v7310_v58 = vand.u32 4294901760, %v7309_v38 }
 0x578   :  { %10248 = vmatpush3.bf16.xpose.msra.mxu0 %v10247_v37  ;;  %v19088_v37 = vand.u32 4294901760, %v15699_v23  ;;  %v19091_v23 = vand.u32 4294901760, %v15738_v46 }
 0x579   :  { %10250 = vmatprep.subr.bf16.mxu0 %v10249_v61  ;;  %v7302_v61 = vsub.f32 %v19084_v36, %v17921_v53  ;;  %v19114_v53 = vld [vmem:[#allocation21_spill] sm:$0xff] }
 0x57a   :  { %v10253_v30 = vpack.c.bf16 %v19089_v50, %v19088_v37  ;;  %v10255_v7 = vpack.c.bf16 %v19091_v23, %v19090_v43  ;;  %v19093_v37 = vld [vmem:[#allocation10_spill] sm:$0xff]  ;;  %v4105_v43 = vstv %s8039_s13  ;;  %v4106_v23 = vstv %s8040_s14 }
 0x57b   :  { %v7303_v54 = vand.u32 4294901760, %v7302_v61  ;;  %v17914_v50 = vand.u32 4294901760, %v19093_v37 }
 0x57d   :  { %10741 = vmatpush1.bf16.xpose.msra.mxu1 %v10740_v9  ;;  %v10743_v9 = vpack.c.bf16 %v7296_v24, %v7289_v2  ;;  %v10746_v2 = vpack.c.bf16 %v7310_v58, %v7303_v54  ;;  %v7316_v24 = vsub.f32 %v19092_v15, %v17919_v33 }
 0x57e   :  { %10742 = vmatprep.subr.bf16.mxu1 %v18951_v57 }
 0x57f   :  { %v7317_v46 = vand.u32 4294901760, %v7316_v24  ;;  %v19096_v24 = vld [vmem:[#allocation77_spill] sm:$0xff] }
 0x580   :  { %10252 = vmatpush3.bf16.xpose.msra.mxu0 %v10251_v12  ;;  %v7323_v12 = vsub.f32 %v19093_v37, %v17914_v50  ;;  %v4108_v50 = vstv %s8038_s15 }
 0x581   :  { %10254 = vmatprep.subr.bf16.mxu0 %v10253_v30  ;;  %v19094_v30 = vld [vmem:[#allocation82_spill] sm:$0xff] }
 0x582   :  { %v7324_v11 = vand.u32 4294901760, %v7323_v12  ;;  %v17913_v61 = vand.u32 4294901760, %v19094_v30  ;;  %v17918_v12 = vand.u32 4294901760, %v19096_v24 }
 0x584   :  { %v10749_v54 = vpack.c.bf16 %v7324_v11, %v7317_v46 }
 0x585   :  { %10744 = vmatpush1.bf16.xpose.msra.mxu1 %v10743_v9  ;;  %v19095_v9 = vld [vmem:[#allocation75_spill] sm:$0xff] }
 0x586   :  { %10745 = vmatprep.subr.bf16.mxu1 %v18951_v57  ;;  %v17915_v38 = vand.u32 4294901760, %v19095_v9 }
 0x588   :  { %10256 = vmatpush3.bf16.xpose.msra.mxu0 %v10255_v7  ;;  %v7337_v58 = vsub.f32 %v19095_v9, %v17915_v38 }
 0x589   :  { %10258 = vmatprep.subr.bf16.mxu0 %v18995_v52  ;;  %v7330_v52 = vsub.f32 %v19094_v30, %v17913_v61  ;;  %v4107_v61 = vsel %vm30_vm1, %v4105_v43, %v4106_v23 }
 0x58a   :  { %v16153_v38 = vsel %vm29_vm2, %v4108_v50, %v4107_v61  ;;  %v16166_v50 = vsub.f32 %v15946_v31, %v15957_v45 }
 0x58b   :  { %v7331_v7 = vand.u32 4294901760, %v7330_v52  ;;  %19099 = vst [vmem:[#allocation68_spill] sm:$0xff] %v16153_v38 }
 0x58c   :  { %19100 = vst [vmem:[#allocation74_spill] sm:$0xff] %v16166_v50  ;;  %v17917_v31 = vand.u32 4294901760, %v16166_v50 }
 0x58d   :  { %10747 = vmatpush1.bf16.xpose.msra.mxu1 %v10746_v2  ;;  %v7338_v2 = vand.u32 4294901760, %v7337_v58 }
 0x58e   :  { %10748 = vmatprep.subr.bf16.mxu1 %v18951_v57 }
 0x58f   :  { %8826 = vmatmul.mubr.f32.vlgmr.msra.gmra.mrb[8].mxu0 %v13860_v26 }
 0x590   :  { %10260 = vmatpush3.bf16.xpose.msra.mxu0 %v18999_v18  ;;  %8859 = vmatprep.mubr.f32.mxu0 %v13860_v26  ;;  %v19097_v18 = vld [vmem:[#allocation84_spill] sm:$0xff] }
 0x591   :  { %10262 = vmatprep.subr.bf16.mxu0 %v19000_v27  ;;  %v17916_v46 = vand.u32 4294901760, %v19097_v18  ;;  %v10752_v27 = vpack.c.bf16 %v7338_v2, %v7331_v7 }
 0x593   :  { %v7351_v52 = vsub.f32 %v19097_v18, %v17916_v46 }
 0x595   :  { %10750 = vmatpush1.bf16.xpose.msra.mxu1 %v10749_v54  ;;  %v7344_v54 = vsub.f32 %v19096_v24, %v17918_v12  ;;  %v7352_v7 = vand.u32 4294901760, %v7351_v52 }
 0x596   :  { %10751 = vmatprep.subr.bf16.mxu1 %v18951_v57 }
 0x597   :  { %v7345_v61 = vand.u32 4294901760, %v7344_v54  ;;  %v7358_v54 = vsub.f32 %v16166_v50, %v17917_v31 }
 0x598   :  { %10264 = vmatpush3.bf16.xpose.msra.mxu0 %v19005_v40 }
 0x599   :  { %10266 = vmatprep.subr.bf16.mxu0 %v19006_v13  ;;  %v10755_v46 = vpack.c.bf16 %v7352_v7, %v7345_v61  ;;  %v7359_v52 = vand.u32 4294901760, %v7358_v54  ;;  %v19106_v61 = vld [vmem:[#allocation20_spill] sm:$0xff]  ;;  %v19107_v7 = vld [vmem:[#allocation65_spill] sm:$0xff]  ;;  %v7994_v54 = vld [vmem:[%s17173_s0 + $0x670] sm:$0xff] }
 0x59b   :  { %v6193_v58 = vpop.f32.mrb[4].mxu1 }
 0x59c   :  { %v10939_v43 = vadd.f32 %v6193_v58, %v16153_v38  ;;  %v6195_v23 = vpop.f32.mrb[5].mxu1 }
 0x59d   :  { %v10940_v40 = vadd.f32 %v6195_v23, %v16153_v38  ;;  %10753 = vmatpush1.bf16.xpose.msra.mxu1 %v10752_v27  ;;  %v19103_v23 = vld [vmem:[#allocation45_spill] sm:$0xff] }
 0x59e   :  { %v7871_v2 = vmax.f32 %v19019_v5, %v10939_v43  ;;  %10754 = vmatprep.subr.bf16.mxu1 %v18951_v57  ;;  %v19101_v43 = vld [vmem:[#allocation56_spill] sm:$0xff] }
 0x59f   :  { %v7872_v11 = vmax.f32 %v19019_v5, %v10940_v40 }
 0x5a0   :  { %v7879_v13 = vmin.f32 %v19021_v51, %v7871_v2  ;;  %10268 = vmatpush3.bf16.xpose.msra.mxu0 %v19010_v34  ;;  %v19102_v34 = vld [vmem:[#allocation62_spill] sm:$0xff]  ;;  %v19108_v2 = vld [vmem:[#allocation67_spill] sm:$0xff] }
 0x5a1   :  { %v7880_v58 = vmin.f32 %v19021_v51, %v7872_v11  ;;  %10270 = vmatprep.subr.bf16.mxu0 %v19011_v39  ;;  %v19104_v39 = vld [vmem:[#allocation49_spill] sm:$0xff]  ;;  %v10761_v11 = vpack.c.bf16 %v19108_v2, %v19107_v7 }
 0x5a2   :  { %v10758_v40 = vpack.c.bf16 %v19104_v39, %v19103_v23 }
 0x5a3   :  { %v7894_v27 = vcombine.low %v7879_v13, %v7880_v58  ;;  %v19109_v13 = vld [vmem:[#allocation57_spill] sm:$0xff]  ;;  %v19110_v58 = vld [vmem:[#allocation70_spill] sm:$0xff] }
 0x5a5   :  { %8042 = vst [vmem:[%s17176_s3 + $0x28] sm:$0x77] %v7894_v27  ;;  %10756 = vmatpush1.bf16.xpose.msra.mxu1 %v10755_v46  ;;  %v19105_v46 = vld [vmem:[#allocation24_spill] sm:$0xff]  ;;  %v7993_v27 = vld [vmem:[%s17173_s0 + $0x668] sm:$0xff] }
 0x5a6   :  { %7354 = vmatprep.subr.mxu1 %v18955_v62 }
 0x5a8   :  { %10272 = vmatpush3.bf16.xpose.msra.mxu0 %v19101_v43 }
 0x5a9   :  { %10274 = vmatprep.subr.bf16.mxu0 %v19102_v34  ;;  %v16208_v34 = vsel %vm171_vm0, %v7993_v27, 0  ;;  %v7978_v27 = vld [vmem:[%s17173_s0 + $0x5f0] sm:$0xff] }
 0x5aa   :  { %v16242_v12 = vsel %vm171_vm0, %v7978_v27, 0 }
 0x5ab   :  { %v17936_v3 = vand.u32 4294901760, %v16242_v12 }
 0x5ad   :  { %7360 = vmatpush1.xpose.msra.mxu1 %v7359_v52  ;;  %v19111_v52 = vld [vmem:[#allocation30_spill] sm:$0xff] }
 0x5ae   :  { %10757 = vmatprep.subr.bf16.mxu1 %v18951_v57  ;;  %v10764_v43 = vpack.c.bf16 %v19040_v55, %v19111_v52 }
 0x5b0   :  { %7369 = vmatmul.mubr.f32.vlgmr.msra.gmra.mrb[6].mxu1 %v13860_v26  ;;  %10276 = vmatpush3.bf16.xpose.msra.mxu0 %v19105_v46  ;;  %v19112_v46 = vld [vmem:[#allocation36_spill] sm:$0xff] }
 0x5b1   :  { %10759 = vmatpush1.bf16.xpose.msra.mxu1 %v10758_v40  ;;  %10278 = vmatprep.subr.bf16.mxu0 %v19106_v61  ;;  %v16211_v40 = vsel %vm171_vm0, %v7994_v54, 0  ;;  %v19113_v61 = vld [vmem:[#allocation41_spill] sm:$0xff]  ;;  %v7995_v54 = vld [vmem:[%s17173_s0 + $0x678] sm:$0xff] }
 0x5b2   :  { %10760 = vmatprep.subr.bf16.mxu1 %v18951_v57  ;;  %7497 = vmatprep.mubr.f32.mxu1 %v18955_v62  ;;  %v16245_v33 = vsel %vm171_vm0, %v7995_v54, 0  ;;  %v7979_v54 = vld [vmem:[%s17173_s0 + $0x5f8] sm:$0xff] }
 0x5b3   :  { %v16284_v47 = vsel %vm171_vm0, %v7979_v54, 0 }
 0x5b4   :  { %v17945_v28 = vand.u32 4294901760, %v16284_v47 }
 0x5b8   :  { %10280 = vmatpush3.bf16.xpose.msra.mxu0 %v19109_v13  ;;  %v17938_v13 = vand.u32 4294901760, %v16211_v40 }
 0x5b9   :  { %10762 = vmatpush1.bf16.xpose.msra.mxu1 %v10761_v11  ;;  %10282 = vmatprep.subr.bf16.mxu0 %v19110_v58  ;;  %v17939_v11 = vand.u32 4294901760, %v16208_v34  ;;  %v7977_v58 = vld [vmem:[%s17173_s0 + $0x5e8] sm:$0xff] }
 0x5ba   :  { %10763 = vmatprep.subr.bf16.mxu1 %v18951_v57  ;;  %v16239_v31 = vsel %vm171_vm0, %v7977_v58, 0  ;;  %v17935_v58 = vand.u32 4294901760, %v16245_v33 }
 0x5bb   :  { %v17937_v6 = vand.u32 4294901760, %v16239_v31 }
 0x5bd   :  { %v16275_v42 = vpack.c.bf16 %v17936_v3, %v17937_v6 }
 0x5c0   :  { %10284 = vmatpush3.bf16.xpose.msra.mxu0 %v19112_v46  ;;  %v10767_v46 = vpack.c.bf16 %v19044_v60, %v19043_v16 }
 0x5c1   :  { %10765 = vmatpush1.bf16.xpose.msra.mxu1 %v10764_v43  ;;  %10286 = vmatprep.subr.bf16.mxu0 %v19113_v61  ;;  %v7996_v43 = vld [vmem:[%s17173_s0 + $0x680] sm:$0xff]  ;;  %v16236_v61 = vpack.c.bf16 %v17938_v13, %v17939_v11 }
 0x5c2   :  { %10766 = vmatprep.subr.bf16.mxu1 %v18951_v57  ;;  %v16248_v0 = vsel %vm171_vm0, %v7996_v43, 0  ;;  %v7997_v43 = vld [vmem:[%s17173_s0 + $0x688] sm:$0xff] }
 0x5c3   :  { %v17934_v27 = vand.u32 4294901760, %v16248_v0  ;;  %v16290_v29 = vsel %vm171_vm0, %v7997_v43, 0  ;;  %v7981_v43 = vld [vmem:[%s17173_s0 + $0x608] sm:$0xff] }
 0x5c4   :  { %v17944_v54 = vand.u32 4294901760, %v16290_v29  ;;  %v16331_v13 = vsel %vm171_vm0, %v7981_v43, 0 }
 0x5c5   :  { %v16281_v4 = vpack.c.bf16 %v17934_v27, %v17935_v58  ;;  %v8000_v27 = vld [vmem:[%s17173_s0 + $0x6a0] sm:$0xff]  ;;  %v10773_v58 = vpack.c.bf16 %v19057_v48, %v19056_v35  ;;  %v16337_v48 = vsel %vm171_vm0, %v7999_v17, 0  ;;  %v7983_v17 = vld [vmem:[%s17173_s0 + $0x618] sm:$0xff] }
 0x5c6   :  { %v16340_v35 = vsel %vm171_vm0, %v8000_v27, 0  ;;  %v17953_v43 = vand.u32 4294901760, %v16337_v48  ;;  %v8001_v27 = vld [vmem:[%s17173_s0 + $0x6a8] sm:$0xff]  ;;  %v16376_v60 = vsel %vm171_vm0, %v7983_v17, 0 }
 0x5c7   :  { %v19119_v14 = vand.u32 4294901760, %v16340_v35 }
 0x5c8   :  { %10288 = vmatpush3.bf16.xpose.msra.mxu0 %v19114_v53  ;;  %v7980_v53 = vld [vmem:[%s17173_s0 + $0x600] sm:$0xff] }
 0x5c9   :  { %10768 = vmatpush1.bf16.xpose.msra.mxu1 %v10767_v46  ;;  %10482 = vmatprep.subr.bf16.mxu0 %v16236_v61  ;;  %v7998_v46 = vld [vmem:[%s17173_s0 + $0x690] sm:$0xff]  ;;  %v16287_v44 = vsel %vm171_vm0, %v7980_v53, 0  ;;  %v16373_v56 = vpack.c.bf16 %v19119_v14, %v17953_v43  ;;  %v8004_v43 = vld [vmem:[%s17173_s0 + $0x6c0] sm:$0xff] }
 0x5ca   :  { %10769 = vmatprep.subr.bf16.mxu1 %v18951_v57  ;;  %v16293_v41 = vsel %vm171_vm0, %v7998_v46, 0  ;;  %v17942_v63 = vand.u32 4294901760, %v16287_v44  ;;  %v19115_v46 = vld [vmem:[#allocation88_spill] sm:$0xff] }
 0x5cb   :  { %v17943_v53 = vand.u32 4294901760, %v16293_v41  ;;  %19120 = vst [vmem:[#allocation80_spill] sm:$0xff] %v16373_v56 }
 0x5cc   :  { %v16322_v3 = vpack.c.bf16 %v17942_v63, %v17945_v28  ;;  %v17954_v63 = vand.u32 4294901760, %v16331_v13  ;;  %v10776_v28 = vpack.c.bf16 %v19063_v1, %v19060_v10  ;;  %v16382_v1 = vsel %vm171_vm0, %v8001_v27, 0  ;;  %v8003_v27 = vld [vmem:[%s17173_s0 + $0x6b8] sm:$0xff] }
 0x5cd   :  { %v16328_v6 = vpack.c.bf16 %v17943_v53, %v17944_v54  ;;  %v8002_v54 = vld [vmem:[%s17173_s0 + $0x6b0] sm:$0xff]  ;;  %v17961_v17 = vand.u32 4294901760, %v16382_v1 }
 0x5ce   :  { %19116 = vst [vmem:[#allocation103_spill] sm:$0xff] %v16322_v3  ;;  %v16385_v10 = vsel %vm171_vm0, %v8002_v54, 0  ;;  %v7985_v54 = vld [vmem:[%s17173_s0 + $0x628] sm:$0xff] }
 0x5cf   :  { %8860 = vmatmul.mubr.f32.vlgmr.msra.gmra.mrb[8].mxu0 %v13860_v26  ;;  %19117 = vst [vmem:[#allocation73_spill] sm:$0xff] %v16328_v6  ;;  %v19122_v51 = vand.u32 4294901760, %v16385_v10  ;;  %v16421_v55 = vsel %vm171_vm0, %v7985_v54, 0 }
 0x5d0   :  { %10484 = vmatpush3.bf16.xpose.msra.mxu0 %v16275_v42  ;;  %9097 = vmatprep.mubr.f32.mxu0 %v19115_v46 }
 0x5d1   :  { %10771 = vmatpush1.bf16.xpose.msra.mxu1 %v10770_v32  ;;  %10486 = vmatprep.subr.bf16.mxu0 %v16281_v4  ;;  %v7982_v32 = vld [vmem:[%s17173_s0 + $0x610] sm:$0xff]  ;;  %v16418_v5 = vpack.c.bf16 %v19122_v51, %v17961_v17 }
 0x5d2   :  { %10772 = vmatprep.subr.bf16.mxu1 %v18951_v57  ;;  %v16334_v11 = vsel %vm171_vm0, %v7982_v32, 0  ;;  %v8006_v17 = vld [vmem:[%s17173_s0 + $0x6d0] sm:$0xff] }
 0x5d3   :  { %v17952_v53 = vand.u32 4294901760, %v16334_v11  ;;  %19123 = vst [vmem:[#allocation11_spill] sm:$0xff] %v16418_v5 }
 0x5d5   :  { %v16367_v32 = vpack.c.bf16 %v17952_v53, %v17954_v63  ;;  %v17962_v53 = vand.u32 4294901760, %v16376_v60  ;;  %v10779_v63 = vpack.c.bf16 %v19069_v20, %v19068_v21  ;;  %v16427_v20 = vsel %vm171_vm0, %v8003_v27, 0  ;;  %v8005_v27 = vld [vmem:[%s17173_s0 + $0x6c8] sm:$0xff] }
 0x5d6   :  { %v16430_v21 = vsel %vm171_vm0, %v8004_v43, 0  ;;  %v17974_v54 = vand.u32 4294901760, %v16427_v20  ;;  %v7987_v43 = vld [vmem:[%s17173_s0 + $0x638] sm:$0xff] }
 0x5d7   :  { %19118 = vst [vmem:[#allocation83_spill] sm:$0xff] %v16367_v32  ;;  %v16466_v38 = vsel %vm171_vm0, %v7987_v43, 0  ;;  %v10785_v43 = vpack.c.bf16 %v19081_v25, %v19080_v59 }
 0x5d8   :  { %10488 = vmatpush3.bf16.xpose.msra.mxu0 %v16322_v3 }
 0x5d9   :  { %10774 = vmatpush1.bf16.xpose.msra.mxu1 %v10773_v58  ;;  %10490 = vmatprep.subr.bf16.mxu0 %v16328_v6  ;;  %v7984_v58 = vld [vmem:[%s17173_s0 + $0x620] sm:$0xff] }
 0x5da   :  { %10775 = vmatprep.subr.bf16.mxu1 %v18951_v57  ;;  %v16379_v16 = vsel %vm171_vm0, %v7984_v58, 0 }
 0x5db   :  { %v17960_v14 = vand.u32 4294901760, %v16379_v16 }
 0x5dd   :  { %v16412_v58 = vpack.c.bf16 %v17960_v14, %v17962_v53  ;;  %v17975_v14 = vand.u32 4294901760, %v16421_v55  ;;  %v10782_v53 = vpack.c.bf16 %v19075_v49, %v19072_v22  ;;  %v16472_v49 = vsel %vm171_vm0, %v8005_v27, 0  ;;  %v8007_v27 = vld [vmem:[%s17173_s0 + $0x6d8] sm:$0xff] }
 0x5de   :  { %v16475_v22 = vsel %vm171_vm0, %v8006_v17, 0  ;;  %v7989_v17 = vld [vmem:[%s17173_s0 + $0x648] sm:$0xff]  ;;  %v19130_v2 = vand.u32 4294901760, %v16472_v49 }
 0x5df   :  { %19121 = vst [vmem:[#allocation5_spill] sm:$0xff] %v16412_v58  ;;  %v19131_v7 = vand.u32 4294901760, %v16475_v22 }
 0x5e0   :  { %10492 = vmatpush3.bf16.xpose.msra.mxu0 %v16367_v32 }
 0x5e1   :  { %10777 = vmatpush1.bf16.xpose.msra.mxu1 %v10776_v28  ;;  %10494 = vmatprep.subr.bf16.mxu0 %v16373_v56  ;;  %v7986_v28 = vld [vmem:[%s17173_s0 + $0x630] sm:$0xff] }
 0x5e2   :  { %10778 = vmatprep.subr.bf16.mxu1 %v18951_v57  ;;  %v16424_v52 = vsel %vm171_vm0, %v7986_v28, 0 }
 0x5e3   :  { %v17973_v51 = vand.u32 4294901760, %v16424_v52 }
 0x5e5   :  { %v16457_v28 = vpack.c.bf16 %v17973_v51, %v17975_v14  ;;  %v17984_v51 = vand.u32 4294901760, %v16466_v38  ;;  %v19127_v14 = vand.u32 4294901760, %v16208_v34 }
 0x5e7   :  { %19124 = vst [vmem:[#allocation16_spill] sm:$0xff] %v16457_v28 }
 0x5e8   :  { %10496 = vmatpush3.bf16.xpose.msra.mxu0 %v16412_v58 }
 0x5e9   :  { %10780 = vmatpush1.bf16.xpose.msra.mxu1 %v10779_v63  ;;  %10498 = vmatprep.subr.bf16.mxu0 %v16418_v5  ;;  %v7988_v63 = vld [vmem:[%s17173_s0 + $0x640] sm:$0xff]  ;;  %v19125_v5 = vand.u32 4294901760, %v16430_v21 }
 0x5ea   :  { %10781 = vmatprep.subr.bf16.mxu1 %v18951_v57  ;;  %v16469_v56 = vsel %vm171_vm0, %v7988_v63, 0  ;;  %v16499_v63 = vsub.f32 %v16208_v34, %v19127_v14  ;;  %v16518_v34 = vpack.c.bf16 %v19131_v7, %v19130_v2  ;;  %v16521_v14 = vsel %vm171_vm0, %v7989_v17, 0 }
 0x5eb   :  { %v16463_v58 = vpack.c.bf16 %v19125_v5, %v17974_v54  ;;  %v17983_v5 = vand.u32 4294901760, %v16469_v56  ;;  %v8008_v54 = vld [vmem:[%s17173_s0 + $0x6e0] sm:$0xff]  ;;  %v19134_v2 = vand.u32 4294901760, %v16242_v12  ;;  %v19136_v17 = vand.u32 4294901760, %v16248_v0 }
 0x5ec   :  { %19132 = vst [vmem:[#allocation97_spill] sm:$0xff] %v16518_v34 }
 0x5ed   :  { %19126 = vst [vmem:[#allocation37_spill] sm:$0xff] %v16463_v58  ;;  %v16565_v59 = vsub.f32 %v16248_v0, %v19136_v17  ;;  %v19143_v17 = vand.u32 4294901760, %v16499_v63 }
 0x5f0   :  { %10500 = vmatpush3.bf16.xpose.msra.mxu0 %v16457_v28  ;;  %v19129_v28 = vand.u32 4294901760, %v16211_v40 }
 0x5f1   :  { %10783 = vmatpush1.bf16.xpose.msra.mxu1 %v10782_v53  ;;  %10502 = vmatprep.subr.bf16.mxu0 %v16463_v58  ;;  %v7990_v53 = vld [vmem:[%s17173_s0 + $0x650] sm:$0xff]  ;;  %v16507_v58 = vpack.c.bf16 %v17983_v5, %v17984_v51  ;;  %v16527_v5 = vsel %vm171_vm0, %v8007_v27, 0  ;;  %v16530_v51 = vsel %vm171_vm0, %v8008_v54, 0  ;;  %v7991_v54 = vld [vmem:[%s17173_s0 + $0x658] sm:$0xff]  ;;  %v19133_v27 = vand.u32 4294901760, %v16239_v31 }
 0x5f2   :  { %10784 = vmatprep.subr.bf16.mxu1 %v18951_v57  ;;  %v16512_v32 = vsub.f32 %v16211_v40, %v19129_v28  ;;  %v16524_v25 = vsel %vm171_vm0, %v7990_v53, 0  ;;  %v7992_v53 = vld [vmem:[%s17173_s0 + $0x660] sm:$0xff]  ;;  %v16555_v28 = vsub.f32 %v16242_v12, %v19134_v2  ;;  %v19135_v40 = vand.u32 4294901760, %v16245_v33 }
 0x5f3   :  { %19128 = vst [vmem:[#allocation23_spill] sm:$0xff] %v16507_v58  ;;  %v16550_v7 = vsub.f32 %v16239_v31, %v19133_v27  ;;  %v19137_v31 = vand.u32 4294901760, %v16521_v14  ;;  %v19138_v27 = vand.u32 4294901760, %v16524_v25  ;;  %v16576_v12 = vsel %vm171_vm0, %v7991_v54, 0 }
 0x5f4   :  { %v16585_v0 = vsel %vm171_vm0, %v7992_v53, 0  ;;  %v19147_v53 = vand.u32 4294901760, %v16290_v29 }
 0x5f8   :  { %10504 = vmatpush3.bf16.xpose.msra.mxu0 %v16507_v58  ;;  %v16573_v58 = vpack.c.bf16 %v19138_v27, %v19137_v31  ;;  %v19146_v27 = vand.u32 4294901760, %v16287_v44 }
 0x5f9   :  { %10786 = vmatpush1.bf16.xpose.msra.mxu1 %v10785_v43  ;;  %10506 = vmatprep.subr.bf16.mxu0 %v16518_v34  ;;  %v16560_v43 = vsub.f32 %v16245_v33, %v19135_v40  ;;  %v10788_v34 = vpack.c.bf16 %v19087_v8, %v19084_v36  ;;  %v19140_v33 = vand.u32 4294901760, %v16527_v5  ;;  %v19141_v40 = vand.u32 4294901760, %v16530_v51 }
 0x5fa   :  { %10787 = vmatprep.subr.bf16.mxu1 %v18951_v57  ;;  %19139 = vst [vmem:[#allocation104_spill] sm:$0xff] %v16573_v58  ;;  %v6422_v8 = vsub.f32 %v16499_v63, %v19143_v17  ;;  %v19144_v36 = vand.u32 4294901760, %v16512_v32 }
 0x5fb   :  { %v16582_v2 = vpack.c.bf16 %v19141_v40, %v19140_v33  ;;  %v16610_v33 = vsub.f32 %v16287_v44, %v19146_v27  ;;  %v19151_v44 = vand.u32 4294901760, %v16555_v28 }
 0x5fc   :  { %v6429_v31 = vsub.f32 %v16512_v32, %v19144_v36  ;;  %v6423_v40 = vand.u32 4294901760, %v6422_v8  ;;  %v10791_v8 = vpack.c.bf16 %v19093_v37, %v19092_v15  ;;  %v19149_v36 = vand.u32 4294901760, %v16585_v0 }
 0x5fd   :  { %19142 = vst [vmem:[#allocation13_spill] sm:$0xff] %v16582_v2  ;;  %v6317_v27 = vsub.f32 %v16555_v28, %v19151_v44  ;;  %v19153_v15 = vand.u32 4294901760, %v16560_v43  ;;  %v18002_v39 = vand.u32 4294901760, %v16610_v33 }
 0x5fe   :  { %v6430_v17 = vand.u32 4294901760, %v6429_v31  ;;  %v19148_v31 = vand.u32 4294901760, %v16576_v12 }
 0x5ff   :  { %v6318_v3 = vand.u32 4294901760, %v6317_v27 }
 0x600   :  { %10508 = vmatpush3.bf16.xpose.msra.mxu0 %v16573_v58  ;;  %v16623_v6 = vpack.c.bf16 %v19149_v36, %v19148_v31  ;;  %v10513_v37 = vpack.c.bf16 %v6430_v17, %v6423_v40  ;;  %v6436_v58 = vsub.f32 %v16560_v43, %v19153_v15  ;;  %v19154_v36 = vand.u32 4294901760, %v16565_v59 }
 0x601   :  { %10789 = vmatpush1.bf16.xpose.msra.mxu1 %v10788_v34  ;;  %10510 = vmatprep.subr.bf16.mxu0 %v16582_v2  ;;  %v19145_v34 = vand.u32 4294901760, %v16284_v47  ;;  %v16615_v2 = vsub.f32 %v16290_v29, %v19147_v53  ;;  %v19152_v29 = vand.u32 4294901760, %v16293_v41 }
 0x602   :  { %10790 = vmatprep.subr.bf16.mxu1 %v18951_v57  ;;  %v6443_v31 = vsub.f32 %v16565_v59, %v19154_v36  ;;  %v19157_v36 = vand.u32 4294901760, %v16337_v48 }
 0x603   :  { %v16605_v54 = vsub.f32 %v16284_v47, %v19145_v34  ;;  %v19150_v47 = vand.u32 4294901760, %v16550_v7  ;;  %v16634_v53 = vsub.f32 %v16293_v41, %v19152_v29  ;;  %v6437_v41 = vand.u32 4294901760, %v6436_v58 }
 0x604   :  { %v6444_v40 = vand.u32 4294901760, %v6443_v31  ;;  %v18004_v15 = vand.u32 4294901760, %v16615_v2  ;;  %v19155_v29 = vand.u32 4294901760, %v16331_v13  ;;  %v10794_v58 = vpack.c.bf16 %v19095_v9, %v19094_v30 }
 0x605   :  { %v6310_v34 = vsub.f32 %v16550_v7, %v19150_v47  ;;  %v18003_v44 = vand.u32 4294901760, %v16605_v54 }
 0x607   :  { %v6311_v47 = vand.u32 4294901760, %v6310_v34  ;;  %v19156_v34 = vand.u32 4294901760, %v16334_v11  ;;  %v6324_v17 = vsub.f32 %v16605_v54, %v18003_v44 }
 0x608   :  { %10512 = vmatpush3.bf16.xpose.msra.mxu0 %v16623_v6 }
 0x609   :  { %10792 = vmatpush1.bf16.xpose.msra.mxu1 %v10791_v8  ;;  %10514 = vmatprep.subr.bf16.mxu0 %v10513_v37  ;;  %v16651_v8 = vsub.f32 %v16331_v13, %v19155_v29  ;;  %v16656_v27 = vsub.f32 %v16334_v11, %v19156_v34  ;;  %v16661_v37 = vsub.f32 %v16337_v48, %v19157_v36  ;;  %v19158_v11 = vand.u32 4294901760, %v16340_v35 }
 0x60a   :  { %10793 = vmatprep.subr.bf16.mxu1 %v18951_v57  ;;  %v10515_v31 = vpack.c.bf16 %v6318_v3, %v6311_v47  ;;  %v6331_v13 = vsub.f32 %v16610_v33, %v18002_v39  ;;  %v10517_v34 = vpack.c.bf16 %v6444_v40, %v6437_v41  ;;  %v6450_v48 = vsub.f32 %v16615_v2, %v18004_v15 }
 0x60b   :  { %v16674_v29 = vsub.f32 %v16340_v35, %v19158_v11  ;;  %v19159_v3 = vand.u32 4294901760, %v16634_v53  ;;  %v6325_v36 = vand.u32 4294901760, %v6324_v17  ;;  %v18006_v44 = vand.u32 4294901760, %v16651_v8 }
 0x60c   :  { %v6332_v39 = vand.u32 4294901760, %v6331_v13  ;;  %v18005_v35 = vand.u32 4294901760, %v16656_v27  ;;  %v6451_v41 = vand.u32 4294901760, %v6450_v48  ;;  %v18007_v11 = vand.u32 4294901760, %v16661_v37 }
 0x60d   :  { %v6457_v47 = vsub.f32 %v16634_v53, %v19159_v3  ;;  %v18008_v15 = vand.u32 4294901760, %v16674_v29  ;;  %v19162_v13 = vand.u32 4294901760, %v16382_v1  ;;  %v10797_v48 = vpack.c.bf16 %v19097_v18, %v19096_v24 }
 0x60e   :  { %v10519_v3 = vpack.c.bf16 %v6332_v39, %v6325_v36 }
 0x60f   :  { %9098 = vmatmul.mubr.f32.vlgmr.msra.gmra.mrb[10].mxu0 %v19115_v46  ;;  %v6458_v40 = vand.u32 4294901760, %v6457_v47  ;;  %v19160_v46 = vand.u32 4294901760, %v16376_v60  ;;  %v6338_v47 = vsub.f32 %v16651_v8, %v18006_v44  ;;  %v6471_v39 = vsub.f32 %v16674_v29, %v18008_v15 }
 0x610   :  { %10516 = vmatpush3.bf16.xpose.msra.mxu0 %v10515_v31  ;;  %9131 = vmatprep.mubr.f32.mxu0 %v13860_v26 }
 0x611   :  { %10795 = vmatpush1.bf16.xpose.msra.mxu1 %v10794_v58  ;;  %10518 = vmatprep.subr.bf16.mxu0 %v10517_v34  ;;  %v16692_v17 = vsub.f32 %v16376_v60, %v19160_v46  ;;  %v19161_v58 = vand.u32 4294901760, %v16379_v16  ;;  %v16702_v34 = vsub.f32 %v16382_v1, %v19162_v13  ;;  %v6345_v60 = vsub.f32 %v16656_v27, %v18005_v35 }
 0x612   :  { %10796 = vmatprep.subr.bf16.mxu1 %v18951_v57  ;;  %v6464_v1 = vsub.f32 %v16661_v37, %v18007_v11  ;;  %v6339_v36 = vand.u32 4294901760, %v6338_v47  ;;  %v19164_v11 = vand.u32 4294901760, %v16421_v55 }
 0x613   :  { %v16697_v31 = vsub.f32 %v16379_v16, %v19161_v58  ;;  %v19163_v16 = vand.u32 4294901760, %v16385_v10  ;;  %v10521_v58 = vpack.c.bf16 %v6458_v40, %v6451_v41  ;;  %v6346_v13 = vand.u32 4294901760, %v6345_v60 }
 0x614   :  { %v18012_v35 = vand.u32 4294901760, %v16692_v17  ;;  %v6472_v41 = vand.u32 4294901760, %v6471_v39  ;;  %v18011_v40 = vand.u32 4294901760, %v16702_v34  ;;  %v19166_v60 = vand.u32 4294901760, %v16427_v20 }
 0x615   :  { %v16715_v46 = vsub.f32 %v16385_v10, %v19163_v16  ;;  %v18009_v44 = vand.u32 4294901760, %v16697_v31  ;;  %v6465_v10 = vand.u32 4294901760, %v6464_v1  ;;  %v10523_v1 = vpack.c.bf16 %v6346_v13, %v6339_v36 }
 0x616   :  { %v6352_v39 = vsub.f32 %v16692_v17, %v18012_v35 }
 0x617   :  { %v18010_v16 = vand.u32 4294901760, %v16715_v46 }
 0x618   :  { %10520 = vmatpush3.bf16.xpose.msra.mxu0 %v10519_v3  ;;  %v19165_v3 = vand.u32 4294901760, %v16424_v52  ;;  %v6353_v13 = vand.u32 4294901760, %v6352_v39 }
 0x619   :  { %10798 = vmatpush1.bf16.xpose.msra.mxu1 %v10797_v48  ;;  %10522 = vmatprep.subr.bf16.mxu0 %v10521_v58  ;;  %v16731_v48 = vsub.f32 %v16421_v55, %v19164_v11  ;;  %v16741_v58 = vsub.f32 %v16427_v20, %v19166_v60  ;;  %v6359_v55 = vsub.f32 %v16697_v31, %v18009_v44  ;;  %v19167_v11 = vand.u32 4294901760, %v16430_v21 }
 0x61a   :  { %7487 = vmatprep.subr.mxu1 %v18955_v62  ;;  %v16736_v47 = vsub.f32 %v16424_v52, %v19165_v3  ;;  %v10525_v52 = vpack.c.bf16 %v6472_v41, %v6465_v10  ;;  %v6478_v20 = vsub.f32 %v16702_v34, %v18011_v40  ;;  %v6485_v36 = vsub.f32 %v16715_v46, %v18010_v16 }
 0x61b   :  { %v16752_v15 = vsub.f32 %v16430_v21, %v19167_v11  ;;  %v6360_v3 = vand.u32 4294901760, %v6359_v55  ;;  %v18014_v60 = vand.u32 4294901760, %v16731_v48  ;;  %v18015_v41 = vand.u32 4294901760, %v16741_v58 }
 0x61c   :  { %v18013_v44 = vand.u32 4294901760, %v16736_v47  ;;  %v6479_v21 = vand.u32 4294901760, %v6478_v20  ;;  %v6486_v10 = vand.u32 4294901760, %v6485_v36  ;;  %v19168_v16 = vand.u32 4294901760, %v16466_v38  ;;  %v19171_v20 = vld [vmem:[#allocation53_spill] sm:$0xff]  ;;  %v19172_v36 = vld [vmem:[#allocation86_spill] sm:$0xff] }
 0x61d   :  { %v18017_v11 = vand.u32 4294901760, %v16752_v15  ;;  %v19170_v55 = vand.u32 4294901760, %v16472_v49  ;;  %v10527_v35 = vpack.c.bf16 %v6360_v3, %v6353_v13  ;;  %v6492_v13 = vsub.f32 %v16741_v58, %v18015_v41 }
 0x61e   :  { %v16769_v40 = vsub.f32 %v16466_v38, %v19168_v16  ;;  %v6366_v38 = vsub.f32 %v16731_v48, %v18014_v60  ;;  %v6373_v16 = vsub.f32 %v16736_v47, %v18013_v44  ;;  %v19174_v41 = vand.u32 4294901760, %v16521_v14 }
 0x61f   :  { %v6499_v3 = vsub.f32 %v16752_v15, %v18017_v11 }
 0x620   :  { %10524 = vmatpush3.bf16.xpose.msra.mxu0 %v10523_v1  ;;  %v19169_v1 = vand.u32 4294901760, %v16469_v56  ;;  %v6374_v44 = vand.u32 4294901760, %v6373_v16  ;;  %v18019_v60 = vand.u32 4294901760, %v16769_v40  ;;  %v19176_v16 = vand.u32 4294901760, %v16527_v5 }
 0x621   :  { %7490 = vmatpush1.xpose.msra.mxu1 %v16166_v50  ;;  %10526 = vmatprep.subr.bf16.mxu0 %v10525_v52  ;;  %v16779_v52 = vsub.f32 %v16472_v49, %v19170_v55  ;;  %v6367_v55 = vand.u32 4294901760, %v6366_v38  ;;  %v16809_v50 = vsub.f32 %v16521_v14, %v19174_v41  ;;  %v19178_v41 = vand.u32 4294901760, %v16530_v51 }
 0x622   :  { %10799 = vmatprep.subr.bf16.mxu1 %v18951_v57  ;;  %v16774_v39 = vsub.f32 %v16469_v56, %v19169_v1  ;;  %v19173_v56 = vand.u32 4294901760, %v16475_v22  ;;  %v10529_v1 = vpack.c.bf16 %v6486_v10, %v6479_v21  ;;  %v6380_v11 = vsub.f32 %v16769_v40, %v18019_v60 }
 0x623   :  { %v18020_v21 = vand.u32 4294901760, %v16779_v52 }
 0x624   :  { %7500 = vmatmul.mubr.f32.vlgmr.msra.gmra.mrb[6].mxu1 %v19171_v20  ;;  %v16793_v49 = vsub.f32 %v16475_v22, %v19173_v56  ;;  %v6493_v22 = vand.u32 4294901760, %v6492_v13  ;;  %v6500_v56 = vand.u32 4294901760, %v6499_v3  ;;  %v19177_v13 = vld [vmem:[#allocation91_spill] sm:$0xff]  ;;  %v10531_v3 = vpack.c.bf16 %v6374_v44, %v6367_v55 }
 0x625   :  { %10801 = vmatpush1.bf16.xpose.msra.mxu1 %v19172_v36  ;;  %7599 = vmatprep.mubr.f32.mxu1 %v18955_v62  ;;  %v18018_v36 = vand.u32 4294901760, %v16774_v39  ;;  %v6506_v44 = vsub.f32 %v16779_v52, %v18020_v21  ;;  %v19179_v21 = vand.u32 4294901760, %v16576_v12 }
 0x626   :  { %10802 = vmatprep.subr.bf16.mxu1 %v18951_v57  ;;  %v18021_v10 = vand.u32 4294901760, %v16793_v49 }
 0x627   :  { %v6387_v14 = vsub.f32 %v16774_v39, %v18018_v36  ;;  %v18023_v36 = vand.u32 4294901760, %v16809_v50 }
 0x628   :  { %10528 = vmatpush3.bf16.xpose.msra.mxu0 %v10527_v35  ;;  %v19175_v35 = vand.u32 4294901760, %v16524_v25  ;;  %v6513_v55 = vsub.f32 %v16793_v49, %v18021_v10 }
 0x629   :  { %10530 = vmatprep.subr.bf16.mxu0 %v10529_v1  ;;  %v16819_v1 = vsub.f32 %v16527_v5, %v19176_v16  ;;  %v10533_v5 = vpack.c.bf16 %v6500_v56, %v6493_v22  ;;  %v6388_v16 = vand.u32 4294901760, %v6387_v14  ;;  %v19181_v14 = vld [vmem:[#allocation66_spill] sm:$0xff] }
 0x62a   :  { %v16814_v38 = vsub.f32 %v16524_v25, %v19175_v35  ;;  %v16831_v25 = vsub.f32 %v16530_v51, %v19178_v41  ;;  %v6381_v35 = vand.u32 4294901760, %v6380_v11  ;;  %v6507_v51 = vand.u32 4294901760, %v6506_v44 }
 0x62b   :  { %v6514_v41 = vand.u32 4294901760, %v6513_v55  ;;  %v18027_v22 = vand.u32 4294901760, %v16819_v1 }
 0x62c   :  { %v18022_v60 = vand.u32 4294901760, %v16814_v38  ;;  %v18024_v56 = vand.u32 4294901760, %v16831_v25  ;;  %v10535_v10 = vpack.c.bf16 %v6388_v16, %v6381_v35 }
 0x62d   :  { %10804 = vmatpush1.bf16.xpose.msra.mxu1 %v19177_v13  ;;  %v16847_v13 = vsub.f32 %v16576_v12, %v19179_v21  ;;  %v10537_v12 = vpack.c.bf16 %v6514_v41, %v6507_v51  ;;  %v6520_v21 = vsub.f32 %v16819_v1, %v18027_v22  ;;  %v19198_v22 = vld [vmem:[#allocation65_spill] sm:$0xff] }
 0x62e   :  { %10805 = vmatprep.subr.bf16.mxu1 %v18951_v57  ;;  %v6401_v44 = vsub.f32 %v16814_v38, %v18022_v60 }
 0x62f   :  { %v18026_v16 = vand.u32 4294901760, %v16847_v13  ;;  %v6521_v60 = vand.u32 4294901760, %v6520_v21 }
 0x630   :  { %10532 = vmatpush3.bf16.xpose.msra.mxu0 %v10531_v3  ;;  %v19180_v3 = vand.u32 4294901760, %v16585_v0  ;;  %v6402_v35 = vand.u32 4294901760, %v6401_v44 }
 0x631   :  { %10534 = vmatprep.subr.bf16.mxu0 %v10533_v5  ;;  %v6394_v5 = vsub.f32 %v16809_v50, %v18023_v36  ;;  %v6408_v41 = vsub.f32 %v16847_v13, %v18026_v16  ;;  %v19196_v16 = vld [vmem:[#allocation103_spill] sm:$0xff] }
 0x632   :  { %v16852_v11 = vsub.f32 %v16585_v0, %v19180_v3  ;;  %v6527_v0 = vsub.f32 %v16831_v25, %v18024_v56 }
 0x633   :  { %v6395_v55 = vand.u32 4294901760, %v6394_v5  ;;  %v6409_v44 = vand.u32 4294901760, %v6408_v41  ;;  %v19186_v41 = vld [vmem:[#allocation89_spill] sm:$0xff] }
 0x634   :  { %v18025_v3 = vand.u32 4294901760, %v16852_v11  ;;  %v6528_v36 = vand.u32 4294901760, %v6527_v0  ;;  %v10545_v0 = vpack.c.bf16 %v16512_v32, %v16499_v63 }
 0x635   :  { %10807 = vmatpush1.bf16.xpose.msra.mxu1 %v19181_v14  ;;  %v19182_v14 = vld [vmem:[#allocation72_spill] sm:$0xff]  ;;  %v10539_v51 = vpack.c.bf16 %v6402_v35, %v6395_v55  ;;  %v19184_v55 = vld [vmem:[#allocation99_spill] sm:$0xff]  ;;  %v10547_v35 = vpack.c.bf16 %v16555_v28, %v16550_v7 }
 0x636   :  { %10808 = vmatprep.subr.bf16.mxu1 %v18951_v57  ;;  %v10541_v5 = vpack.c.bf16 %v6528_v36, %v6521_v60  ;;  %v10549_v60 = vpack.c.bf16 %v16565_v59, %v16560_v43  ;;  %v19185_v36 = vld [vmem:[#allocation78_spill] sm:$0xff] }
 0x638   :  { %10536 = vmatpush3.bf16.xpose.msra.mxu0 %v10535_v10  ;;  %v6415_v10 = vsub.f32 %v16852_v11, %v18025_v3  ;;  %v10575_v3 = vpack.c.bf16 %v16852_v11, %v16847_v13 }
 0x639   :  { %10538 = vmatprep.subr.bf16.mxu0 %v10537_v12  ;;  %v19183_v12 = vld [vmem:[#allocation93_spill] sm:$0xff] }
 0x63a   :  { %v6416_v56 = vand.u32 4294901760, %v6415_v10  ;;  %v10555_v10 = vpack.c.bf16 %v16656_v27, %v16651_v8 }
 0x63c   :  { %v10543_v21 = vpack.c.bf16 %v6416_v56, %v6409_v44  ;;  %v10551_v56 = vpack.c.bf16 %v16610_v33, %v16605_v54  ;;  %v19187_v44 = vld [vmem:[#allocation101_spill] sm:$0xff] }
 0x63d   :  { %10810 = vmatpush1.bf16.xpose.msra.mxu1 %v19182_v14 }
 0x63e   :  { %10811 = vmatprep.subr.bf16.mxu1 %v18951_v57 }
 0x640   :  { %10540 = vmatpush3.bf16.xpose.msra.mxu0 %v10539_v51  ;;  %v10553_v51 = vpack.c.bf16 %v16634_v53, %v16615_v2 }
 0x641   :  { %10542 = vmatprep.subr.bf16.mxu0 %v10541_v5  ;;  %v10557_v5 = vpack.c.bf16 %v16674_v29, %v16661_v37 }
 0x645   :  { %10813 = vmatpush1.bf16.xpose.msra.mxu1 %v19183_v12 }
 0x646   :  { %10814 = vmatprep.subr.bf16.mxu1 %v18951_v57 }
 0x648   :  { %10544 = vmatpush3.bf16.xpose.msra.mxu0 %v10543_v21  ;;  %v10559_v21 = vpack.c.bf16 %v16697_v31, %v16692_v17 }
 0x649   :  { %10546 = vmatprep.subr.bf16.mxu0 %v10545_v0  ;;  %v10561_v0 = vpack.c.bf16 %v16715_v46, %v16702_v34 }
 0x64d   :  { %10816 = vmatpush1.bf16.xpose.msra.mxu1 %v19184_v55 }
 0x64e   :  { %10817 = vmatprep.subr.bf16.mxu1 %v18951_v57 }
 0x64f   :  { %9132 = vmatmul.mubr.f32.vlgmr.msra.gmra.mrb[10].mxu0 %v13860_v26 }
 0x650   :  { %10548 = vmatpush3.bf16.xpose.msra.mxu0 %v10547_v35  ;;  %9165 = vmatprep.mubr.f32.mxu0 %v19171_v20  ;;  %v19188_v35 = vld [vmem:[#allocation106_spill] sm:$0xff] }
 0x651   :  { %10550 = vmatprep.subr.bf16.mxu0 %v10549_v60  ;;  %v10563_v60 = vpack.c.bf16 %v16736_v47, %v16731_v48 }
 0x655   :  { %10819 = vmatpush1.bf16.xpose.msra.mxu1 %v19185_v36 }
 0x656   :  { %10820 = vmatprep.subr.bf16.mxu1 %v18951_v57 }
 0x658   :  { %10552 = vmatpush3.bf16.xpose.msra.mxu0 %v10551_v56  ;;  %v10565_v56 = vpack.c.bf16 %v16752_v15, %v16741_v58 }
 0x659   :  { %10554 = vmatprep.subr.bf16.mxu0 %v10553_v51  ;;  %v19189_v51 = vld [vmem:[#allocation90_spill] sm:$0xff] }
 0x65d   :  { %10822 = vmatpush1.bf16.xpose.msra.mxu1 %v19186_v41  ;;  %v19207_v41 = vld [vmem:[#allocation38_spill] sm:$0xff] }
 0x65e   :  { %10823 = vmatprep.subr.bf16.mxu1 %v18951_v57  ;;  %v19208_v36 = vand.u32 4294901760, %v19207_v41 }
 0x660   :  { %10556 = vmatpush3.bf16.xpose.msra.mxu0 %v10555_v10  ;;  %v10567_v10 = vpack.c.bf16 %v16774_v39, %v16769_v40 }
 0x661   :  { %10558 = vmatprep.subr.bf16.mxu0 %v10557_v5  ;;  %v10569_v5 = vpack.c.bf16 %v16793_v49, %v16779_v52 }
 0x665   :  { %10825 = vmatpush1.bf16.xpose.msra.mxu1 %v19187_v44 }
 0x666   :  { %10826 = vmatprep.subr.bf16.mxu1 %v18951_v57 }
 0x668   :  { %10560 = vmatpush3.bf16.xpose.msra.mxu0 %v10559_v21  ;;  %v19190_v21 = vld [vmem:[#allocation94_spill] sm:$0xff] }
 0x669   :  { %10562 = vmatprep.subr.bf16.mxu0 %v10561_v0  ;;  %v10571_v0 = vpack.c.bf16 %v16814_v38, %v16809_v50 }
 0x66d   :  { %10828 = vmatpush1.bf16.xpose.msra.mxu1 %v19188_v35  ;;  %v19205_v35 = vld [vmem:[#allocation30_spill] sm:$0xff] }
 0x66e   :  { %10829 = vmatprep.subr.bf16.mxu1 %v18951_v57  ;;  %v19206_v44 = vand.u32 4294901760, %v19205_v35 }
 0x670   :  { %10564 = vmatpush3.bf16.xpose.msra.mxu0 %v10563_v60  ;;  %v10573_v60 = vpack.c.bf16 %v16831_v25, %v16819_v1  ;;  %v10848_v55 = vpack.c.bf16 %v19208_v36, %v19206_v44  ;;  %v19213_v36 = vld [vmem:[#allocation100_spill] sm:$0xff]  ;;  %v19215_v44 = vld [vmem:[#allocation18_spill] sm:$0xff] }
 0x671   :  { %10566 = vmatprep.subr.bf16.mxu0 %v10565_v56  ;;  %v19191_v56 = vld [vmem:[#allocation61_spill] sm:$0xff]  ;;  %v19214_v41 = vand.u32 4294901760, %v19213_v36  ;;  %v19225_v36 = vld [vmem:[#allocation42_spill] sm:$0xff] }
 0x675   :  { %10831 = vmatpush1.bf16.xpose.msra.mxu1 %v19189_v51 }
 0x676   :  { %10832 = vmatprep.subr.bf16.mxu1 %v18951_v57 }
 0x678   :  { %10568 = vmatpush3.bf16.xpose.msra.mxu0 %v10567_v10  ;;  %v19192_v10 = vld [vmem:[#allocation96_spill] sm:$0xff] }
 0x679   :  { %10570 = vmatprep.subr.bf16.mxu0 %v10569_v5  ;;  %v19193_v5 = vand.u32 4294901760, %v19103_v23 }
 0x67d   :  { %10834 = vmatpush1.bf16.xpose.msra.mxu1 %v19190_v21 }
 0x67e   :  { %10835 = vmatprep.subr.bf16.mxu1 %v18951_v57 }
 0x680   :  { %10572 = vmatpush3.bf16.xpose.msra.mxu0 %v10571_v0  ;;  %v19194_v0 = vld [vmem:[#allocation49_spill] sm:$0xff] }
 0x681   :  { %10574 = vmatprep.subr.bf16.mxu0 %v10573_v60 }
 0x685   :  { %10837 = vmatpush1.bf16.xpose.msra.mxu1 %v19191_v56 }
 0x686   :  { %10838 = vmatprep.subr.bf16.mxu1 %v18951_v57 }
 0x688   :  { %10576 = vmatpush3.bf16.xpose.msra.mxu0 %v10575_v3  ;;  %v19195_v3 = vand.u32 4294901760, %v19194_v0  ;;  %v19203_v0 = vld [vmem:[#allocation80_spill] sm:$0xff] }
 0x689   :  { %10578 = vmatprep.subr.bf16.mxu0 %v16236_v61 }
 0x68a   :  { %v10842_v60 = vpack.c.bf16 %v19195_v3, %v19193_v5  ;;  %v19202_v5 = vld [vmem:[#allocation83_spill] sm:$0xff] }
 0x68d   :  { %10840 = vmatpush1.bf16.xpose.msra.mxu1 %v19192_v10  ;;  %v19200_v10 = vld [vmem:[#allocation67_spill] sm:$0xff] }
 0x68e   :  { %7590 = vmatprep.subr.mxu1 %v18955_v62  ;;  %v19201_v23 = vand.u32 4294901760, %v19200_v10  ;;  %v19209_v10 = vld [vmem:[#allocation44_spill] sm:$0xff] }
 0x68f   :  { %9166 = vmatmul.mubr.f32.vlgmr.msra.gmra.mrb[10].mxu0 %v19171_v20  ;;  %v19197_v20 = vld [vmem:[#allocation73_spill] sm:$0xff] }
 0x690   :  { %10580 = vmatpush3.bf16.xpose.msra.mxu0 %v16275_v42  ;;  %9199 = vmatprep.mubr.f32.mxu0 %v19001_v19 }
 0x691   :  { %10582 = vmatprep.subr.bf16.mxu0 %v16281_v4 }
 0x695   :  { %7592 = vmatpush1.xpose.msra.mxu1 %v15957_v45  ;;  %v19199_v45 = vand.u32 4294901760, %v19198_v22 }
 0x696   :  { %10841 = vmatprep.subr.bf16.mxu1 %v18951_v57 }
 0x697   :  { %v10845_v56 = vpack.c.bf16 %v19201_v23, %v19199_v45  ;;  %v19210_v23 = vld [vmem:[#allocation48_spill] sm:$0xff] }
 0x698   :  { %7603 = vmatmul.mubr.f32.vlgmr.msra.gmra.mrb[6].mxu1 %v19001_v19  ;;  %10584 = vmatpush3.bf16.xpose.msra.mxu0 %v19196_v16 }
 0x699   :  { %10843 = vmatpush1.bf16.xpose.msra.mxu1 %v10842_v60  ;;  %10586 = vmatprep.subr.bf16.mxu0 %v19197_v20  ;;  %v19204_v60 = vld [vmem:[#allocation68_spill] sm:$0xff] }
 0x69a   :  { %10844 = vmatprep.subr.bf16.mxu1 %v18951_v57  ;;  %7760 = vmatprep.mubr.f32.mxu1 %v18955_v62 }
 0x6a0   :  { %10588 = vmatpush3.bf16.xpose.msra.mxu0 %v19202_v5 }
 0x6a1   :  { %10846 = vmatpush1.bf16.xpose.msra.mxu1 %v10845_v56  ;;  %10590 = vmatprep.subr.bf16.mxu0 %v19203_v0  ;;  %v19211_v0 = vld [vmem:[#allocation5_spill] sm:$0xff] }
 0x6a2   :  { %10847 = vmatprep.subr.bf16.mxu1 %v18951_v57  ;;  %v5338_v3 = vpop.f32.mrb[8].mxu0 }
 0x6a3   :  { %v10937_v21 = vadd.f32 %v5338_v3, %v19204_v60  ;;  %v5340_v51 = vpop.f32.mrb[9].mxu0  ;;  %v19212_v3 = vld [vmem:[#allocation11_spill] sm:$0xff] }
 0x6a4   :  { %v10938_v22 = vadd.f32 %v5340_v51, %v19204_v60  ;;  %v19216_v51 = vand.u32 4294901760, %v19215_v44  ;;  %v19227_v44 = vld [vmem:[#allocation51_spill] sm:$0xff]  ;;  %v19229_v60 = vld [vmem:[#allocation104_spill] sm:$0xff] }
 0x6a5   :  { %v7869_v45 = vmax.f32 %v19209_v10, %v10937_v21 }
 0x6a6   :  { %v7870_v56 = vmax.f32 %v19209_v10, %v10938_v22  ;;  %v10851_v21 = vpack.c.bf16 %v19216_v51, %v19214_v41  ;;  %v19218_v22 = vld [vmem:[#allocation37_spill] sm:$0xff]  ;;  %v19223_v10 = vld [vmem:[#allocation23_spill] sm:$0xff]  ;;  %v19226_v41 = vand.u32 4294901760, %v19225_v36  ;;  %v19228_v51 = vand.u32 4294901760, %v19227_v44 }
 0x6a7   :  { %v7877_v12 = vmin.f32 %v19210_v23, %v7869_v45  ;;  %v19219_v45 = vld [vmem:[#allocation64_spill] sm:$0xff] }
 0x6a8   :  { %v7878_v14 = vmin.f32 %v19210_v23, %v7870_v56  ;;  %10592 = vmatpush3.bf16.xpose.msra.mxu0 %v19211_v0  ;;  %v19220_v56 = vand.u32 4294901760, %v19219_v45  ;;  %v19221_v23 = vld [vmem:[#allocation6_spill] sm:$0xff]  ;;  %v19230_v45 = vld [vmem:[#allocation13_spill] sm:$0xff] }
 0x6a9   :  { %10849 = vmatpush1.bf16.xpose.msra.mxu1 %v10848_v55  ;;  %10594 = vmatprep.subr.bf16.mxu0 %v19212_v3  ;;  %v19217_v55 = vld [vmem:[#allocation16_spill] sm:$0xff] }
 0x6aa   :  { %10850 = vmatprep.subr.bf16.mxu1 %v18951_v57  ;;  %v7893_v35 = vcombine.low %v7877_v12, %v7878_v14  ;;  %v19222_v14 = vand.u32 4294901760, %v19221_v23  ;;  %v19231_v23 = vld [vmem:[#allocation15_spill] sm:$0xff] }
 0x6ac   :  { %8041 = vst [vmem:[%s17176_s3 + $0x20] sm:$0x77] %v7893_v35  ;;  %v10854_v12 = vpack.c.bf16 %v19222_v14, %v19220_v56  ;;  %v19224_v35 = vld [vmem:[#allocation97_spill] sm:$0xff]  ;;  %v19232_v56 = vand.u32 4294901760, %v19231_v23  ;;  %v19233_v14 = vld [vmem:[#allocation22_spill] sm:$0xff]  ;;  %v19241_v23 = vand.u32 4294901760, %v16550_v7 }
 0x6ad   :  { %v19247_v7 = vld [vmem:[#allocation79_spill] sm:$0xff] }
 0x6b0   :  { %10596 = vmatpush3.bf16.xpose.msra.mxu0 %v19217_v55 }
 0x6b1   :  { %10852 = vmatpush1.bf16.xpose.msra.mxu1 %v10851_v21  ;;  %10598 = vmatprep.subr.bf16.mxu0 %v19218_v22  ;;  %v10857_v21 = vpack.c.bf16 %v19228_v51, %v19226_v41  ;;  %v19235_v22 = vand.u32 4294901760, %v16499_v63  ;;  %v19237_v41 = vld [vmem:[#allocation28_spill] sm:$0xff]  ;;  %v19239_v51 = vld [vmem:[#allocation46_spill] sm:$0xff]  ;;  %v19243_v63 = vand.u32 4294901760, %v16560_v43  ;;  %v19250_v43 = vand.u32 4294901760, %v16610_v33 }
 0x6b2   :  { %10853 = vmatprep.subr.bf16.mxu1 %v18951_v57  ;;  %v19238_v44 = vand.u32 4294901760, %v19237_v41  ;;  %v19251_v41 = vand.u32 4294901760, %v16615_v2  ;;  %v19258_v33 = vand.u32 4294901760, %v16656_v27  ;;  %v19259_v2 = vand.u32 4294901760, %v16661_v37 }
 0x6b3   :  { %v19266_v27 = vand.u32 4294901760, %v16697_v31  ;;  %v19267_v37 = vand.u32 4294901760, %v16702_v34  ;;  %v19274_v31 = vand.u32 4294901760, %v16736_v47  ;;  %v19275_v34 = vand.u32 4294901760, %v16741_v58 }
 0x6b4   :  { %v19280_v47 = vand.u32 4294901760, %v16774_v39  ;;  %v19281_v58 = vand.u32 4294901760, %v16779_v52  ;;  %v19286_v39 = vand.u32 4294901760, %v16814_v38  ;;  %v19287_v52 = vand.u32 4294901760, %v16819_v1  ;;  %v19293_v38 = vld [vmem:[#allocation86_spill] sm:$0xff]  ;;  %v19294_v1 = vld [vmem:[#allocation91_spill] sm:$0xff] }
 0x6b8   :  { %10600 = vmatpush3.bf16.xpose.msra.mxu0 %v19223_v10 }
 0x6b9   :  { %10855 = vmatpush1.bf16.xpose.msra.mxu1 %v10854_v12  ;;  %10602 = vmatprep.subr.bf16.mxu0 %v19224_v35  ;;  %v19234_v12 = vand.u32 4294901760, %v19233_v14  ;;  %v19236_v35 = vand.u32 4294901760, %v16512_v32  ;;  %v19244_v32 = vand.u32 4294901760, %v16565_v59 }
 0x6ba   :  { %10856 = vmatprep.subr.bf16.mxu1 %v18951_v57 }
 0x6bb   :  { %v10860_v10 = vpack.c.bf16 %v19234_v12, %v19232_v56  ;;  %v10609_v36 = vpack.c.bf16 %v19236_v35, %v19235_v22  ;;  %v19242_v56 = vand.u32 4294901760, %v16555_v28  ;;  %v19245_v22 = vld [vmem:[#allocation76_spill] sm:$0xff]  ;;  %v19248_v12 = vand.u32 4294901760, %v19247_v7 }
 0x6bc   :  { %v19246_v35 = vand.u32 4294901760, %v19245_v22  ;;  %v19263_v22 = vld [vmem:[#allocation7_spill] sm:$0xff] }
 0x6bd   :  { %v10611_v14 = vpack.c.bf16 %v19242_v56, %v19241_v23 }
 0x6be   :  { %v10866_v28 = vpack.c.bf16 %v19248_v12, %v19246_v35  ;;  %v19264_v35 = vand.u32 4294901760, %v19263_v22  ;;  %v19310_v22 = vld [vmem:[#allocation61_spill] sm:$0xff] }
 0x6c0   :  { %10604 = vmatpush3.bf16.xpose.msra.mxu0 %v19229_v60 }
 0x6c1   :  { %10858 = vmatpush1.bf16.xpose.msra.mxu1 %v10857_v21  ;;  %10606 = vmatprep.subr.bf16.mxu0 %v19230_v45  ;;  %v19240_v21 = vand.u32 4294901760, %v19239_v51 }
 0x6c2   :  { %10859 = vmatprep.subr.bf16.mxu1 %v18951_v57 }
 0x6c3   :  { %v10863_v45 = vpack.c.bf16 %v19240_v21, %v19238_v44  ;;  %v19253_v44 = vld [vmem:[#allocation92_spill] sm:$0xff]  ;;  %v19255_v21 = vld [vmem:[#allocation95_spill] sm:$0xff] }
 0x6c4   :  { %v19254_v51 = vand.u32 4294901760, %v19253_v44  ;;  %v19256_v23 = vand.u32 4294901760, %v19255_v21  ;;  %v19278_v21 = vand.u32 4294901760, %v19095_v9  ;;  %v19284_v9 = vand.u32 4294901760, %v19097_v18 }
 0x6c5   :  { %v19290_v18 = vand.u32 4294901760, %v16852_v11  ;;  %v19300_v11 = vld [vmem:[#allocation99_spill] sm:$0xff] }
 0x6c6   :  { %v10869_v56 = vpack.c.bf16 %v19256_v23, %v19254_v51  ;;  %v19277_v51 = vand.u32 4294901760, %v19094_v30  ;;  %v19283_v30 = vand.u32 4294901760, %v19096_v24  ;;  %v19289_v24 = vand.u32 4294901760, %v16847_v13  ;;  %v19296_v13 = vld [vmem:[#allocation80_spill] sm:$0xff] }
 0x6c8   :  { %10608 = vmatpush3.bf16.xpose.msra.mxu0 %v16623_v6  ;;  %v10878_v23 = vpack.c.bf16 %v19278_v21, %v19277_v51 }
 0x6c9   :  { %10861 = vmatpush1.bf16.xpose.msra.mxu1 %v10860_v10  ;;  %10610 = vmatprep.subr.bf16.mxu0 %v10609_v36  ;;  %v10613_v10 = vpack.c.bf16 %v19244_v32, %v19243_v63  ;;  %v19249_v36 = vand.u32 4294901760, %v16605_v54  ;;  %v19257_v54 = vand.u32 4294901760, %v16651_v8  ;;  %v19261_v32 = vld [vmem:[#allocation105_spill] sm:$0xff]  ;;  %v19265_v8 = vand.u32 4294901760, %v16692_v17 }
 0x6ca   :  { %10862 = vmatprep.subr.bf16.mxu1 %v18951_v57  ;;  %v19273_v17 = vand.u32 4294901760, %v16731_v48  ;;  %v19279_v48 = vand.u32 4294901760, %v16769_v40  ;;  %v19285_v40 = vand.u32 4294901760, %v16809_v50 }
 0x6cb   :  { %v10615_v59 = vpack.c.bf16 %v19250_v43, %v19249_v36  ;;  %v10623_v12 = vpack.c.bf16 %v19266_v27, %v19265_v8  ;;  %v19269_v36 = vld [vmem:[#allocation8_spill] sm:$0xff] }
 0x6cc   :  { %v19270_v43 = vand.u32 4294901760, %v19269_v36  ;;  %v19313_v8 = vld [vmem:[#allocation68_spill] sm:$0xff] }
 0x6cf   :  { %9200 = vmatmul.mubr.f32.vlgmr.msra.gmra.mrb[10].mxu0 %v19001_v19  ;;  %v19252_v19 = vand.u32 4294901760, %v16634_v53  ;;  %v19260_v53 = vand.u32 4294901760, %v16674_v29  ;;  %v19268_v29 = vand.u32 4294901760, %v16715_v46  ;;  %v19276_v46 = vand.u32 4294901760, %v16752_v15 }
 0x6d0   :  { %10612 = vmatpush3.bf16.xpose.msra.mxu0 %v10611_v14  ;;  %9233 = vmatprep.mubr.f32.mxu0 %v13860_v26  ;;  %v10619_v14 = vpack.c.bf16 %v19258_v33, %v19257_v54  ;;  %v19282_v15 = vand.u32 4294901760, %v16793_v49  ;;  %v10881_v33 = vpack.c.bf16 %v19284_v9, %v19283_v30  ;;  %v19288_v49 = vand.u32 4294901760, %v16831_v25  ;;  %v19299_v25 = vld [vmem:[#allocation37_spill] sm:$0xff] }
 0x6d1   :  { %10864 = vmatpush1.bf16.xpose.msra.mxu1 %v10863_v45  ;;  %10614 = vmatprep.subr.bf16.mxu0 %v10613_v10  ;;  %v10617_v45 = vpack.c.bf16 %v19252_v19, %v19251_v41  ;;  %v10621_v63 = vpack.c.bf16 %v19260_v53, %v19259_v2  ;;  %v19262_v10 = vand.u32 4294901760, %v19261_v32  ;;  %v10629_v44 = vpack.c.bf16 %v19276_v46, %v19275_v34  ;;  %v19307_v32 = vld [vmem:[#allocation106_spill] sm:$0xff] }
 0x6d2   :  { %10865 = vmatprep.subr.bf16.mxu1 %v18951_v57  ;;  %v10633_v54 = vpack.c.bf16 %v19282_v15, %v19281_v58  ;;  %v10637_v2 = vpack.c.bf16 %v19288_v49, %v19287_v52  ;;  %v10639_v53 = vpack.c.bf16 %v19290_v18, %v19289_v24 }
 0x6d3   :  { %v10872_v7 = vpack.c.bf16 %v19264_v35, %v19262_v10  ;;  %v19308_v10 = vld [vmem:[#allocation90_spill] sm:$0xff] }
 0x6d4   :  { %v19312_v35 = vld [vmem:[#allocation98_spill] sm:$0xff] }
 0x6d8   :  { %10616 = vmatpush3.bf16.xpose.msra.mxu0 %v10615_v59  ;;  %v19271_v59 = vld [vmem:[#allocation10_spill] sm:$0xff] }
 0x6d9   :  { %10867 = vmatpush1.bf16.xpose.msra.mxu1 %v10866_v28  ;;  %10618 = vmatprep.subr.bf16.mxu0 %v10617_v45  ;;  %v10625_v28 = vpack.c.bf16 %v19268_v29, %v19267_v37  ;;  %v19272_v41 = vand.u32 4294901760, %v19271_v59  ;;  %v10627_v45 = vpack.c.bf16 %v19274_v31, %v19273_v17  ;;  %v19314_v29 = vld [vmem:[#allocation44_spill] sm:$0xff] }
 0x6da   :  { %10868 = vmatprep.subr.bf16.mxu1 %v18951_v57 }
 0x6db   :  { %v10875_v19 = vpack.c.bf16 %v19272_v41, %v19270_v43  ;;  %v19315_v43 = vld [vmem:[#allocation48_spill] sm:$0xff] }
 0x6e0   :  { %10620 = vmatpush3.bf16.xpose.msra.mxu0 %v10619_v14  ;;  %v10635_v14 = vpack.c.bf16 %v19286_v39, %v19285_v40 }
 0x6e1   :  { %10870 = vmatpush1.bf16.xpose.msra.mxu1 %v10869_v56  ;;  %10622 = vmatprep.subr.bf16.mxu0 %v10621_v63  ;;  %v10631_v56 = vpack.c.bf16 %v19280_v47, %v19279_v48  ;;  %v19291_v63 = vld [vmem:[#allocation74_spill] sm:$0xff] }
 0x6e2   :  { %10871 = vmatprep.subr.bf16.mxu1 %v18951_v57  ;;  %v19292_v50 = vand.u32 4294901760, %v19291_v63 }
 0x6e8   :  { %10624 = vmatpush3.bf16.xpose.msra.mxu0 %v10623_v12 }
 0x6e9   :  { %10873 = vmatpush1.bf16.xpose.msra.mxu1 %v10872_v7  ;;  %10626 = vmatprep.subr.bf16.mxu0 %v10625_v28 }
 0x6ea   :  { %10874 = vmatprep.subr.bf16.mxu1 %v18951_v57 }
 0x6f0   :  { %10628 = vmatpush3.bf16.xpose.msra.mxu0 %v10627_v45 }
 0x6f1   :  { %10876 = vmatpush1.bf16.xpose.msra.mxu1 %v10875_v19  ;;  %10630 = vmatprep.subr.bf16.mxu0 %v10629_v44 }
 0x6f2   :  { %10877 = vmatprep.subr.bf16.mxu1 %v18951_v57 }
 0x6f8   :  { %10632 = vmatpush3.bf16.xpose.msra.mxu0 %v10631_v56 }
 0x6f9   :  { %10879 = vmatpush1.bf16.xpose.msra.mxu1 %v10878_v23  ;;  %10634 = vmatprep.subr.bf16.mxu0 %v10633_v54 }
 0x6fa   :  { %10880 = vmatprep.subr.bf16.mxu1 %v18951_v57 }
 0x700   :  { %10636 = vmatpush3.bf16.xpose.msra.mxu0 %v10635_v14 }
 0x701   :  { %10882 = vmatpush1.bf16.xpose.msra.mxu1 %v10881_v33  ;;  %10638 = vmatprep.subr.bf16.mxu0 %v10637_v2 }
 0x702   :  { %7749 = vmatprep.subr.mxu1 %v18955_v62 }
 0x708   :  { %10640 = vmatpush3.bf16.xpose.msra.mxu0 %v10639_v53 }
 0x709   :  { %7753 = vmatpush1.xpose.msra.mxu1 %v19292_v50  ;;  %10642 = vmatprep.subr.bf16.mxu0 %v16236_v61  ;;  %v19295_v61 = vld [vmem:[#allocation66_spill] sm:$0xff] }
 0x70a   :  { %10883 = vmatprep.subr.bf16.mxu1 %v18951_v57 }
 0x70c   :  { %7762 = vmatmul.mubr.f32.vlgmr.msra.gmra.mrb[6].mxu1 %v13860_v26 }
 0x70d   :  { %10885 = vmatpush1.bf16.xpose.msra.mxu1 %v19293_v38  ;;  %7861 = vmatprep.mubr.f32.mxu1 %v18955_v62 }
 0x70e   :  { %10886 = vmatprep.subr.bf16.mxu1 %v18951_v57 }
 0x70f   :  { %9234 = vmatmul.mubr.f32.vlgmr.msra.gmra.mrb[10].mxu0 %v13860_v26 }
 0x710   :  { %10644 = vmatpush3.bf16.xpose.msra.mxu0 %v16275_v42  ;;  %9267 = vmatprep.mubr.f32.mxu0 %v13860_v26  ;;  %v19297_v42 = vld [vmem:[#allocation72_spill] sm:$0xff] }
 0x711   :  { %10646 = vmatprep.subr.bf16.mxu0 %v16281_v4  ;;  %v19298_v4 = vld [vmem:[#allocation93_spill] sm:$0xff] }
 0x715   :  { %10888 = vmatpush1.bf16.xpose.msra.mxu1 %v19294_v1 }
 0x716   :  { %10889 = vmatprep.subr.bf16.mxu1 %v18951_v57 }
 0x718   :  { %10648 = vmatpush3.bf16.xpose.msra.mxu0 %v19196_v16  ;;  %v19301_v16 = vld [vmem:[#allocation23_spill] sm:$0xff] }
 0x719   :  { %10650 = vmatprep.subr.bf16.mxu0 %v19197_v20  ;;  %v19302_v20 = vld [vmem:[#allocation97_spill] sm:$0xff] }
 0x71d   :  { %10891 = vmatpush1.bf16.xpose.msra.mxu1 %v19295_v61 }
 0x71e   :  { %10892 = vmatprep.subr.bf16.mxu1 %v18951_v57 }
 0x720   :  { %10652 = vmatpush3.bf16.xpose.msra.mxu0 %v19202_v5  ;;  %v19303_v5 = vld [vmem:[#allocation78_spill] sm:$0xff] }
 0x721   :  { %10654 = vmatprep.subr.bf16.mxu0 %v19296_v13 }
 0x725   :  { %10894 = vmatpush1.bf16.xpose.msra.mxu1 %v19297_v42 }
 0x726   :  { %10895 = vmatprep.subr.bf16.mxu1 %v18951_v57 }
 0x728   :  { %10656 = vmatpush3.bf16.xpose.msra.mxu0 %v19211_v0  ;;  %v19304_v0 = vld [vmem:[#allocation13_spill] sm:$0xff] }
 0x729   :  { %10658 = vmatprep.subr.bf16.mxu0 %v19212_v3  ;;  %v19305_v3 = vld [vmem:[#allocation89_spill] sm:$0xff] }
 0x72d   :  { %10897 = vmatpush1.bf16.xpose.msra.mxu1 %v19298_v4 }
 0x72e   :  { %10898 = vmatprep.subr.bf16.mxu1 %v18951_v57 }
 0x730   :  { %10660 = vmatpush3.bf16.xpose.msra.mxu0 %v19217_v55  ;;  %v19306_v55 = vld [vmem:[#allocation101_spill] sm:$0xff] }
 0x731   :  { %10662 = vmatprep.subr.bf16.mxu0 %v19299_v25 }
 0x735   :  { %10900 = vmatpush1.bf16.xpose.msra.mxu1 %v19300_v11 }
 0x736   :  { %10901 = vmatprep.subr.bf16.mxu1 %v18951_v57 }
 0x738   :  { %10664 = vmatpush3.bf16.xpose.msra.mxu0 %v19301_v16 }
 0x739   :  { %10666 = vmatprep.subr.bf16.mxu0 %v19302_v20 }
 0x73d   :  { %10903 = vmatpush1.bf16.xpose.msra.mxu1 %v19303_v5 }
 0x73e   :  { %10904 = vmatprep.subr.bf16.mxu1 %v18951_v57 }
 0x740   :  { %10668 = vmatpush3.bf16.xpose.msra.mxu0 %v19229_v60  ;;  %v19309_v60 = vld [vmem:[#allocation94_spill] sm:$0xff] }
 0x741   :  { %10670 = vmatprep.subr.bf16.mxu0 %v19304_v0 }
 0x745   :  { %10906 = vmatpush1.bf16.xpose.msra.mxu1 %v19305_v3 }
 0x746   :  { %10907 = vmatprep.subr.bf16.mxu1 %v18951_v57 }
 0x748   :  { %10672 = vmatpush3.bf16.xpose.msra.mxu0 %v16623_v6  ;;  %v19311_v6 = vld [vmem:[#allocation96_spill] sm:$0xff] }
 0x74d   :  { %10909 = vmatpush1.bf16.xpose.msra.mxu1 %v19306_v55 }
 0x74e   :  { %10910 = vmatprep.subr.bf16.mxu1 %v18951_v57 }
 0x74f   :  { %9268 = vmatmul.mubr.f32.vlgmr.msra.gmra.mrb[10].mxu0 %v13860_v26 }
 0x755   :  { %10912 = vmatpush1.bf16.xpose.msra.mxu1 %v19307_v32 }
 0x756   :  { %10913 = vmatprep.subr.bf16.mxu1 %v18951_v57 }
 0x75d   :  { %10915 = vmatpush1.bf16.xpose.msra.mxu1 %v19308_v10 }
 0x75e   :  { %10916 = vmatprep.subr.bf16.mxu1 %v18951_v57 }
 0x765   :  { %10918 = vmatpush1.bf16.xpose.msra.mxu1 %v19309_v60 }
 0x766   :  { %10919 = vmatprep.subr.bf16.mxu1 %v18951_v57 }
 0x76d   :  { %10921 = vmatpush1.bf16.xpose.msra.mxu1 %v19310_v22 }
 0x76e   :  { %10922 = vmatprep.subr.bf16.mxu1 %v18951_v57 }
 0x775   :  { %10924 = vmatpush1.bf16.xpose.msra.mxu1 %v19311_v6 }
 0x776   :  { %7852 = vmatprep.subr.mxu1 %v18955_v62 }
 0x77d   :  { %7854 = vmatpush1.xpose.msra.mxu1 %v19312_v35 }
 0x780   :  { %7863 = vmatmul.mubr.f32.vlgmr.msra.gmra.mrb[6].mxu1 %v13860_v26 }
 0x822   :  { %v7048_v7 = vpop.f32.mrb[10].mxu0 }
 0x823   :  { %v10941_v27 = vadd.f32 %v7048_v7, %v19313_v8  ;;  %v7050_v12 = vpop.f32.mrb[11].mxu0 }
 0x824   :  { %v10942_v37 = vadd.f32 %v7050_v12, %v19313_v8 }
 0x825   :  { %v7873_v28 = vmax.f32 %v19314_v29, %v10941_v27 }
 0x826   :  { %v7874_v36 = vmax.f32 %v19314_v29, %v10942_v37 }
 0x827   :  { %v7881_v57 = vmin.f32 %v19315_v43, %v7873_v28 }
 0x828   :  { %v7882_v59 = vmin.f32 %v19315_v43, %v7874_v36 }
 0x82a   :  { %v7895_v41 = vcombine.low %v7881_v57, %v7882_v59 }
 0x82c   :  { %8043 = vst [vmem:[%s17176_s3 + $0x30] sm:$0x77] %v7895_v41 }
 0x853   :  { %v7864_v26 = vpop.f32.mrb[6].mxu1 }
 0x854   :  { %v10943_v62 = vadd.f32 %v7864_v26, %v19313_v8  ;;  %v7866_v19 = vpop.f32.mrb[7].mxu1 }
 0x855   :  { %v10944_v17 = vadd.f32 %v7866_v19, %v19313_v8 }
 0x856   :  { %v7875_v31 = vmax.f32 %v19314_v29, %v10943_v62 }
 0x857   :  { %v7876_v45 = vmax.f32 %v19314_v29, %v10944_v17 }
 0x858   :  { %v7883_v34 = vmin.f32 %v19315_v43, %v7875_v31 }
 0x859   :  { %v7884_v46 = vmin.f32 %v19315_v43, %v7876_v45 }
 0x85b   :  { %v7896_v44 = vcombine.low %v7883_v34, %v7884_v46 }
 0x85d   :  { %8044 = vst.msk [vmem:[%s17176_s3 + $0x38] sm:$0x77] %vm15923_vm5, %v7896_v44 }
 0x85e   :  { %7910 = vsyncpa [#allocation3], 1 }

</bundles_post_ra>
